<compile_context>
chip_gen: v6e
topology: v6e:2x2x1
jax: 0.10.0
libtpu: 0.0.40
codegen_flags: <defaults>
</compile_context>

<pallas_src>
import functools

import jax
import jax.numpy as jnp
from jax.experimental import pallas as pl
from jax.experimental.pallas import tpu as pltpu


# ----------------------------------------------------------------------------
# Pallas kernels: tiled matmul + bias (+ optional fused residual-add / ReLU)
# ----------------------------------------------------------------------------
def _mm_kernel_noacc(*refs, relu, has_add):
    """Single-K-block variant: no scratch accumulator, no pl.when phases."""
    if has_add:
        a_ref, b_ref, bias_ref, add_ref, o_ref = refs
    else:
        a_ref, b_ref, bias_ref, o_ref = refs
        add_ref = None
    r = jnp.dot(a_ref[...], b_ref[...], preferred_element_type=jnp.float32)
    r = r + bias_ref[...]
    if has_add:
        r = r + add_ref[...].astype(jnp.float32)
    if relu:
        r = jnp.maximum(r, 0.0)
    o_ref[...] = r.astype(o_ref.dtype)


def _mm_kernel_acc(*refs, relu, has_add):
    """K-tiled fallback: f32 VMEM accumulator, init/finalize via pl.when."""
    if has_add:
        a_ref, b_ref, bias_ref, add_ref, o_ref, acc_ref = refs
    else:
        a_ref, b_ref, bias_ref, o_ref, acc_ref = refs
        add_ref = None

    @pl.when(pl.program_id(2) == 0)
    def _():
        acc_ref[...] = jnp.zeros_like(acc_ref)

    acc_ref[...] += jnp.dot(a_ref[...], b_ref[...],
                            preferred_element_type=jnp.float32)

    @pl.when(pl.program_id(2) == pl.num_programs(2) - 1)
    def _():
        r = acc_ref[...] + bias_ref[...]
        if has_add:
            r = r + add_ref[...].astype(jnp.float32)
        if relu:
            r = jnp.maximum(r, 0.0)
        o_ref[...] = r.astype(o_ref.dtype)


# ----------------------------------------------------------------------------
# Tiling helpers / per-generation configuration
# ----------------------------------------------------------------------------
def _round_up(x, m):
    return (x + m - 1) // m * m


def _pick_tile(dim, unit, cap):
    """Largest power-of-two multiple of `unit` (<= cap) dividing round_up(dim, unit)."""
    padded = _round_up(dim, unit)
    if padded <= cap:
        return padded
    t = unit
    while t * 2 <= cap:
        t *= 2
    while t > unit and padded % t != 0:
        t //= 2
    return t


def _pad_to(x, shape):
    pads = [(0, t - s) for s, t in zip(x.shape, shape)]
    if any(p[1] for p in pads):
        return jnp.pad(x, pads)
    return x


@functools.lru_cache(maxsize=None)
def _tpu_config():
    """Per-generation tile caps and VMEM limit (v5e/v6e: 128 MiB, v7x: 64 MiB/TC)."""
    kind = ""
    try:
        kind = jax.devices()[0].device_kind.lower()
    except Exception:
        pass
    vmem_cap = None
    try:
        vmem_cap = int(pltpu.get_tpu_info().vmem_capacity_bytes)
    except Exception:
        pass
    if (vmem_cap is not None and vmem_cap <= 64 * 1024 * 1024) or "v7" in kind:
        # v7x: only 64 MiB VMEM per TC -> conservative caps, 256-wide N tiles.
        return dict(tm_cap=512, tn_cap=256, tk_cap=512,
                    k_full_cap=2048, vmem_limit=44 * 1024 * 1024)
    if "v5" in kind:
        # v5e: 128 MiB physical but 4x128x128 MXU and no bf16 VPU -> modest tiles.
        return dict(tm_cap=512, tn_cap=512, tk_cap=512,
                    k_full_cap=2048, vmem_limit=32 * 1024 * 1024)
    # v6e (default): 128 MiB physical VMEM, 2x256x256 MXU -> large blocks.
    return dict(tm_cap=1024, tn_cap=512, tk_cap=512,
                k_full_cap=4096, vmem_limit=80 * 1024 * 1024)


# ----------------------------------------------------------------------------
# matmul + bias (+ addend + ReLU) wrapper
# ----------------------------------------------------------------------------
def matmul_bias(lhs, rhs, bias, addend=None, relu=False, out_dtype=jnp.bfloat16):
    """lhs:(M,Kp) @ rhs:(Kp,N) + bias:(N,) [+ addend:(M,N)] [ReLU] -> (M,N).

    lhs is expected to already be 128-aligned along K (conv2d folds the K pad
    into the im2col concat so no extra pad copy of the big activation matrix).
    """
    M, Kp = lhs.shape
    _, N = rhs.shape
    cfg = _tpu_config()
    has_add = addend is not None

    tn = _pick_tile(N, 128, cfg['tn_cap'])
    Np = _round_up(N, tn)

    # Single-K-block (resident rhs, no accumulator) path covers every layer here.
    use_full_k = Kp <= cfg['k_full_cap']
    kdim = Kp if use_full_k else min(Kp, cfg['tk_cap'])

    # Keep double-buffered lhs/rhs/out (+addend, +acc) comfortably inside the limit.
    def _vmem_bytes(tm_):
        b = 2 * (tm_ * kdim + kdim * tn + tm_ * tn) * 2            # bf16, 2 buffers
        if has_add:
            b += 2 * tm_ * tn * 2
        if not use_full_k:
            b += tm_ * tn * 4                                      # f32 accumulator
        return b

    tm_cap = cfg['tm_cap']
    while tm_cap > 16 and _vmem_bytes(tm_cap) > cfg['vmem_limit'] // 2:
        tm_cap //= 2
    tm = _pick_tile(M, 16, tm_cap)       # 16-row unit: bf16 sublane packing
    Mp = _round_up(M, tm)

    lhs_p = _pad_to(lhs.astype(jnp.bfloat16), (Mp, Kp))
    rhs_p = _pad_to(rhs.astype(jnp.bfloat16), (Kp, Np))
    bias_p = _pad_to(bias.astype(jnp.float32), (Np,)).reshape(1, Np)
    add_p = _pad_to(addend.astype(jnp.bfloat16), (Mp, Np)) if has_add else None

    out_bytes = Mp * Np * jnp.dtype(out_dtype).itemsize
    bytes_accessed = (Mp * Kp * 2 + Kp * Np * 2 + Np * 4 + out_bytes
                      + (Mp * Np * 2 if has_add else 0))
    cost = pl.CostEstimate(flops=2 * Mp * Kp * Np, transcendentals=0,
                           bytes_accessed=bytes_accessed)

    args = [lhs_p, rhs_p, bias_p]
    if has_add:
        args.append(add_p)

    if use_full_k:
        # Grid (N-tiles, M-tiles) with M innermost: rhs/bias block index is constant
        # across the inner loop, so the weights are DMA'd once per N tile (resident).
        in_specs = [
            pl.BlockSpec((tm, Kp), lambda j, i: (i, 0)),
            pl.BlockSpec((Kp, tn), lambda j, i: (0, j)),
            pl.BlockSpec((1, tn), lambda j, i: (0, j)),
        ]
        if has_add:
            in_specs.append(pl.BlockSpec((tm, tn), lambda j, i: (i, j)))
        kernel = functools.partial(_mm_kernel_noacc, relu=relu, has_add=has_add)
        out = pl.pallas_call(
            kernel,
            out_shape=jax.ShapeDtypeStruct((Mp, Np), out_dtype),
            grid_spec=pltpu.PrefetchScalarGridSpec(
                num_scalar_prefetch=0,
                grid=(Np // tn, Mp // tm),
                in_specs=in_specs,
                out_specs=pl.BlockSpec((tm, tn), lambda j, i: (i, j)),
            ),
            compiler_params=pltpu.CompilerParams(
                dimension_semantics=("parallel", "parallel"),
                vmem_limit_bytes=cfg['vmem_limit']),
            cost_estimate=cost,
        )(*args)
    else:
        tk = _pick_tile(Kp, 128, cfg['tk_cap'])   # Kp is 128-aligned; tk divides it
        in_specs = [
            pl.BlockSpec((tm, tk), lambda i, j, k: (i, k)),
            pl.BlockSpec((tk, tn), lambda i, j, k: (k, j)),
            pl.BlockSpec((1, tn), lambda i, j, k: (0, j)),
        ]
        if has_add:
            in_specs.append(pl.BlockSpec((tm, tn), lambda i, j, k: (i, j)))
        kernel = functools.partial(_mm_kernel_acc, relu=relu, has_add=has_add)
        out = pl.pallas_call(
            kernel,
            out_shape=jax.ShapeDtypeStruct((Mp, Np), out_dtype),
            grid_spec=pltpu.PrefetchScalarGridSpec(
                num_scalar_prefetch=0,
                grid=(Mp // tm, Np // tn, Kp // tk),
                in_specs=in_specs,
                out_specs=pl.BlockSpec((tm, tn), lambda i, j, k: (i, j)),
                scratch_shapes=[pltpu.VMEM((tm, tn), jnp.float32)],
            ),
            compiler_params=pltpu.CompilerParams(
                dimension_semantics=("parallel", "parallel", "arbitrary"),
                vmem_limit_bytes=cfg['vmem_limit']),
            cost_estimate=cost,
        )(*args)

    if Mp != M or Np != N:
        out = out[:M, :N]
    return out


# ----------------------------------------------------------------------------
# Conv2d = im2col (glue, bf16) + Pallas matmul kernel with fused epilogue
# ----------------------------------------------------------------------------
def conv2d(x, w, b, stride=1, padding=1, relu=False, addend=None,
           out_dtype=jnp.bfloat16):
    """x: NHWC, w: (kh,kw,Cin,Cout), b: (Cout,), addend: NHWC of output shape."""
    N, H, W, Cin = x.shape
    kh, kw, _, Cout = w.shape
    Ho = (H + 2 * padding - kh) // stride + 1
    Wo = (W + 2 * padding - kw) // stride + 1

    x = x.astype(jnp.bfloat16)
    if padding > 0:
        x = jnp.pad(x, ((0, 0), (padding, padding), (padding, padding), (0, 0)))

    K = kh * kw * Cin
    Kp = _round_up(K, 128)
    if kh == 1 and kw == 1 and stride == 1:
        lhs = x.reshape(N * Ho * Wo, Cin)
        lhs = _pad_to(lhs, (N * Ho * Wo, Kp))
    else:
        # TODO(synk): fuse im2col into the kernel via shifted-window reads to drop
        # the kh*kw activation expansion in HBM; kept in XLA glue for robustness.
        patches = [x[:, i:i + stride * Ho:stride, j:j + stride * Wo:stride, :]
                   for i in range(kh) for j in range(kw)]
        if Kp > K:  # fold K-padding into the concat (no extra pad copy of lhs)
            patches.append(jnp.zeros((N, Ho, Wo, Kp - K), jnp.bfloat16))
        lhs = jnp.concatenate(patches, axis=-1).reshape(N * Ho * Wo, Kp)

    rhs = _pad_to(w.reshape(K, Cout).astype(jnp.bfloat16), (Kp, Cout))
    add2d = None if addend is None else addend.reshape(N * Ho * Wo, Cout)

    out = matmul_bias(lhs, rhs, b, addend=add2d, relu=relu, out_dtype=out_dtype)
    return out.reshape(N, Ho, Wo, Cout)


def conv_apply(x, p, stride, padding, relu=False, addend=None,
               out_dtype=jnp.bfloat16):
    return conv2d(x, p['w'], p['b'], stride=stride, padding=padding,
                  relu=relu, addend=addend, out_dtype=out_dtype)


def _fold_conv_pair(pa, pb):
    # conv(y, Wa) + conv(y, Wb) == conv(y, Wa + Wb) when input/stride/padding match;
    # done at trace time on the f32 params (exact, halves the encoder conv work).
    return {'w': pa['w'] + pb['w'], 'b': pa['b'] + pb['b']}


# ----------------------------------------------------------------------------
# Block approximations (definitions not provided in the reference source)
# ----------------------------------------------------------------------------
def duck_block(x, p):
    # TODO(synk): original DuckBlock definition not provided; approximated as
    # Conv3x3(same) + (identity-init BatchNorm folded in) + ReLU.
    return conv_apply(x, p['conv'], 1, 1, relu=True)


def residual_block(x, p):
    # TODO(synk): original ResidualBlock definition not provided; approximated as
    # conv3x3+ReLU -> conv3x3 (+skip, 1x1 projection when channels change) -> ReLU.
    h = conv_apply(x, p['conv1'], 1, 1, relu=True)
    if 'proj' in p:
        skip = conv_apply(x, p['proj'], 1, 0, relu=False)
    else:
        skip = x
    # skip-add and final ReLU are fused into the second conv's matmul epilogue
    return conv_apply(h, p['conv2'], 1, 1, relu=True, addend=skip)


def upsample2(x):  # nearest-neighbor scale_factor=2, NHWC, broadcast+reshape
    N, H, W, C = x.shape
    y = jnp.broadcast_to(x[:, :, None, :, None, :], (N, H, 2, W, 2, C))
    return y.reshape(N, 2 * H, 2 * W, C)


# ----------------------------------------------------------------------------
# Parameter construction (deterministic)
# ----------------------------------------------------------------------------
def _conv_params(key, kh, kw, cin, cout):
    k1, k2 = jax.random.split(key)
    fan_in = kh * kw * cin
    w = jax.random.normal(k1, (kh, kw, cin, cout), jnp.float32) * (2.0 / fan_in) ** 0.5
    b = jax.random.normal(k2, (cout,), jnp.float32) * 0.01
    return {'w': w, 'b': b}


def init_ducknet_params(key, in_channel, C, num_classes, k=3):
    keys = iter(jax.random.split(key, 64))
    nk = lambda: next(keys)
    p = {}
    p['first_duck'] = {'conv': _conv_params(nk(), k, k, in_channel, C)}
    p['second_conv'] = _conv_params(nk(), k, k, C, 2 * C)
    p['second_conv_from_first'] = _conv_params(nk(), k, k, C, 2 * C)
    p['second_duck'] = {'conv': _conv_params(nk(), k, k, 2 * C, 2 * C)}
    p['third_conv'] = _conv_params(nk(), k, k, 2 * C, 4 * C)
    p['third_conv_from_second'] = _conv_params(nk(), k, k, 2 * C, 4 * C)
    p['third_duck'] = {'conv': _conv_params(nk(), k, k, 4 * C, 4 * C)}
    p['forth_conv'] = _conv_params(nk(), k, k, 4 * C, 8 * C)
    p['forth_conv_from_third'] = _conv_params(nk(), k, k, 4 * C, 8 * C)
    p['forth_duck'] = {'conv': _conv_params(nk(), k, k, 8 * C, 8 * C)}
    p['fifth_conv'] = _conv_params(nk(), k, k, 8 * C, 16 * C)
    p['fifth_conv_from_forth'] = _conv_params(nk(), k, k, 8 * C, 16 * C)
    p['fifth_duck'] = {'conv': _conv_params(nk(), k, k, 16 * C, 16 * C)}
    p['sixth_conv'] = _conv_params(nk(), k, k, 16 * C, 32 * C)
    p['sixth_conv_from_fifth'] = _conv_params(nk(), k, k, 16 * C, 32 * C)
    p['bottleneck1'] = {
        'conv1': _conv_params(nk(), k, k, 32 * C, 32 * C),
        'conv2': _conv_params(nk(), k, k, 32 * C, 32 * C),
    }
    p['bottleneck2'] = {
        'conv1': _conv_params(nk(), k, k, 32 * C, 16 * C),
        'conv2': _conv_params(nk(), k, k, 16 * C, 16 * C),
        'proj': _conv_params(nk(), 1, 1, 32 * C, 16 * C),
    }
    p['fifth_duck_from_sixth'] = {'conv': _conv_params(nk(), k, k, 16 * C, 8 * C)}
    p['forth_duck_from_fifth'] = {'conv': _conv_params(nk(), k, k, 8 * C, 4 * C)}
    p['third_duck_from_forth'] = {'conv': _conv_params(nk(), k, k, 4 * C, 2 * C)}
    p['second_duck_from_third'] = {'conv': _conv_params(nk(), k, k, 2 * C, C)}
    p['output_duck'] = {'conv': _conv_params(nk(), k, k, C, C)}
    p['output_conv'] = _conv_params(nk(), 1, 1, C, num_classes)
    p['num_classes'] = num_classes
    return p


# ----------------------------------------------------------------------------
# Full forward (mirrors DuckNet.forward); encoder conv pairs folded exactly
# ----------------------------------------------------------------------------
def ducknet_forward(x_nchw, p):
    x = jnp.transpose(x_nchw, (0, 2, 3, 1)).astype(jnp.bfloat16)  # NCHW -> NHWC

    first_duck = duck_block(x, p['first_duck'])

    # Each "X_conv + X_conv_from_prev(y)" pair shares the same input/stride/padding
    # and the first conv is only ever used as the addend -> fold into ONE conv.
    second_down = conv_apply(
        first_duck, _fold_conv_pair(p['second_conv'], p['second_conv_from_first']), 2, 1)
    second_duck = duck_block(second_down, p['second_duck'])

    third_down = conv_apply(
        second_duck, _fold_conv_pair(p['third_conv'], p['third_conv_from_second']), 2, 1)
    third_duck = duck_block(third_down, p['third_duck'])

    forth_down = conv_apply(
        third_duck, _fold_conv_pair(p['forth_conv'], p['forth_conv_from_third']), 2, 1)
    forth_duck = duck_block(forth_down, p['forth_duck'])

    fifth_down = conv_apply(
        forth_duck, _fold_conv_pair(p['fifth_conv'], p['fifth_conv_from_forth']), 2, 1)
    fifth_duck = duck_block(fifth_down, p['fifth_duck'])

    sixth_down = conv_apply(
        fifth_duck, _fold_conv_pair(p['sixth_conv'], p['sixth_conv_from_fifth']), 2, 1)

    bottleneck = residual_block(sixth_down, p['bottleneck1'])
    bottleneck = residual_block(bottleneck, p['bottleneck2'])
    bottleneck = upsample2(bottleneck)

    fifth_up = upsample2(duck_block(bottleneck + fifth_duck, p['fifth_duck_from_sixth']))
    forth_up = upsample2(duck_block(fifth_up + forth_duck, p['forth_duck_from_fifth']))
    third_up = upsample2(duck_block(forth_up + third_duck, p['third_duck_from_forth']))
    second_up = upsample2(duck_block(third_up + second_duck, p['second_duck_from_third']))

    addition = second_up + first_duck
    addition = duck_block(addition, p['output_duck'])
    addition = conv_apply(addition, p['output_conv'], 1, 0,
                          out_dtype=jnp.float32)  # 1x1, padding='same'
    addition = jax.nn.sigmoid(addition)
    if p['num_classes'] > 1:
        addition = jax.nn.softmax(addition, axis=-1)  # channel axis in NHWC

    return jnp.transpose(addition, (0, 3, 1, 2))  # back to NCHW


if __name__ == "__main__":
    key = jax.random.PRNGKey(0)
    kx, kp = jax.random.split(key)

    # Small shapes: batch=2, in_channel=3, spatial=32 (supports 5 stride-2
    # downsamples), base out_channel=4, num_classes=1.
    B, Cin, H, W = 2, 3, 32, 32
    C, num_classes = 4, 1

    x = jax.random.normal(kx, (B, Cin, H, W), jnp.float32)
    params = init_ducknet_params(kp, Cin, C, num_classes)

    fwd = jax.jit(lambda xx: ducknet_forward(xx, params))
    out = fwd(x)
    jax.block_until_ready(out)

    assert out.shape == (B, num_classes, H, W), out.shape
    assert jnp.all(jnp.isfinite(out)), "non-finite output"
    print("KERNEL_OK")
</pallas_src>

<mosaic_0001>
module attributes {stable_mosaic.version = 11 : i64} {
  func.func @_mm_kernel_noacc(%arg0: i32, %arg1: i32, %arg2: memref<1024x128xbf16, #tpu.memory_space<vmem>>, %arg3: memref<128x128xbf16, #tpu.memory_space<vmem>>, %arg4: memref<1x128xf32, #tpu.memory_space<vmem>>, %arg5: memref<1024x128xbf16, #tpu.memory_space<vmem>>) attributes {dimension_semantics = [#tpu.dimension_semantics<parallel>, #tpu.dimension_semantics<parallel>], iteration_bounds = array<i64: 1, 2>, scalar_prefetch = 0 : i64, scratch_operands = 0 : i64, tpu.core_type = #tpu.core_type<tc>, window_params = [{transform_indices = @transform_0, window_bounds = array<i64: 1024, 128>}, {transform_indices = @transform_1, window_bounds = array<i64: 128, 128>}, {transform_indices = @transform_2, window_bounds = array<i64: 1, 128>}, {transform_indices = @transform_3, window_bounds = array<i64: 1024, 128>}]} {
    %c0 = arith.constant 0 : index
    %c0_0 = arith.constant 0 : index
    %0 = vector.load %arg2[%c0, %c0_0] : memref<1024x128xbf16, #tpu.memory_space<vmem>>, vector<1024x128xbf16>
    %c0_1 = arith.constant 0 : index
    %c0_2 = arith.constant 0 : index
    %1 = vector.load %arg3[%c0_1, %c0_2] : memref<128x128xbf16, #tpu.memory_space<vmem>>, vector<128x128xbf16>
    %cst = arith.constant dense<0.000000e+00> : vector<1024x128xf32>
    %2 = tpu.matmul %0, %1, %cst {dimension_numbers = #tpu.dot_dimension_numbers<[1], [0], [0], [1], [0, 0, 1, 1], [], []>} : vector<1024x128xbf16>, vector<128x128xbf16>, vector<1024x128xf32> -> vector<1024x128xf32>
    %c0_3 = arith.constant 0 : index
    %c0_4 = arith.constant 0 : index
    %3 = vector.load %arg4[%c0_3, %c0_4] : memref<1x128xf32, #tpu.memory_space<vmem>>, vector<1x128xf32>
    %4 = vector.broadcast %3 : vector<1x128xf32> to vector<1024x128xf32>
    %5 = arith.addf %2, %4 : vector<1024x128xf32>
    %cst_5 = arith.constant 0.000000e+00 : f32
    %6 = vector.broadcast %cst_5 : f32 to vector<1024x128xf32>
    %7 = arith.maximumf %5, %6 : vector<1024x128xf32>
    %8 = arith.truncf %7 : vector<1024x128xf32> to vector<1024x128xbf16>
    %c0_6 = arith.constant 0 : index
    %c0_7 = arith.constant 0 : index
    %9 = vector.load %arg5[%c0_6, %c0_7] : memref<1024x128xbf16, #tpu.memory_space<vmem>>, vector<1024x128xbf16>
    tpu.vector_store %arg5[%c0_6, %c0_7], %8 {strides = array<i32>} : memref<1024x128xbf16, #tpu.memory_space<vmem>>, vector<1024x128xbf16>,
    return
  }
  func.func @transform_0(%arg0: i32, %arg1: i32) -> (i32, i32) {
    %c0_i32 = arith.constant 0 : i32
    %c0_i32_0 = arith.constant 0 : i32
    return %arg1, %c0_i32 : i32, i32
  }
  func.func @transform_1(%arg0: i32, %arg1: i32) -> (i32, i32) {
    %c0_i32 = arith.constant 0 : i32
    %c0_i32_0 = arith.constant 0 : i32
    return %c0_i32, %arg0 : i32, i32
  }
  func.func @transform_2(%arg0: i32, %arg1: i32) -> (i32, i32) {
    %c0_i32 = arith.constant 0 : i32
    %c0_i32_0 = arith.constant 0 : i32
    return %c0_i32, %arg0 : i32, i32
  }
  func.func @transform_3(%arg0: i32, %arg1: i32) -> (i32, i32) {
    %c0_i32 = arith.constant 0 : i32
    return %arg1, %arg0 : i32, i32
  }
}

module attributes {stable_mosaic.version = 11 : i64} {
  func.func @_mm_kernel_noacc(%arg0: i32, %arg1: i32, %arg2: memref<512x128xbf16, #tpu.memory_space<vmem>>, %arg3: memref<128x128xbf16, #tpu.memory_space<vmem>>, %arg4: memref<1x128xf32, #tpu.memory_space<vmem>>, %arg5: memref<512x128xbf16, #tpu.memory_space<vmem>>) attributes {dimension_semantics = [#tpu.dimension_semantics<parallel>, #tpu.dimension_semantics<parallel>], iteration_bounds = array<i64: 1, 1>, scalar_prefetch = 0 : i64, scratch_operands = 0 : i64, tpu.core_type = #tpu.core_type<tc>, window_params = [{transform_indices = @transform_0, window_bounds = array<i64: 512, 128>}, {transform_indices = @transform_1, window_bounds = array<i64: 128, 128>}, {transform_indices = @transform_2, window_bounds = array<i64: 1, 128>}, {transform_indices = @transform_3, window_bounds = array<i64: 512, 128>}]} {
    %c0 = arith.constant 0 : index
    %c0_0 = arith.constant 0 : index
    %0 = vector.load %arg2[%c0, %c0_0] : memref<512x128xbf16, #tpu.memory_space<vmem>>, vector<512x128xbf16>
    %c0_1 = arith.constant 0 : index
    %c0_2 = arith.constant 0 : index
    %1 = vector.load %arg3[%c0_1, %c0_2] : memref<128x128xbf16, #tpu.memory_space<vmem>>, vector<128x128xbf16>
    %cst = arith.constant dense<0.000000e+00> : vector<512x128xf32>
    %2 = tpu.matmul %0, %1, %cst {dimension_numbers = #tpu.dot_dimension_numbers<[1], [0], [0], [1], [0, 0, 1, 1], [], []>} : vector<512x128xbf16>, vector<128x128xbf16>, vector<512x128xf32> -> vector<512x128xf32>
    %c0_3 = arith.constant 0 : index
    %c0_4 = arith.constant 0 : index
    %3 = vector.load %arg4[%c0_3, %c0_4] : memref<1x128xf32, #tpu.memory_space<vmem>>, vector<1x128xf32>
    %4 = vector.broadcast %3 : vector<1x128xf32> to vector<512x128xf32>
    %5 = arith.addf %2, %4 : vector<512x128xf32>
    %6 = arith.truncf %5 : vector<512x128xf32> to vector<512x128xbf16>
    %c0_5 = arith.constant 0 : index
    %c0_6 = arith.constant 0 : index
    %7 = vector.load %arg5[%c0_5, %c0_6] : memref<512x128xbf16, #tpu.memory_space<vmem>>, vector<512x128xbf16>
    tpu.vector_store %arg5[%c0_5, %c0_6], %6 {strides = array<i32>} : memref<512x128xbf16, #tpu.memory_space<vmem>>, vector<512x128xbf16>,
    return
  }
  func.func @transform_0(%arg0: i32, %arg1: i32) -> (i32, i32) {
    %c0_i32 = arith.constant 0 : i32
    %c0_i32_0 = arith.constant 0 : i32
    return %arg1, %c0_i32 : i32, i32
  }
  func.func @transform_1(%arg0: i32, %arg1: i32) -> (i32, i32) {
    %c0_i32 = arith.constant 0 : i32
    %c0_i32_0 = arith.constant 0 : i32
    return %c0_i32, %arg0 : i32, i32
  }
  func.func @transform_2(%arg0: i32, %arg1: i32) -> (i32, i32) {
    %c0_i32 = arith.constant 0 : i32
    %c0_i32_0 = arith.constant 0 : i32
    return %c0_i32, %arg0 : i32, i32
  }
  func.func @transform_3(%arg0: i32, %arg1: i32) -> (i32, i32) {
    %c0_i32 = arith.constant 0 : i32
    return %arg1, %arg0 : i32, i32
  }
}

module attributes {stable_mosaic.version = 11 : i64} {
  func.func @_mm_kernel_noacc(%arg0: i32, %arg1: i32, %arg2: memref<512x128xbf16, #tpu.memory_space<vmem>>, %arg3: memref<128x128xbf16, #tpu.memory_space<vmem>>, %arg4: memref<1x128xf32, #tpu.memory_space<vmem>>, %arg5: memref<512x128xbf16, #tpu.memory_space<vmem>>) attributes {dimension_semantics = [#tpu.dimension_semantics<parallel>, #tpu.dimension_semantics<parallel>], iteration_bounds = array<i64: 1, 1>, scalar_prefetch = 0 : i64, scratch_operands = 0 : i64, tpu.core_type = #tpu.core_type<tc>, window_params = [{transform_indices = @transform_0, window_bounds = array<i64: 512, 128>}, {transform_indices = @transform_1, window_bounds = array<i64: 128, 128>}, {transform_indices = @transform_2, window_bounds = array<i64: 1, 128>}, {transform_indices = @transform_3, window_bounds = array<i64: 512, 128>}]} {
    %c0 = arith.constant 0 : index
    %c0_0 = arith.constant 0 : index
    %0 = vector.load %arg2[%c0, %c0_0] : memref<512x128xbf16, #tpu.memory_space<vmem>>, vector<512x128xbf16>
    %c0_1 = arith.constant 0 : index
    %c0_2 = arith.constant 0 : index
    %1 = vector.load %arg3[%c0_1, %c0_2] : memref<128x128xbf16, #tpu.memory_space<vmem>>, vector<128x128xbf16>
    %cst = arith.constant dense<0.000000e+00> : vector<512x128xf32>
    %2 = tpu.matmul %0, %1, %cst {dimension_numbers = #tpu.dot_dimension_numbers<[1], [0], [0], [1], [0, 0, 1, 1], [], []>} : vector<512x128xbf16>, vector<128x128xbf16>, vector<512x128xf32> -> vector<512x128xf32>
    %c0_3 = arith.constant 0 : index
    %c0_4 = arith.constant 0 : index
    %3 = vector.load %arg4[%c0_3, %c0_4] : memref<1x128xf32, #tpu.memory_space<vmem>>, vector<1x128xf32>
    %4 = vector.broadcast %3 : vector<1x128xf32> to vector<512x128xf32>
    %5 = arith.addf %2, %4 : vector<512x128xf32>
    %cst_5 = arith.constant 0.000000e+00 : f32
    %6 = vector.broadcast %cst_5 : f32 to vector<512x128xf32>
    %7 = arith.maximumf %5, %6 : vector<512x128xf32>
    %8 = arith.truncf %7 : vector<512x128xf32> to vector<512x128xbf16>
    %c0_6 = arith.constant 0 : index
    %c0_7 = arith.constant 0 : index
    %9 = vector.load %arg5[%c0_6, %c0_7] : memref<512x128xbf16, #tpu.memory_space<vmem>>, vector<512x128xbf16>
    tpu.vector_store %arg5[%c0_6, %c0_7], %8 {strides = array<i32>} : memref<512x128xbf16, #tpu.memory_space<vmem>>, vector<512x128xbf16>,
    return
  }
  func.func @transform_0(%arg0: i32, %arg1: i32) -> (i32, i32) {
    %c0_i32 = arith.constant 0 : i32
    %c0_i32_0 = arith.constant 0 : i32
    return %arg1, %c0_i32 : i32, i32
  }
  func.func @transform_1(%arg0: i32, %arg1: i32) -> (i32, i32) {
    %c0_i32 = arith.constant 0 : i32
    %c0_i32_0 = arith.constant 0 : i32
    return %c0_i32, %arg0 : i32, i32
  }
  func.func @transform_2(%arg0: i32, %arg1: i32) -> (i32, i32) {
    %c0_i32 = arith.constant 0 : i32
    %c0_i32_0 = arith.constant 0 : i32
    return %c0_i32, %arg0 : i32, i32
  }
  func.func @transform_3(%arg0: i32, %arg1: i32) -> (i32, i32) {
    %c0_i32 = arith.constant 0 : i32
    return %arg1, %arg0 : i32, i32
  }
}

module attributes {stable_mosaic.version = 11 : i64} {
  func.func @_mm_kernel_noacc(%arg0: i32, %arg1: i32, %arg2: memref<128x128xbf16, #tpu.memory_space<vmem>>, %arg3: memref<128x128xbf16, #tpu.memory_space<vmem>>, %arg4: memref<1x128xf32, #tpu.memory_space<vmem>>, %arg5: memref<128x128xbf16, #tpu.memory_space<vmem>>) attributes {dimension_semantics = [#tpu.dimension_semantics<parallel>, #tpu.dimension_semantics<parallel>], iteration_bounds = array<i64: 1, 1>, scalar_prefetch = 0 : i64, scratch_operands = 0 : i64, tpu.core_type = #tpu.core_type<tc>, window_params = [{transform_indices = @transform_0, window_bounds = array<i64: 128, 128>}, {transform_indices = @transform_1, window_bounds = array<i64: 128, 128>}, {transform_indices = @transform_2, window_bounds = array<i64: 1, 128>}, {transform_indices = @transform_3, window_bounds = array<i64: 128, 128>}]} {
    %c0 = arith.constant 0 : index
    %c0_0 = arith.constant 0 : index
    %0 = vector.load %arg2[%c0, %c0_0] : memref<128x128xbf16, #tpu.memory_space<vmem>>, vector<128x128xbf16>
    %c0_1 = arith.constant 0 : index
    %c0_2 = arith.constant 0 : index
    %1 = vector.load %arg3[%c0_1, %c0_2] : memref<128x128xbf16, #tpu.memory_space<vmem>>, vector<128x128xbf16>
    %cst = arith.constant dense<0.000000e+00> : vector<128x128xf32>
    %2 = tpu.matmul %0, %1, %cst {dimension_numbers = #tpu.dot_dimension_numbers<[1], [0], [0], [1], [0, 0, 1, 1], [], []>} : vector<128x128xbf16>, vector<128x128xbf16>, vector<128x128xf32> -> vector<128x128xf32>
    %c0_3 = arith.constant 0 : index
    %c0_4 = arith.constant 0 : index
    %3 = vector.load %arg4[%c0_3, %c0_4] : memref<1x128xf32, #tpu.memory_space<vmem>>, vector<1x128xf32>
    %4 = vector.broadcast %3 : vector<1x128xf32> to vector<128x128xf32>
    %5 = arith.addf %2, %4 : vector<128x128xf32>
    %6 = arith.truncf %5 : vector<128x128xf32> to vector<128x128xbf16>
    %c0_5 = arith.constant 0 : index
    %c0_6 = arith.constant 0 : index
    %7 = vector.load %arg5[%c0_5, %c0_6] : memref<128x128xbf16, #tpu.memory_space<vmem>>, vector<128x128xbf16>
    tpu.vector_store %arg5[%c0_5, %c0_6], %6 {strides = array<i32>} : memref<128x128xbf16, #tpu.memory_space<vmem>>, vector<128x128xbf16>,
    return
  }
  func.func @transform_0(%arg0: i32, %arg1: i32) -> (i32, i32) {
    %c0_i32 = arith.constant 0 : i32
    %c0_i32_0 = arith.constant 0 : i32
    return %arg1, %c0_i32 : i32, i32
  }
  func.func @transform_1(%arg0: i32, %arg1: i32) -> (i32, i32) {
    %c0_i32 = arith.constant 0 : i32
    %c0_i32_0 = arith.constant 0 : i32
    return %c0_i32, %arg0 : i32, i32
  }
  func.func @transform_2(%arg0: i32, %arg1: i32) -> (i32, i32) {
    %c0_i32 = arith.constant 0 : i32
    %c0_i32_0 = arith.constant 0 : i32
    return %c0_i32, %arg0 : i32, i32
  }
  func.func @transform_3(%arg0: i32, %arg1: i32) -> (i32, i32) {
    %c0_i32 = arith.constant 0 : i32
    return %arg1, %arg0 : i32, i32
  }
}

module attributes {stable_mosaic.version = 11 : i64} {
  func.func @_mm_kernel_noacc(%arg0: i32, %arg1: i32, %arg2: memref<128x256xbf16, #tpu.memory_space<vmem>>, %arg3: memref<256x128xbf16, #tpu.memory_space<vmem>>, %arg4: memref<1x128xf32, #tpu.memory_space<vmem>>, %arg5: memref<128x128xbf16, #tpu.memory_space<vmem>>) attributes {dimension_semantics = [#tpu.dimension_semantics<parallel>, #tpu.dimension_semantics<parallel>], iteration_bounds = array<i64: 1, 1>, scalar_prefetch = 0 : i64, scratch_operands = 0 : i64, tpu.core_type = #tpu.core_type<tc>, window_params = [{transform_indices = @transform_0, window_bounds = array<i64: 128, 256>}, {transform_indices = @transform_1, window_bounds = array<i64: 256, 128>}, {transform_indices = @transform_2, window_bounds = array<i64: 1, 128>}, {transform_indices = @transform_3, window_bounds = array<i64: 128, 128>}]} {
    %c0 = arith.constant 0 : index
    %c0_0 = arith.constant 0 : index
    %0 = vector.load %arg2[%c0, %c0_0] : memref<128x256xbf16, #tpu.memory_space<vmem>>, vector<128x256xbf16>
    %c0_1 = arith.constant 0 : index
    %c0_2 = arith.constant 0 : index
    %1 = vector.load %arg3[%c0_1, %c0_2] : memref<256x128xbf16, #tpu.memory_space<vmem>>, vector<256x128xbf16>
    %cst = arith.constant dense<0.000000e+00> : vector<128x128xf32>
    %2 = tpu.matmul %0, %1, %cst {dimension_numbers = #tpu.dot_dimension_numbers<[1], [0], [0], [1], [0, 0, 1, 1], [], []>} : vector<128x256xbf16>, vector<256x128xbf16>, vector<128x128xf32> -> vector<128x128xf32>
    %c0_3 = arith.constant 0 : index
    %c0_4 = arith.constant 0 : index
    %3 = vector.load %arg4[%c0_3, %c0_4] : memref<1x128xf32, #tpu.memory_space<vmem>>, vector<1x128xf32>
    %4 = vector.broadcast %3 : vector<1x128xf32> to vector<128x128xf32>
    %5 = arith.addf %2, %4 : vector<128x128xf32>
    %cst_5 = arith.constant 0.000000e+00 : f32
    %6 = vector.broadcast %cst_5 : f32 to vector<128x128xf32>
    %7 = arith.maximumf %5, %6 : vector<128x128xf32>
    %8 = arith.truncf %7 : vector<128x128xf32> to vector<128x128xbf16>
    %c0_6 = arith.constant 0 : index
    %c0_7 = arith.constant 0 : index
    %9 = vector.load %arg5[%c0_6, %c0_7] : memref<128x128xbf16, #tpu.memory_space<vmem>>, vector<128x128xbf16>
    tpu.vector_store %arg5[%c0_6, %c0_7], %8 {strides = array<i32>} : memref<128x128xbf16, #tpu.memory_space<vmem>>, vector<128x128xbf16>,
    return
  }
  func.func @transform_0(%arg0: i32, %arg1: i32) -> (i32, i32) {
    %c0_i32 = arith.constant 0 : i32
    %c0_i32_0 = arith.constant 0 : i32
    return %arg1, %c0_i32 : i32, i32
  }
  func.func @transform_1(%arg0: i32, %arg1: i32) -> (i32, i32) {
    %c0_i32 = arith.constant 0 : i32
    %c0_i32_0 = arith.constant 0 : i32
    return %c0_i32, %arg0 : i32, i32
  }
  func.func @transform_2(%arg0: i32, %arg1: i32) -> (i32, i32) {
    %c0_i32 = arith.constant 0 : i32
    %c0_i32_0 = arith.constant 0 : i32
    return %c0_i32, %arg0 : i32, i32
  }
  func.func @transform_3(%arg0: i32, %arg1: i32) -> (i32, i32) {
    %c0_i32 = arith.constant 0 : i32
    return %arg1, %arg0 : i32, i32
  }
}

module attributes {stable_mosaic.version = 11 : i64} {
  func.func @_mm_kernel_noacc(%arg0: i32, %arg1: i32, %arg2: memref<32x256xbf16, #tpu.memory_space<vmem>>, %arg3: memref<256x128xbf16, #tpu.memory_space<vmem>>, %arg4: memref<1x128xf32, #tpu.memory_space<vmem>>, %arg5: memref<32x128xbf16, #tpu.memory_space<vmem>>) attributes {dimension_semantics = [#tpu.dimension_semantics<parallel>, #tpu.dimension_semantics<parallel>], iteration_bounds = array<i64: 1, 1>, scalar_prefetch = 0 : i64, scratch_operands = 0 : i64, tpu.core_type = #tpu.core_type<tc>, window_params = [{transform_indices = @transform_0, window_bounds = array<i64: 32, 256>}, {transform_indices = @transform_1, window_bounds = array<i64: 256, 128>}, {transform_indices = @transform_2, window_bounds = array<i64: 1, 128>}, {transform_indices = @transform_3, window_bounds = array<i64: 32, 128>}]} {
    %c0 = arith.constant 0 : index
    %c0_0 = arith.constant 0 : index
    %0 = vector.load %arg2[%c0, %c0_0] : memref<32x256xbf16, #tpu.memory_space<vmem>>, vector<32x256xbf16>
    %c0_1 = arith.constant 0 : index
    %c0_2 = arith.constant 0 : index
    %1 = vector.load %arg3[%c0_1, %c0_2] : memref<256x128xbf16, #tpu.memory_space<vmem>>, vector<256x128xbf16>
    %cst = arith.constant dense<0.000000e+00> : vector<32x128xf32>
    %2 = tpu.matmul %0, %1, %cst {dimension_numbers = #tpu.dot_dimension_numbers<[1], [0], [0], [1], [0, 0, 1, 1], [], []>} : vector<32x256xbf16>, vector<256x128xbf16>, vector<32x128xf32> -> vector<32x128xf32>
    %c0_3 = arith.constant 0 : index
    %c0_4 = arith.constant 0 : index
    %3 = vector.load %arg4[%c0_3, %c0_4] : memref<1x128xf32, #tpu.memory_space<vmem>>, vector<1x128xf32>
    %4 = vector.broadcast %3 : vector<1x128xf32> to vector<32x128xf32>
    %5 = arith.addf %2, %4 : vector<32x128xf32>
    %6 = arith.truncf %5 : vector<32x128xf32> to vector<32x128xbf16>
    %c0_5 = arith.constant 0 : index
    %c0_6 = arith.constant 0 : index
    %7 = vector.load %arg5[%c0_5, %c0_6] : memref<32x128xbf16, #tpu.memory_space<vmem>>, vector<32x128xbf16>
    tpu.vector_store %arg5[%c0_5, %c0_6], %6 {strides = array<i32>} : memref<32x128xbf16, #tpu.memory_space<vmem>>, vector<32x128xbf16>,
    return
  }
  func.func @transform_0(%arg0: i32, %arg1: i32) -> (i32, i32) {
    %c0_i32 = arith.constant 0 : i32
    %c0_i32_0 = arith.constant 0 : i32
    return %arg1, %c0_i32 : i32, i32
  }
  func.func @transform_1(%arg0: i32, %arg1: i32) -> (i32, i32) {
    %c0_i32 = arith.constant 0 : i32
    %c0_i32_0 = arith.constant 0 : i32
    return %c0_i32, %arg0 : i32, i32
  }
  func.func @transform_2(%arg0: i32, %arg1: i32) -> (i32, i32) {
    %c0_i32 = arith.constant 0 : i32
    %c0_i32_0 = arith.constant 0 : i32
    return %c0_i32, %arg0 : i32, i32
  }
  func.func @transform_3(%arg0: i32, %arg1: i32) -> (i32, i32) {
    %c0_i32 = arith.constant 0 : i32
    return %arg1, %arg0 : i32, i32
  }
}

module attributes {stable_mosaic.version = 11 : i64} {
  func.func @_mm_kernel_noacc(%arg0: i32, %arg1: i32, %arg2: memref<32x384xbf16, #tpu.memory_space<vmem>>, %arg3: memref<384x128xbf16, #tpu.memory_space<vmem>>, %arg4: memref<1x128xf32, #tpu.memory_space<vmem>>, %arg5: memref<32x128xbf16, #tpu.memory_space<vmem>>) attributes {dimension_semantics = [#tpu.dimension_semantics<parallel>, #tpu.dimension_semantics<parallel>], iteration_bounds = array<i64: 1, 1>, scalar_prefetch = 0 : i64, scratch_operands = 0 : i64, tpu.core_type = #tpu.core_type<tc>, window_params = [{transform_indices = @transform_0, window_bounds = array<i64: 32, 384>}, {transform_indices = @transform_1, window_bounds = array<i64: 384, 128>}, {transform_indices = @transform_2, window_bounds = array<i64: 1, 128>}, {transform_indices = @transform_3, window_bounds = array<i64: 32, 128>}]} {
    %c0 = arith.constant 0 : index
    %c0_0 = arith.constant 0 : index
    %0 = vector.load %arg2[%c0, %c0_0] : memref<32x384xbf16, #tpu.memory_space<vmem>>, vector<32x384xbf16>
    %c0_1 = arith.constant 0 : index
    %c0_2 = arith.constant 0 : index
    %1 = vector.load %arg3[%c0_1, %c0_2] : memref<384x128xbf16, #tpu.memory_space<vmem>>, vector<384x128xbf16>
    %cst = arith.constant dense<0.000000e+00> : vector<32x128xf32>
    %2 = tpu.matmul %0, %1, %cst {dimension_numbers = #tpu.dot_dimension_numbers<[1], [0], [0], [1], [0, 0, 1, 1], [], []>} : vector<32x384xbf16>, vector<384x128xbf16>, vector<32x128xf32> -> vector<32x128xf32>
    %c0_3 = arith.constant 0 : index
    %c0_4 = arith.constant 0 : index
    %3 = vector.load %arg4[%c0_3, %c0_4] : memref<1x128xf32, #tpu.memory_space<vmem>>, vector<1x128xf32>
    %4 = vector.broadcast %3 : vector<1x128xf32> to vector<32x128xf32>
    %5 = arith.addf %2, %4 : vector<32x128xf32>
    %cst_5 = arith.constant 0.000000e+00 : f32
    %6 = vector.broadcast %cst_5 : f32 to vector<32x128xf32>
    %7 = arith.maximumf %5, %6 : vector<32x128xf32>
    %8 = arith.truncf %7 : vector<32x128xf32> to vector<32x128xbf16>
    %c0_6 = arith.constant 0 : index
    %c0_7 = arith.constant 0 : index
    %9 = vector.load %arg5[%c0_6, %c0_7] : memref<32x128xbf16, #tpu.memory_space<vmem>>, vector<32x128xbf16>
    tpu.vector_store %arg5[%c0_6, %c0_7], %8 {strides = array<i32>} : memref<32x128xbf16, #tpu.memory_space<vmem>>, vector<32x128xbf16>,
    return
  }
  func.func @transform_0(%arg0: i32, %arg1: i32) -> (i32, i32) {
    %c0_i32 = arith.constant 0 : i32
    %c0_i32_0 = arith.constant 0 : i32
    return %arg1, %c0_i32 : i32, i32
  }
  func.func @transform_1(%arg0: i32, %arg1: i32) -> (i32, i32) {
    %c0_i32 = arith.constant 0 : i32
    %c0_i32_0 = arith.constant 0 : i32
    return %c0_i32, %arg0 : i32, i32
  }
  func.func @transform_2(%arg0: i32, %arg1: i32) -> (i32, i32) {
    %c0_i32 = arith.constant 0 : i32
    %c0_i32_0 = arith.constant 0 : i32
    return %c0_i32, %arg0 : i32, i32
  }
  func.func @transform_3(%arg0: i32, %arg1: i32) -> (i32, i32) {
    %c0_i32 = arith.constant 0 : i32
    return %arg1, %arg0 : i32, i32
  }
}

module attributes {stable_mosaic.version = 11 : i64} {
  func.func @_mm_kernel_noacc(%arg0: i32, %arg1: i32, %arg2: memref<16x384xbf16, #tpu.memory_space<vmem>>, %arg3: memref<384x128xbf16, #tpu.memory_space<vmem>>, %arg4: memref<1x128xf32, #tpu.memory_space<vmem>>, %arg5: memref<16x128xbf16, #tpu.memory_space<vmem>>) attributes {dimension_semantics = [#tpu.dimension_semantics<parallel>, #tpu.dimension_semantics<parallel>], iteration_bounds = array<i64: 1, 1>, scalar_prefetch = 0 : i64, scratch_operands = 0 : i64, tpu.core_type = #tpu.core_type<tc>, window_params = [{transform_indices = @transform_0, window_bounds = array<i64: 16, 384>}, {transform_indices = @transform_1, window_bounds = array<i64: 384, 128>}, {transform_indices = @transform_2, window_bounds = array<i64: 1, 128>}, {transform_indices = @transform_3, window_bounds = array<i64: 16, 128>}]} {
    %c0 = arith.constant 0 : index
    %c0_0 = arith.constant 0 : index
    %0 = vector.load %arg2[%c0, %c0_0] : memref<16x384xbf16, #tpu.memory_space<vmem>>, vector<16x384xbf16>
    %c0_1 = arith.constant 0 : index
    %c0_2 = arith.constant 0 : index
    %1 = vector.load %arg3[%c0_1, %c0_2] : memref<384x128xbf16, #tpu.memory_space<vmem>>, vector<384x128xbf16>
    %cst = arith.constant dense<0.000000e+00> : vector<16x128xf32>
    %2 = tpu.matmul %0, %1, %cst {dimension_numbers = #tpu.dot_dimension_numbers<[1], [0], [0], [1], [0, 0, 1, 1], [], []>} : vector<16x384xbf16>, vector<384x128xbf16>, vector<16x128xf32> -> vector<16x128xf32>
    %c0_3 = arith.constant 0 : index
    %c0_4 = arith.constant 0 : index
    %3 = vector.load %arg4[%c0_3, %c0_4] : memref<1x128xf32, #tpu.memory_space<vmem>>, vector<1x128xf32>
    %4 = vector.broadcast %3 : vector<1x128xf32> to vector<16x128xf32>
    %5 = arith.addf %2, %4 : vector<16x128xf32>
    %6 = arith.truncf %5 : vector<16x128xf32> to vector<16x128xbf16>
    %c0_5 = arith.constant 0 : index
    %c0_6 = arith.constant 0 : index
    %7 = vector.load %arg5[%c0_5, %c0_6] : memref<16x128xbf16, #tpu.memory_space<vmem>>, vector<16x128xbf16>
    tpu.vector_store %arg5[%c0_5, %c0_6], %6 {strides = array<i32>} : memref<16x128xbf16, #tpu.memory_space<vmem>>, vector<16x128xbf16>,
    return
  }
  func.func @transform_0(%arg0: i32, %arg1: i32) -> (i32, i32) {
    %c0_i32 = arith.constant 0 : i32
    %c0_i32_0 = arith.constant 0 : i32
    return %arg1, %c0_i32 : i32, i32
  }
  func.func @transform_1(%arg0: i32, %arg1: i32) -> (i32, i32) {
    %c0_i32 = arith.constant 0 : i32
    %c0_i32_0 = arith.constant 0 : i32
    return %c0_i32, %arg0 : i32, i32
  }
  func.func @transform_2(%arg0: i32, %arg1: i32) -> (i32, i32) {
    %c0_i32 = arith.constant 0 : i32
    %c0_i32_0 = arith.constant 0 : i32
    return %c0_i32, %arg0 : i32, i32
  }
  func.func @transform_3(%arg0: i32, %arg1: i32) -> (i32, i32) {
    %c0_i32 = arith.constant 0 : i32
    return %arg1, %arg0 : i32, i32
  }
}

module attributes {stable_mosaic.version = 11 : i64} {
  func.func @_mm_kernel_noacc(%arg0: i32, %arg1: i32, %arg2: memref<16x640xbf16, #tpu.memory_space<vmem>>, %arg3: memref<640x128xbf16, #tpu.memory_space<vmem>>, %arg4: memref<1x128xf32, #tpu.memory_space<vmem>>, %arg5: memref<16x128xbf16, #tpu.memory_space<vmem>>) attributes {dimension_semantics = [#tpu.dimension_semantics<parallel>, #tpu.dimension_semantics<parallel>], iteration_bounds = array<i64: 1, 1>, scalar_prefetch = 0 : i64, scratch_operands = 0 : i64, tpu.core_type = #tpu.core_type<tc>, window_params = [{transform_indices = @transform_0, window_bounds = array<i64: 16, 640>}, {transform_indices = @transform_1, window_bounds = array<i64: 640, 128>}, {transform_indices = @transform_2, window_bounds = array<i64: 1, 128>}, {transform_indices = @transform_3, window_bounds = array<i64: 16, 128>}]} {
    %c0 = arith.constant 0 : index
    %c0_0 = arith.constant 0 : index
    %0 = vector.load %arg2[%c0, %c0_0] : memref<16x640xbf16, #tpu.memory_space<vmem>>, vector<16x640xbf16>
    %c0_1 = arith.constant 0 : index
    %c0_2 = arith.constant 0 : index
    %1 = vector.load %arg3[%c0_1, %c0_2] : memref<640x128xbf16, #tpu.memory_space<vmem>>, vector<640x128xbf16>
    %cst = arith.constant dense<0.000000e+00> : vector<16x128xf32>
    %2 = tpu.matmul %0, %1, %cst {dimension_numbers = #tpu.dot_dimension_numbers<[1], [0], [0], [1], [0, 0, 1, 1], [], []>} : vector<16x640xbf16>, vector<640x128xbf16>, vector<16x128xf32> -> vector<16x128xf32>
    %c0_3 = arith.constant 0 : index
    %c0_4 = arith.constant 0 : index
    %3 = vector.load %arg4[%c0_3, %c0_4] : memref<1x128xf32, #tpu.memory_space<vmem>>, vector<1x128xf32>
    %4 = vector.broadcast %3 : vector<1x128xf32> to vector<16x128xf32>
    %5 = arith.addf %2, %4 : vector<16x128xf32>
    %6 = arith.truncf %5 : vector<16x128xf32> to vector<16x128xbf16>
    %c0_5 = arith.constant 0 : index
    %c0_6 = arith.constant 0 : index
    %7 = vector.load %arg5[%c0_5, %c0_6] : memref<16x128xbf16, #tpu.memory_space<vmem>>, vector<16x128xbf16>
    tpu.vector_store %arg5[%c0_5, %c0_6], %6 {strides = array<i32>} : memref<16x128xbf16, #tpu.memory_space<vmem>>, vector<16x128xbf16>,
    return
  }
  func.func @transform_0(%arg0: i32, %arg1: i32) -> (i32, i32) {
    %c0_i32 = arith.constant 0 : i32
    %c0_i32_0 = arith.constant 0 : i32
    return %arg1, %c0_i32 : i32, i32
  }
  func.func @transform_1(%arg0: i32, %arg1: i32) -> (i32, i32) {
    %c0_i32 = arith.constant 0 : i32
    %c0_i32_0 = arith.constant 0 : i32
    return %c0_i32, %arg0 : i32, i32
  }
  func.func @transform_2(%arg0: i32, %arg1: i32) -> (i32, i32) {
    %c0_i32 = arith.constant 0 : i32
    %c0_i32_0 = arith.constant 0 : i32
    return %c0_i32, %arg0 : i32, i32
  }
  func.func @transform_3(%arg0: i32, %arg1: i32) -> (i32, i32) {
    %c0_i32 = arith.constant 0 : i32
    return %arg1, %arg0 : i32, i32
  }
}

module attributes {stable_mosaic.version = 11 : i64} {
  func.func @_mm_kernel_noacc(%arg0: i32, %arg1: i32, %arg2: memref<16x640xbf16, #tpu.memory_space<vmem>>, %arg3: memref<640x128xbf16, #tpu.memory_space<vmem>>, %arg4: memref<1x128xf32, #tpu.memory_space<vmem>>, %arg5: memref<16x128xbf16, #tpu.memory_space<vmem>>) attributes {dimension_semantics = [#tpu.dimension_semantics<parallel>, #tpu.dimension_semantics<parallel>], iteration_bounds = array<i64: 1, 1>, scalar_prefetch = 0 : i64, scratch_operands = 0 : i64, tpu.core_type = #tpu.core_type<tc>, window_params = [{transform_indices = @transform_0, window_bounds = array<i64: 16, 640>}, {transform_indices = @transform_1, window_bounds = array<i64: 640, 128>}, {transform_indices = @transform_2, window_bounds = array<i64: 1, 128>}, {transform_indices = @transform_3, window_bounds = array<i64: 16, 128>}]} {
    %c0 = arith.constant 0 : index
    %c0_0 = arith.constant 0 : index
    %0 = vector.load %arg2[%c0, %c0_0] : memref<16x640xbf16, #tpu.memory_space<vmem>>, vector<16x640xbf16>
    %c0_1 = arith.constant 0 : index
    %c0_2 = arith.constant 0 : index
    %1 = vector.load %arg3[%c0_1, %c0_2] : memref<640x128xbf16, #tpu.memory_space<vmem>>, vector<640x128xbf16>
    %cst = arith.constant dense<0.000000e+00> : vector<16x128xf32>
    %2 = tpu.matmul %0, %1, %cst {dimension_numbers = #tpu.dot_dimension_numbers<[1], [0], [0], [1], [0, 0, 1, 1], [], []>} : vector<16x640xbf16>, vector<640x128xbf16>, vector<16x128xf32> -> vector<16x128xf32>
    %c0_3 = arith.constant 0 : index
    %c0_4 = arith.constant 0 : index
    %3 = vector.load %arg4[%c0_3, %c0_4] : memref<1x128xf32, #tpu.memory_space<vmem>>, vector<1x128xf32>
    %4 = vector.broadcast %3 : vector<1x128xf32> to vector<16x128xf32>
    %5 = arith.addf %2, %4 : vector<16x128xf32>
    %cst_5 = arith.constant 0.000000e+00 : f32
    %6 = vector.broadcast %cst_5 : f32 to vector<16x128xf32>
    %7 = arith.maximumf %5, %6 : vector<16x128xf32>
    %8 = arith.truncf %7 : vector<16x128xf32> to vector<16x128xbf16>
    %c0_6 = arith.constant 0 : index
    %c0_7 = arith.constant 0 : index
    %9 = vector.load %arg5[%c0_6, %c0_7] : memref<16x128xbf16, #tpu.memory_space<vmem>>, vector<16x128xbf16>
    tpu.vector_store %arg5[%c0_6, %c0_7], %8 {strides = array<i32>} : memref<16x128xbf16, #tpu.memory_space<vmem>>, vector<16x128xbf16>,
    return
  }
  func.func @transform_0(%arg0: i32, %arg1: i32) -> (i32, i32) {
    %c0_i32 = arith.constant 0 : i32
    %c0_i32_0 = arith.constant 0 : i32
    return %arg1, %c0_i32 : i32, i32
  }
  func.func @transform_1(%arg0: i32, %arg1: i32) -> (i32, i32) {
    %c0_i32 = arith.constant 0 : i32
    %c0_i32_0 = arith.constant 0 : i32
    return %c0_i32, %arg0 : i32, i32
  }
  func.func @transform_2(%arg0: i32, %arg1: i32) -> (i32, i32) {
    %c0_i32 = arith.constant 0 : i32
    %c0_i32_0 = arith.constant 0 : i32
    return %c0_i32, %arg0 : i32, i32
  }
  func.func @transform_3(%arg0: i32, %arg1: i32) -> (i32, i32) {
    %c0_i32 = arith.constant 0 : i32
    return %arg1, %arg0 : i32, i32
  }
}

module attributes {stable_mosaic.version = 11 : i64} {
  func.func @_mm_kernel_noacc(%arg0: i32, %arg1: i32, %arg2: memref<16x128xbf16, #tpu.memory_space<vmem>>, %arg3: memref<128x128xbf16, #tpu.memory_space<vmem>>, %arg4: memref<1x128xf32, #tpu.memory_space<vmem>>, %arg5: memref<16x128xbf16, #tpu.memory_space<vmem>>) attributes {dimension_semantics = [#tpu.dimension_semantics<parallel>, #tpu.dimension_semantics<parallel>], iteration_bounds = array<i64: 1, 1>, scalar_prefetch = 0 : i64, scratch_operands = 0 : i64, tpu.core_type = #tpu.core_type<tc>, window_params = [{transform_indices = @transform_0, window_bounds = array<i64: 16, 128>}, {transform_indices = @transform_1, window_bounds = array<i64: 128, 128>}, {transform_indices = @transform_2, window_bounds = array<i64: 1, 128>}, {transform_indices = @transform_3, window_bounds = array<i64: 16, 128>}]} {
    %c0 = arith.constant 0 : index
    %c0_0 = arith.constant 0 : index
    %0 = vector.load %arg2[%c0, %c0_0] : memref<16x128xbf16, #tpu.memory_space<vmem>>, vector<16x128xbf16>
    %c0_1 = arith.constant 0 : index
    %c0_2 = arith.constant 0 : index
    %1 = vector.load %arg3[%c0_1, %c0_2] : memref<128x128xbf16, #tpu.memory_space<vmem>>, vector<128x128xbf16>
    %cst = arith.constant dense<0.000000e+00> : vector<16x128xf32>
    %2 = tpu.matmul %0, %1, %cst {dimension_numbers = #tpu.dot_dimension_numbers<[1], [0], [0], [1], [0, 0, 1, 1], [], []>} : vector<16x128xbf16>, vector<128x128xbf16>, vector<16x128xf32> -> vector<16x128xf32>
    %c0_3 = arith.constant 0 : index
    %c0_4 = arith.constant 0 : index
    %3 = vector.load %arg4[%c0_3, %c0_4] : memref<1x128xf32, #tpu.memory_space<vmem>>, vector<1x128xf32>
    %4 = vector.broadcast %3 : vector<1x128xf32> to vector<16x128xf32>
    %5 = arith.addf %2, %4 : vector<16x128xf32>
    %6 = arith.truncf %5 : vector<16x128xf32> to vector<16x128xbf16>
    %c0_5 = arith.constant 0 : index
    %c0_6 = arith.constant 0 : index
    %7 = vector.load %arg5[%c0_5, %c0_6] : memref<16x128xbf16, #tpu.memory_space<vmem>>, vector<16x128xbf16>
    tpu.vector_store %arg5[%c0_5, %c0_6], %6 {strides = array<i32>} : memref<16x128xbf16, #tpu.memory_space<vmem>>, vector<16x128xbf16>,
    return
  }
  func.func @transform_0(%arg0: i32, %arg1: i32) -> (i32, i32) {
    %c0_i32 = arith.constant 0 : i32
    %c0_i32_0 = arith.constant 0 : i32
    return %arg1, %c0_i32 : i32, i32
  }
  func.func @transform_1(%arg0: i32, %arg1: i32) -> (i32, i32) {
    %c0_i32 = arith.constant 0 : i32
    %c0_i32_0 = arith.constant 0 : i32
    return %c0_i32, %arg0 : i32, i32
  }
  func.func @transform_2(%arg0: i32, %arg1: i32) -> (i32, i32) {
    %c0_i32 = arith.constant 0 : i32
    %c0_i32_0 = arith.constant 0 : i32
    return %c0_i32, %arg0 : i32, i32
  }
  func.func @transform_3(%arg0: i32, %arg1: i32) -> (i32, i32) {
    %c0_i32 = arith.constant 0 : i32
    return %arg1, %arg0 : i32, i32
  }
}

module attributes {stable_mosaic.version = 11 : i64} {
  func.func @_mm_kernel_noacc(%arg0: i32, %arg1: i32, %arg2: memref<16x1152xbf16, #tpu.memory_space<vmem>>, %arg3: memref<1152x128xbf16, #tpu.memory_space<vmem>>, %arg4: memref<1x128xf32, #tpu.memory_space<vmem>>, %arg5: memref<16x128xbf16, #tpu.memory_space<vmem>>, %arg6: memref<16x128xbf16, #tpu.memory_space<vmem>>) attributes {dimension_semantics = [#tpu.dimension_semantics<parallel>, #tpu.dimension_semantics<parallel>], iteration_bounds = array<i64: 1, 1>, scalar_prefetch = 0 : i64, scratch_operands = 0 : i64, tpu.core_type = #tpu.core_type<tc>, window_params = [{transform_indices = @transform_0, window_bounds = array<i64: 16, 1152>}, {transform_indices = @transform_1, window_bounds = array<i64: 1152, 128>}, {transform_indices = @transform_2, window_bounds = array<i64: 1, 128>}, {transform_indices = @transform_3, window_bounds = array<i64: 16, 128>}, {transform_indices = @transform_4, window_bounds = array<i64: 16, 128>}]} {
    %c0 = arith.constant 0 : index
    %c0_0 = arith.constant 0 : index
    %0 = vector.load %arg2[%c0, %c0_0] : memref<16x1152xbf16, #tpu.memory_space<vmem>>, vector<16x1152xbf16>
    %c0_1 = arith.constant 0 : index
    %c0_2 = arith.constant 0 : index
    %1 = vector.load %arg3[%c0_1, %c0_2] : memref<1152x128xbf16, #tpu.memory_space<vmem>>, vector<1152x128xbf16>
    %cst = arith.constant dense<0.000000e+00> : vector<16x128xf32>
    %2 = tpu.matmul %0, %1, %cst {dimension_numbers = #tpu.dot_dimension_numbers<[1], [0], [0], [1], [0, 0, 1, 1], [], []>} : vector<16x1152xbf16>, vector<1152x128xbf16>, vector<16x128xf32> -> vector<16x128xf32>
    %c0_3 = arith.constant 0 : index
    %c0_4 = arith.constant 0 : index
    %3 = vector.load %arg4[%c0_3, %c0_4] : memref<1x128xf32, #tpu.memory_space<vmem>>, vector<1x128xf32>
    %4 = vector.broadcast %3 : vector<1x128xf32> to vector<16x128xf32>
    %5 = arith.addf %2, %4 : vector<16x128xf32>
    %c0_5 = arith.constant 0 : index
    %c0_6 = arith.constant 0 : index
    %6 = vector.load %arg5[%c0_5, %c0_6] : memref<16x128xbf16, #tpu.memory_space<vmem>>, vector<16x128xbf16>
    %7 = arith.extf %6 : vector<16x128xbf16> to vector<16x128xf32>
    %8 = arith.addf %5, %7 : vector<16x128xf32>
    %cst_7 = arith.constant 0.000000e+00 : f32
    %9 = vector.broadcast %cst_7 : f32 to vector<16x128xf32>
    %10 = arith.maximumf %8, %9 : vector<16x128xf32>
    %11 = arith.truncf %10 : vector<16x128xf32> to vector<16x128xbf16>
    %c0_8 = arith.constant 0 : index
    %c0_9 = arith.constant 0 : index
    %12 = vector.load %arg6[%c0_8, %c0_9] : memref<16x128xbf16, #tpu.memory_space<vmem>>, vector<16x128xbf16>
    tpu.vector_store %arg6[%c0_8, %c0_9], %11 {strides = array<i32>} : memref<16x128xbf16, #tpu.memory_space<vmem>>, vector<16x128xbf16>,
    return
  }
  func.func @transform_0(%arg0: i32, %arg1: i32) -> (i32, i32) {
    %c0_i32 = arith.constant 0 : i32
    %c0_i32_0 = arith.constant 0 : i32
    return %arg1, %c0_i32 : i32, i32
  }
  func.func @transform_1(%arg0: i32, %arg1: i32) -> (i32, i32) {
    %c0_i32 = arith.constant 0 : i32
    %c0_i32_0 = arith.constant 0 : i32
    return %c0_i32, %arg0 : i32, i32
  }
  func.func @transform_2(%arg0: i32, %arg1: i32) -> (i32, i32) {
    %c0_i32 = arith.constant 0 : i32
    %c0_i32_0 = arith.constant 0 : i32
    return %c0_i32, %arg0 : i32, i32
  }
  func.func @transform_3(%arg0: i32, %arg1: i32) -> (i32, i32) {
    %c0_i32 = arith.constant 0 : i32
    return %arg1, %arg0 : i32, i32
  }
  func.func @transform_4(%arg0: i32, %arg1: i32) -> (i32, i32) {
    %c0_i32 = arith.constant 0 : i32
    return %arg1, %arg0 : i32, i32
  }
}

module attributes {stable_mosaic.version = 11 : i64} {
  func.func @_mm_kernel_noacc(%arg0: i32, %arg1: i32, %arg2: memref<16x640xbf16, #tpu.memory_space<vmem>>, %arg3: memref<640x128xbf16, #tpu.memory_space<vmem>>, %arg4: memref<1x128xf32, #tpu.memory_space<vmem>>, %arg5: memref<16x128xbf16, #tpu.memory_space<vmem>>, %arg6: memref<16x128xbf16, #tpu.memory_space<vmem>>) attributes {dimension_semantics = [#tpu.dimension_semantics<parallel>, #tpu.dimension_semantics<parallel>], iteration_bounds = array<i64: 1, 1>, scalar_prefetch = 0 : i64, scratch_operands = 0 : i64, tpu.core_type = #tpu.core_type<tc>, window_params = [{transform_indices = @transform_0, window_bounds = array<i64: 16, 640>}, {transform_indices = @transform_1, window_bounds = array<i64: 640, 128>}, {transform_indices = @transform_2, window_bounds = array<i64: 1, 128>}, {transform_indices = @transform_3, window_bounds = array<i64: 16, 128>}, {transform_indices = @transform_4, window_bounds = array<i64: 16, 128>}]} {
    %c0 = arith.constant 0 : index
    %c0_0 = arith.constant 0 : index
    %0 = vector.load %arg2[%c0, %c0_0] : memref<16x640xbf16, #tpu.memory_space<vmem>>, vector<16x640xbf16>
    %c0_1 = arith.constant 0 : index
    %c0_2 = arith.constant 0 : index
    %1 = vector.load %arg3[%c0_1, %c0_2] : memref<640x128xbf16, #tpu.memory_space<vmem>>, vector<640x128xbf16>
    %cst = arith.constant dense<0.000000e+00> : vector<16x128xf32>
    %2 = tpu.matmul %0, %1, %cst {dimension_numbers = #tpu.dot_dimension_numbers<[1], [0], [0], [1], [0, 0, 1, 1], [], []>} : vector<16x640xbf16>, vector<640x128xbf16>, vector<16x128xf32> -> vector<16x128xf32>
    %c0_3 = arith.constant 0 : index
    %c0_4 = arith.constant 0 : index
    %3 = vector.load %arg4[%c0_3, %c0_4] : memref<1x128xf32, #tpu.memory_space<vmem>>, vector<1x128xf32>
    %4 = vector.broadcast %3 : vector<1x128xf32> to vector<16x128xf32>
    %5 = arith.addf %2, %4 : vector<16x128xf32>
    %c0_5 = arith.constant 0 : index
    %c0_6 = arith.constant 0 : index
    %6 = vector.load %arg5[%c0_5, %c0_6] : memref<16x128xbf16, #tpu.memory_space<vmem>>, vector<16x128xbf16>
    %7 = arith.extf %6 : vector<16x128xbf16> to vector<16x128xf32>
    %8 = arith.addf %5, %7 : vector<16x128xf32>
    %cst_7 = arith.constant 0.000000e+00 : f32
    %9 = vector.broadcast %cst_7 : f32 to vector<16x128xf32>
    %10 = arith.maximumf %8, %9 : vector<16x128xf32>
    %11 = arith.truncf %10 : vector<16x128xf32> to vector<16x128xbf16>
    %c0_8 = arith.constant 0 : index
    %c0_9 = arith.constant 0 : index
    %12 = vector.load %arg6[%c0_8, %c0_9] : memref<16x128xbf16, #tpu.memory_space<vmem>>, vector<16x128xbf16>
    tpu.vector_store %arg6[%c0_8, %c0_9], %11 {strides = array<i32>} : memref<16x128xbf16, #tpu.memory_space<vmem>>, vector<16x128xbf16>,
    return
  }
  func.func @transform_0(%arg0: i32, %arg1: i32) -> (i32, i32) {
    %c0_i32 = arith.constant 0 : i32
    %c0_i32_0 = arith.constant 0 : i32
    return %arg1, %c0_i32 : i32, i32
  }
  func.func @transform_1(%arg0: i32, %arg1: i32) -> (i32, i32) {
    %c0_i32 = arith.constant 0 : i32
    %c0_i32_0 = arith.constant 0 : i32
    return %c0_i32, %arg0 : i32, i32
  }
  func.func @transform_2(%arg0: i32, %arg1: i32) -> (i32, i32) {
    %c0_i32 = arith.constant 0 : i32
    %c0_i32_0 = arith.constant 0 : i32
    return %c0_i32, %arg0 : i32, i32
  }
  func.func @transform_3(%arg0: i32, %arg1: i32) -> (i32, i32) {
    %c0_i32 = arith.constant 0 : i32
    return %arg1, %arg0 : i32, i32
  }
  func.func @transform_4(%arg0: i32, %arg1: i32) -> (i32, i32) {
    %c0_i32 = arith.constant 0 : i32
    return %arg1, %arg0 : i32, i32
  }
}

module attributes {stable_mosaic.version = 11 : i64} {
  func.func @_mm_kernel_noacc(%arg0: i32, %arg1: i32, %arg2: memref<16x1152xbf16, #tpu.memory_space<vmem>>, %arg3: memref<1152x128xbf16, #tpu.memory_space<vmem>>, %arg4: memref<1x128xf32, #tpu.memory_space<vmem>>, %arg5: memref<16x128xbf16, #tpu.memory_space<vmem>>) attributes {dimension_semantics = [#tpu.dimension_semantics<parallel>, #tpu.dimension_semantics<parallel>], iteration_bounds = array<i64: 1, 1>, scalar_prefetch = 0 : i64, scratch_operands = 0 : i64, tpu.core_type = #tpu.core_type<tc>, window_params = [{transform_indices = @transform_0, window_bounds = array<i64: 16, 1152>}, {transform_indices = @transform_1, window_bounds = array<i64: 1152, 128>}, {transform_indices = @transform_2, window_bounds = array<i64: 1, 128>}, {transform_indices = @transform_3, window_bounds = array<i64: 16, 128>}]} {
    %c0 = arith.constant 0 : index
    %c0_0 = arith.constant 0 : index
    %0 = vector.load %arg2[%c0, %c0_0] : memref<16x1152xbf16, #tpu.memory_space<vmem>>, vector<16x1152xbf16>
    %c0_1 = arith.constant 0 : index
    %c0_2 = arith.constant 0 : index
    %1 = vector.load %arg3[%c0_1, %c0_2] : memref<1152x128xbf16, #tpu.memory_space<vmem>>, vector<1152x128xbf16>
    %cst = arith.constant dense<0.000000e+00> : vector<16x128xf32>
    %2 = tpu.matmul %0, %1, %cst {dimension_numbers = #tpu.dot_dimension_numbers<[1], [0], [0], [1], [0, 0, 1, 1], [], []>} : vector<16x1152xbf16>, vector<1152x128xbf16>, vector<16x128xf32> -> vector<16x128xf32>
    %c0_3 = arith.constant 0 : index
    %c0_4 = arith.constant 0 : index
    %3 = vector.load %arg4[%c0_3, %c0_4] : memref<1x128xf32, #tpu.memory_space<vmem>>, vector<1x128xf32>
    %4 = vector.broadcast %3 : vector<1x128xf32> to vector<16x128xf32>
    %5 = arith.addf %2, %4 : vector<16x128xf32>
    %cst_5 = arith.constant 0.000000e+00 : f32
    %6 = vector.broadcast %cst_5 : f32 to vector<16x128xf32>
    %7 = arith.maximumf %5, %6 : vector<16x128xf32>
    %8 = arith.truncf %7 : vector<16x128xf32> to vector<16x128xbf16>
    %c0_6 = arith.constant 0 : index
    %c0_7 = arith.constant 0 : index
    %9 = vector.load %arg5[%c0_6, %c0_7] : memref<16x128xbf16, #tpu.memory_space<vmem>>, vector<16x128xbf16>
    tpu.vector_store %arg5[%c0_6, %c0_7], %8 {strides = array<i32>} : memref<16x128xbf16, #tpu.memory_space<vmem>>, vector<16x128xbf16>,
    return
  }
  func.func @transform_0(%arg0: i32, %arg1: i32) -> (i32, i32) {
    %c0_i32 = arith.constant 0 : i32
    %c0_i32_0 = arith.constant 0 : i32
    return %arg1, %c0_i32 : i32, i32
  }
  func.func @transform_1(%arg0: i32, %arg1: i32) -> (i32, i32) {
    %c0_i32 = arith.constant 0 : i32
    %c0_i32_0 = arith.constant 0 : i32
    return %c0_i32, %arg0 : i32, i32
  }
  func.func @transform_2(%arg0: i32, %arg1: i32) -> (i32, i32) {
    %c0_i32 = arith.constant 0 : i32
    %c0_i32_0 = arith.constant 0 : i32
    return %c0_i32, %arg0 : i32, i32
  }
  func.func @transform_3(%arg0: i32, %arg1: i32) -> (i32, i32) {
    %c0_i32 = arith.constant 0 : i32
    return %arg1, %arg0 : i32, i32
  }
}

module attributes {stable_mosaic.version = 11 : i64} {
  func.func @_mm_kernel_noacc(%arg0: i32, %arg1: i32, %arg2: memref<1024x128xbf16, #tpu.memory_space<vmem>>, %arg3: memref<128x128xbf16, #tpu.memory_space<vmem>>, %arg4: memref<1x128xf32, #tpu.memory_space<vmem>>, %arg5: memref<1024x128xf32, #tpu.memory_space<vmem>>) attributes {dimension_semantics = [#tpu.dimension_semantics<parallel>, #tpu.dimension_semantics<parallel>], iteration_bounds = array<i64: 1, 2>, scalar_prefetch = 0 : i64, scratch_operands = 0 : i64, tpu.core_type = #tpu.core_type<tc>, window_params = [{transform_indices = @transform_0, window_bounds = array<i64: 1024, 128>}, {transform_indices = @transform_1, window_bounds = array<i64: 128, 128>}, {transform_indices = @transform_2, window_bounds = array<i64: 1, 128>}, {transform_indices = @transform_3, window_bounds = array<i64: 1024, 128>}]} {
    %c0 = arith.constant 0 : index
    %c0_0 = arith.constant 0 : index
    %0 = vector.load %arg2[%c0, %c0_0] : memref<1024x128xbf16, #tpu.memory_space<vmem>>, vector<1024x128xbf16>
    %c0_1 = arith.constant 0 : index
    %c0_2 = arith.constant 0 : index
    %1 = vector.load %arg3[%c0_1, %c0_2] : memref<128x128xbf16, #tpu.memory_space<vmem>>, vector<128x128xbf16>
    %cst = arith.constant dense<0.000000e+00> : vector<1024x128xf32>
    %2 = tpu.matmul %0, %1, %cst {dimension_numbers = #tpu.dot_dimension_numbers<[1], [0], [0], [1], [0, 0, 1, 1], [], []>} : vector<1024x128xbf16>, vector<128x128xbf16>, vector<1024x128xf32> -> vector<1024x128xf32>
    %c0_3 = arith.constant 0 : index
    %c0_4 = arith.constant 0 : index
    %3 = vector.load %arg4[%c0_3, %c0_4] : memref<1x128xf32, #tpu.memory_space<vmem>>, vector<1x128xf32>
    %4 = vector.broadcast %3 : vector<1x128xf32> to vector<1024x128xf32>
    %5 = arith.addf %2, %4 : vector<1024x128xf32>
    %c0_5 = arith.constant 0 : index
    %c0_6 = arith.constant 0 : index
    %6 = vector.load %arg5[%c0_5, %c0_6] : memref<1024x128xf32, #tpu.memory_space<vmem>>, vector<1024x128xf32>
    tpu.vector_store %arg5[%c0_5, %c0_6], %5 {strides = array<i32>} : memref<1024x128xf32, #tpu.memory_space<vmem>>, vector<1024x128xf32>,
    return
  }
  func.func @transform_0(%arg0: i32, %arg1: i32) -> (i32, i32) {
    %c0_i32 = arith.constant 0 : i32
    %c0_i32_0 = arith.constant 0 : i32
    return %arg1, %c0_i32 : i32, i32
  }
  func.func @transform_1(%arg0: i32, %arg1: i32) -> (i32, i32) {
    %c0_i32 = arith.constant 0 : i32
    %c0_i32_0 = arith.constant 0 : i32
    return %c0_i32, %arg0 : i32, i32
  }
  func.func @transform_2(%arg0: i32, %arg1: i32) -> (i32, i32) {
    %c0_i32 = arith.constant 0 : i32
    %c0_i32_0 = arith.constant 0 : i32
    return %c0_i32, %arg0 : i32, i32
  }
  func.func @transform_3(%arg0: i32, %arg1: i32) -> (i32, i32) {
    %c0_i32 = arith.constant 0 : i32
    return %arg1, %arg0 : i32, i32
  }
}

</mosaic_0001>

<bundles_post_ra>
// kernel: _lambda_.21
= control target key start
LH: loop header
LB: loop body
LE: loop exit
PB: predicated region body
PF: predicated region fallthrough
CT: control target
= control target key end

     0   :  { %s3321_s12 = smov 0   ;;  %s3323_s13 = smov 0   ;;  %s3650_s0 = inlined_call_operand.vmem [shape: bf16[2048,128], index: 0, kind: input, shape index: {}]   ;;  %s3651_s1 = inlined_call_operand.vmem [shape: bf16[128,128], index: 1, kind: input, shape index: {}]   ;;  %s3652_s2 = inlined_call_operand.vmem [shape: f32[1,128], index: 2, kind: input, shape index: {}]   ;;  %s3653_s3 = inlined_call_operand.vmem [shape: bf16[2048,128], index: 3, kind: output, shape index: {}]  }
   0x1   :  { %s3325_s14 = smov 0  }
   0x2 LB: > { %s22_s15 = sadd.s32 1, %s3295_s13  ;;  %p2230_p0 = scmp.ge.s32.totalorder %s3299_s14, 1  ;;  %s3299_s14 = sphi %s3325_s14, %s13_s14   ;;  %s3295_s13 = sphi %s3323_s13, %s3655_s13   ;;  %s3291_s12 = sphi %s3321_s12, %s3654_s12  }
   0x3   : > { %p23_p1 = scmp.ge.s32.totalorder %s22_s15, 2  ;;  %p169_p2 = scmp.lt.s32.totalorder %s3299_s14, 3 }
   0x5   : > { %s3657_s15 = smov (%p23_p1, %s22_s15), 0  ;;  %p170_p3 = pnand %p2230_p0, %p169_p2 }
   0x6   : > { %s2231_s18 = sshll.u32 (!%p170_p3), %s3291_s12, 7 }
   0x7   : > { %173 = sbr.rel (%p170_p3) target bundleno = 371 (0x173), region = 32  ;;  %p204_p4 = scmp.lt.s32.totalorder (!%p170_p3), %s2231_s18, 255 }
   0xc   : > { %v3205_v0 = vld [vmem:[%s3651_s1 + $0x38] sm:$0xff]   ;;  %v3206_v1 = vld [vmem:[%s3651_s1 + $0x30] sm:$0xff]   ;;  %s3659_s18 = smov (!%p204_p4, %s2231_s18), 255  ;;  %v3207_v2 = vld [vmem:[%s3651_s1 + $0x28] sm:$0xff]  }
   0xd   : > { %3021 = vmatprep.subr.bf16.mxu0 %v3205_v0  ;;  %3165 = vmatprep.subr.bf16.mxu1 %v3205_v0  ;;  %s2232_s23 = sshll.u32 %s3659_s18, 2  ;;  %v3208_v3 = vld [vmem:[%s3651_s1 + $0x20] sm:$0xff]   ;;  %v3209_v6 = vld [vmem:[%s3651_s1 + $0x18] sm:$0xff]   ;;  %v3210_v7 = vld [vmem:[%s3651_s1 + $0x10] sm:$0xff]  }
   0xe   : > { %3022 = vmatpush3.bf16.msra.mxu0 %v3205_v0  ;;  %3173 = vmatpush3.bf16.msra.mxu1 %v3205_v0  ;;  %s3356_s26 = scalar_lea.vmem %s3650_s0, %s2232_s23  ;;  %v3211_v8 = vld [vmem:[%s3651_s1 + $0x8] sm:$0xff]   ;;  %v3212_v9 = vld [vmem:[%s3651_s1] sm:$0xff]   ;;  %s3455_s17 = scalar_lea.vmem %s3653_s3, %s2232_s23 }
   0xf   : > { %3023 = vmatprep.subr.bf16.mxu0 %v3206_v1  ;;  %3166 = vmatprep.subr.bf16.mxu1 %v3206_v1  ;;  %v3213_v4 = vld [vmem:[%s3356_s26] sm:$0xff]   ;;  %v3215_v10 = vld [vmem:[%s3356_s26 + $0x8] sm:$0xff]   ;;  %v3217_v12 = vld [vmem:[%s3356_s26 + $0x10] sm:$0xff]  }
  0x10   : > { %v3214_v5 = vld [vmem:[%s3356_s26 + $0x100] sm:$0xff]   ;;  %3037 = vmatprep.mubr.bf16.mxu0 %v3213_v4  ;;  %v3216_v11 = vld [vmem:[%s3356_s26 + $0x108] sm:$0xff]   ;;  %v3218_v13 = vld [vmem:[%s3356_s26 + $0x110] sm:$0xff]  }
  0x11   : > { %3101 = vmatprep.mubr.bf16.mxu1 %v3214_v5  ;;  %v3219_v14 = vld [vmem:[%s3356_s26 + $0x18] sm:$0xff]   ;;  %v3221_v16 = vld [vmem:[%s3356_s26 + $0x20] sm:$0xff]   ;;  %v3223_v18 = vld [vmem:[%s3356_s26 + $0x28] sm:$0xff]  }
  0x12   : > { %3024 = vmatpush3.bf16.msra.mxu0 %v3206_v1  ;;  %3174 = vmatpush3.bf16.msra.mxu1 %v3206_v1  ;;  %v3220_v15 = vld [vmem:[%s3356_s26 + $0x118] sm:$0xff]   ;;  %v3222_v17 = vld [vmem:[%s3356_s26 + $0x120] sm:$0xff]   ;;  %v3224_v19 = vld [vmem:[%s3356_s26 + $0x128] sm:$0xff]  }
  0x13   : > { %3025 = vmatprep.subr.bf16.mxu0 %v3207_v2  ;;  %3167 = vmatprep.subr.bf16.mxu1 %v3207_v2  ;;  %v3225_v20 = vld [vmem:[%s3356_s26 + $0x30] sm:$0xff]   ;;  %v3227_v22 = vld [vmem:[%s3356_s26 + $0x38] sm:$0xff]   ;;  %v3229_v24 = vld [vmem:[%s3356_s26 + $0x40] sm:$0xff]  }
  0x14   : > { %v3226_v21 = vld [vmem:[%s3356_s26 + $0x130] sm:$0xff]   ;;  %v3228_v23 = vld [vmem:[%s3356_s26 + $0x138] sm:$0xff]   ;;  %v3230_v25 = vld [vmem:[%s3356_s26 + $0x140] sm:$0xff]  }
  0x15   : > { %v3231_v26 = vld [vmem:[%s3356_s26 + $0x48] sm:$0xff]   ;;  %v3233_v28 = vld [vmem:[%s3356_s26 + $0x50] sm:$0xff]   ;;  %v3235_v30 = vld [vmem:[%s3356_s26 + $0x58] sm:$0xff]  }
  0x16   : > { %3026 = vmatpush3.bf16.msra.mxu0 %v3207_v2  ;;  %3175 = vmatpush3.bf16.msra.mxu1 %v3207_v2  ;;  %v3232_v27 = vld [vmem:[%s3356_s26 + $0x148] sm:$0xff]   ;;  %v3234_v29 = vld [vmem:[%s3356_s26 + $0x150] sm:$0xff]   ;;  %v3236_v31 = vld [vmem:[%s3356_s26 + $0x158] sm:$0xff]  }
  0x17   : > { %3027 = vmatprep.subr.bf16.mxu0 %v3208_v3  ;;  %3168 = vmatprep.subr.bf16.mxu1 %v3208_v3  ;;  %v3237_v32 = vld [vmem:[%s3356_s26 + $0x60] sm:$0xff]   ;;  %v3239_v34 = vld [vmem:[%s3356_s26 + $0x68] sm:$0xff]   ;;  %v3241_v36 = vld [vmem:[%s3356_s26 + $0x70] sm:$0xff]  }
  0x18   : > { %v3238_v33 = vld [vmem:[%s3356_s26 + $0x160] sm:$0xff]   ;;  %v3240_v35 = vld [vmem:[%s3356_s26 + $0x168] sm:$0xff]   ;;  %v3242_v37 = vld [vmem:[%s3356_s26 + $0x170] sm:$0xff]  }
  0x19   : > { %v3243_v38 = vld [vmem:[%s3356_s26 + $0x78] sm:$0xff]   ;;  %v3245_v40 = vld [vmem:[%s3356_s26 + $0x80] sm:$0xff]   ;;  %v3247_v42 = vld [vmem:[%s3356_s26 + $0x88] sm:$0xff]  }
  0x1a   : > { %3028 = vmatpush3.bf16.msra.mxu0 %v3208_v3  ;;  %3176 = vmatpush3.bf16.msra.mxu1 %v3208_v3  ;;  %v3244_v39 = vld [vmem:[%s3356_s26 + $0x178] sm:$0xff]   ;;  %v3246_v41 = vld [vmem:[%s3356_s26 + $0x180] sm:$0xff]   ;;  %v3248_v43 = vld [vmem:[%s3356_s26 + $0x188] sm:$0xff]  }
  0x1b   : > { %3029 = vmatprep.subr.bf16.mxu0 %v3209_v6  ;;  %3169 = vmatprep.subr.bf16.mxu1 %v3209_v6  ;;  %v3249_v44 = vld [vmem:[%s3356_s26 + $0x90] sm:$0xff]   ;;  %v3251_v46 = vld [vmem:[%s3356_s26 + $0x98] sm:$0xff]   ;;  %v3253_v48 = vld [vmem:[%s3356_s26 + $0xa0] sm:$0xff]  }
  0x1c   : > { %v3250_v45 = vld [vmem:[%s3356_s26 + $0x190] sm:$0xff]   ;;  %v3252_v47 = vld [vmem:[%s3356_s26 + $0x198] sm:$0xff]   ;;  %v3254_v49 = vld [vmem:[%s3356_s26 + $0x1a0] sm:$0xff]  }
  0x1d   : > { %v3255_v50 = vld [vmem:[%s3356_s26 + $0xa8] sm:$0xff]   ;;  %v3257_v52 = vld [vmem:[%s3356_s26 + $0xb0] sm:$0xff]   ;;  %v3259_v54 = vld [vmem:[%s3356_s26 + $0xb8] sm:$0xff]  }
  0x1e   : > { %3030 = vmatpush3.bf16.msra.mxu0 %v3209_v6  ;;  %3177 = vmatpush3.bf16.msra.mxu1 %v3209_v6  ;;  %v3256_v51 = vld [vmem:[%s3356_s26 + $0x1a8] sm:$0xff]   ;;  %v3258_v53 = vld [vmem:[%s3356_s26 + $0x1b0] sm:$0xff]   ;;  %v3260_v55 = vld [vmem:[%s3356_s26 + $0x1b8] sm:$0xff]  }
  0x1f   : > { %3031 = vmatprep.subr.bf16.mxu0 %v3210_v7  ;;  %3170 = vmatprep.subr.bf16.mxu1 %v3210_v7  ;;  %v3261_v56 = vld [vmem:[%s3356_s26 + $0xc0] sm:$0xff]   ;;  %v3263_v58 = vld [vmem:[%s3356_s26 + $0xc8] sm:$0xff]   ;;  %v3265_v60 = vld [vmem:[%s3356_s26 + $0xd0] sm:$0xff]  }
  0x20   : > { %v3262_v57 = vld [vmem:[%s3356_s26 + $0x1c0] sm:$0xff]   ;;  %v3264_v59 = vld [vmem:[%s3356_s26 + $0x1c8] sm:$0xff]   ;;  %v3266_v61 = vld [vmem:[%s3356_s26 + $0x1d0] sm:$0xff]  }
  0x21   : > { %v3267_v62 = vld [vmem:[%s3356_s26 + $0xd8] sm:$0xff]   ;;  %v3269_v0 = vld [vmem:[%s3356_s26 + $0xe0] sm:$0xff]   ;;  %v3271_v2 = vld [vmem:[%s3356_s26 + $0xe8] sm:$0xff]  }
  0x22   : > { %3032 = vmatpush3.bf16.msra.mxu0 %v3210_v7  ;;  %3178 = vmatpush3.bf16.msra.mxu1 %v3210_v7  ;;  %v3268_v63 = vld [vmem:[%s3356_s26 + $0x1d8] sm:$0xff]   ;;  %v3270_v1 = vld [vmem:[%s3356_s26 + $0x1e0] sm:$0xff]   ;;  %v3272_v3 = vld [vmem:[%s3356_s26 + $0x1e8] sm:$0xff]  }
  0x23   : > { %3033 = vmatprep.subr.bf16.mxu0 %v3211_v8  ;;  %3171 = vmatprep.subr.bf16.mxu1 %v3211_v8  ;;  %v3273_v4 = vld [vmem:[%s3356_s26 + $0xf0] sm:$0xff]   ;;  %v3275_v6 = vld [vmem:[%s3356_s26 + $0xf8] sm:$0xff]  }
  0x24   : > { %v3274_v5 = vld [vmem:[%s3356_s26 + $0x1f0] sm:$0xff]   ;;  %v3276_v7 = vld [vmem:[%s3356_s26 + $0x1f8] sm:$0xff]  }
  0x26   : > { %3034 = vmatpush3.bf16.msra.mxu0 %v3211_v8  ;;  %3179 = vmatpush3.bf16.msra.mxu1 %v3211_v8  ;;  %v3440_v8 = vld [vmem:[%s3652_s2] ss:$0 sm:$0xff] }
  0x27   : > { %3035 = vmatprep.subr.bf16.mxu0 %v3212_v9  ;;  %3172 = vmatprep.subr.bf16.mxu1 %v3212_v9 }
  0x2a   : > { %3036 = vmatpush3.bf16.msra.mxu0 %v3212_v9  ;;  %3180 = vmatpush3.bf16.msra.mxu1 %v3212_v9 }
  0x2d   : > { %3038 = vmatmul.mubr.bf16.vlgmr.msra.gmra.mxu0 %v3215_v10  ;;  %3102 = vmatmul.mubr.bf16.vlgmr.msra.gmra.mxu1 %v3216_v11 }
  0x2e   : > { %3041 = vmatprep.mubr.bf16.mxu0 %v3217_v12  ;;  %3105 = vmatprep.mubr.bf16.mxu1 %v3218_v13 }
  0x35   : > { %3042 = vmatmul.mubr.bf16.gmra.mxu0 %v3219_v14  ;;  %3106 = vmatmul.mubr.bf16.gmra.mxu1 %v3220_v15 }
  0x36   : > { %3045 = vmatprep.mubr.bf16.mxu0 %v3221_v16  ;;  %3109 = vmatprep.mubr.bf16.mxu1 %v3222_v17 }
  0x3d   : > { %3046 = vmatmul.mubr.bf16.gmra.mxu0 %v3223_v18  ;;  %3110 = vmatmul.mubr.bf16.gmra.mxu1 %v3224_v19 }
  0x3e   : > { %3049 = vmatprep.mubr.bf16.mxu0 %v3225_v20  ;;  %3113 = vmatprep.mubr.bf16.mxu1 %v3226_v21 }
  0x45   : > { %3050 = vmatmul.mubr.bf16.gmra.mxu0 %v3227_v22  ;;  %3114 = vmatmul.mubr.bf16.gmra.mxu1 %v3228_v23 }
  0x46   : > { %3053 = vmatprep.mubr.bf16.mxu0 %v3229_v24  ;;  %3117 = vmatprep.mubr.bf16.mxu1 %v3230_v25 }
  0x4d   : > { %3054 = vmatmul.mubr.bf16.gmra.mxu0 %v3231_v26  ;;  %3118 = vmatmul.mubr.bf16.gmra.mxu1 %v3232_v27 }
  0x4e   : > { %3057 = vmatprep.mubr.bf16.mxu0 %v3233_v28  ;;  %3121 = vmatprep.mubr.bf16.mxu1 %v3234_v29 }
  0x55   : > { %3058 = vmatmul.mubr.bf16.gmra.mxu0 %v3235_v30  ;;  %3122 = vmatmul.mubr.bf16.gmra.mxu1 %v3236_v31 }
  0x56   : > { %3061 = vmatprep.mubr.bf16.mxu0 %v3237_v32  ;;  %3125 = vmatprep.mubr.bf16.mxu1 %v3238_v33 }
  0x5d   : > { %3062 = vmatmul.mubr.bf16.gmra.mxu0 %v3239_v34  ;;  %3126 = vmatmul.mubr.bf16.gmra.mxu1 %v3240_v35 }
  0x5e   : > { %3065 = vmatprep.mubr.bf16.mxu0 %v3241_v36  ;;  %3129 = vmatprep.mubr.bf16.mxu1 %v3242_v37 }
  0x65   : > { %3066 = vmatmul.mubr.bf16.gmra.mxu0 %v3243_v38  ;;  %3130 = vmatmul.mubr.bf16.gmra.mxu1 %v3244_v39 }
  0x66   : > { %3069 = vmatprep.mubr.bf16.mxu0 %v3245_v40  ;;  %3133 = vmatprep.mubr.bf16.mxu1 %v3246_v41 }
  0x6d   : > { %3070 = vmatmul.mubr.bf16.gmra.mxu0 %v3247_v42  ;;  %3134 = vmatmul.mubr.bf16.gmra.mxu1 %v3248_v43 }
  0x6e   : > { %3073 = vmatprep.mubr.bf16.mxu0 %v3249_v44  ;;  %3137 = vmatprep.mubr.bf16.mxu1 %v3250_v45 }
  0x75   : > { %3074 = vmatmul.mubr.bf16.gmra.mxu0 %v3251_v46  ;;  %3138 = vmatmul.mubr.bf16.gmra.mxu1 %v3252_v47 }
  0x76   : > { %3077 = vmatprep.mubr.bf16.mxu0 %v3253_v48  ;;  %3141 = vmatprep.mubr.bf16.mxu1 %v3254_v49 }
  0x7d   : > { %3078 = vmatmul.mubr.bf16.gmra.mxu0 %v3255_v50  ;;  %3142 = vmatmul.mubr.bf16.gmra.mxu1 %v3256_v51 }
  0x7e   : > { %3081 = vmatprep.mubr.bf16.mxu0 %v3257_v52  ;;  %3145 = vmatprep.mubr.bf16.mxu1 %v3258_v53 }
  0x85   : > { %3082 = vmatmul.mubr.bf16.gmra.mxu0 %v3259_v54  ;;  %3146 = vmatmul.mubr.bf16.gmra.mxu1 %v3260_v55 }
  0x86   : > { %3085 = vmatprep.mubr.bf16.mxu0 %v3261_v56  ;;  %3149 = vmatprep.mubr.bf16.mxu1 %v3262_v57 }
  0x8d   : > { %3086 = vmatmul.mubr.bf16.gmra.mxu0 %v3263_v58  ;;  %3150 = vmatmul.mubr.bf16.gmra.mxu1 %v3264_v59 }
  0x8e   : > { %3089 = vmatprep.mubr.bf16.mxu0 %v3265_v60  ;;  %3153 = vmatprep.mubr.bf16.mxu1 %v3266_v61 }
  0x95   : > { %3090 = vmatmul.mubr.bf16.gmra.mxu0 %v3267_v62  ;;  %3154 = vmatmul.mubr.bf16.gmra.mxu1 %v3268_v63 }
  0x96   : > { %3093 = vmatprep.mubr.bf16.mxu0 %v3269_v0  ;;  %3157 = vmatprep.mubr.bf16.mxu1 %v3270_v1 }
  0x9d   : > { %3094 = vmatmul.mubr.bf16.gmra.mxu0 %v3271_v2  ;;  %3158 = vmatmul.mubr.bf16.gmra.mxu1 %v3272_v3 }
  0x9e   : > { %3097 = vmatprep.mubr.bf16.mxu0 %v3273_v4  ;;  %3161 = vmatprep.mubr.bf16.mxu1 %v3274_v5 }
  0xa5   : > { %3098 = vmatmul.mubr.bf16.gmra.mxu0 %v3275_v6  ;;  %3162 = vmatmul.mubr.bf16.gmra.mxu1 %v3276_v7 }
  0xed   : > { %v3039_v9 = vpop.f32.mrf.mxu0  ;;  %v3103_v10 = vpop.f32.mrf.mxu1 }
  0xee   : > { %v852_v11 = vadd.f32 %v3039_v9, %v3440_v8  ;;  %v1108_v12 = vadd.f32 %v3103_v10, %v3440_v8 }
  0xef   : > { %v843_v13 = vpop.f32.mrf.mxu0  ;;  %v1099_v14 = vpop.f32.mrf.mxu1 }
  0xf0   : > { %v844_v15 = vadd.f32 %v3440_v8, %v843_v13  ;;  %v1100_v16 = vadd.f32 %v3440_v8, %v1099_v14  ;;  %v1356_v21 = vmax.f32 %v852_v11, 0.0  ;;  %v1420_v22 = vmax.f32 %v1108_v12, 0.0 }
  0xf1   : > { %v3040_v17 = vpop.f32.mrf.mxu0  ;;  %v3104_v18 = vpop.f32.mrf.mxu1 }
  0xf2   : > { %v855_v19 = vadd.f32 %v3040_v17, %v3440_v8  ;;  %v1111_v20 = vadd.f32 %v3104_v18, %v3440_v8  ;;  %v1354_v29 = vmax.f32 %v844_v15, 0.0  ;;  %v1418_v30 = vmax.f32 %v1100_v16, 0.0 }
  0xf3   : > { %v846_v23 = vpop.f32.mrf.mxu0  ;;  %v1102_v24 = vpop.f32.mrf.mxu1 }
  0xf4   : > { %v1357_v25 = vmax.f32 %v855_v19, 0.0  ;;  %v1421_v26 = vmax.f32 %v1111_v20, 0.0  ;;  %v847_v27 = vadd.f32 %v3440_v8, %v846_v23  ;;  %v1103_v28 = vadd.f32 %v3440_v8, %v1102_v24 }
  0xf5   : > { %v3043_v31 = vpop.f32.mrf.mxu0  ;;  %v3107_v32 = vpop.f32.mrf.mxu1 }
  0xf6   : > { %v2574_v33 = vpack.c.bf16 %v1357_v25, %v1356_v21  ;;  %v2734_v34 = vpack.c.bf16 %v1421_v26, %v1420_v22  ;;  %v1355_v35 = vmax.f32 %v847_v27, 0.0  ;;  %v1419_v36 = vmax.f32 %v1103_v28, 0.0 }
  0xf7   : > { %v868_v37 = vadd.f32 %v3043_v31, %v3440_v8  ;;  %v1124_v38 = vadd.f32 %v3107_v32, %v3440_v8  ;;  %v859_v39 = vpop.f32.mrf.mxu0  ;;  %v1115_v40 = vpop.f32.mrf.mxu1 }
  0xf8   : > { %2886 = vst [vmem:[%s3455_s17 + $0x8] sm:$0xff] %v2574_v33   ;;  %2918 = vst [vmem:[%s3455_s17 + $0x108] sm:$0xff] %v2734_v34   ;;  %v2569_v41 = vpack.c.bf16 %v1355_v35, %v1354_v29  ;;  %v2729_v42 = vpack.c.bf16 %v1419_v36, %v1418_v30  ;;  %v860_v43 = vadd.f32 %v3440_v8, %v859_v39 }
  0xf9   : > { %v1116_v44 = vadd.f32 %v3440_v8, %v1115_v40  ;;  %v3044_v45 = vpop.f32.mrf.mxu0  ;;  %v3108_v46 = vpop.f32.mrf.mxu1  ;;  %v1360_v49 = vmax.f32 %v868_v37, 0.0  ;;  %v1424_v50 = vmax.f32 %v1124_v38, 0.0 }
  0xfa   : > { %2570 = vst [vmem:[%s3455_s17] sm:$0xff] %v2569_v41   ;;  %2917 = vst [vmem:[%s3455_s17 + $0x100] sm:$0xff] %v2729_v42   ;;  %v871_v47 = vadd.f32 %v3044_v45, %v3440_v8  ;;  %v1127_v48 = vadd.f32 %v3108_v46, %v3440_v8  ;;  %v1358_v57 = vmax.f32 %v860_v43, 0.0 }
  0xfb   : > { %v862_v51 = vpop.f32.mrf.mxu0  ;;  %v1118_v52 = vpop.f32.mrf.mxu1  ;;  %v1422_v58 = vmax.f32 %v1116_v44, 0.0 }
  0xfc   : > { %v1361_v53 = vmax.f32 %v871_v47, 0.0  ;;  %v1425_v54 = vmax.f32 %v1127_v48, 0.0  ;;  %v863_v55 = vadd.f32 %v3440_v8, %v862_v51  ;;  %v1119_v56 = vadd.f32 %v3440_v8, %v1118_v52 }
  0xfd   : > { %v3047_v59 = vpop.f32.mrf.mxu0  ;;  %v3111_v60 = vpop.f32.mrf.mxu1 }
  0xfe   : > { %v2584_v61 = vpack.c.bf16 %v1361_v53, %v1360_v49  ;;  %v2744_v62 = vpack.c.bf16 %v1425_v54, %v1424_v50  ;;  %v1359_v63 = vmax.f32 %v863_v55, 0.0  ;;  %v1423_v0 = vmax.f32 %v1119_v56, 0.0 }
  0xff   : > { %v884_v1 = vadd.f32 %v3047_v59, %v3440_v8  ;;  %v1140_v2 = vadd.f32 %v3111_v60, %v3440_v8  ;;  %v875_v3 = vpop.f32.mrf.mxu0  ;;  %v1131_v4 = vpop.f32.mrf.mxu1 }
 0x100   : > { %2888 = vst [vmem:[%s3455_s17 + $0x18] sm:$0xff] %v2584_v61   ;;  %2920 = vst [vmem:[%s3455_s17 + $0x118] sm:$0xff] %v2744_v62   ;;  %v2579_v5 = vpack.c.bf16 %v1359_v63, %v1358_v57  ;;  %v2739_v6 = vpack.c.bf16 %v1423_v0, %v1422_v58  ;;  %v876_v7 = vadd.f32 %v3440_v8, %v875_v3 }
 0x101   : > { %v1132_v9 = vadd.f32 %v3440_v8, %v1131_v4  ;;  %v3048_v10 = vpop.f32.mrf.mxu0  ;;  %v3112_v11 = vpop.f32.mrf.mxu1  ;;  %v1364_v14 = vmax.f32 %v884_v1, 0.0  ;;  %v1428_v15 = vmax.f32 %v1140_v2, 0.0 }
 0x102   : > { %2887 = vst [vmem:[%s3455_s17 + $0x10] sm:$0xff] %v2579_v5   ;;  %2919 = vst [vmem:[%s3455_s17 + $0x110] sm:$0xff] %v2739_v6   ;;  %v887_v12 = vadd.f32 %v3048_v10, %v3440_v8  ;;  %v1143_v13 = vadd.f32 %v3112_v11, %v3440_v8  ;;  %v1362_v22 = vmax.f32 %v876_v7, 0.0 }
 0x103   : > { %v878_v16 = vpop.f32.mrf.mxu0  ;;  %v1134_v17 = vpop.f32.mrf.mxu1  ;;  %v1426_v23 = vmax.f32 %v1132_v9, 0.0 }
 0x104   : > { %v1365_v18 = vmax.f32 %v887_v12, 0.0  ;;  %v1429_v19 = vmax.f32 %v1143_v13, 0.0  ;;  %v879_v20 = vadd.f32 %v3440_v8, %v878_v16  ;;  %v1135_v21 = vadd.f32 %v3440_v8, %v1134_v17 }
 0x105   : > { %v3051_v24 = vpop.f32.mrf.mxu0  ;;  %v3115_v25 = vpop.f32.mrf.mxu1 }
 0x106   : > { %v2594_v26 = vpack.c.bf16 %v1365_v18, %v1364_v14  ;;  %v2754_v27 = vpack.c.bf16 %v1429_v19, %v1428_v15  ;;  %v1363_v28 = vmax.f32 %v879_v20, 0.0  ;;  %v1427_v29 = vmax.f32 %v1135_v21, 0.0 }
 0x107   : > { %v900_v30 = vadd.f32 %v3051_v24, %v3440_v8  ;;  %v1156_v31 = vadd.f32 %v3115_v25, %v3440_v8  ;;  %v891_v32 = vpop.f32.mrf.mxu0  ;;  %v1147_v33 = vpop.f32.mrf.mxu1 }
 0x108   : > { %2890 = vst [vmem:[%s3455_s17 + $0x28] sm:$0xff] %v2594_v26   ;;  %2922 = vst [vmem:[%s3455_s17 + $0x128] sm:$0xff] %v2754_v27   ;;  %v2589_v34 = vpack.c.bf16 %v1363_v28, %v1362_v22  ;;  %v2749_v35 = vpack.c.bf16 %v1427_v29, %v1426_v23  ;;  %v892_v36 = vadd.f32 %v3440_v8, %v891_v32 }
 0x109   : > { %v1148_v37 = vadd.f32 %v3440_v8, %v1147_v33  ;;  %v3052_v38 = vpop.f32.mrf.mxu0  ;;  %v3116_v39 = vpop.f32.mrf.mxu1  ;;  %v1368_v42 = vmax.f32 %v900_v30, 0.0  ;;  %v1432_v43 = vmax.f32 %v1156_v31, 0.0 }
 0x10a   : > { %2889 = vst [vmem:[%s3455_s17 + $0x20] sm:$0xff] %v2589_v34   ;;  %2921 = vst [vmem:[%s3455_s17 + $0x120] sm:$0xff] %v2749_v35   ;;  %v903_v40 = vadd.f32 %v3052_v38, %v3440_v8  ;;  %v1159_v41 = vadd.f32 %v3116_v39, %v3440_v8  ;;  %v1366_v50 = vmax.f32 %v892_v36, 0.0 }
 0x10b   : > { %v894_v44 = vpop.f32.mrf.mxu0  ;;  %v1150_v45 = vpop.f32.mrf.mxu1  ;;  %v1430_v51 = vmax.f32 %v1148_v37, 0.0 }
 0x10c   : > { %v1369_v46 = vmax.f32 %v903_v40, 0.0  ;;  %v1433_v47 = vmax.f32 %v1159_v41, 0.0  ;;  %v895_v48 = vadd.f32 %v3440_v8, %v894_v44  ;;  %v1151_v49 = vadd.f32 %v3440_v8, %v1150_v45 }
 0x10d   : > { %v3055_v52 = vpop.f32.mrf.mxu0  ;;  %v3119_v53 = vpop.f32.mrf.mxu1 }
 0x10e   : > { %v2604_v54 = vpack.c.bf16 %v1369_v46, %v1368_v42  ;;  %v2764_v55 = vpack.c.bf16 %v1433_v47, %v1432_v43  ;;  %v1367_v56 = vmax.f32 %v895_v48, 0.0  ;;  %v1431_v57 = vmax.f32 %v1151_v49, 0.0 }
 0x10f   : > { %v916_v58 = vadd.f32 %v3055_v52, %v3440_v8  ;;  %v1172_v59 = vadd.f32 %v3119_v53, %v3440_v8  ;;  %v907_v60 = vpop.f32.mrf.mxu0  ;;  %v1163_v61 = vpop.f32.mrf.mxu1 }
 0x110   : > { %2892 = vst [vmem:[%s3455_s17 + $0x38] sm:$0xff] %v2604_v54   ;;  %2924 = vst [vmem:[%s3455_s17 + $0x138] sm:$0xff] %v2764_v55   ;;  %v2599_v62 = vpack.c.bf16 %v1367_v56, %v1366_v50  ;;  %v2759_v63 = vpack.c.bf16 %v1431_v57, %v1430_v51  ;;  %v908_v0 = vadd.f32 %v3440_v8, %v907_v60 }
 0x111   : > { %v1164_v1 = vadd.f32 %v3440_v8, %v1163_v61  ;;  %v3056_v2 = vpop.f32.mrf.mxu0  ;;  %v3120_v3 = vpop.f32.mrf.mxu1  ;;  %v1372_v6 = vmax.f32 %v916_v58, 0.0  ;;  %v1436_v7 = vmax.f32 %v1172_v59, 0.0 }
 0x112   : > { %2891 = vst [vmem:[%s3455_s17 + $0x30] sm:$0xff] %v2599_v62   ;;  %2923 = vst [vmem:[%s3455_s17 + $0x130] sm:$0xff] %v2759_v63   ;;  %v919_v4 = vadd.f32 %v3056_v2, %v3440_v8  ;;  %v1175_v5 = vadd.f32 %v3120_v3, %v3440_v8  ;;  %v1370_v15 = vmax.f32 %v908_v0, 0.0 }
 0x113   : > { %v910_v9 = vpop.f32.mrf.mxu0  ;;  %v1166_v10 = vpop.f32.mrf.mxu1  ;;  %v1434_v16 = vmax.f32 %v1164_v1, 0.0 }
 0x114   : > { %v1373_v11 = vmax.f32 %v919_v4, 0.0  ;;  %v1437_v12 = vmax.f32 %v1175_v5, 0.0  ;;  %v911_v13 = vadd.f32 %v3440_v8, %v910_v9  ;;  %v1167_v14 = vadd.f32 %v3440_v8, %v1166_v10 }
 0x115   : > { %v3059_v17 = vpop.f32.mrf.mxu0  ;;  %v3123_v18 = vpop.f32.mrf.mxu1 }
 0x116   : > { %v2614_v19 = vpack.c.bf16 %v1373_v11, %v1372_v6  ;;  %v2774_v20 = vpack.c.bf16 %v1437_v12, %v1436_v7  ;;  %v1371_v21 = vmax.f32 %v911_v13, 0.0  ;;  %v1435_v22 = vmax.f32 %v1167_v14, 0.0 }
 0x117   : > { %v932_v23 = vadd.f32 %v3059_v17, %v3440_v8  ;;  %v1188_v24 = vadd.f32 %v3123_v18, %v3440_v8  ;;  %v923_v25 = vpop.f32.mrf.mxu0  ;;  %v1179_v26 = vpop.f32.mrf.mxu1 }
 0x118   : > { %2894 = vst [vmem:[%s3455_s17 + $0x48] sm:$0xff] %v2614_v19   ;;  %2926 = vst [vmem:[%s3455_s17 + $0x148] sm:$0xff] %v2774_v20   ;;  %v2609_v27 = vpack.c.bf16 %v1371_v21, %v1370_v15  ;;  %v2769_v28 = vpack.c.bf16 %v1435_v22, %v1434_v16  ;;  %v924_v29 = vadd.f32 %v3440_v8, %v923_v25 }
 0x119   : > { %v1180_v30 = vadd.f32 %v3440_v8, %v1179_v26  ;;  %v3060_v31 = vpop.f32.mrf.mxu0  ;;  %v3124_v32 = vpop.f32.mrf.mxu1  ;;  %v1376_v35 = vmax.f32 %v932_v23, 0.0  ;;  %v1440_v36 = vmax.f32 %v1188_v24, 0.0 }
 0x11a   : > { %2893 = vst [vmem:[%s3455_s17 + $0x40] sm:$0xff] %v2609_v27   ;;  %2925 = vst [vmem:[%s3455_s17 + $0x140] sm:$0xff] %v2769_v28   ;;  %v935_v33 = vadd.f32 %v3060_v31, %v3440_v8  ;;  %v1191_v34 = vadd.f32 %v3124_v32, %v3440_v8  ;;  %v1374_v43 = vmax.f32 %v924_v29, 0.0 }
 0x11b   : > { %v926_v37 = vpop.f32.mrf.mxu0  ;;  %v1182_v38 = vpop.f32.mrf.mxu1  ;;  %v1438_v44 = vmax.f32 %v1180_v30, 0.0 }
 0x11c   : > { %v1377_v39 = vmax.f32 %v935_v33, 0.0  ;;  %v1441_v40 = vmax.f32 %v1191_v34, 0.0  ;;  %v927_v41 = vadd.f32 %v3440_v8, %v926_v37  ;;  %v1183_v42 = vadd.f32 %v3440_v8, %v1182_v38 }
 0x11d   : > { %v3063_v45 = vpop.f32.mrf.mxu0  ;;  %v3127_v46 = vpop.f32.mrf.mxu1 }
 0x11e   : > { %v2624_v47 = vpack.c.bf16 %v1377_v39, %v1376_v35  ;;  %v2784_v48 = vpack.c.bf16 %v1441_v40, %v1440_v36  ;;  %v1375_v49 = vmax.f32 %v927_v41, 0.0  ;;  %v1439_v50 = vmax.f32 %v1183_v42, 0.0 }
 0x11f   : > { %v948_v51 = vadd.f32 %v3063_v45, %v3440_v8  ;;  %v1204_v52 = vadd.f32 %v3127_v46, %v3440_v8  ;;  %v939_v53 = vpop.f32.mrf.mxu0  ;;  %v1195_v54 = vpop.f32.mrf.mxu1 }
 0x120   : > { %2896 = vst [vmem:[%s3455_s17 + $0x58] sm:$0xff] %v2624_v47   ;;  %2928 = vst [vmem:[%s3455_s17 + $0x158] sm:$0xff] %v2784_v48   ;;  %v2619_v55 = vpack.c.bf16 %v1375_v49, %v1374_v43  ;;  %v2779_v56 = vpack.c.bf16 %v1439_v50, %v1438_v44  ;;  %v940_v57 = vadd.f32 %v3440_v8, %v939_v53 }
 0x121   : > { %v1196_v58 = vadd.f32 %v3440_v8, %v1195_v54  ;;  %v3064_v59 = vpop.f32.mrf.mxu0  ;;  %v3128_v60 = vpop.f32.mrf.mxu1  ;;  %v1380_v63 = vmax.f32 %v948_v51, 0.0  ;;  %v1444_v0 = vmax.f32 %v1204_v52, 0.0 }
 0x122   : > { %2895 = vst [vmem:[%s3455_s17 + $0x50] sm:$0xff] %v2619_v55   ;;  %2927 = vst [vmem:[%s3455_s17 + $0x150] sm:$0xff] %v2779_v56   ;;  %v951_v61 = vadd.f32 %v3064_v59, %v3440_v8  ;;  %v1207_v62 = vadd.f32 %v3128_v60, %v3440_v8  ;;  %v1378_v7 = vmax.f32 %v940_v57, 0.0 }
 0x123   : > { %v942_v1 = vpop.f32.mrf.mxu0  ;;  %v1198_v2 = vpop.f32.mrf.mxu1  ;;  %v1442_v9 = vmax.f32 %v1196_v58, 0.0 }
 0x124   : > { %v1381_v3 = vmax.f32 %v951_v61, 0.0  ;;  %v1445_v4 = vmax.f32 %v1207_v62, 0.0  ;;  %v943_v5 = vadd.f32 %v3440_v8, %v942_v1  ;;  %v1199_v6 = vadd.f32 %v3440_v8, %v1198_v2 }
 0x125   : > { %v3067_v10 = vpop.f32.mrf.mxu0  ;;  %v3131_v11 = vpop.f32.mrf.mxu1 }
 0x126   : > { %v2634_v12 = vpack.c.bf16 %v1381_v3, %v1380_v63  ;;  %v2794_v13 = vpack.c.bf16 %v1445_v4, %v1444_v0  ;;  %v1379_v14 = vmax.f32 %v943_v5, 0.0  ;;  %v1443_v15 = vmax.f32 %v1199_v6, 0.0 }
 0x127   : > { %v964_v16 = vadd.f32 %v3067_v10, %v3440_v8  ;;  %v1220_v17 = vadd.f32 %v3131_v11, %v3440_v8  ;;  %v955_v18 = vpop.f32.mrf.mxu0  ;;  %v1211_v19 = vpop.f32.mrf.mxu1 }
 0x128   : > { %2898 = vst [vmem:[%s3455_s17 + $0x68] sm:$0xff] %v2634_v12   ;;  %2930 = vst [vmem:[%s3455_s17 + $0x168] sm:$0xff] %v2794_v13   ;;  %v2629_v20 = vpack.c.bf16 %v1379_v14, %v1378_v7  ;;  %v2789_v21 = vpack.c.bf16 %v1443_v15, %v1442_v9  ;;  %v956_v22 = vadd.f32 %v3440_v8, %v955_v18 }
 0x129   : > { %v1212_v23 = vadd.f32 %v3440_v8, %v1211_v19  ;;  %v3068_v24 = vpop.f32.mrf.mxu0  ;;  %v3132_v25 = vpop.f32.mrf.mxu1  ;;  %v1384_v28 = vmax.f32 %v964_v16, 0.0  ;;  %v1448_v29 = vmax.f32 %v1220_v17, 0.0 }
 0x12a   : > { %2897 = vst [vmem:[%s3455_s17 + $0x60] sm:$0xff] %v2629_v20   ;;  %2929 = vst [vmem:[%s3455_s17 + $0x160] sm:$0xff] %v2789_v21   ;;  %v967_v26 = vadd.f32 %v3068_v24, %v3440_v8  ;;  %v1223_v27 = vadd.f32 %v3132_v25, %v3440_v8  ;;  %v1382_v36 = vmax.f32 %v956_v22, 0.0 }
 0x12b   : > { %v958_v30 = vpop.f32.mrf.mxu0  ;;  %v1214_v31 = vpop.f32.mrf.mxu1  ;;  %v1446_v37 = vmax.f32 %v1212_v23, 0.0 }
 0x12c   : > { %v1385_v32 = vmax.f32 %v967_v26, 0.0  ;;  %v1449_v33 = vmax.f32 %v1223_v27, 0.0  ;;  %v959_v34 = vadd.f32 %v3440_v8, %v958_v30  ;;  %v1215_v35 = vadd.f32 %v3440_v8, %v1214_v31 }
 0x12d   : > { %v3071_v38 = vpop.f32.mrf.mxu0  ;;  %v3135_v39 = vpop.f32.mrf.mxu1 }
 0x12e   : > { %v2644_v40 = vpack.c.bf16 %v1385_v32, %v1384_v28  ;;  %v2804_v41 = vpack.c.bf16 %v1449_v33, %v1448_v29  ;;  %v1383_v42 = vmax.f32 %v959_v34, 0.0  ;;  %v1447_v43 = vmax.f32 %v1215_v35, 0.0 }
 0x12f   : > { %v980_v44 = vadd.f32 %v3071_v38, %v3440_v8  ;;  %v1236_v45 = vadd.f32 %v3135_v39, %v3440_v8  ;;  %v971_v46 = vpop.f32.mrf.mxu0  ;;  %v1227_v47 = vpop.f32.mrf.mxu1 }
 0x130   : > { %2900 = vst [vmem:[%s3455_s17 + $0x78] sm:$0xff] %v2644_v40   ;;  %2932 = vst [vmem:[%s3455_s17 + $0x178] sm:$0xff] %v2804_v41   ;;  %v2639_v48 = vpack.c.bf16 %v1383_v42, %v1382_v36  ;;  %v2799_v49 = vpack.c.bf16 %v1447_v43, %v1446_v37  ;;  %v972_v50 = vadd.f32 %v3440_v8, %v971_v46 }
 0x131   : > { %v1228_v51 = vadd.f32 %v3440_v8, %v1227_v47  ;;  %v3072_v52 = vpop.f32.mrf.mxu0  ;;  %v3136_v53 = vpop.f32.mrf.mxu1  ;;  %v1388_v56 = vmax.f32 %v980_v44, 0.0  ;;  %v1452_v57 = vmax.f32 %v1236_v45, 0.0 }
 0x132   : > { %2899 = vst [vmem:[%s3455_s17 + $0x70] sm:$0xff] %v2639_v48   ;;  %2931 = vst [vmem:[%s3455_s17 + $0x170] sm:$0xff] %v2799_v49   ;;  %v983_v54 = vadd.f32 %v3072_v52, %v3440_v8  ;;  %v1239_v55 = vadd.f32 %v3136_v53, %v3440_v8  ;;  %v1386_v0 = vmax.f32 %v972_v50, 0.0 }
 0x133   : > { %v974_v58 = vpop.f32.mrf.mxu0  ;;  %v1230_v59 = vpop.f32.mrf.mxu1  ;;  %v1450_v1 = vmax.f32 %v1228_v51, 0.0 }
 0x134   : > { %v1389_v60 = vmax.f32 %v983_v54, 0.0  ;;  %v1453_v61 = vmax.f32 %v1239_v55, 0.0  ;;  %v975_v62 = vadd.f32 %v3440_v8, %v974_v58  ;;  %v1231_v63 = vadd.f32 %v3440_v8, %v1230_v59 }
 0x135   : > { %v3075_v2 = vpop.f32.mrf.mxu0  ;;  %v3139_v3 = vpop.f32.mrf.mxu1 }
 0x136   : > { %v2654_v4 = vpack.c.bf16 %v1389_v60, %v1388_v56  ;;  %v2814_v5 = vpack.c.bf16 %v1453_v61, %v1452_v57  ;;  %v1387_v6 = vmax.f32 %v975_v62, 0.0  ;;  %v1451_v7 = vmax.f32 %v1231_v63, 0.0 }
 0x137   : > { %v996_v9 = vadd.f32 %v3075_v2, %v3440_v8  ;;  %v1252_v10 = vadd.f32 %v3139_v3, %v3440_v8  ;;  %v987_v11 = vpop.f32.mrf.mxu0  ;;  %v1243_v12 = vpop.f32.mrf.mxu1 }
 0x138   : > { %2902 = vst [vmem:[%s3455_s17 + $0x88] sm:$0xff] %v2654_v4   ;;  %2934 = vst [vmem:[%s3455_s17 + $0x188] sm:$0xff] %v2814_v5   ;;  %v2649_v13 = vpack.c.bf16 %v1387_v6, %v1386_v0  ;;  %v2809_v14 = vpack.c.bf16 %v1451_v7, %v1450_v1  ;;  %v988_v15 = vadd.f32 %v3440_v8, %v987_v11 }
 0x139   : > { %v1244_v16 = vadd.f32 %v3440_v8, %v1243_v12  ;;  %v3076_v17 = vpop.f32.mrf.mxu0  ;;  %v3140_v18 = vpop.f32.mrf.mxu1  ;;  %v1392_v21 = vmax.f32 %v996_v9, 0.0  ;;  %v1456_v22 = vmax.f32 %v1252_v10, 0.0 }
 0x13a   : > { %2901 = vst [vmem:[%s3455_s17 + $0x80] sm:$0xff] %v2649_v13   ;;  %2933 = vst [vmem:[%s3455_s17 + $0x180] sm:$0xff] %v2809_v14   ;;  %v999_v19 = vadd.f32 %v3076_v17, %v3440_v8  ;;  %v1255_v20 = vadd.f32 %v3140_v18, %v3440_v8  ;;  %v1390_v29 = vmax.f32 %v988_v15, 0.0 }
 0x13b   : > { %v990_v23 = vpop.f32.mrf.mxu0  ;;  %v1246_v24 = vpop.f32.mrf.mxu1  ;;  %v1454_v30 = vmax.f32 %v1244_v16, 0.0 }
 0x13c   : > { %v1393_v25 = vmax.f32 %v999_v19, 0.0  ;;  %v1457_v26 = vmax.f32 %v1255_v20, 0.0  ;;  %v991_v27 = vadd.f32 %v3440_v8, %v990_v23  ;;  %v1247_v28 = vadd.f32 %v3440_v8, %v1246_v24 }
 0x13d   : > { %v3079_v31 = vpop.f32.mrf.mxu0  ;;  %v3143_v32 = vpop.f32.mrf.mxu1 }
 0x13e   : > { %v2664_v33 = vpack.c.bf16 %v1393_v25, %v1392_v21  ;;  %v2824_v34 = vpack.c.bf16 %v1457_v26, %v1456_v22  ;;  %v1391_v35 = vmax.f32 %v991_v27, 0.0  ;;  %v1455_v36 = vmax.f32 %v1247_v28, 0.0 }
 0x13f   : > { %v1012_v37 = vadd.f32 %v3079_v31, %v3440_v8  ;;  %v1268_v38 = vadd.f32 %v3143_v32, %v3440_v8  ;;  %v1003_v39 = vpop.f32.mrf.mxu0  ;;  %v1259_v40 = vpop.f32.mrf.mxu1 }
 0x140   : > { %2904 = vst [vmem:[%s3455_s17 + $0x98] sm:$0xff] %v2664_v33   ;;  %2936 = vst [vmem:[%s3455_s17 + $0x198] sm:$0xff] %v2824_v34   ;;  %v2659_v41 = vpack.c.bf16 %v1391_v35, %v1390_v29  ;;  %v2819_v42 = vpack.c.bf16 %v1455_v36, %v1454_v30  ;;  %v1004_v43 = vadd.f32 %v3440_v8, %v1003_v39 }
 0x141   : > { %v1260_v44 = vadd.f32 %v3440_v8, %v1259_v40  ;;  %v3080_v45 = vpop.f32.mrf.mxu0  ;;  %v3144_v46 = vpop.f32.mrf.mxu1  ;;  %v1396_v49 = vmax.f32 %v1012_v37, 0.0  ;;  %v1460_v50 = vmax.f32 %v1268_v38, 0.0 }
 0x142   : > { %2903 = vst [vmem:[%s3455_s17 + $0x90] sm:$0xff] %v2659_v41   ;;  %2935 = vst [vmem:[%s3455_s17 + $0x190] sm:$0xff] %v2819_v42   ;;  %v1015_v47 = vadd.f32 %v3080_v45, %v3440_v8  ;;  %v1271_v48 = vadd.f32 %v3144_v46, %v3440_v8  ;;  %v1394_v57 = vmax.f32 %v1004_v43, 0.0 }
 0x143   : > { %v1006_v51 = vpop.f32.mrf.mxu0  ;;  %v1262_v52 = vpop.f32.mrf.mxu1  ;;  %v1458_v58 = vmax.f32 %v1260_v44, 0.0 }
 0x144   : > { %v1397_v53 = vmax.f32 %v1015_v47, 0.0  ;;  %v1461_v54 = vmax.f32 %v1271_v48, 0.0  ;;  %v1007_v55 = vadd.f32 %v3440_v8, %v1006_v51  ;;  %v1263_v56 = vadd.f32 %v3440_v8, %v1262_v52 }
 0x145   : > { %v3083_v59 = vpop.f32.mrf.mxu0  ;;  %v3147_v60 = vpop.f32.mrf.mxu1 }
 0x146   : > { %v2674_v61 = vpack.c.bf16 %v1397_v53, %v1396_v49  ;;  %v2834_v62 = vpack.c.bf16 %v1461_v54, %v1460_v50  ;;  %v1395_v63 = vmax.f32 %v1007_v55, 0.0  ;;  %v1459_v0 = vmax.f32 %v1263_v56, 0.0 }
 0x147   : > { %v1028_v1 = vadd.f32 %v3083_v59, %v3440_v8  ;;  %v1284_v2 = vadd.f32 %v3147_v60, %v3440_v8  ;;  %v1019_v3 = vpop.f32.mrf.mxu0  ;;  %v1275_v4 = vpop.f32.mrf.mxu1 }
 0x148   : > { %2906 = vst [vmem:[%s3455_s17 + $0xa8] sm:$0xff] %v2674_v61   ;;  %2938 = vst [vmem:[%s3455_s17 + $0x1a8] sm:$0xff] %v2834_v62   ;;  %v2669_v5 = vpack.c.bf16 %v1395_v63, %v1394_v57  ;;  %v2829_v6 = vpack.c.bf16 %v1459_v0, %v1458_v58  ;;  %v1020_v7 = vadd.f32 %v3440_v8, %v1019_v3 }
 0x149   : > { %v1276_v9 = vadd.f32 %v3440_v8, %v1275_v4  ;;  %v3084_v10 = vpop.f32.mrf.mxu0  ;;  %v3148_v11 = vpop.f32.mrf.mxu1  ;;  %v1400_v14 = vmax.f32 %v1028_v1, 0.0  ;;  %v1464_v15 = vmax.f32 %v1284_v2, 0.0 }
 0x14a   : > { %2905 = vst [vmem:[%s3455_s17 + $0xa0] sm:$0xff] %v2669_v5   ;;  %2937 = vst [vmem:[%s3455_s17 + $0x1a0] sm:$0xff] %v2829_v6   ;;  %v1031_v12 = vadd.f32 %v3084_v10, %v3440_v8  ;;  %v1287_v13 = vadd.f32 %v3148_v11, %v3440_v8  ;;  %v1398_v22 = vmax.f32 %v1020_v7, 0.0 }
 0x14b   : > { %v1022_v16 = vpop.f32.mrf.mxu0  ;;  %v1278_v17 = vpop.f32.mrf.mxu1  ;;  %v1462_v23 = vmax.f32 %v1276_v9, 0.0 }
 0x14c   : > { %v1401_v18 = vmax.f32 %v1031_v12, 0.0  ;;  %v1465_v19 = vmax.f32 %v1287_v13, 0.0  ;;  %v1023_v20 = vadd.f32 %v3440_v8, %v1022_v16  ;;  %v1279_v21 = vadd.f32 %v3440_v8, %v1278_v17 }
 0x14d   : > { %v3087_v24 = vpop.f32.mrf.mxu0  ;;  %v3151_v25 = vpop.f32.mrf.mxu1 }
 0x14e   : > { %v2684_v26 = vpack.c.bf16 %v1401_v18, %v1400_v14  ;;  %v2844_v27 = vpack.c.bf16 %v1465_v19, %v1464_v15  ;;  %v1399_v28 = vmax.f32 %v1023_v20, 0.0  ;;  %v1463_v29 = vmax.f32 %v1279_v21, 0.0 }
 0x14f   : > { %v1044_v30 = vadd.f32 %v3087_v24, %v3440_v8  ;;  %v1300_v31 = vadd.f32 %v3151_v25, %v3440_v8  ;;  %v1035_v32 = vpop.f32.mrf.mxu0  ;;  %v1291_v33 = vpop.f32.mrf.mxu1 }
 0x150   : > { %2908 = vst [vmem:[%s3455_s17 + $0xb8] sm:$0xff] %v2684_v26   ;;  %2940 = vst [vmem:[%s3455_s17 + $0x1b8] sm:$0xff] %v2844_v27   ;;  %v2679_v34 = vpack.c.bf16 %v1399_v28, %v1398_v22  ;;  %v2839_v35 = vpack.c.bf16 %v1463_v29, %v1462_v23  ;;  %v1036_v36 = vadd.f32 %v3440_v8, %v1035_v32 }
 0x151   : > { %v1292_v37 = vadd.f32 %v3440_v8, %v1291_v33  ;;  %v3088_v38 = vpop.f32.mrf.mxu0  ;;  %v3152_v39 = vpop.f32.mrf.mxu1  ;;  %v1404_v42 = vmax.f32 %v1044_v30, 0.0  ;;  %v1468_v43 = vmax.f32 %v1300_v31, 0.0 }
 0x152   : > { %2907 = vst [vmem:[%s3455_s17 + $0xb0] sm:$0xff] %v2679_v34   ;;  %2939 = vst [vmem:[%s3455_s17 + $0x1b0] sm:$0xff] %v2839_v35   ;;  %v1047_v40 = vadd.f32 %v3088_v38, %v3440_v8  ;;  %v1303_v41 = vadd.f32 %v3152_v39, %v3440_v8  ;;  %v1402_v50 = vmax.f32 %v1036_v36, 0.0 }
 0x153   : > { %v1038_v44 = vpop.f32.mrf.mxu0  ;;  %v1294_v45 = vpop.f32.mrf.mxu1  ;;  %v1466_v51 = vmax.f32 %v1292_v37, 0.0 }
 0x154   : > { %v1405_v46 = vmax.f32 %v1047_v40, 0.0  ;;  %v1469_v47 = vmax.f32 %v1303_v41, 0.0  ;;  %v1039_v48 = vadd.f32 %v3440_v8, %v1038_v44  ;;  %v1295_v49 = vadd.f32 %v3440_v8, %v1294_v45 }
 0x155   : > { %v3091_v52 = vpop.f32.mrf.mxu0  ;;  %v3155_v53 = vpop.f32.mrf.mxu1 }
 0x156   : > { %v2694_v54 = vpack.c.bf16 %v1405_v46, %v1404_v42  ;;  %v2854_v55 = vpack.c.bf16 %v1469_v47, %v1468_v43  ;;  %v1403_v56 = vmax.f32 %v1039_v48, 0.0  ;;  %v1467_v57 = vmax.f32 %v1295_v49, 0.0 }
 0x157   : > { %v1060_v58 = vadd.f32 %v3091_v52, %v3440_v8  ;;  %v1316_v59 = vadd.f32 %v3155_v53, %v3440_v8  ;;  %v1051_v60 = vpop.f32.mrf.mxu0  ;;  %v1307_v61 = vpop.f32.mrf.mxu1 }
 0x158   : > { %2910 = vst [vmem:[%s3455_s17 + $0xc8] sm:$0xff] %v2694_v54   ;;  %2942 = vst [vmem:[%s3455_s17 + $0x1c8] sm:$0xff] %v2854_v55   ;;  %v2689_v62 = vpack.c.bf16 %v1403_v56, %v1402_v50  ;;  %v2849_v63 = vpack.c.bf16 %v1467_v57, %v1466_v51  ;;  %v1052_v0 = vadd.f32 %v3440_v8, %v1051_v60 }
 0x159   : > { %v1308_v1 = vadd.f32 %v3440_v8, %v1307_v61  ;;  %v3092_v2 = vpop.f32.mrf.mxu0  ;;  %v3156_v3 = vpop.f32.mrf.mxu1  ;;  %v1408_v6 = vmax.f32 %v1060_v58, 0.0  ;;  %v1472_v7 = vmax.f32 %v1316_v59, 0.0 }
 0x15a   : > { %2909 = vst [vmem:[%s3455_s17 + $0xc0] sm:$0xff] %v2689_v62   ;;  %2941 = vst [vmem:[%s3455_s17 + $0x1c0] sm:$0xff] %v2849_v63   ;;  %v1063_v4 = vadd.f32 %v3092_v2, %v3440_v8  ;;  %v1319_v5 = vadd.f32 %v3156_v3, %v3440_v8  ;;  %v1406_v15 = vmax.f32 %v1052_v0, 0.0 }
 0x15b   : > { %v1054_v9 = vpop.f32.mrf.mxu0  ;;  %v1310_v10 = vpop.f32.mrf.mxu1  ;;  %v1470_v16 = vmax.f32 %v1308_v1, 0.0 }
 0x15c   : > { %v1409_v11 = vmax.f32 %v1063_v4, 0.0  ;;  %v1473_v12 = vmax.f32 %v1319_v5, 0.0  ;;  %v1055_v13 = vadd.f32 %v3440_v8, %v1054_v9  ;;  %v1311_v14 = vadd.f32 %v3440_v8, %v1310_v10 }
 0x15d   : > { %v3095_v17 = vpop.f32.mrf.mxu0  ;;  %v3159_v18 = vpop.f32.mrf.mxu1 }
 0x15e   : > { %v2704_v19 = vpack.c.bf16 %v1409_v11, %v1408_v6  ;;  %v2864_v20 = vpack.c.bf16 %v1473_v12, %v1472_v7  ;;  %v1407_v21 = vmax.f32 %v1055_v13, 0.0  ;;  %v1471_v22 = vmax.f32 %v1311_v14, 0.0 }
 0x15f   : > { %v1076_v23 = vadd.f32 %v3095_v17, %v3440_v8  ;;  %v1332_v24 = vadd.f32 %v3159_v18, %v3440_v8  ;;  %v1067_v25 = vpop.f32.mrf.mxu0  ;;  %v1323_v26 = vpop.f32.mrf.mxu1 }
 0x160   : > { %2912 = vst [vmem:[%s3455_s17 + $0xd8] sm:$0xff] %v2704_v19   ;;  %2944 = vst [vmem:[%s3455_s17 + $0x1d8] sm:$0xff] %v2864_v20   ;;  %v2699_v27 = vpack.c.bf16 %v1407_v21, %v1406_v15  ;;  %v2859_v28 = vpack.c.bf16 %v1471_v22, %v1470_v16  ;;  %v1068_v29 = vadd.f32 %v3440_v8, %v1067_v25 }
 0x161   : > { %v1324_v30 = vadd.f32 %v3440_v8, %v1323_v26  ;;  %v3096_v31 = vpop.f32.mrf.mxu0  ;;  %v3160_v32 = vpop.f32.mrf.mxu1  ;;  %v1412_v35 = vmax.f32 %v1076_v23, 0.0  ;;  %v1476_v36 = vmax.f32 %v1332_v24, 0.0 }
 0x162   : > { %2911 = vst [vmem:[%s3455_s17 + $0xd0] sm:$0xff] %v2699_v27   ;;  %2943 = vst [vmem:[%s3455_s17 + $0x1d0] sm:$0xff] %v2859_v28   ;;  %v1079_v33 = vadd.f32 %v3096_v31, %v3440_v8  ;;  %v1335_v34 = vadd.f32 %v3160_v32, %v3440_v8  ;;  %v1410_v43 = vmax.f32 %v1068_v29, 0.0 }
 0x163   : > { %v1070_v37 = vpop.f32.mrf.mxu0  ;;  %v1326_v38 = vpop.f32.mrf.mxu1  ;;  %v1474_v44 = vmax.f32 %v1324_v30, 0.0 }
 0x164   : > { %v1413_v39 = vmax.f32 %v1079_v33, 0.0  ;;  %v1477_v40 = vmax.f32 %v1335_v34, 0.0  ;;  %v1071_v41 = vadd.f32 %v3440_v8, %v1070_v37  ;;  %v1327_v42 = vadd.f32 %v3440_v8, %v1326_v38 }
 0x165   : > { %v3099_v45 = vpop.f32.mrf.mxu0  ;;  %v3163_v46 = vpop.f32.mrf.mxu1 }
 0x166   : > { %v2714_v47 = vpack.c.bf16 %v1413_v39, %v1412_v35  ;;  %v2874_v48 = vpack.c.bf16 %v1477_v40, %v1476_v36  ;;  %v1411_v49 = vmax.f32 %v1071_v41, 0.0  ;;  %v1475_v50 = vmax.f32 %v1327_v42, 0.0 }
 0x167   : > { %v1092_v51 = vadd.f32 %v3099_v45, %v3440_v8  ;;  %v1348_v52 = vadd.f32 %v3163_v46, %v3440_v8  ;;  %v1083_v53 = vpop.f32.mrf.mxu0  ;;  %v1339_v54 = vpop.f32.mrf.mxu1 }
 0x168   : > { %2914 = vst [vmem:[%s3455_s17 + $0xe8] sm:$0xff] %v2714_v47   ;;  %2946 = vst [vmem:[%s3455_s17 + $0x1e8] sm:$0xff] %v2874_v48   ;;  %v2709_v55 = vpack.c.bf16 %v1411_v49, %v1410_v43  ;;  %v2869_v56 = vpack.c.bf16 %v1475_v50, %v1474_v44  ;;  %v1084_v57 = vadd.f32 %v3440_v8, %v1083_v53 }
 0x169   : > { %v1340_v58 = vadd.f32 %v3440_v8, %v1339_v54  ;;  %v3100_v59 = vpop.f32.mrf.mxu0  ;;  %v3164_v60 = vpop.f32.mrf.mxu1  ;;  %v1416_v63 = vmax.f32 %v1092_v51, 0.0  ;;  %v1480_v0 = vmax.f32 %v1348_v52, 0.0 }
 0x16a   : > { %2913 = vst [vmem:[%s3455_s17 + $0xe0] sm:$0xff] %v2709_v55   ;;  %2945 = vst [vmem:[%s3455_s17 + $0x1e0] sm:$0xff] %v2869_v56   ;;  %v1095_v61 = vadd.f32 %v3100_v59, %v3440_v8  ;;  %v1351_v62 = vadd.f32 %v3164_v60, %v3440_v8  ;;  %v1414_v7 = vmax.f32 %v1084_v57, 0.0 }
 0x16b   : > { %v1086_v1 = vpop.f32.mrf.mxu0  ;;  %v1342_v2 = vpop.f32.mrf.mxu1  ;;  %v1478_v9 = vmax.f32 %v1340_v58, 0.0 }
 0x16c   : > { %v1417_v3 = vmax.f32 %v1095_v61, 0.0  ;;  %v1481_v4 = vmax.f32 %v1351_v62, 0.0  ;;  %v1087_v5 = vadd.f32 %v3440_v8, %v1086_v1  ;;  %v1343_v6 = vadd.f32 %v3440_v8, %v1342_v2 }
 0x16e   : > { %v2724_v10 = vpack.c.bf16 %v1417_v3, %v1416_v63  ;;  %v2884_v11 = vpack.c.bf16 %v1481_v4, %v1480_v0  ;;  %v1415_v12 = vmax.f32 %v1087_v5, 0.0  ;;  %v1479_v13 = vmax.f32 %v1343_v6, 0.0 }
 0x170   : > { %2916 = vst [vmem:[%s3455_s17 + $0xf8] sm:$0xff] %v2724_v10   ;;  %2948 = vst [vmem:[%s3455_s17 + $0x1f8] sm:$0xff] %v2884_v11   ;;  %v2719_v14 = vpack.c.bf16 %v1415_v12, %v1414_v7  ;;  %v2879_v15 = vpack.c.bf16 %v1479_v13, %v1478_v9 }
 0x172   : > { %2915 = vst [vmem:[%s3455_s17 + $0xf0] sm:$0xff] %v2719_v14   ;;  %2947 = vst [vmem:[%s3455_s17 + $0x1f0] sm:$0xff] %v2879_v15  }
 0x173 PF: > { %s13_s14 = sadd.s32 1, %s3299_s14   ;;  %s3654_s12 = smov %s3295_s13 }
 0x174   : > { %p10_p5 = scmp.ge.s32.totalorder %s13_s14, 4   ;;  %s3655_s13 = smov %s3657_s15 }
 0x176   :  { %12 = sbr.rel (!%p10_p5) target bundleno = 2 (0x2), region = 68 }

// kernel: _lambda_.22
= control target key start
LH: loop header
LB: loop body
LE: loop exit
PB: predicated region body
PF: predicated region fallthrough
CT: control target
= control target key end

     0   :  { %s1796_s1 = inlined_call_operand.vmem [shape: bf16[128,128], index: 1, kind: input, shape index: {}]   ;;  %s1797_s0 = inlined_call_operand.vmem [shape: bf16[512,128], index: 0, kind: input, shape index: {}]   ;;  %s1798_s2 = inlined_call_operand.vmem [shape: f32[1,128], index: 2, kind: input, shape index: {}]   ;;  %s1799_s3 = inlined_call_operand.vmem [shape: bf16[512,128], index: 3, kind: output, shape index: {}]  }
   0x1   :  { %v1451_v0 = vld [vmem:[%s1796_s1 + $0x38] sm:$0xff]   ;;  %v1452_v1 = vld [vmem:[%s1796_s1 + $0x30] sm:$0xff]   ;;  %v1453_v2 = vld [vmem:[%s1796_s1 + $0x28] sm:$0xff]  }
   0x2   :  { %1355 = vmatprep.subr.bf16.mxu0 %v1451_v0  ;;  %1435 = vmatprep.subr.bf16.mxu1 %v1451_v0  ;;  %v1454_v3 = vld [vmem:[%s1796_s1 + $0x20] sm:$0xff]   ;;  %v1455_v6 = vld [vmem:[%s1796_s1 + $0x18] sm:$0xff]   ;;  %v1456_v7 = vld [vmem:[%s1796_s1 + $0x10] sm:$0xff]  }
   0x3   :  { %1356 = vmatpush3.bf16.msra.mxu0 %v1451_v0  ;;  %1443 = vmatpush3.bf16.msra.mxu1 %v1451_v0  ;;  %v1459_v4 = vld [vmem:[%s1797_s0] sm:$0xff]   ;;  %v1457_v8 = vld [vmem:[%s1796_s1 + $0x8] sm:$0xff]   ;;  %v1463_v12 = vld [vmem:[%s1797_s0 + $0x10] sm:$0xff]  }
   0x4   :  { %1357 = vmatprep.subr.bf16.mxu0 %v1452_v1  ;;  %1436 = vmatprep.subr.bf16.mxu1 %v1452_v1  ;;  %v1460_v5 = vld [vmem:[%s1797_s0 + $0x80] sm:$0xff]   ;;  %v1461_v10 = vld [vmem:[%s1797_s0 + $0x8] sm:$0xff]   ;;  %v1464_v13 = vld [vmem:[%s1797_s0 + $0x90] sm:$0xff]  }
   0x5   :  { %1371 = vmatprep.mubr.bf16.mxu0 %v1459_v4  ;;  %1403 = vmatprep.mubr.bf16.mxu1 %v1460_v5  ;;  %v1458_v9 = vld [vmem:[%s1796_s1] sm:$0xff]   ;;  %v1462_v11 = vld [vmem:[%s1797_s0 + $0x88] sm:$0xff]   ;;  %v1465_v14 = vld [vmem:[%s1797_s0 + $0x18] sm:$0xff]  }
   0x6   :  { %v1466_v15 = vld [vmem:[%s1797_s0 + $0x98] sm:$0xff]   ;;  %v1467_v16 = vld [vmem:[%s1797_s0 + $0x20] sm:$0xff]   ;;  %v1469_v18 = vld [vmem:[%s1797_s0 + $0x28] sm:$0xff]  }
   0x7   :  { %1358 = vmatpush3.bf16.msra.mxu0 %v1452_v1  ;;  %1444 = vmatpush3.bf16.msra.mxu1 %v1452_v1  ;;  %v1468_v17 = vld [vmem:[%s1797_s0 + $0xa0] sm:$0xff]   ;;  %v1470_v19 = vld [vmem:[%s1797_s0 + $0xa8] sm:$0xff]   ;;  %v1471_v20 = vld [vmem:[%s1797_s0 + $0x30] sm:$0xff]  }
   0x8   :  { %1359 = vmatprep.subr.bf16.mxu0 %v1453_v2  ;;  %1437 = vmatprep.subr.bf16.mxu1 %v1453_v2  ;;  %v1472_v21 = vld [vmem:[%s1797_s0 + $0xb0] sm:$0xff]   ;;  %v1473_v22 = vld [vmem:[%s1797_s0 + $0x38] sm:$0xff]   ;;  %v1475_v24 = vld [vmem:[%s1797_s0 + $0x40] sm:$0xff]  }
   0x9   :  { %v1474_v23 = vld [vmem:[%s1797_s0 + $0xb8] sm:$0xff]   ;;  %v1476_v25 = vld [vmem:[%s1797_s0 + $0xc0] sm:$0xff]   ;;  %v1477_v26 = vld [vmem:[%s1797_s0 + $0x48] sm:$0xff]  }
   0xa   :  { %v1478_v27 = vld [vmem:[%s1797_s0 + $0xc8] sm:$0xff]   ;;  %v1479_v28 = vld [vmem:[%s1797_s0 + $0x50] sm:$0xff]   ;;  %v1481_v30 = vld [vmem:[%s1797_s0 + $0x58] sm:$0xff]  }
   0xb   :  { %1360 = vmatpush3.bf16.msra.mxu0 %v1453_v2  ;;  %1445 = vmatpush3.bf16.msra.mxu1 %v1453_v2  ;;  %v1480_v29 = vld [vmem:[%s1797_s0 + $0xd0] sm:$0xff]   ;;  %v1482_v31 = vld [vmem:[%s1797_s0 + $0xd8] sm:$0xff]   ;;  %v1483_v32 = vld [vmem:[%s1797_s0 + $0x60] sm:$0xff]  }
   0xc   :  { %1361 = vmatprep.subr.bf16.mxu0 %v1454_v3  ;;  %1438 = vmatprep.subr.bf16.mxu1 %v1454_v3  ;;  %v1484_v33 = vld [vmem:[%s1797_s0 + $0xe0] sm:$0xff]   ;;  %v1485_v34 = vld [vmem:[%s1797_s0 + $0x68] sm:$0xff]   ;;  %v1487_v36 = vld [vmem:[%s1797_s0 + $0x70] sm:$0xff]  }
   0xd   :  { %v1486_v35 = vld [vmem:[%s1797_s0 + $0xe8] sm:$0xff]   ;;  %v1488_v37 = vld [vmem:[%s1797_s0 + $0xf0] sm:$0xff]   ;;  %v1489_v38 = vld [vmem:[%s1797_s0 + $0x78] sm:$0xff]  }
   0xe   :  { %v1490_v39 = vld [vmem:[%s1797_s0 + $0xf8] sm:$0xff]   ;;  %v1634_v42 = vld [vmem:[%s1798_s2] ss:$0 sm:$0xff] }
   0xf   :  { %1362 = vmatpush3.bf16.msra.mxu0 %v1454_v3  ;;  %1446 = vmatpush3.bf16.msra.mxu1 %v1454_v3 }
  0x10   :  { %1363 = vmatprep.subr.bf16.mxu0 %v1455_v6  ;;  %1439 = vmatprep.subr.bf16.mxu1 %v1455_v6 }
  0x13   :  { %1364 = vmatpush3.bf16.msra.mxu0 %v1455_v6  ;;  %1447 = vmatpush3.bf16.msra.mxu1 %v1455_v6 }
  0x14   :  { %1365 = vmatprep.subr.bf16.mxu0 %v1456_v7  ;;  %1440 = vmatprep.subr.bf16.mxu1 %v1456_v7 }
  0x17   :  { %1366 = vmatpush3.bf16.msra.mxu0 %v1456_v7  ;;  %1448 = vmatpush3.bf16.msra.mxu1 %v1456_v7 }
  0x18   :  { %1367 = vmatprep.subr.bf16.mxu0 %v1457_v8  ;;  %1441 = vmatprep.subr.bf16.mxu1 %v1457_v8 }
  0x1b   :  { %1368 = vmatpush3.bf16.msra.mxu0 %v1457_v8  ;;  %1449 = vmatpush3.bf16.msra.mxu1 %v1457_v8 }
  0x1c   :  { %1369 = vmatprep.subr.bf16.mxu0 %v1458_v9  ;;  %1442 = vmatprep.subr.bf16.mxu1 %v1458_v9 }
  0x1f   :  { %1370 = vmatpush3.bf16.msra.mxu0 %v1458_v9  ;;  %1450 = vmatpush3.bf16.msra.mxu1 %v1458_v9 }
  0x22   :  { %1372 = vmatmul.mubr.bf16.vlgmr.msra.gmra.mxu0 %v1461_v10  ;;  %1404 = vmatmul.mubr.bf16.vlgmr.msra.gmra.mxu1 %v1462_v11 }
  0x23   :  { %1375 = vmatprep.mubr.bf16.mxu0 %v1463_v12  ;;  %1407 = vmatprep.mubr.bf16.mxu1 %v1464_v13 }
  0x2a   :  { %1376 = vmatmul.mubr.bf16.gmra.mxu0 %v1465_v14  ;;  %1408 = vmatmul.mubr.bf16.gmra.mxu1 %v1466_v15 }
  0x2b   :  { %1379 = vmatprep.mubr.bf16.mxu0 %v1467_v16  ;;  %1411 = vmatprep.mubr.bf16.mxu1 %v1468_v17 }
  0x32   :  { %1380 = vmatmul.mubr.bf16.gmra.mxu0 %v1469_v18  ;;  %1412 = vmatmul.mubr.bf16.gmra.mxu1 %v1470_v19 }
  0x33   :  { %1383 = vmatprep.mubr.bf16.mxu0 %v1471_v20  ;;  %1415 = vmatprep.mubr.bf16.mxu1 %v1472_v21 }
  0x3a   :  { %1384 = vmatmul.mubr.bf16.gmra.mxu0 %v1473_v22  ;;  %1416 = vmatmul.mubr.bf16.gmra.mxu1 %v1474_v23 }
  0x3b   :  { %1387 = vmatprep.mubr.bf16.mxu0 %v1475_v24  ;;  %1419 = vmatprep.mubr.bf16.mxu1 %v1476_v25 }
  0x42   :  { %1388 = vmatmul.mubr.bf16.gmra.mxu0 %v1477_v26  ;;  %1420 = vmatmul.mubr.bf16.gmra.mxu1 %v1478_v27 }
  0x43   :  { %1391 = vmatprep.mubr.bf16.mxu0 %v1479_v28  ;;  %1423 = vmatprep.mubr.bf16.mxu1 %v1480_v29 }
  0x4a   :  { %1392 = vmatmul.mubr.bf16.gmra.mxu0 %v1481_v30  ;;  %1424 = vmatmul.mubr.bf16.gmra.mxu1 %v1482_v31 }
  0x4b   :  { %1395 = vmatprep.mubr.bf16.mxu0 %v1483_v32  ;;  %1427 = vmatprep.mubr.bf16.mxu1 %v1484_v33 }
  0x52   :  { %1396 = vmatmul.mubr.bf16.gmra.mxu0 %v1485_v34  ;;  %1428 = vmatmul.mubr.bf16.gmra.mxu1 %v1486_v35 }
  0x53   :  { %1399 = vmatprep.mubr.bf16.mxu0 %v1487_v36  ;;  %1431 = vmatprep.mubr.bf16.mxu1 %v1488_v37 }
  0x5a   :  { %1400 = vmatmul.mubr.bf16.gmra.mxu0 %v1489_v38  ;;  %1432 = vmatmul.mubr.bf16.gmra.mxu1 %v1490_v39 }
  0xe2   :  { %v1373_v40 = vpop.f32.mrf.mxu0  ;;  %v1405_v41 = vpop.f32.mrf.mxu1 }
  0xe3   :  { %v385_v47 = vadd.f32 %v1373_v40, %v1634_v42  ;;  %v513_v48 = vadd.f32 %v1405_v41, %v1634_v42 }
  0xe4   :  { %v376_v43 = vpop.f32.mrf.mxu0  ;;  %v504_v44 = vpop.f32.mrf.mxu1 }
  0xe5   :  { %v377_v51 = vadd.f32 %v1634_v42, %v376_v43  ;;  %v505_v52 = vadd.f32 %v1634_v42, %v504_v44 }
  0xe6   :  { %v1374_v45 = vpop.f32.mrf.mxu0  ;;  %v1406_v46 = vpop.f32.mrf.mxu1 }
  0xe7   :  { %v388_v49 = vadd.f32 %v1374_v45, %v1634_v42  ;;  %v516_v50 = vadd.f32 %v1406_v46, %v1634_v42 }
  0xe8   :  { %v379_v53 = vpop.f32.mrf.mxu0  ;;  %v507_v54 = vpop.f32.mrf.mxu1 }
  0xe9   :  { %v1132_v55 = vpack.c.bf16 %v388_v49, %v385_v47  ;;  %v1212_v56 = vpack.c.bf16 %v516_v50, %v513_v48  ;;  %v380_v57 = vadd.f32 %v1634_v42, %v379_v53  ;;  %v508_v58 = vadd.f32 %v1634_v42, %v507_v54 }
  0xea   :  { %v1377_v59 = vpop.f32.mrf.mxu0  ;;  %v1409_v60 = vpop.f32.mrf.mxu1 }
  0xeb   :  { %1284 = vst [vmem:[%s1799_s3 + $0x8] sm:$0xff] %v1132_v55   ;;  %1300 = vst [vmem:[%s1799_s3 + $0x88] sm:$0xff] %v1212_v56   ;;  %v1127_v61 = vpack.c.bf16 %v380_v57, %v377_v51  ;;  %v1207_v62 = vpack.c.bf16 %v508_v58, %v505_v52  ;;  %v401_v3 = vadd.f32 %v1377_v59, %v1634_v42 }
  0xec   :  { %v392_v63 = vpop.f32.mrf.mxu0  ;;  %v520_v0 = vpop.f32.mrf.mxu1  ;;  %v529_v4 = vadd.f32 %v1409_v60, %v1634_v42 }
  0xed   :  { %1128 = vst [vmem:[%s1799_s3] sm:$0xff] %v1127_v61   ;;  %1299 = vst [vmem:[%s1799_s3 + $0x80] sm:$0xff] %v1207_v62   ;;  %v393_v7 = vadd.f32 %v1634_v42, %v392_v63  ;;  %v521_v8 = vadd.f32 %v1634_v42, %v520_v0 }
  0xee   :  { %v1378_v1 = vpop.f32.mrf.mxu0  ;;  %v1410_v2 = vpop.f32.mrf.mxu1 }
  0xef   :  { %v404_v5 = vadd.f32 %v1378_v1, %v1634_v42  ;;  %v532_v6 = vadd.f32 %v1410_v2, %v1634_v42 }
  0xf0   :  { %v395_v9 = vpop.f32.mrf.mxu0  ;;  %v523_v10 = vpop.f32.mrf.mxu1 }
  0xf1   :  { %v1142_v11 = vpack.c.bf16 %v404_v5, %v401_v3  ;;  %v1222_v12 = vpack.c.bf16 %v532_v6, %v529_v4  ;;  %v396_v13 = vadd.f32 %v1634_v42, %v395_v9  ;;  %v524_v14 = vadd.f32 %v1634_v42, %v523_v10 }
  0xf2   :  { %v1381_v15 = vpop.f32.mrf.mxu0  ;;  %v1413_v16 = vpop.f32.mrf.mxu1 }
  0xf3   :  { %1286 = vst [vmem:[%s1799_s3 + $0x18] sm:$0xff] %v1142_v11   ;;  %1302 = vst [vmem:[%s1799_s3 + $0x98] sm:$0xff] %v1222_v12   ;;  %v1137_v17 = vpack.c.bf16 %v396_v13, %v393_v7  ;;  %v1217_v18 = vpack.c.bf16 %v524_v14, %v521_v8  ;;  %v417_v23 = vadd.f32 %v1381_v15, %v1634_v42 }
  0xf4   :  { %v408_v19 = vpop.f32.mrf.mxu0  ;;  %v536_v20 = vpop.f32.mrf.mxu1  ;;  %v545_v24 = vadd.f32 %v1413_v16, %v1634_v42 }
  0xf5   :  { %1285 = vst [vmem:[%s1799_s3 + $0x10] sm:$0xff] %v1137_v17   ;;  %1301 = vst [vmem:[%s1799_s3 + $0x90] sm:$0xff] %v1217_v18   ;;  %v409_v27 = vadd.f32 %v1634_v42, %v408_v19  ;;  %v537_v28 = vadd.f32 %v1634_v42, %v536_v20 }
  0xf6   :  { %v1382_v21 = vpop.f32.mrf.mxu0  ;;  %v1414_v22 = vpop.f32.mrf.mxu1 }
  0xf7   :  { %v420_v25 = vadd.f32 %v1382_v21, %v1634_v42  ;;  %v548_v26 = vadd.f32 %v1414_v22, %v1634_v42 }
  0xf8   :  { %v411_v29 = vpop.f32.mrf.mxu0  ;;  %v539_v30 = vpop.f32.mrf.mxu1 }
  0xf9   :  { %v1152_v31 = vpack.c.bf16 %v420_v25, %v417_v23  ;;  %v1232_v32 = vpack.c.bf16 %v548_v26, %v545_v24  ;;  %v412_v33 = vadd.f32 %v1634_v42, %v411_v29  ;;  %v540_v34 = vadd.f32 %v1634_v42, %v539_v30 }
  0xfa   :  { %v1385_v35 = vpop.f32.mrf.mxu0  ;;  %v1417_v36 = vpop.f32.mrf.mxu1 }
  0xfb   :  { %1288 = vst [vmem:[%s1799_s3 + $0x28] sm:$0xff] %v1152_v31   ;;  %1304 = vst [vmem:[%s1799_s3 + $0xa8] sm:$0xff] %v1232_v32   ;;  %v1147_v37 = vpack.c.bf16 %v412_v33, %v409_v27  ;;  %v1227_v38 = vpack.c.bf16 %v540_v34, %v537_v28  ;;  %v433_v44 = vadd.f32 %v1385_v35, %v1634_v42 }
  0xfc   :  { %v424_v39 = vpop.f32.mrf.mxu0  ;;  %v552_v40 = vpop.f32.mrf.mxu1  ;;  %v561_v45 = vadd.f32 %v1417_v36, %v1634_v42 }
  0xfd   :  { %1287 = vst [vmem:[%s1799_s3 + $0x20] sm:$0xff] %v1147_v37   ;;  %1303 = vst [vmem:[%s1799_s3 + $0xa0] sm:$0xff] %v1227_v38   ;;  %v425_v48 = vadd.f32 %v1634_v42, %v424_v39  ;;  %v553_v49 = vadd.f32 %v1634_v42, %v552_v40 }
  0xfe   :  { %v1386_v41 = vpop.f32.mrf.mxu0  ;;  %v1418_v43 = vpop.f32.mrf.mxu1 }
  0xff   :  { %v436_v46 = vadd.f32 %v1386_v41, %v1634_v42  ;;  %v564_v47 = vadd.f32 %v1418_v43, %v1634_v42 }
 0x100   :  { %v427_v50 = vpop.f32.mrf.mxu0  ;;  %v555_v51 = vpop.f32.mrf.mxu1 }
 0x101   :  { %v1162_v52 = vpack.c.bf16 %v436_v46, %v433_v44  ;;  %v1242_v53 = vpack.c.bf16 %v564_v47, %v561_v45  ;;  %v428_v54 = vadd.f32 %v1634_v42, %v427_v50  ;;  %v556_v55 = vadd.f32 %v1634_v42, %v555_v51 }
 0x102   :  { %v1389_v56 = vpop.f32.mrf.mxu0  ;;  %v1421_v57 = vpop.f32.mrf.mxu1 }
 0x103   :  { %1290 = vst [vmem:[%s1799_s3 + $0x38] sm:$0xff] %v1162_v52   ;;  %1306 = vst [vmem:[%s1799_s3 + $0xb8] sm:$0xff] %v1242_v53   ;;  %v1157_v58 = vpack.c.bf16 %v428_v54, %v425_v48  ;;  %v1237_v59 = vpack.c.bf16 %v556_v55, %v553_v49  ;;  %v449_v0 = vadd.f32 %v1389_v56, %v1634_v42 }
 0x104   :  { %v440_v60 = vpop.f32.mrf.mxu0  ;;  %v568_v61 = vpop.f32.mrf.mxu1  ;;  %v577_v1 = vadd.f32 %v1421_v57, %v1634_v42 }
 0x105   :  { %1289 = vst [vmem:[%s1799_s3 + $0x30] sm:$0xff] %v1157_v58   ;;  %1305 = vst [vmem:[%s1799_s3 + $0xb0] sm:$0xff] %v1237_v59   ;;  %v441_v4 = vadd.f32 %v1634_v42, %v440_v60  ;;  %v569_v5 = vadd.f32 %v1634_v42, %v568_v61 }
 0x106   :  { %v1390_v62 = vpop.f32.mrf.mxu0  ;;  %v1422_v63 = vpop.f32.mrf.mxu1 }
 0x107   :  { %v452_v2 = vadd.f32 %v1390_v62, %v1634_v42  ;;  %v580_v3 = vadd.f32 %v1422_v63, %v1634_v42 }
 0x108   :  { %v443_v6 = vpop.f32.mrf.mxu0  ;;  %v571_v7 = vpop.f32.mrf.mxu1 }
 0x109   :  { %v1172_v8 = vpack.c.bf16 %v452_v2, %v449_v0  ;;  %v1252_v9 = vpack.c.bf16 %v580_v3, %v577_v1  ;;  %v444_v10 = vadd.f32 %v1634_v42, %v443_v6  ;;  %v572_v11 = vadd.f32 %v1634_v42, %v571_v7 }
 0x10a   :  { %v1393_v12 = vpop.f32.mrf.mxu0  ;;  %v1425_v13 = vpop.f32.mrf.mxu1 }
 0x10b   :  { %1292 = vst [vmem:[%s1799_s3 + $0x48] sm:$0xff] %v1172_v8   ;;  %1308 = vst [vmem:[%s1799_s3 + $0xc8] sm:$0xff] %v1252_v9   ;;  %v1167_v14 = vpack.c.bf16 %v444_v10, %v441_v4  ;;  %v1247_v15 = vpack.c.bf16 %v572_v11, %v569_v5  ;;  %v465_v20 = vadd.f32 %v1393_v12, %v1634_v42 }
 0x10c   :  { %v456_v16 = vpop.f32.mrf.mxu0  ;;  %v584_v17 = vpop.f32.mrf.mxu1  ;;  %v593_v21 = vadd.f32 %v1425_v13, %v1634_v42 }
 0x10d   :  { %1291 = vst [vmem:[%s1799_s3 + $0x40] sm:$0xff] %v1167_v14   ;;  %1307 = vst [vmem:[%s1799_s3 + $0xc0] sm:$0xff] %v1247_v15   ;;  %v457_v24 = vadd.f32 %v1634_v42, %v456_v16  ;;  %v585_v25 = vadd.f32 %v1634_v42, %v584_v17 }
 0x10e   :  { %v1394_v18 = vpop.f32.mrf.mxu0  ;;  %v1426_v19 = vpop.f32.mrf.mxu1 }
 0x10f   :  { %v468_v22 = vadd.f32 %v1394_v18, %v1634_v42  ;;  %v596_v23 = vadd.f32 %v1426_v19, %v1634_v42 }
 0x110   :  { %v459_v26 = vpop.f32.mrf.mxu0  ;;  %v587_v27 = vpop.f32.mrf.mxu1 }
 0x111   :  { %v1182_v28 = vpack.c.bf16 %v468_v22, %v465_v20  ;;  %v1262_v29 = vpack.c.bf16 %v596_v23, %v593_v21  ;;  %v460_v30 = vadd.f32 %v1634_v42, %v459_v26  ;;  %v588_v31 = vadd.f32 %v1634_v42, %v587_v27 }
 0x112   :  { %v1397_v32 = vpop.f32.mrf.mxu0  ;;  %v1429_v33 = vpop.f32.mrf.mxu1 }
 0x113   :  { %1294 = vst [vmem:[%s1799_s3 + $0x58] sm:$0xff] %v1182_v28   ;;  %1310 = vst [vmem:[%s1799_s3 + $0xd8] sm:$0xff] %v1262_v29   ;;  %v1177_v34 = vpack.c.bf16 %v460_v30, %v457_v24  ;;  %v1257_v35 = vpack.c.bf16 %v588_v31, %v585_v25  ;;  %v481_v40 = vadd.f32 %v1397_v32, %v1634_v42 }
 0x114   :  { %v472_v36 = vpop.f32.mrf.mxu0  ;;  %v600_v37 = vpop.f32.mrf.mxu1  ;;  %v609_v41 = vadd.f32 %v1429_v33, %v1634_v42 }
 0x115   :  { %1293 = vst [vmem:[%s1799_s3 + $0x50] sm:$0xff] %v1177_v34   ;;  %1309 = vst [vmem:[%s1799_s3 + $0xd0] sm:$0xff] %v1257_v35   ;;  %v473_v45 = vadd.f32 %v1634_v42, %v472_v36  ;;  %v601_v46 = vadd.f32 %v1634_v42, %v600_v37 }
 0x116   :  { %v1398_v38 = vpop.f32.mrf.mxu0  ;;  %v1430_v39 = vpop.f32.mrf.mxu1 }
 0x117   :  { %v484_v43 = vadd.f32 %v1398_v38, %v1634_v42  ;;  %v612_v44 = vadd.f32 %v1430_v39, %v1634_v42 }
 0x118   :  { %v475_v47 = vpop.f32.mrf.mxu0  ;;  %v603_v48 = vpop.f32.mrf.mxu1 }
 0x119   :  { %v1192_v49 = vpack.c.bf16 %v484_v43, %v481_v40  ;;  %v1272_v50 = vpack.c.bf16 %v612_v44, %v609_v41  ;;  %v476_v51 = vadd.f32 %v1634_v42, %v475_v47  ;;  %v604_v52 = vadd.f32 %v1634_v42, %v603_v48 }
 0x11a   :  { %v1401_v53 = vpop.f32.mrf.mxu0  ;;  %v1433_v54 = vpop.f32.mrf.mxu1 }
 0x11b   :  { %1296 = vst [vmem:[%s1799_s3 + $0x68] sm:$0xff] %v1192_v49   ;;  %1312 = vst [vmem:[%s1799_s3 + $0xe8] sm:$0xff] %v1272_v50   ;;  %v1187_v55 = vpack.c.bf16 %v476_v51, %v473_v45  ;;  %v1267_v56 = vpack.c.bf16 %v604_v52, %v601_v46  ;;  %v497_v61 = vadd.f32 %v1401_v53, %v1634_v42 }
 0x11c   :  { %v488_v57 = vpop.f32.mrf.mxu0  ;;  %v616_v58 = vpop.f32.mrf.mxu1  ;;  %v625_v62 = vadd.f32 %v1433_v54, %v1634_v42 }
 0x11d   :  { %1295 = vst [vmem:[%s1799_s3 + $0x60] sm:$0xff] %v1187_v55   ;;  %1311 = vst [vmem:[%s1799_s3 + $0xe0] sm:$0xff] %v1267_v56   ;;  %v489_v1 = vadd.f32 %v1634_v42, %v488_v57  ;;  %v617_v2 = vadd.f32 %v1634_v42, %v616_v58 }
 0x11e   :  { %v1402_v59 = vpop.f32.mrf.mxu0  ;;  %v1434_v60 = vpop.f32.mrf.mxu1 }
 0x11f   :  { %v500_v63 = vadd.f32 %v1402_v59, %v1634_v42  ;;  %v628_v0 = vadd.f32 %v1434_v60, %v1634_v42 }
 0x120   :  { %v491_v3 = vpop.f32.mrf.mxu0  ;;  %v619_v4 = vpop.f32.mrf.mxu1 }
 0x121   :  { %v1202_v5 = vpack.c.bf16 %v500_v63, %v497_v61  ;;  %v1282_v6 = vpack.c.bf16 %v628_v0, %v625_v62  ;;  %v492_v7 = vadd.f32 %v1634_v42, %v491_v3  ;;  %v620_v8 = vadd.f32 %v1634_v42, %v619_v4 }
 0x123   :  { %1298 = vst [vmem:[%s1799_s3 + $0x78] sm:$0xff] %v1202_v5   ;;  %1314 = vst [vmem:[%s1799_s3 + $0xf8] sm:$0xff] %v1282_v6   ;;  %v1197_v9 = vpack.c.bf16 %v492_v7, %v489_v1  ;;  %v1277_v10 = vpack.c.bf16 %v620_v8, %v617_v2 }
 0x125   :  { %1297 = vst [vmem:[%s1799_s3 + $0x70] sm:$0xff] %v1197_v9   ;;  %1313 = vst [vmem:[%s1799_s3 + $0xf0] sm:$0xff] %v1277_v10  }

// kernel: _lambda_.23
= control target key start
LH: loop header
LB: loop body
LE: loop exit
PB: predicated region body
PF: predicated region fallthrough
CT: control target
= control target key end

     0   :  { %s1860_s1 = inlined_call_operand.vmem [shape: bf16[128,128], index: 1, kind: input, shape index: {}]   ;;  %s1861_s0 = inlined_call_operand.vmem [shape: bf16[512,128], index: 0, kind: input, shape index: {}]   ;;  %s1862_s2 = inlined_call_operand.vmem [shape: f32[1,128], index: 2, kind: input, shape index: {}]   ;;  %s1863_s3 = inlined_call_operand.vmem [shape: bf16[512,128], index: 3, kind: output, shape index: {}]  }
   0x1   :  { %v1515_v0 = vld [vmem:[%s1860_s1 + $0x38] sm:$0xff]   ;;  %v1516_v1 = vld [vmem:[%s1860_s1 + $0x30] sm:$0xff]   ;;  %v1517_v2 = vld [vmem:[%s1860_s1 + $0x28] sm:$0xff]  }
   0x2   :  { %1419 = vmatprep.subr.bf16.mxu0 %v1515_v0  ;;  %1499 = vmatprep.subr.bf16.mxu1 %v1515_v0  ;;  %v1518_v3 = vld [vmem:[%s1860_s1 + $0x20] sm:$0xff]   ;;  %v1519_v6 = vld [vmem:[%s1860_s1 + $0x18] sm:$0xff]   ;;  %v1520_v7 = vld [vmem:[%s1860_s1 + $0x10] sm:$0xff]  }
   0x3   :  { %1420 = vmatpush3.bf16.msra.mxu0 %v1515_v0  ;;  %1507 = vmatpush3.bf16.msra.mxu1 %v1515_v0  ;;  %v1523_v4 = vld [vmem:[%s1861_s0] sm:$0xff]   ;;  %v1521_v8 = vld [vmem:[%s1860_s1 + $0x8] sm:$0xff]   ;;  %v1527_v12 = vld [vmem:[%s1861_s0 + $0x10] sm:$0xff]  }
   0x4   :  { %1421 = vmatprep.subr.bf16.mxu0 %v1516_v1  ;;  %1500 = vmatprep.subr.bf16.mxu1 %v1516_v1  ;;  %v1524_v5 = vld [vmem:[%s1861_s0 + $0x80] sm:$0xff]   ;;  %v1525_v10 = vld [vmem:[%s1861_s0 + $0x8] sm:$0xff]   ;;  %v1528_v13 = vld [vmem:[%s1861_s0 + $0x90] sm:$0xff]  }
   0x5   :  { %1435 = vmatprep.mubr.bf16.mxu0 %v1523_v4  ;;  %1467 = vmatprep.mubr.bf16.mxu1 %v1524_v5  ;;  %v1522_v9 = vld [vmem:[%s1860_s1] sm:$0xff]   ;;  %v1526_v11 = vld [vmem:[%s1861_s0 + $0x88] sm:$0xff]   ;;  %v1529_v14 = vld [vmem:[%s1861_s0 + $0x18] sm:$0xff]  }
   0x6   :  { %v1530_v15 = vld [vmem:[%s1861_s0 + $0x98] sm:$0xff]   ;;  %v1531_v16 = vld [vmem:[%s1861_s0 + $0x20] sm:$0xff]   ;;  %v1533_v18 = vld [vmem:[%s1861_s0 + $0x28] sm:$0xff]  }
   0x7   :  { %1422 = vmatpush3.bf16.msra.mxu0 %v1516_v1  ;;  %1508 = vmatpush3.bf16.msra.mxu1 %v1516_v1  ;;  %v1532_v17 = vld [vmem:[%s1861_s0 + $0xa0] sm:$0xff]   ;;  %v1534_v19 = vld [vmem:[%s1861_s0 + $0xa8] sm:$0xff]   ;;  %v1535_v20 = vld [vmem:[%s1861_s0 + $0x30] sm:$0xff]  }
   0x8   :  { %1423 = vmatprep.subr.bf16.mxu0 %v1517_v2  ;;  %1501 = vmatprep.subr.bf16.mxu1 %v1517_v2  ;;  %v1536_v21 = vld [vmem:[%s1861_s0 + $0xb0] sm:$0xff]   ;;  %v1537_v22 = vld [vmem:[%s1861_s0 + $0x38] sm:$0xff]   ;;  %v1539_v24 = vld [vmem:[%s1861_s0 + $0x40] sm:$0xff]  }
   0x9   :  { %v1538_v23 = vld [vmem:[%s1861_s0 + $0xb8] sm:$0xff]   ;;  %v1540_v25 = vld [vmem:[%s1861_s0 + $0xc0] sm:$0xff]   ;;  %v1541_v26 = vld [vmem:[%s1861_s0 + $0x48] sm:$0xff]  }
   0xa   :  { %v1542_v27 = vld [vmem:[%s1861_s0 + $0xc8] sm:$0xff]   ;;  %v1543_v28 = vld [vmem:[%s1861_s0 + $0x50] sm:$0xff]   ;;  %v1545_v30 = vld [vmem:[%s1861_s0 + $0x58] sm:$0xff]  }
   0xb   :  { %1424 = vmatpush3.bf16.msra.mxu0 %v1517_v2  ;;  %1509 = vmatpush3.bf16.msra.mxu1 %v1517_v2  ;;  %v1544_v29 = vld [vmem:[%s1861_s0 + $0xd0] sm:$0xff]   ;;  %v1546_v31 = vld [vmem:[%s1861_s0 + $0xd8] sm:$0xff]   ;;  %v1547_v32 = vld [vmem:[%s1861_s0 + $0x60] sm:$0xff]  }
   0xc   :  { %1425 = vmatprep.subr.bf16.mxu0 %v1518_v3  ;;  %1502 = vmatprep.subr.bf16.mxu1 %v1518_v3  ;;  %v1548_v33 = vld [vmem:[%s1861_s0 + $0xe0] sm:$0xff]   ;;  %v1549_v34 = vld [vmem:[%s1861_s0 + $0x68] sm:$0xff]   ;;  %v1551_v36 = vld [vmem:[%s1861_s0 + $0x70] sm:$0xff]  }
   0xd   :  { %v1550_v35 = vld [vmem:[%s1861_s0 + $0xe8] sm:$0xff]   ;;  %v1552_v37 = vld [vmem:[%s1861_s0 + $0xf0] sm:$0xff]   ;;  %v1553_v38 = vld [vmem:[%s1861_s0 + $0x78] sm:$0xff]  }
   0xe   :  { %v1554_v39 = vld [vmem:[%s1861_s0 + $0xf8] sm:$0xff]   ;;  %v1698_v40 = vld [vmem:[%s1862_s2] ss:$0 sm:$0xff] }
   0xf   :  { %1426 = vmatpush3.bf16.msra.mxu0 %v1518_v3  ;;  %1510 = vmatpush3.bf16.msra.mxu1 %v1518_v3 }
  0x10   :  { %1427 = vmatprep.subr.bf16.mxu0 %v1519_v6  ;;  %1503 = vmatprep.subr.bf16.mxu1 %v1519_v6 }
  0x13   :  { %1428 = vmatpush3.bf16.msra.mxu0 %v1519_v6  ;;  %1511 = vmatpush3.bf16.msra.mxu1 %v1519_v6 }
  0x14   :  { %1429 = vmatprep.subr.bf16.mxu0 %v1520_v7  ;;  %1504 = vmatprep.subr.bf16.mxu1 %v1520_v7 }
  0x17   :  { %1430 = vmatpush3.bf16.msra.mxu0 %v1520_v7  ;;  %1512 = vmatpush3.bf16.msra.mxu1 %v1520_v7 }
  0x18   :  { %1431 = vmatprep.subr.bf16.mxu0 %v1521_v8  ;;  %1505 = vmatprep.subr.bf16.mxu1 %v1521_v8 }
  0x1b   :  { %1432 = vmatpush3.bf16.msra.mxu0 %v1521_v8  ;;  %1513 = vmatpush3.bf16.msra.mxu1 %v1521_v8 }
  0x1c   :  { %1433 = vmatprep.subr.bf16.mxu0 %v1522_v9  ;;  %1506 = vmatprep.subr.bf16.mxu1 %v1522_v9 }
  0x1f   :  { %1434 = vmatpush3.bf16.msra.mxu0 %v1522_v9  ;;  %1514 = vmatpush3.bf16.msra.mxu1 %v1522_v9 }
  0x22   :  { %1436 = vmatmul.mubr.bf16.vlgmr.msra.gmra.mxu0 %v1525_v10  ;;  %1468 = vmatmul.mubr.bf16.vlgmr.msra.gmra.mxu1 %v1526_v11 }
  0x23   :  { %1439 = vmatprep.mubr.bf16.mxu0 %v1527_v12  ;;  %1471 = vmatprep.mubr.bf16.mxu1 %v1528_v13 }
  0x2a   :  { %1440 = vmatmul.mubr.bf16.gmra.mxu0 %v1529_v14  ;;  %1472 = vmatmul.mubr.bf16.gmra.mxu1 %v1530_v15 }
  0x2b   :  { %1443 = vmatprep.mubr.bf16.mxu0 %v1531_v16  ;;  %1475 = vmatprep.mubr.bf16.mxu1 %v1532_v17 }
  0x32   :  { %1444 = vmatmul.mubr.bf16.gmra.mxu0 %v1533_v18  ;;  %1476 = vmatmul.mubr.bf16.gmra.mxu1 %v1534_v19 }
  0x33   :  { %1447 = vmatprep.mubr.bf16.mxu0 %v1535_v20  ;;  %1479 = vmatprep.mubr.bf16.mxu1 %v1536_v21 }
  0x3a   :  { %1448 = vmatmul.mubr.bf16.gmra.mxu0 %v1537_v22  ;;  %1480 = vmatmul.mubr.bf16.gmra.mxu1 %v1538_v23 }
  0x3b   :  { %1451 = vmatprep.mubr.bf16.mxu0 %v1539_v24  ;;  %1483 = vmatprep.mubr.bf16.mxu1 %v1540_v25 }
  0x42   :  { %1452 = vmatmul.mubr.bf16.gmra.mxu0 %v1541_v26  ;;  %1484 = vmatmul.mubr.bf16.gmra.mxu1 %v1542_v27 }
  0x43   :  { %1455 = vmatprep.mubr.bf16.mxu0 %v1543_v28  ;;  %1487 = vmatprep.mubr.bf16.mxu1 %v1544_v29 }
  0x4a   :  { %1456 = vmatmul.mubr.bf16.gmra.mxu0 %v1545_v30  ;;  %1488 = vmatmul.mubr.bf16.gmra.mxu1 %v1546_v31 }
  0x4b   :  { %1459 = vmatprep.mubr.bf16.mxu0 %v1547_v32  ;;  %1491 = vmatprep.mubr.bf16.mxu1 %v1548_v33 }
  0x52   :  { %1460 = vmatmul.mubr.bf16.gmra.mxu0 %v1549_v34  ;;  %1492 = vmatmul.mubr.bf16.gmra.mxu1 %v1550_v35 }
  0x53   :  { %1463 = vmatprep.mubr.bf16.mxu0 %v1551_v36  ;;  %1495 = vmatprep.mubr.bf16.mxu1 %v1552_v37 }
  0x5a   :  { %1464 = vmatmul.mubr.bf16.gmra.mxu0 %v1553_v38  ;;  %1496 = vmatmul.mubr.bf16.gmra.mxu1 %v1554_v39 }
  0xe2   :  { %v1437_v41 = vpop.f32.mrf.mxu0  ;;  %v1469_v42 = vpop.f32.mrf.mxu1 }
  0xe3   :  { %v385_v43 = vadd.f32 %v1437_v41, %v1698_v40  ;;  %v513_v44 = vadd.f32 %v1469_v42, %v1698_v40 }
  0xe4   :  { %v376_v45 = vpop.f32.mrf.mxu0  ;;  %v504_v46 = vpop.f32.mrf.mxu1 }
  0xe5   :  { %v377_v47 = vadd.f32 %v1698_v40, %v376_v45  ;;  %v505_v48 = vadd.f32 %v1698_v40, %v504_v46  ;;  %v633_v53 = vmax.f32 %v385_v43, 0.0  ;;  %v665_v54 = vmax.f32 %v513_v44, 0.0 }
  0xe6   :  { %v1438_v49 = vpop.f32.mrf.mxu0  ;;  %v1470_v50 = vpop.f32.mrf.mxu1 }
  0xe7   :  { %v388_v51 = vadd.f32 %v1438_v49, %v1698_v40  ;;  %v516_v52 = vadd.f32 %v1470_v50, %v1698_v40  ;;  %v631_v61 = vmax.f32 %v377_v47, 0.0  ;;  %v663_v62 = vmax.f32 %v505_v48, 0.0 }
  0xe8   :  { %v379_v55 = vpop.f32.mrf.mxu0  ;;  %v507_v56 = vpop.f32.mrf.mxu1 }
  0xe9   :  { %v634_v57 = vmax.f32 %v388_v51, 0.0  ;;  %v666_v58 = vmax.f32 %v516_v52, 0.0  ;;  %v380_v59 = vadd.f32 %v1698_v40, %v379_v55  ;;  %v508_v60 = vadd.f32 %v1698_v40, %v507_v56 }
  0xea   :  { %v1441_v63 = vpop.f32.mrf.mxu0  ;;  %v1473_v0 = vpop.f32.mrf.mxu1 }
  0xeb   :  { %v1196_v1 = vpack.c.bf16 %v634_v57, %v633_v53  ;;  %v1276_v2 = vpack.c.bf16 %v666_v58, %v665_v54  ;;  %v632_v3 = vmax.f32 %v380_v59, 0.0  ;;  %v664_v4 = vmax.f32 %v508_v60, 0.0 }
  0xec   :  { %v401_v5 = vadd.f32 %v1441_v63, %v1698_v40  ;;  %v529_v6 = vadd.f32 %v1473_v0, %v1698_v40  ;;  %v392_v7 = vpop.f32.mrf.mxu0  ;;  %v520_v8 = vpop.f32.mrf.mxu1 }
  0xed   :  { %1348 = vst [vmem:[%s1863_s3 + $0x8] sm:$0xff] %v1196_v1   ;;  %1364 = vst [vmem:[%s1863_s3 + $0x88] sm:$0xff] %v1276_v2   ;;  %v1191_v9 = vpack.c.bf16 %v632_v3, %v631_v61  ;;  %v1271_v10 = vpack.c.bf16 %v664_v4, %v663_v62  ;;  %v393_v11 = vadd.f32 %v1698_v40, %v392_v7 }
  0xee   :  { %v521_v12 = vadd.f32 %v1698_v40, %v520_v8  ;;  %v1442_v13 = vpop.f32.mrf.mxu0  ;;  %v1474_v14 = vpop.f32.mrf.mxu1  ;;  %v637_v17 = vmax.f32 %v401_v5, 0.0  ;;  %v669_v18 = vmax.f32 %v529_v6, 0.0 }
  0xef   :  { %1192 = vst [vmem:[%s1863_s3] sm:$0xff] %v1191_v9   ;;  %1363 = vst [vmem:[%s1863_s3 + $0x80] sm:$0xff] %v1271_v10   ;;  %v404_v15 = vadd.f32 %v1442_v13, %v1698_v40  ;;  %v532_v16 = vadd.f32 %v1474_v14, %v1698_v40  ;;  %v635_v25 = vmax.f32 %v393_v11, 0.0 }
  0xf0   :  { %v395_v19 = vpop.f32.mrf.mxu0  ;;  %v523_v20 = vpop.f32.mrf.mxu1  ;;  %v667_v26 = vmax.f32 %v521_v12, 0.0 }
  0xf1   :  { %v638_v21 = vmax.f32 %v404_v15, 0.0  ;;  %v670_v22 = vmax.f32 %v532_v16, 0.0  ;;  %v396_v23 = vadd.f32 %v1698_v40, %v395_v19  ;;  %v524_v24 = vadd.f32 %v1698_v40, %v523_v20 }
  0xf2   :  { %v1445_v27 = vpop.f32.mrf.mxu0  ;;  %v1477_v28 = vpop.f32.mrf.mxu1 }
  0xf3   :  { %v1206_v29 = vpack.c.bf16 %v638_v21, %v637_v17  ;;  %v1286_v30 = vpack.c.bf16 %v670_v22, %v669_v18  ;;  %v636_v31 = vmax.f32 %v396_v23, 0.0  ;;  %v668_v32 = vmax.f32 %v524_v24, 0.0 }
  0xf4   :  { %v417_v33 = vadd.f32 %v1445_v27, %v1698_v40  ;;  %v545_v34 = vadd.f32 %v1477_v28, %v1698_v40  ;;  %v408_v35 = vpop.f32.mrf.mxu0  ;;  %v536_v36 = vpop.f32.mrf.mxu1 }
  0xf5   :  { %1350 = vst [vmem:[%s1863_s3 + $0x18] sm:$0xff] %v1206_v29   ;;  %1366 = vst [vmem:[%s1863_s3 + $0x98] sm:$0xff] %v1286_v30   ;;  %v1201_v37 = vpack.c.bf16 %v636_v31, %v635_v25  ;;  %v1281_v38 = vpack.c.bf16 %v668_v32, %v667_v26  ;;  %v409_v39 = vadd.f32 %v1698_v40, %v408_v35 }
  0xf6   :  { %v537_v41 = vadd.f32 %v1698_v40, %v536_v36  ;;  %v1446_v42 = vpop.f32.mrf.mxu0  ;;  %v1478_v43 = vpop.f32.mrf.mxu1  ;;  %v641_v46 = vmax.f32 %v417_v33, 0.0  ;;  %v673_v47 = vmax.f32 %v545_v34, 0.0 }
  0xf7   :  { %1349 = vst [vmem:[%s1863_s3 + $0x10] sm:$0xff] %v1201_v37   ;;  %1365 = vst [vmem:[%s1863_s3 + $0x90] sm:$0xff] %v1281_v38   ;;  %v420_v44 = vadd.f32 %v1446_v42, %v1698_v40  ;;  %v548_v45 = vadd.f32 %v1478_v43, %v1698_v40  ;;  %v639_v54 = vmax.f32 %v409_v39, 0.0 }
  0xf8   :  { %v411_v48 = vpop.f32.mrf.mxu0  ;;  %v539_v49 = vpop.f32.mrf.mxu1  ;;  %v671_v55 = vmax.f32 %v537_v41, 0.0 }
  0xf9   :  { %v642_v50 = vmax.f32 %v420_v44, 0.0  ;;  %v674_v51 = vmax.f32 %v548_v45, 0.0  ;;  %v412_v52 = vadd.f32 %v1698_v40, %v411_v48  ;;  %v540_v53 = vadd.f32 %v1698_v40, %v539_v49 }
  0xfa   :  { %v1449_v56 = vpop.f32.mrf.mxu0  ;;  %v1481_v57 = vpop.f32.mrf.mxu1 }
  0xfb   :  { %v1216_v58 = vpack.c.bf16 %v642_v50, %v641_v46  ;;  %v1296_v59 = vpack.c.bf16 %v674_v51, %v673_v47  ;;  %v640_v60 = vmax.f32 %v412_v52, 0.0  ;;  %v672_v61 = vmax.f32 %v540_v53, 0.0 }
  0xfc   :  { %v433_v62 = vadd.f32 %v1449_v56, %v1698_v40  ;;  %v561_v63 = vadd.f32 %v1481_v57, %v1698_v40  ;;  %v424_v0 = vpop.f32.mrf.mxu0  ;;  %v552_v1 = vpop.f32.mrf.mxu1 }
  0xfd   :  { %1352 = vst [vmem:[%s1863_s3 + $0x28] sm:$0xff] %v1216_v58   ;;  %1368 = vst [vmem:[%s1863_s3 + $0xa8] sm:$0xff] %v1296_v59   ;;  %v1211_v2 = vpack.c.bf16 %v640_v60, %v639_v54  ;;  %v1291_v3 = vpack.c.bf16 %v672_v61, %v671_v55  ;;  %v425_v4 = vadd.f32 %v1698_v40, %v424_v0 }
  0xfe   :  { %v553_v5 = vadd.f32 %v1698_v40, %v552_v1  ;;  %v1450_v6 = vpop.f32.mrf.mxu0  ;;  %v1482_v7 = vpop.f32.mrf.mxu1  ;;  %v645_v10 = vmax.f32 %v433_v62, 0.0  ;;  %v677_v11 = vmax.f32 %v561_v63, 0.0 }
  0xff   :  { %1351 = vst [vmem:[%s1863_s3 + $0x20] sm:$0xff] %v1211_v2   ;;  %1367 = vst [vmem:[%s1863_s3 + $0xa0] sm:$0xff] %v1291_v3   ;;  %v436_v8 = vadd.f32 %v1450_v6, %v1698_v40  ;;  %v564_v9 = vadd.f32 %v1482_v7, %v1698_v40  ;;  %v643_v18 = vmax.f32 %v425_v4, 0.0 }
 0x100   :  { %v427_v12 = vpop.f32.mrf.mxu0  ;;  %v555_v13 = vpop.f32.mrf.mxu1  ;;  %v675_v19 = vmax.f32 %v553_v5, 0.0 }
 0x101   :  { %v646_v14 = vmax.f32 %v436_v8, 0.0  ;;  %v678_v15 = vmax.f32 %v564_v9, 0.0  ;;  %v428_v16 = vadd.f32 %v1698_v40, %v427_v12  ;;  %v556_v17 = vadd.f32 %v1698_v40, %v555_v13 }
 0x102   :  { %v1453_v20 = vpop.f32.mrf.mxu0  ;;  %v1485_v21 = vpop.f32.mrf.mxu1 }
 0x103   :  { %v1226_v22 = vpack.c.bf16 %v646_v14, %v645_v10  ;;  %v1306_v23 = vpack.c.bf16 %v678_v15, %v677_v11  ;;  %v644_v24 = vmax.f32 %v428_v16, 0.0  ;;  %v676_v25 = vmax.f32 %v556_v17, 0.0 }
 0x104   :  { %v449_v26 = vadd.f32 %v1453_v20, %v1698_v40  ;;  %v577_v27 = vadd.f32 %v1485_v21, %v1698_v40  ;;  %v440_v28 = vpop.f32.mrf.mxu0  ;;  %v568_v29 = vpop.f32.mrf.mxu1 }
 0x105   :  { %1354 = vst [vmem:[%s1863_s3 + $0x38] sm:$0xff] %v1226_v22   ;;  %1370 = vst [vmem:[%s1863_s3 + $0xb8] sm:$0xff] %v1306_v23   ;;  %v1221_v30 = vpack.c.bf16 %v644_v24, %v643_v18  ;;  %v1301_v31 = vpack.c.bf16 %v676_v25, %v675_v19  ;;  %v441_v32 = vadd.f32 %v1698_v40, %v440_v28 }
 0x106   :  { %v569_v33 = vadd.f32 %v1698_v40, %v568_v29  ;;  %v1454_v34 = vpop.f32.mrf.mxu0  ;;  %v1486_v35 = vpop.f32.mrf.mxu1  ;;  %v649_v38 = vmax.f32 %v449_v26, 0.0  ;;  %v681_v39 = vmax.f32 %v577_v27, 0.0 }
 0x107   :  { %1353 = vst [vmem:[%s1863_s3 + $0x30] sm:$0xff] %v1221_v30   ;;  %1369 = vst [vmem:[%s1863_s3 + $0xb0] sm:$0xff] %v1301_v31   ;;  %v452_v36 = vadd.f32 %v1454_v34, %v1698_v40  ;;  %v580_v37 = vadd.f32 %v1486_v35, %v1698_v40  ;;  %v647_v47 = vmax.f32 %v441_v32, 0.0 }
 0x108   :  { %v443_v41 = vpop.f32.mrf.mxu0  ;;  %v571_v42 = vpop.f32.mrf.mxu1  ;;  %v679_v48 = vmax.f32 %v569_v33, 0.0 }
 0x109   :  { %v650_v43 = vmax.f32 %v452_v36, 0.0  ;;  %v682_v44 = vmax.f32 %v580_v37, 0.0  ;;  %v444_v45 = vadd.f32 %v1698_v40, %v443_v41  ;;  %v572_v46 = vadd.f32 %v1698_v40, %v571_v42 }
 0x10a   :  { %v1457_v49 = vpop.f32.mrf.mxu0  ;;  %v1489_v50 = vpop.f32.mrf.mxu1 }
 0x10b   :  { %v1236_v51 = vpack.c.bf16 %v650_v43, %v649_v38  ;;  %v1316_v52 = vpack.c.bf16 %v682_v44, %v681_v39  ;;  %v648_v53 = vmax.f32 %v444_v45, 0.0  ;;  %v680_v54 = vmax.f32 %v572_v46, 0.0 }
 0x10c   :  { %v465_v55 = vadd.f32 %v1457_v49, %v1698_v40  ;;  %v593_v56 = vadd.f32 %v1489_v50, %v1698_v40  ;;  %v456_v57 = vpop.f32.mrf.mxu0  ;;  %v584_v58 = vpop.f32.mrf.mxu1 }
 0x10d   :  { %1356 = vst [vmem:[%s1863_s3 + $0x48] sm:$0xff] %v1236_v51   ;;  %1372 = vst [vmem:[%s1863_s3 + $0xc8] sm:$0xff] %v1316_v52   ;;  %v1231_v59 = vpack.c.bf16 %v648_v53, %v647_v47  ;;  %v1311_v60 = vpack.c.bf16 %v680_v54, %v679_v48  ;;  %v457_v61 = vadd.f32 %v1698_v40, %v456_v57 }
 0x10e   :  { %v585_v62 = vadd.f32 %v1698_v40, %v584_v58  ;;  %v1458_v63 = vpop.f32.mrf.mxu0  ;;  %v1490_v0 = vpop.f32.mrf.mxu1  ;;  %v653_v3 = vmax.f32 %v465_v55, 0.0  ;;  %v685_v4 = vmax.f32 %v593_v56, 0.0 }
 0x10f   :  { %1355 = vst [vmem:[%s1863_s3 + $0x40] sm:$0xff] %v1231_v59   ;;  %1371 = vst [vmem:[%s1863_s3 + $0xc0] sm:$0xff] %v1311_v60   ;;  %v468_v1 = vadd.f32 %v1458_v63, %v1698_v40  ;;  %v596_v2 = vadd.f32 %v1490_v0, %v1698_v40  ;;  %v651_v11 = vmax.f32 %v457_v61, 0.0 }
 0x110   :  { %v459_v5 = vpop.f32.mrf.mxu0  ;;  %v587_v6 = vpop.f32.mrf.mxu1  ;;  %v683_v12 = vmax.f32 %v585_v62, 0.0 }
 0x111   :  { %v654_v7 = vmax.f32 %v468_v1, 0.0  ;;  %v686_v8 = vmax.f32 %v596_v2, 0.0  ;;  %v460_v9 = vadd.f32 %v1698_v40, %v459_v5  ;;  %v588_v10 = vadd.f32 %v1698_v40, %v587_v6 }
 0x112   :  { %v1461_v13 = vpop.f32.mrf.mxu0  ;;  %v1493_v14 = vpop.f32.mrf.mxu1 }
 0x113   :  { %v1246_v15 = vpack.c.bf16 %v654_v7, %v653_v3  ;;  %v1326_v16 = vpack.c.bf16 %v686_v8, %v685_v4  ;;  %v652_v17 = vmax.f32 %v460_v9, 0.0  ;;  %v684_v18 = vmax.f32 %v588_v10, 0.0 }
 0x114   :  { %v481_v19 = vadd.f32 %v1461_v13, %v1698_v40  ;;  %v609_v20 = vadd.f32 %v1493_v14, %v1698_v40  ;;  %v472_v21 = vpop.f32.mrf.mxu0  ;;  %v600_v22 = vpop.f32.mrf.mxu1 }
 0x115   :  { %1358 = vst [vmem:[%s1863_s3 + $0x58] sm:$0xff] %v1246_v15   ;;  %1374 = vst [vmem:[%s1863_s3 + $0xd8] sm:$0xff] %v1326_v16   ;;  %v1241_v23 = vpack.c.bf16 %v652_v17, %v651_v11  ;;  %v1321_v24 = vpack.c.bf16 %v684_v18, %v683_v12  ;;  %v473_v25 = vadd.f32 %v1698_v40, %v472_v21 }
 0x116   :  { %v601_v26 = vadd.f32 %v1698_v40, %v600_v22  ;;  %v1462_v27 = vpop.f32.mrf.mxu0  ;;  %v1494_v28 = vpop.f32.mrf.mxu1  ;;  %v657_v31 = vmax.f32 %v481_v19, 0.0  ;;  %v689_v32 = vmax.f32 %v609_v20, 0.0 }
 0x117   :  { %1357 = vst [vmem:[%s1863_s3 + $0x50] sm:$0xff] %v1241_v23   ;;  %1373 = vst [vmem:[%s1863_s3 + $0xd0] sm:$0xff] %v1321_v24   ;;  %v484_v29 = vadd.f32 %v1462_v27, %v1698_v40  ;;  %v612_v30 = vadd.f32 %v1494_v28, %v1698_v40  ;;  %v655_v39 = vmax.f32 %v473_v25, 0.0 }
 0x118   :  { %v475_v33 = vpop.f32.mrf.mxu0  ;;  %v603_v34 = vpop.f32.mrf.mxu1  ;;  %v687_v41 = vmax.f32 %v601_v26, 0.0 }
 0x119   :  { %v658_v35 = vmax.f32 %v484_v29, 0.0  ;;  %v690_v36 = vmax.f32 %v612_v30, 0.0  ;;  %v476_v37 = vadd.f32 %v1698_v40, %v475_v33  ;;  %v604_v38 = vadd.f32 %v1698_v40, %v603_v34 }
 0x11a   :  { %v1465_v42 = vpop.f32.mrf.mxu0  ;;  %v1497_v43 = vpop.f32.mrf.mxu1 }
 0x11b   :  { %v1256_v44 = vpack.c.bf16 %v658_v35, %v657_v31  ;;  %v1336_v45 = vpack.c.bf16 %v690_v36, %v689_v32  ;;  %v656_v46 = vmax.f32 %v476_v37, 0.0  ;;  %v688_v47 = vmax.f32 %v604_v38, 0.0 }
 0x11c   :  { %v497_v48 = vadd.f32 %v1465_v42, %v1698_v40  ;;  %v625_v49 = vadd.f32 %v1497_v43, %v1698_v40  ;;  %v488_v50 = vpop.f32.mrf.mxu0  ;;  %v616_v51 = vpop.f32.mrf.mxu1 }
 0x11d   :  { %1360 = vst [vmem:[%s1863_s3 + $0x68] sm:$0xff] %v1256_v44   ;;  %1376 = vst [vmem:[%s1863_s3 + $0xe8] sm:$0xff] %v1336_v45   ;;  %v1251_v52 = vpack.c.bf16 %v656_v46, %v655_v39  ;;  %v1331_v53 = vpack.c.bf16 %v688_v47, %v687_v41  ;;  %v489_v54 = vadd.f32 %v1698_v40, %v488_v50 }
 0x11e   :  { %v617_v55 = vadd.f32 %v1698_v40, %v616_v51  ;;  %v1466_v56 = vpop.f32.mrf.mxu0  ;;  %v1498_v57 = vpop.f32.mrf.mxu1  ;;  %v661_v60 = vmax.f32 %v497_v48, 0.0  ;;  %v693_v61 = vmax.f32 %v625_v49, 0.0 }
 0x11f   :  { %1359 = vst [vmem:[%s1863_s3 + $0x60] sm:$0xff] %v1251_v52   ;;  %1375 = vst [vmem:[%s1863_s3 + $0xe0] sm:$0xff] %v1331_v53   ;;  %v500_v58 = vadd.f32 %v1466_v56, %v1698_v40  ;;  %v628_v59 = vadd.f32 %v1498_v57, %v1698_v40  ;;  %v659_v4 = vmax.f32 %v489_v54, 0.0 }
 0x120   :  { %v491_v62 = vpop.f32.mrf.mxu0  ;;  %v619_v63 = vpop.f32.mrf.mxu1  ;;  %v691_v5 = vmax.f32 %v617_v55, 0.0 }
 0x121   :  { %v662_v0 = vmax.f32 %v500_v58, 0.0  ;;  %v694_v1 = vmax.f32 %v628_v59, 0.0  ;;  %v492_v2 = vadd.f32 %v1698_v40, %v491_v62  ;;  %v620_v3 = vadd.f32 %v1698_v40, %v619_v63 }
 0x123   :  { %v1266_v6 = vpack.c.bf16 %v662_v0, %v661_v60  ;;  %v1346_v7 = vpack.c.bf16 %v694_v1, %v693_v61  ;;  %v660_v8 = vmax.f32 %v492_v2, 0.0  ;;  %v692_v9 = vmax.f32 %v620_v3, 0.0 }
 0x125   :  { %1362 = vst [vmem:[%s1863_s3 + $0x78] sm:$0xff] %v1266_v6   ;;  %1378 = vst [vmem:[%s1863_s3 + $0xf8] sm:$0xff] %v1346_v7   ;;  %v1261_v10 = vpack.c.bf16 %v660_v8, %v659_v4  ;;  %v1341_v11 = vpack.c.bf16 %v692_v9, %v691_v5 }
 0x127   :  { %1361 = vst [vmem:[%s1863_s3 + $0x70] sm:$0xff] %v1261_v10   ;;  %1377 = vst [vmem:[%s1863_s3 + $0xf0] sm:$0xff] %v1341_v11  }

// kernel: _lambda_.24
= control target key start
LH: loop header
LB: loop body
LE: loop exit
PB: predicated region body
PF: predicated region fallthrough
CT: control target
= control target key end

     0   :  { %s602_s1 = inlined_call_operand.vmem [shape: bf16[128,128], index: 1, kind: input, shape index: {}]   ;;  %s603_s0 = inlined_call_operand.vmem [shape: bf16[128,128], index: 0, kind: input, shape index: {}]   ;;  %s604_s2 = inlined_call_operand.vmem [shape: f32[1,128], index: 2, kind: input, shape index: {}]   ;;  %s605_s3 = inlined_call_operand.vmem [shape: bf16[128,128], index: 3, kind: output, shape index: {}]  }
   0x1   :  { %v491_v0 = vld [vmem:[%s602_s1 + $0x38] sm:$0xff]   ;;  %v492_v1 = vld [vmem:[%s602_s1 + $0x30] sm:$0xff]   ;;  %v493_v2 = vld [vmem:[%s602_s1 + $0x28] sm:$0xff]  }
   0x2   :  { %443 = vmatprep.subr.bf16.mxu0 %v491_v0  ;;  %475 = vmatprep.subr.bf16.mxu1 %v491_v0  ;;  %v494_v3 = vld [vmem:[%s602_s1 + $0x20] sm:$0xff]   ;;  %v495_v6 = vld [vmem:[%s602_s1 + $0x18] sm:$0xff]   ;;  %v496_v7 = vld [vmem:[%s602_s1 + $0x10] sm:$0xff]  }
   0x3   :  { %444 = vmatpush3.bf16.msra.mxu0 %v491_v0  ;;  %483 = vmatpush3.bf16.msra.mxu1 %v491_v0  ;;  %v499_v4 = vld [vmem:[%s603_s0] sm:$0xff]   ;;  %v497_v8 = vld [vmem:[%s602_s1 + $0x8] sm:$0xff]   ;;  %v503_v12 = vld [vmem:[%s603_s0 + $0x10] sm:$0xff]  }
   0x4   :  { %445 = vmatprep.subr.bf16.mxu0 %v492_v1  ;;  %476 = vmatprep.subr.bf16.mxu1 %v492_v1  ;;  %v500_v5 = vld [vmem:[%s603_s0 + $0x20] sm:$0xff]   ;;  %v501_v10 = vld [vmem:[%s603_s0 + $0x8] sm:$0xff]   ;;  %v504_v13 = vld [vmem:[%s603_s0 + $0x30] sm:$0xff]  }
   0x5   :  { %459 = vmatprep.mubr.bf16.mxu0 %v499_v4  ;;  %467 = vmatprep.mubr.bf16.mxu1 %v500_v5  ;;  %v498_v9 = vld [vmem:[%s602_s1] sm:$0xff]   ;;  %v502_v11 = vld [vmem:[%s603_s0 + $0x28] sm:$0xff]   ;;  %v505_v14 = vld [vmem:[%s603_s0 + $0x18] sm:$0xff]  }
   0x6   :  { %v506_v15 = vld [vmem:[%s603_s0 + $0x38] sm:$0xff]   ;;  %v331_v18 = vld [vmem:[%s604_s2] ss:$0 sm:$0xff] }
   0x7   :  { %446 = vmatpush3.bf16.msra.mxu0 %v492_v1  ;;  %484 = vmatpush3.bf16.msra.mxu1 %v492_v1 }
   0x8   :  { %447 = vmatprep.subr.bf16.mxu0 %v493_v2  ;;  %477 = vmatprep.subr.bf16.mxu1 %v493_v2 }
   0xb   :  { %448 = vmatpush3.bf16.msra.mxu0 %v493_v2  ;;  %485 = vmatpush3.bf16.msra.mxu1 %v493_v2 }
   0xc   :  { %449 = vmatprep.subr.bf16.mxu0 %v494_v3  ;;  %478 = vmatprep.subr.bf16.mxu1 %v494_v3 }
   0xf   :  { %450 = vmatpush3.bf16.msra.mxu0 %v494_v3  ;;  %486 = vmatpush3.bf16.msra.mxu1 %v494_v3 }
  0x10   :  { %451 = vmatprep.subr.bf16.mxu0 %v495_v6  ;;  %479 = vmatprep.subr.bf16.mxu1 %v495_v6 }
  0x13   :  { %452 = vmatpush3.bf16.msra.mxu0 %v495_v6  ;;  %487 = vmatpush3.bf16.msra.mxu1 %v495_v6 }
  0x14   :  { %453 = vmatprep.subr.bf16.mxu0 %v496_v7  ;;  %480 = vmatprep.subr.bf16.mxu1 %v496_v7 }
  0x17   :  { %454 = vmatpush3.bf16.msra.mxu0 %v496_v7  ;;  %488 = vmatpush3.bf16.msra.mxu1 %v496_v7 }
  0x18   :  { %455 = vmatprep.subr.bf16.mxu0 %v497_v8  ;;  %481 = vmatprep.subr.bf16.mxu1 %v497_v8 }
  0x1b   :  { %456 = vmatpush3.bf16.msra.mxu0 %v497_v8  ;;  %489 = vmatpush3.bf16.msra.mxu1 %v497_v8 }
  0x1c   :  { %457 = vmatprep.subr.bf16.mxu0 %v498_v9  ;;  %482 = vmatprep.subr.bf16.mxu1 %v498_v9 }
  0x1f   :  { %458 = vmatpush3.bf16.msra.mxu0 %v498_v9  ;;  %490 = vmatpush3.bf16.msra.mxu1 %v498_v9 }
  0x22   :  { %460 = vmatmul.mubr.bf16.vlgmr.msra.gmra.mxu0 %v501_v10  ;;  %468 = vmatmul.mubr.bf16.vlgmr.msra.gmra.mxu1 %v502_v11 }
  0x23   :  { %463 = vmatprep.mubr.bf16.mxu0 %v503_v12  ;;  %471 = vmatprep.mubr.bf16.mxu1 %v504_v13 }
  0x2a   :  { %464 = vmatmul.mubr.bf16.gmra.mxu0 %v505_v14  ;;  %472 = vmatmul.mubr.bf16.gmra.mxu1 %v506_v15 }
  0xe2   :  { %v461_v16 = vpop.f32.mrf.mxu0  ;;  %v469_v17 = vpop.f32.mrf.mxu1 }
  0xe3   :  { %v193_v23 = vadd.f32 %v461_v16, %v331_v18  ;;  %v225_v24 = vadd.f32 %v469_v17, %v331_v18 }
  0xe4   :  { %v184_v19 = vpop.f32.mrf.mxu0  ;;  %v216_v20 = vpop.f32.mrf.mxu1 }
  0xe5   :  { %v185_v27 = vadd.f32 %v331_v18, %v184_v19  ;;  %v217_v28 = vadd.f32 %v331_v18, %v216_v20 }
  0xe6   :  { %v462_v21 = vpop.f32.mrf.mxu0  ;;  %v470_v22 = vpop.f32.mrf.mxu1 }
  0xe7   :  { %v196_v25 = vadd.f32 %v462_v21, %v331_v18  ;;  %v228_v26 = vadd.f32 %v470_v22, %v331_v18 }
  0xe8   :  { %v187_v29 = vpop.f32.mrf.mxu0  ;;  %v219_v30 = vpop.f32.mrf.mxu1 }
  0xe9   :  { %v388_v31 = vpack.c.bf16 %v196_v25, %v193_v23  ;;  %v408_v32 = vpack.c.bf16 %v228_v26, %v225_v24  ;;  %v188_v33 = vadd.f32 %v331_v18, %v187_v29  ;;  %v220_v34 = vadd.f32 %v331_v18, %v219_v30 }
  0xea   :  { %v465_v35 = vpop.f32.mrf.mxu0  ;;  %v473_v36 = vpop.f32.mrf.mxu1 }
  0xeb   :  { %420 = vst [vmem:[%s605_s3 + $0x8] sm:$0xff] %v388_v31   ;;  %424 = vst [vmem:[%s605_s3 + $0x28] sm:$0xff] %v408_v32   ;;  %v383_v37 = vpack.c.bf16 %v188_v33, %v185_v27  ;;  %v403_v38 = vpack.c.bf16 %v220_v34, %v217_v28  ;;  %v209_v43 = vadd.f32 %v465_v35, %v331_v18 }
  0xec   :  { %v200_v39 = vpop.f32.mrf.mxu0  ;;  %v232_v40 = vpop.f32.mrf.mxu1  ;;  %v241_v44 = vadd.f32 %v473_v36, %v331_v18 }
  0xed   :  { %384 = vst [vmem:[%s605_s3] sm:$0xff] %v383_v37   ;;  %423 = vst [vmem:[%s605_s3 + $0x20] sm:$0xff] %v403_v38   ;;  %v201_v47 = vadd.f32 %v331_v18, %v200_v39  ;;  %v233_v48 = vadd.f32 %v331_v18, %v232_v40 }
  0xee   :  { %v466_v41 = vpop.f32.mrf.mxu0  ;;  %v474_v42 = vpop.f32.mrf.mxu1 }
  0xef   :  { %v212_v45 = vadd.f32 %v466_v41, %v331_v18  ;;  %v244_v46 = vadd.f32 %v474_v42, %v331_v18 }
  0xf0   :  { %v203_v49 = vpop.f32.mrf.mxu0  ;;  %v235_v50 = vpop.f32.mrf.mxu1 }
  0xf1   :  { %v398_v51 = vpack.c.bf16 %v212_v45, %v209_v43  ;;  %v418_v52 = vpack.c.bf16 %v244_v46, %v241_v44  ;;  %v204_v53 = vadd.f32 %v331_v18, %v203_v49  ;;  %v236_v54 = vadd.f32 %v331_v18, %v235_v50 }
  0xf3   :  { %422 = vst [vmem:[%s605_s3 + $0x18] sm:$0xff] %v398_v51   ;;  %426 = vst [vmem:[%s605_s3 + $0x38] sm:$0xff] %v418_v52   ;;  %v393_v55 = vpack.c.bf16 %v204_v53, %v201_v47  ;;  %v413_v56 = vpack.c.bf16 %v236_v54, %v233_v48 }
  0xf5   :  { %421 = vst [vmem:[%s605_s3 + $0x10] sm:$0xff] %v393_v55   ;;  %425 = vst [vmem:[%s605_s3 + $0x30] sm:$0xff] %v413_v56  }

// kernel: _lambda_.25
= control target key start
LH: loop header
LB: loop body
LE: loop exit
PB: predicated region body
PF: predicated region fallthrough
CT: control target
= control target key end

     0   :  { %s836_s1 = inlined_call_operand.vmem [shape: bf16[256,128], index: 1, kind: input, shape index: {}]   ;;  %s837_s0 = inlined_call_operand.vmem [shape: bf16[128,256], index: 0, kind: input, shape index: {}]   ;;  %s838_s2 = inlined_call_operand.vmem [shape: f32[1,128], index: 2, kind: input, shape index: {}]   ;;  %s839_s3 = inlined_call_operand.vmem [shape: bf16[128,128], index: 3, kind: output, shape index: {}]  }
   0x1   :  { %v635_v0 = vld [vmem:[%s836_s1 + $0x78] sm:$0xff]   ;;  %v637_v2 = vld [vmem:[%s836_s1 + $0x70] sm:$0xff]   ;;  %v639_v4 = vld [vmem:[%s836_s1 + $0x68] sm:$0xff]  }
   0x2   :  { %v636_v1 = vld [vmem:[%s836_s1 + $0x38] sm:$0xff]   ;;  %555 = vmatprep.subr.bf16.mxu0 %v635_v0  ;;  %619 = vmatprep.subr.bf16.mxu1 %v635_v0  ;;  %v638_v3 = vld [vmem:[%s836_s1 + $0x30] sm:$0xff]   ;;  %v640_v5 = vld [vmem:[%s836_s1 + $0x28] sm:$0xff]  }
   0x3   :  { %556 = vmatpush3.bf16.msra.mxu0 %v636_v1  ;;  %627 = vmatpush3.bf16.msra.mxu1 %v636_v1  ;;  %v641_v6 = vld [vmem:[%s836_s1 + $0x60] sm:$0xff]   ;;  %v643_v8 = vld [vmem:[%s836_s1 + $0x58] sm:$0xff]   ;;  %v645_v10 = vld [vmem:[%s836_s1 + $0x50] sm:$0xff]  }
   0x4   :  { %557 = vmatprep.subr.bf16.mxu0 %v637_v2  ;;  %620 = vmatprep.subr.bf16.mxu1 %v637_v2  ;;  %v642_v7 = vld [vmem:[%s836_s1 + $0x20] sm:$0xff]   ;;  %v644_v9 = vld [vmem:[%s836_s1 + $0x18] sm:$0xff]   ;;  %v646_v13 = vld [vmem:[%s836_s1 + $0x10] sm:$0xff]  }
   0x5   :  { %v653_v11 = vld [vmem:[%s837_s0 + $0x4] ss:$8 sps:$4 sm:$0xff]   ;;  %v651_v18 = vld [vmem:[%s837_s0] ss:$8 sps:$4 sm:$0xff]   ;;  %v657_v20 = vld [vmem:[%s837_s0 + $0x14] ss:$8 sps:$4 sm:$0xff]  }
   0x6   :  { %v656_v12 = vld [vmem:[%s837_s0 + $0x44] ss:$8 sps:$4 sm:$0xff]   ;;  %278 = vmatprep.mubr.bf16.mxu0 %v653_v11  ;;  %v654_v19 = vld [vmem:[%s837_s0 + $0x40] ss:$8 sps:$4 sm:$0xff]   ;;  %v659_v21 = vld [vmem:[%s837_s0 + $0x54] ss:$8 sps:$4 sm:$0xff]  }
   0x7   :  { %558 = vmatpush3.bf16.msra.mxu0 %v638_v3  ;;  %628 = vmatpush3.bf16.msra.mxu1 %v638_v3  ;;  %v647_v14 = vld [vmem:[%s836_s1 + $0x48] sm:$0xff]   ;;  %v649_v16 = vld [vmem:[%s836_s1 + $0x40] sm:$0xff]   ;;  %v661_v22 = vld [vmem:[%s837_s0 + $0x10] ss:$8 sps:$4 sm:$0xff]  }
   0x8   :  { %559 = vmatprep.subr.bf16.mxu0 %v639_v4  ;;  %621 = vmatprep.subr.bf16.mxu1 %v639_v4  ;;  %v648_v15 = vld [vmem:[%s836_s1 + $0x8] sm:$0xff]   ;;  %v650_v17 = vld [vmem:[%s836_s1] sm:$0xff]   ;;  %v662_v23 = vld [vmem:[%s837_s0 + $0x50] ss:$8 sps:$4 sm:$0xff]  }
   0x9   :  { %310 = vmatprep.mubr.bf16.mxu1 %v656_v12  ;;  %v663_v24 = vld [vmem:[%s837_s0 + $0x24] ss:$8 sps:$4 sm:$0xff]   ;;  %v667_v26 = vld [vmem:[%s837_s0 + $0x20] ss:$8 sps:$4 sm:$0xff]   ;;  %v669_v28 = vld [vmem:[%s837_s0 + $0x34] ss:$8 sps:$4 sm:$0xff]  }
   0xa   :  { %v665_v25 = vld [vmem:[%s837_s0 + $0x64] ss:$8 sps:$4 sm:$0xff]   ;;  %v668_v27 = vld [vmem:[%s837_s0 + $0x60] ss:$8 sps:$4 sm:$0xff]   ;;  %v671_v29 = vld [vmem:[%s837_s0 + $0x74] ss:$8 sps:$4 sm:$0xff]  }
   0xb   :  { %560 = vmatpush3.bf16.msra.mxu0 %v640_v5  ;;  %629 = vmatpush3.bf16.msra.mxu1 %v640_v5  ;;  %v673_v30 = vld [vmem:[%s837_s0 + $0x30] ss:$8 sps:$4 sm:$0xff]   ;;  %v794_v36 = vld [vmem:[%s838_s2] ss:$0 sm:$0xff] }
   0xc   :  { %561 = vmatprep.subr.bf16.mxu0 %v641_v6  ;;  %622 = vmatprep.subr.bf16.mxu1 %v641_v6  ;;  %v674_v31 = vld [vmem:[%s837_s0 + $0x70] ss:$8 sps:$4 sm:$0xff]  }
   0xf   :  { %562 = vmatpush3.bf16.msra.mxu0 %v642_v7  ;;  %630 = vmatpush3.bf16.msra.mxu1 %v642_v7 }
  0x10   :  { %563 = vmatprep.subr.bf16.mxu0 %v643_v8  ;;  %623 = vmatprep.subr.bf16.mxu1 %v643_v8 }
  0x13   :  { %564 = vmatpush3.bf16.msra.mxu0 %v644_v9  ;;  %631 = vmatpush3.bf16.msra.mxu1 %v644_v9 }
  0x14   :  { %565 = vmatprep.subr.bf16.mxu0 %v645_v10  ;;  %624 = vmatprep.subr.bf16.mxu1 %v645_v10 }
  0x17   :  { %566 = vmatpush3.bf16.msra.mxu0 %v646_v13  ;;  %632 = vmatpush3.bf16.msra.mxu1 %v646_v13 }
  0x18   :  { %567 = vmatprep.subr.bf16.mxu0 %v647_v14  ;;  %625 = vmatprep.subr.bf16.mxu1 %v647_v14 }
  0x1b   :  { %568 = vmatpush3.bf16.msra.mxu0 %v648_v15  ;;  %633 = vmatpush3.bf16.msra.mxu1 %v648_v15 }
  0x1c   :  { %569 = vmatprep.subr.bf16.mxu0 %v649_v16  ;;  %626 = vmatprep.subr.bf16.mxu1 %v649_v16 }
  0x1f   :  { %570 = vmatpush3.bf16.msra.mxu0 %v650_v17  ;;  %634 = vmatpush3.bf16.msra.mxu1 %v650_v17 }
  0x22   :  { %279 = vmatmul.mubr.bf16.vlgmr.msra.gmra.mxu0 %v651_v18  ;;  %311 = vmatmul.mubr.bf16.vlgmr.msra.gmra.mxu1 %v654_v19 }
  0x23   :  { %286 = vmatprep.mubr.bf16.mxu0 %v657_v20  ;;  %318 = vmatprep.mubr.bf16.mxu1 %v659_v21 }
  0x2a   :  { %287 = vmatmul.mubr.bf16.gmra.mxu0 %v661_v22  ;;  %319 = vmatmul.mubr.bf16.gmra.mxu1 %v662_v23 }
  0x2b   :  { %294 = vmatprep.mubr.bf16.mxu0 %v663_v24  ;;  %326 = vmatprep.mubr.bf16.mxu1 %v665_v25 }
  0x32   :  { %295 = vmatmul.mubr.bf16.gmra.mxu0 %v667_v26  ;;  %327 = vmatmul.mubr.bf16.gmra.mxu1 %v668_v27 }
  0x33   :  { %302 = vmatprep.mubr.bf16.mxu0 %v669_v28  ;;  %334 = vmatprep.mubr.bf16.mxu1 %v671_v29 }
  0x3a   :  { %303 = vmatmul.mubr.bf16.gmra.mxu0 %v673_v30  ;;  %335 = vmatmul.mubr.bf16.gmra.mxu1 %v674_v31 }
  0xe2   :  { %v571_v32 = vpop.f32.mrf.mxu0  ;;  %v595_v33 = vpop.f32.mrf.mxu1 }
  0xe4   :  { %v572_v34 = vpop.f32.mrf.mxu0  ;;  %v596_v35 = vpop.f32.mrf.mxu1 }
  0xe5   :  { %v573_v37 = vadd.f32 %v572_v34, %v571_v32  ;;  %v597_v38 = vadd.f32 %v596_v35, %v595_v33 }
  0xe6   :  { %v574_v39 = vpop.f32.mrf.mxu0  ;;  %v598_v40 = vpop.f32.mrf.mxu1 }
  0xe7   :  { %v281_v41 = vadd.f32 %v573_v37, %v794_v36  ;;  %v313_v42 = vadd.f32 %v597_v38, %v794_v36 }
  0xe8   :  { %v575_v43 = vpop.f32.mrf.mxu0  ;;  %v599_v44 = vpop.f32.mrf.mxu1 }
  0xe9   :  { %v576_v45 = vadd.f32 %v575_v43, %v574_v39  ;;  %v600_v46 = vadd.f32 %v599_v44, %v598_v40  ;;  %v343_v51 = vmax.f32 %v281_v41, 0.0  ;;  %v351_v52 = vmax.f32 %v313_v42, 0.0 }
  0xea   :  { %v577_v47 = vpop.f32.mrf.mxu0  ;;  %v601_v48 = vpop.f32.mrf.mxu1 }
  0xeb   :  { %v284_v49 = vadd.f32 %v576_v45, %v794_v36  ;;  %v316_v50 = vadd.f32 %v600_v46, %v794_v36 }
  0xec   :  { %v578_v53 = vpop.f32.mrf.mxu0  ;;  %v602_v54 = vpop.f32.mrf.mxu1 }
  0xed   :  { %v344_v55 = vmax.f32 %v284_v49, 0.0  ;;  %v352_v56 = vmax.f32 %v316_v50, 0.0  ;;  %v579_v57 = vadd.f32 %v578_v53, %v577_v47  ;;  %v603_v58 = vadd.f32 %v602_v54, %v601_v48 }
  0xee   :  { %v580_v59 = vpop.f32.mrf.mxu0  ;;  %v604_v60 = vpop.f32.mrf.mxu1 }
  0xef   :  { %v511_v61 = vpack.c.bf16 %v344_v55, %v343_v51  ;;  %v531_v62 = vpack.c.bf16 %v352_v56, %v351_v52  ;;  %v289_v63 = vadd.f32 %v579_v57, %v794_v36  ;;  %v321_v0 = vadd.f32 %v603_v58, %v794_v36 }
  0xf0   :  { %v581_v1 = vpop.f32.mrf.mxu0  ;;  %v605_v2 = vpop.f32.mrf.mxu1 }
  0xf1   :  { %512 = vst [vmem:[%s839_s3] sm:$0xff] %v511_v61   ;;  %551 = vst [vmem:[%s839_s3 + $0x20] sm:$0xff] %v531_v62   ;;  %v582_v3 = vadd.f32 %v581_v1, %v580_v59  ;;  %v606_v4 = vadd.f32 %v605_v2, %v604_v60  ;;  %v345_v9 = vmax.f32 %v289_v63, 0.0  ;;  %v353_v10 = vmax.f32 %v321_v0, 0.0 }
  0xf2   :  { %v583_v5 = vpop.f32.mrf.mxu0  ;;  %v607_v6 = vpop.f32.mrf.mxu1 }
  0xf3   :  { %v292_v7 = vadd.f32 %v582_v3, %v794_v36  ;;  %v324_v8 = vadd.f32 %v606_v4, %v794_v36 }
  0xf4   :  { %v584_v11 = vpop.f32.mrf.mxu0  ;;  %v608_v12 = vpop.f32.mrf.mxu1 }
  0xf5   :  { %v346_v13 = vmax.f32 %v292_v7, 0.0  ;;  %v354_v14 = vmax.f32 %v324_v8, 0.0  ;;  %v585_v15 = vadd.f32 %v584_v11, %v583_v5  ;;  %v609_v16 = vadd.f32 %v608_v12, %v607_v6 }
  0xf6   :  { %v586_v17 = vpop.f32.mrf.mxu0  ;;  %v610_v18 = vpop.f32.mrf.mxu1 }
  0xf7   :  { %v516_v19 = vpack.c.bf16 %v346_v13, %v345_v9  ;;  %v536_v20 = vpack.c.bf16 %v354_v14, %v353_v10  ;;  %v297_v21 = vadd.f32 %v585_v15, %v794_v36  ;;  %v329_v22 = vadd.f32 %v609_v16, %v794_v36 }
  0xf8   :  { %v587_v23 = vpop.f32.mrf.mxu0  ;;  %v611_v24 = vpop.f32.mrf.mxu1 }
  0xf9   :  { %548 = vst [vmem:[%s839_s3 + $0x8] sm:$0xff] %v516_v19   ;;  %552 = vst [vmem:[%s839_s3 + $0x28] sm:$0xff] %v536_v20   ;;  %v588_v25 = vadd.f32 %v587_v23, %v586_v17  ;;  %v612_v26 = vadd.f32 %v611_v24, %v610_v18  ;;  %v347_v31 = vmax.f32 %v297_v21, 0.0  ;;  %v355_v32 = vmax.f32 %v329_v22, 0.0 }
  0xfa   :  { %v589_v27 = vpop.f32.mrf.mxu0  ;;  %v613_v28 = vpop.f32.mrf.mxu1 }
  0xfb   :  { %v300_v29 = vadd.f32 %v588_v25, %v794_v36  ;;  %v332_v30 = vadd.f32 %v612_v26, %v794_v36 }
  0xfc   :  { %v590_v33 = vpop.f32.mrf.mxu0  ;;  %v614_v34 = vpop.f32.mrf.mxu1 }
  0xfd   :  { %v348_v35 = vmax.f32 %v300_v29, 0.0  ;;  %v356_v37 = vmax.f32 %v332_v30, 0.0  ;;  %v591_v38 = vadd.f32 %v590_v33, %v589_v27  ;;  %v615_v39 = vadd.f32 %v614_v34, %v613_v28 }
  0xfe   :  { %v592_v40 = vpop.f32.mrf.mxu0  ;;  %v616_v41 = vpop.f32.mrf.mxu1 }
  0xff   :  { %v521_v42 = vpack.c.bf16 %v348_v35, %v347_v31  ;;  %v541_v43 = vpack.c.bf16 %v356_v37, %v355_v32  ;;  %v305_v46 = vadd.f32 %v591_v38, %v794_v36  ;;  %v337_v47 = vadd.f32 %v615_v39, %v794_v36 }
 0x100   :  { %v593_v44 = vpop.f32.mrf.mxu0  ;;  %v617_v45 = vpop.f32.mrf.mxu1 }
 0x101   :  { %549 = vst [vmem:[%s839_s3 + $0x10] sm:$0xff] %v521_v42   ;;  %553 = vst [vmem:[%s839_s3 + $0x30] sm:$0xff] %v541_v43   ;;  %v594_v48 = vadd.f32 %v593_v44, %v592_v40  ;;  %v618_v49 = vadd.f32 %v617_v45, %v616_v41  ;;  %v349_v52 = vmax.f32 %v305_v46, 0.0  ;;  %v357_v53 = vmax.f32 %v337_v47, 0.0 }
 0x103   :  { %v308_v50 = vadd.f32 %v594_v48, %v794_v36  ;;  %v340_v51 = vadd.f32 %v618_v49, %v794_v36 }
 0x105   :  { %v350_v54 = vmax.f32 %v308_v50, 0.0  ;;  %v358_v55 = vmax.f32 %v340_v51, 0.0 }
 0x107   :  { %v526_v56 = vpack.c.bf16 %v350_v54, %v349_v52  ;;  %v546_v57 = vpack.c.bf16 %v358_v55, %v357_v53 }
 0x109   :  { %550 = vst [vmem:[%s839_s3 + $0x18] sm:$0xff] %v526_v56   ;;  %554 = vst [vmem:[%s839_s3 + $0x38] sm:$0xff] %v546_v57  }

// kernel: _lambda_.26
= control target key start
LH: loop header
LB: loop body
LE: loop exit
PB: predicated region body
PF: predicated region fallthrough
CT: control target
= control target key end

     0   :  { %s442_s1 = inlined_call_operand.vmem [shape: bf16[256,128], index: 1, kind: input, shape index: {}]   ;;  %s443_s0 = inlined_call_operand.vmem [shape: bf16[32,256], index: 0, kind: input, shape index: {}]   ;;  %s444_s2 = inlined_call_operand.vmem [shape: f32[1,128], index: 2, kind: input, shape index: {}]   ;;  %s445_s3 = inlined_call_operand.vmem [shape: bf16[32,128], index: 3, kind: output, shape index: {}]  }
   0x1   :  { %v331_v0 = vld [vmem:[%s442_s1 + $0x78] sm:$0xff]   ;;  %v333_v2 = vld [vmem:[%s442_s1 + $0x70] sm:$0xff]   ;;  %v335_v4 = vld [vmem:[%s442_s1 + $0x68] sm:$0xff]  }
   0x2   :  { %v332_v1 = vld [vmem:[%s442_s1 + $0x38] sm:$0xff]   ;;  %287 = vmatprep.subr.bf16.mxu0 %v331_v0  ;;  %315 = vmatprep.subr.bf16.mxu1 %v331_v0  ;;  %v334_v3 = vld [vmem:[%s442_s1 + $0x30] sm:$0xff]   ;;  %v336_v5 = vld [vmem:[%s442_s1 + $0x28] sm:$0xff]  }
   0x3   :  { %288 = vmatpush3.bf16.msra.mxu0 %v332_v1  ;;  %323 = vmatpush3.bf16.msra.mxu1 %v332_v1  ;;  %v337_v6 = vld [vmem:[%s442_s1 + $0x60] sm:$0xff]   ;;  %v339_v8 = vld [vmem:[%s442_s1 + $0x58] sm:$0xff]   ;;  %v341_v10 = vld [vmem:[%s442_s1 + $0x50] sm:$0xff]  }
   0x4   :  { %289 = vmatprep.subr.bf16.mxu0 %v333_v2  ;;  %316 = vmatprep.subr.bf16.mxu1 %v333_v2  ;;  %v338_v7 = vld [vmem:[%s442_s1 + $0x20] sm:$0xff]   ;;  %v340_v9 = vld [vmem:[%s442_s1 + $0x18] sm:$0xff]   ;;  %v342_v13 = vld [vmem:[%s442_s1 + $0x10] sm:$0xff]  }
   0x5   :  { %v349_v11 = vld [vmem:[%s443_s0 + $0x4] ss:$8 sps:$4 sm:$0xff]   ;;  %v352_v12 = vld [vmem:[%s443_s0 + $0x14] ss:$8 sps:$4 sm:$0xff]   ;;  %v347_v18 = vld [vmem:[%s443_s0] ss:$8 sps:$4 sm:$0xff]  }
   0x6   :  { %v343_v14 = vld [vmem:[%s442_s1 + $0x48] sm:$0xff]   ;;  %206 = vmatprep.mubr.bf16.mxu0 %v349_v11  ;;  %214 = vmatprep.mubr.bf16.mxu1 %v352_v12  ;;  %v345_v16 = vld [vmem:[%s442_s1 + $0x40] sm:$0xff]   ;;  %v350_v19 = vld [vmem:[%s443_s0 + $0x10] ss:$8 sps:$4 sm:$0xff]  }
   0x7   :  { %290 = vmatpush3.bf16.msra.mxu0 %v334_v3  ;;  %324 = vmatpush3.bf16.msra.mxu1 %v334_v3  ;;  %v344_v15 = vld [vmem:[%s442_s1 + $0x8] sm:$0xff]   ;;  %v346_v17 = vld [vmem:[%s442_s1] sm:$0xff]  }
   0x8   :  { %291 = vmatprep.subr.bf16.mxu0 %v335_v4  ;;  %317 = vmatprep.subr.bf16.mxu1 %v335_v4  ;;  %v247_v28 = vld [vmem:[%s444_s2] ss:$0 sm:$0xff] }
   0xb   :  { %292 = vmatpush3.bf16.msra.mxu0 %v336_v5  ;;  %325 = vmatpush3.bf16.msra.mxu1 %v336_v5 }
   0xc   :  { %293 = vmatprep.subr.bf16.mxu0 %v337_v6  ;;  %318 = vmatprep.subr.bf16.mxu1 %v337_v6 }
   0xf   :  { %294 = vmatpush3.bf16.msra.mxu0 %v338_v7  ;;  %326 = vmatpush3.bf16.msra.mxu1 %v338_v7 }
  0x10   :  { %295 = vmatprep.subr.bf16.mxu0 %v339_v8  ;;  %319 = vmatprep.subr.bf16.mxu1 %v339_v8 }
  0x13   :  { %296 = vmatpush3.bf16.msra.mxu0 %v340_v9  ;;  %327 = vmatpush3.bf16.msra.mxu1 %v340_v9 }
  0x14   :  { %297 = vmatprep.subr.bf16.mxu0 %v341_v10  ;;  %320 = vmatprep.subr.bf16.mxu1 %v341_v10 }
  0x17   :  { %298 = vmatpush3.bf16.msra.mxu0 %v342_v13  ;;  %328 = vmatpush3.bf16.msra.mxu1 %v342_v13 }
  0x18   :  { %299 = vmatprep.subr.bf16.mxu0 %v343_v14  ;;  %321 = vmatprep.subr.bf16.mxu1 %v343_v14 }
  0x1b   :  { %300 = vmatpush3.bf16.msra.mxu0 %v344_v15  ;;  %329 = vmatpush3.bf16.msra.mxu1 %v344_v15 }
  0x1c   :  { %301 = vmatprep.subr.bf16.mxu0 %v345_v16  ;;  %322 = vmatprep.subr.bf16.mxu1 %v345_v16 }
  0x1f   :  { %302 = vmatpush3.bf16.msra.mxu0 %v346_v17  ;;  %330 = vmatpush3.bf16.msra.mxu1 %v346_v17 }
  0x22   :  { %207 = vmatmul.mubr.bf16.vlgmr.msra.gmra.mxu0 %v347_v18  ;;  %215 = vmatmul.mubr.bf16.vlgmr.msra.gmra.mxu1 %v350_v19 }
  0xe2   :  { %v303_v20 = vpop.f32.mrf.mxu0  ;;  %v309_v21 = vpop.f32.mrf.mxu1 }
  0xe4   :  { %v304_v22 = vpop.f32.mrf.mxu0  ;;  %v310_v23 = vpop.f32.mrf.mxu1 }
  0xe5   :  { %v305_v26 = vadd.f32 %v304_v22, %v303_v20  ;;  %v311_v27 = vadd.f32 %v310_v23, %v309_v21 }
  0xe6   :  { %v306_v24 = vpop.f32.mrf.mxu0  ;;  %v312_v25 = vpop.f32.mrf.mxu1 }
  0xe7   :  { %v209_v33 = vadd.f32 %v305_v26, %v247_v28  ;;  %v217_v34 = vadd.f32 %v311_v27, %v247_v28 }
  0xe8   :  { %v307_v29 = vpop.f32.mrf.mxu0  ;;  %v313_v30 = vpop.f32.mrf.mxu1 }
  0xe9   :  { %v308_v31 = vadd.f32 %v307_v29, %v306_v24  ;;  %v314_v32 = vadd.f32 %v313_v30, %v312_v25 }
  0xeb   :  { %v212_v35 = vadd.f32 %v308_v31, %v247_v28  ;;  %v220_v36 = vadd.f32 %v314_v32, %v247_v28 }
  0xed   :  { %v279_v37 = vpack.c.bf16 %v212_v35, %v209_v33  ;;  %v284_v38 = vpack.c.bf16 %v220_v36, %v217_v34 }
  0xef   :  { %280 = vst [vmem:[%s445_s3] sm:$0xff] %v279_v37   ;;  %286 = vst [vmem:[%s445_s3 + $0x8] sm:$0xff] %v284_v38  }

// kernel: _lambda_.27
= control target key start
LH: loop header
LB: loop body
LE: loop exit
PB: predicated region body
PF: predicated region fallthrough
CT: control target
= control target key end

     0   :  { %s639_s1 = inlined_call_operand.vmem [shape: bf16[384,128], index: 1, kind: input, shape index: {}]   ;;  %s640_s0 = inlined_call_operand.vmem [shape: bf16[32,384], index: 0, kind: input, shape index: {}]   ;;  %s641_s2 = inlined_call_operand.vmem [shape: f32[1,128], index: 2, kind: input, shape index: {}]   ;;  %s642_s3 = inlined_call_operand.vmem [shape: bf16[32,128], index: 3, kind: output, shape index: {}]  }
   0x1   :  { %v488_v0 = vld [vmem:[%s639_s1 + $0x78] sm:$0xff]   ;;  %v490_v2 = vld [vmem:[%s639_s1 + $0x70] sm:$0xff]   ;;  %v493_v5 = vld [vmem:[%s639_s1 + $0x68] sm:$0xff]  }
   0x2   :  { %v489_v1 = vld [vmem:[%s639_s1 + $0x38] sm:$0xff]   ;;  %430 = vmatprep.subr.bf16.mxu0 %v488_v0  ;;  %v492_v4 = vld [vmem:[%s639_s1 + $0x30] sm:$0xff]   ;;  %v495_v7 = vld [vmem:[%s639_s1 + $0x28] sm:$0xff]  }
   0x3   :  { %431 = vmatpush3.bf16.msra.mxu0 %v489_v1  ;;  %v491_v3 = vld [vmem:[%s639_s1 + $0xb8] sm:$0xff]   ;;  %v494_v6 = vld [vmem:[%s639_s1 + $0xb0] sm:$0xff]   ;;  %v496_v8 = vld [vmem:[%s639_s1 + $0x60] sm:$0xff]  }
   0x4   :  { %432 = vmatprep.subr.bf16.mxu0 %v490_v2  ;;  %468 = vmatprep.subr.bf16.mxu1 %v491_v3  ;;  %v497_v9 = vld [vmem:[%s639_s1 + $0xa8] sm:$0xff]   ;;  %v498_v10 = vld [vmem:[%s639_s1 + $0x20] sm:$0xff]   ;;  %v499_v11 = vld [vmem:[%s639_s1 + $0x58] sm:$0xff]  }
   0x5   :  { %469 = vmatpush3.bf16.msra.mxu1 %v491_v3  ;;  %v500_v12 = vld [vmem:[%s639_s1 + $0xa0] sm:$0xff]   ;;  %v501_v13 = vld [vmem:[%s639_s1 + $0x18] sm:$0xff]   ;;  %v502_v15 = vld [vmem:[%s639_s1 + $0x50] sm:$0xff]  }
   0x6   :  { %470 = vmatprep.subr.bf16.mxu1 %v494_v6  ;;  %v503_v14 = vld [vmem:[%s639_s1 + $0x98] sm:$0xff]   ;;  %v504_v16 = vld [vmem:[%s639_s1 + $0x10] sm:$0xff]   ;;  %v505_v18 = vld [vmem:[%s639_s1 + $0x48] sm:$0xff]  }
   0x7   :  { %433 = vmatpush3.bf16.msra.mxu0 %v492_v4  ;;  %v506_v17 = vld [vmem:[%s639_s1 + $0x90] sm:$0xff]   ;;  %v507_v19 = vld [vmem:[%s639_s1 + $0x8] sm:$0xff]   ;;  %v508_v20 = vld [vmem:[%s639_s1 + $0x40] sm:$0xff]  }
   0x8   :  { %434 = vmatprep.subr.bf16.mxu0 %v493_v5  ;;  %v509_v21 = vld [vmem:[%s639_s1 + $0x88] sm:$0xff]   ;;  %v513_v22 = vld [vmem:[%s640_s0 + $0x4] ss:$12 sps:$4 sm:$0xff]   ;;  %v380_v32 = vld [vmem:[%s641_s2] ss:$0 sm:$0xff] }
   0x9   :  { %471 = vmatpush3.bf16.msra.mxu1 %v494_v6  ;;  %v510_v23 = vld [vmem:[%s639_s1] sm:$0xff]   ;;  %286 = vmatprep.mubr.bf16.mxu0 %v513_v22  ;;  %v515_v24 = vld [vmem:[%s640_s0 + $0x8] ss:$12 sps:$4 sm:$0xff]  }
   0xa   :  { %472 = vmatprep.subr.bf16.mxu1 %v497_v9  ;;  %v514_v25 = vld [vmem:[%s639_s1 + $0x80] sm:$0xff]   ;;  %484 = vmatprep.mubr.bf16.mxu1 %v515_v24  ;;  %v517_v27 = vld [vmem:[%s640_s0 + $0x1c] ss:$12 sps:$4 sm:$0xff]  }
   0xb   :  { %435 = vmatpush3.bf16.msra.mxu0 %v495_v7  ;;  %v511_v26 = vld [vmem:[%s640_s0] ss:$12 sps:$4 sm:$0xff]   ;;  %v519_v29 = vld [vmem:[%s640_s0 + $0x18] ss:$12 sps:$4 sm:$0xff]  }
   0xc   :  { %436 = vmatprep.subr.bf16.mxu0 %v496_v8  ;;  %v516_v28 = vld [vmem:[%s640_s0 + $0x20] ss:$12 sps:$4 sm:$0xff]  }
   0xd   :  { %473 = vmatpush3.bf16.msra.mxu1 %v497_v9 }
   0xe   :  { %474 = vmatprep.subr.bf16.mxu1 %v500_v12 }
   0xf   :  { %437 = vmatpush3.bf16.msra.mxu0 %v498_v10 }
  0x10   :  { %438 = vmatprep.subr.bf16.mxu0 %v499_v11 }
  0x11   :  { %475 = vmatpush3.bf16.msra.mxu1 %v500_v12 }
  0x12   :  { %476 = vmatprep.subr.bf16.mxu1 %v503_v14 }
  0x13   :  { %439 = vmatpush3.bf16.msra.mxu0 %v501_v13 }
  0x14   :  { %440 = vmatprep.subr.bf16.mxu0 %v502_v15 }
  0x15   :  { %477 = vmatpush3.bf16.msra.mxu1 %v503_v14 }
  0x16   :  { %478 = vmatprep.subr.bf16.mxu1 %v506_v17 }
  0x17   :  { %441 = vmatpush3.bf16.msra.mxu0 %v504_v16 }
  0x18   :  { %442 = vmatprep.subr.bf16.mxu0 %v505_v18 }
  0x19   :  { %479 = vmatpush3.bf16.msra.mxu1 %v506_v17 }
  0x1a   :  { %480 = vmatprep.subr.bf16.mxu1 %v509_v21 }
  0x1b   :  { %443 = vmatpush3.bf16.msra.mxu0 %v507_v19 }
  0x1c   :  { %444 = vmatprep.subr.bf16.mxu0 %v508_v20 }
  0x1d   :  { %481 = vmatpush3.bf16.msra.mxu1 %v509_v21 }
  0x1e   :  { %482 = vmatprep.subr.bf16.mxu1 %v514_v25 }
  0x1f   :  { %445 = vmatpush3.bf16.msra.mxu0 %v510_v23 }
  0x21   :  { %483 = vmatpush3.bf16.msra.mxu1 %v514_v25 }
  0x22   :  { %287 = vmatmul.mubr.bf16.vlgmr.msra.gmra.mxu0 %v511_v26 }
  0x23   :  { %294 = vmatprep.mubr.bf16.mxu0 %v517_v27 }
  0x24   :  { %485 = vmatmul.mubr.bf16.vlgmr.msra.gmra.mxu1 %v516_v28 }
  0x2a   :  { %295 = vmatmul.mubr.bf16.gmra.mxu0 %v519_v29 }
  0xe2   :  { %v446_v30 = vpop.f32.mrf.mxu0 }
  0xe4   :  { %v447_v31 = vpop.f32.mrf.mxu0  ;;  %v486_v34 = vpop.f32.mrf.mxu1 }
  0xe5   :  { %v448_v33 = vadd.f32 %v447_v31, %v446_v30 }
  0xe6   :  { %v449_v35 = vpop.f32.mrf.mxu0  ;;  %v337_v37 = vpop.f32.mrf.mxu1 }
  0xe7   :  { %v289_v36 = vadd.f32 %v448_v33, %v380_v32 }
  0xe8   :  { %v450_v38 = vpop.f32.mrf.mxu0  ;;  %v487_v40 = vpop.f32.mrf.mxu1 }
  0xe9   :  { %v451_v39 = vadd.f32 %v450_v38, %v449_v35  ;;  %v338_v42 = vadd.f32 %v337_v37, %v289_v36 }
  0xea   :  { %v452_v41 = vpop.f32.mrf.mxu0  ;;  %v340_v44 = vpop.f32.mrf.mxu1 }
  0xeb   :  { %v292_v43 = vadd.f32 %v451_v39, %v380_v32  ;;  %v352_v49 = vmax.f32 %v338_v42, 0.0 }
  0xec   :  { %v453_v45 = vpop.f32.mrf.mxu0 }
  0xed   :  { %v454_v46 = vadd.f32 %v453_v45, %v452_v41  ;;  %v341_v47 = vadd.f32 %v340_v44, %v292_v43 }
  0xee   :  { %v455_v48 = vpop.f32.mrf.mxu0 }
  0xef   :  { %v297_v50 = vadd.f32 %v454_v46, %v380_v32  ;;  %v353_v51 = vmax.f32 %v341_v47, 0.0 }
  0xf0   :  { %v456_v52 = vpop.f32.mrf.mxu0 }
  0xf1   :  { %v422_v53 = vpack.c.bf16 %v353_v51, %v352_v49  ;;  %v457_v54 = vadd.f32 %v456_v52, %v455_v48  ;;  %v346_v55 = vadd.f32 %v486_v34, %v297_v50 }
  0xf3   :  { %423 = vst [vmem:[%s642_s3] sm:$0xff] %v422_v53   ;;  %v300_v56 = vadd.f32 %v457_v54, %v380_v32  ;;  %v354_v58 = vmax.f32 %v346_v55, 0.0 }
  0xf5   :  { %v349_v57 = vadd.f32 %v487_v40, %v300_v56 }
  0xf7   :  { %v355_v59 = vmax.f32 %v349_v57, 0.0 }
  0xf9   :  { %v427_v60 = vpack.c.bf16 %v355_v59, %v354_v58 }
  0xfb   :  { %429 = vst [vmem:[%s642_s3 + $0x8] sm:$0xff] %v427_v60  }

// kernel: _lambda_.28
= control target key start
LH: loop header
LB: loop body
LE: loop exit
PB: predicated region body
PF: predicated region fallthrough
CT: control target
= control target key end

     0   :  { %v448_v1 = vmov 0.0   ;;  %vm449_vm0 = vmmov 0   ;;  %s557_s1 = inlined_call_operand.vmem [shape: bf16[384,128], index: 1, kind: input, shape index: {}]   ;;  %s558_s0 = inlined_call_operand.vmem [shape: bf16[16,384], index: 0, kind: input, shape index: {}]   ;;  %s559_s2 = inlined_call_operand.vmem [shape: f32[1,128], index: 2, kind: input, shape index: {}]   ;;  %s560_s3 = inlined_call_operand.vmem [shape: bf16[16,128], index: 3, kind: output, shape index: {}]  }
   0x1   :  { %v420_v0 = vld [vmem:[%s557_s1 + $0x78] sm:$0xff]   ;;  %398 = vmatprep.subr.bf16.mxu1 %v448_v1  ;;  %414 = vmatprep.mubr.msk.bf16.mxu1 %vm449_vm0, %v448_v1  ;;  %v423_v4 = vld [vmem:[%s557_s1 + $0x70] sm:$0xff]   ;;  %v426_v7 = vld [vmem:[%s557_s1 + $0x68] sm:$0xff]  }
   0x2   :  { %v421_v2 = vld [vmem:[%s557_s1 + $0x38] sm:$0xff]   ;;  %367 = vmatprep.subr.bf16.mxu0 %v420_v0  ;;  %v424_v5 = vld [vmem:[%s557_s1 + $0x30] sm:$0xff]   ;;  %v427_v8 = vld [vmem:[%s557_s1 + $0x28] sm:$0xff]  }
   0x3   :  { %v422_v3 = vld [vmem:[%s557_s1 + $0xb8] sm:$0xff]   ;;  %368 = vmatpush3.bf16.msra.mxu0 %v421_v2  ;;  %v425_v6 = vld [vmem:[%s557_s1 + $0xb0] sm:$0xff]   ;;  %v428_v9 = vld [vmem:[%s557_s1 + $0xa8] sm:$0xff]  }
   0x4   :  { %399 = vmatpush3.bf16.msra.mxu1 %v422_v3  ;;  %369 = vmatprep.subr.bf16.mxu0 %v423_v4  ;;  %v429_v10 = vld [vmem:[%s557_s1 + $0x60] sm:$0xff]   ;;  %v432_v13 = vld [vmem:[%s557_s1 + $0x58] sm:$0xff]   ;;  %v435_v16 = vld [vmem:[%s557_s1 + $0x50] sm:$0xff]  }
   0x5   :  { %400 = vmatprep.subr.bf16.mxu1 %v448_v1  ;;  %v430_v11 = vld [vmem:[%s557_s1 + $0x20] sm:$0xff]   ;;  %v433_v14 = vld [vmem:[%s557_s1 + $0x18] sm:$0xff]   ;;  %v436_v17 = vld [vmem:[%s557_s1 + $0x10] sm:$0xff]  }
   0x6   :  { %v431_v12 = vld [vmem:[%s557_s1 + $0xa0] sm:$0xff]   ;;  %v434_v15 = vld [vmem:[%s557_s1 + $0x98] sm:$0xff]   ;;  %v437_v18 = vld [vmem:[%s557_s1 + $0x90] sm:$0xff]  }
   0x7   :  { %370 = vmatpush3.bf16.msra.mxu0 %v424_v5  ;;  %v438_v19 = vld [vmem:[%s557_s1 + $0x48] sm:$0xff]   ;;  %v441_v22 = vld [vmem:[%s557_s1 + $0x40] sm:$0xff]  }
   0x8   :  { %401 = vmatpush3.bf16.msra.mxu1 %v425_v6  ;;  %371 = vmatprep.subr.bf16.mxu0 %v426_v7  ;;  %v439_v20 = vld [vmem:[%s557_s1 + $0x8] sm:$0xff]   ;;  %v446_v23 = vld [vmem:[%s558_s0 + $0x4] ss:$12 sps:$4 sm:$0xff]   ;;  %v330_v33 = vld [vmem:[%s559_s2] ss:$0 sm:$0xff] }
   0x9   :  { %402 = vmatprep.subr.bf16.mxu1 %v448_v1  ;;  %v440_v21 = vld [vmem:[%s557_s1 + $0x88] sm:$0xff]   ;;  %v442_v24 = vld [vmem:[%s557_s1] sm:$0xff]   ;;  %266 = vmatprep.mubr.bf16.mxu0 %v446_v23 }
   0xa   :  { %v443_v25 = vld [vmem:[%s557_s1 + $0x80] sm:$0xff]   ;;  %v447_v27 = vld [vmem:[%s558_s0 + $0x8] ss:$12 sps:$4 sm:$0xff]  }
   0xb   :  { %372 = vmatpush3.bf16.msra.mxu0 %v427_v8  ;;  %v444_v26 = vld [vmem:[%s558_s0] ss:$12 sps:$4 sm:$0xff]  }
   0xc   :  { %403 = vmatpush3.bf16.msra.mxu1 %v428_v9  ;;  %373 = vmatprep.subr.bf16.mxu0 %v429_v10 }
   0xd   :  { %404 = vmatprep.subr.bf16.mxu1 %v448_v1 }
   0xf   :  { %374 = vmatpush3.bf16.msra.mxu0 %v430_v11 }
  0x10   :  { %405 = vmatpush3.bf16.msra.mxu1 %v431_v12  ;;  %375 = vmatprep.subr.bf16.mxu0 %v432_v13 }
  0x11   :  { %406 = vmatprep.subr.bf16.mxu1 %v448_v1 }
  0x13   :  { %376 = vmatpush3.bf16.msra.mxu0 %v433_v14 }
  0x14   :  { %407 = vmatpush3.bf16.msra.mxu1 %v434_v15  ;;  %377 = vmatprep.subr.bf16.mxu0 %v435_v16 }
  0x15   :  { %408 = vmatprep.subr.bf16.mxu1 %v448_v1 }
  0x17   :  { %378 = vmatpush3.bf16.msra.mxu0 %v436_v17 }
  0x18   :  { %409 = vmatpush3.bf16.msra.mxu1 %v437_v18  ;;  %379 = vmatprep.subr.bf16.mxu0 %v438_v19 }
  0x19   :  { %410 = vmatprep.subr.bf16.mxu1 %v448_v1 }
  0x1b   :  { %380 = vmatpush3.bf16.msra.mxu0 %v439_v20 }
  0x1c   :  { %411 = vmatpush3.bf16.msra.mxu1 %v440_v21  ;;  %381 = vmatprep.subr.bf16.mxu0 %v441_v22 }
  0x1d   :  { %412 = vmatprep.subr.bf16.mxu1 %v448_v1 }
  0x1f   :  { %382 = vmatpush3.bf16.msra.mxu0 %v442_v24 }
  0x20   :  { %413 = vmatpush3.bf16.msra.mxu1 %v443_v25 }
  0x22   :  { %267 = vmatmul.mubr.bf16.vlgmr.msra.gmra.mxu0 %v444_v26 }
  0x23   :  { %415 = vmatmul.mubr.bf16.vlgmr.msra.gmra.mxu1 %v447_v27 }
  0xe2   :  { %v383_v28 = vpop.f32.mrf.mxu0 }
  0xe3   :  { %v309_v29 = vpop.f32.mrf.mxu1 }
  0xe4   :  { %v384_v30 = vpop.f32.mrf.mxu0 }
  0xe5   :  { %v385_v31 = vadd.f32 %v384_v30, %v383_v28  ;;  %v416_v32 = vpop.f32.mrf.mxu1 }
  0xe6   :  { %v386_v34 = vpop.f32.mrf.mxu0 }
  0xe7   :  { %v312_v35 = vpop.f32.mrf.mxu1  ;;  %v269_v37 = vadd.f32 %v385_v31, %v330_v33 }
  0xe8   :  { %v387_v36 = vpop.f32.mrf.mxu0 }
  0xe9   :  { %v388_v38 = vadd.f32 %v387_v36, %v386_v34  ;;  %v417_v39 = vpop.f32.mrf.mxu1  ;;  %v310_v41 = vadd.f32 %v309_v29, %v269_v37 }
  0xeb   :  { %v272_v40 = vadd.f32 %v388_v38, %v330_v33 }
  0xed   :  { %v313_v42 = vadd.f32 %v312_v35, %v272_v40 }
  0xef   :  { %v365_v43 = vpack.c.bf16 %v313_v42, %v310_v41 }
  0xf1   :  { %366 = vst [vmem:[%s560_s3] sm:$0xff] %v365_v43  }

// kernel: _lambda_.30
= control target key start
LH: loop header
LB: loop body
LE: loop exit
PB: predicated region body
PF: predicated region fallthrough
CT: control target
= control target key end

     0   :  { %v688_v33 = vmov 0.0   ;;  %vm689_vm0 = vmmov 0   ;;  %s851_s1 = inlined_call_operand.vmem [shape: bf16[640,128], index: 1, kind: input, shape index: {}]   ;;  %s852_s0 = inlined_call_operand.vmem [shape: bf16[16,640], index: 0, kind: input, shape index: {}]   ;;  %s853_s2 = inlined_call_operand.vmem [shape: f32[1,128], index: 2, kind: input, shape index: {}]   ;;  %s854_s3 = inlined_call_operand.vmem [shape: bf16[16,128], index: 3, kind: output, shape index: {}]  }
   0x1   :  { %v641_v0 = vld [vmem:[%s851_s1 + $0x78] sm:$0xff]   ;;  %v645_v4 = vld [vmem:[%s851_s1 + $0x70] sm:$0xff]   ;;  %v649_v8 = vld [vmem:[%s851_s1 + $0x68] sm:$0xff]  }
   0x2   :  { %v642_v1 = vld [vmem:[%s851_s1 + $0x38] sm:$0xff]   ;;  %566 = vmatprep.subr.bf16.mxu0 %v641_v0  ;;  %v646_v5 = vld [vmem:[%s851_s1 + $0x30] sm:$0xff]   ;;  %v650_v9 = vld [vmem:[%s851_s1 + $0x28] sm:$0xff]  }
   0x3   :  { %v643_v2 = vld [vmem:[%s851_s1 + $0xf8] sm:$0xff]   ;;  %567 = vmatpush3.bf16.msra.mxu0 %v642_v1  ;;  %v647_v6 = vld [vmem:[%s851_s1 + $0xf0] sm:$0xff]   ;;  %v651_v10 = vld [vmem:[%s851_s1 + $0xe8] sm:$0xff]  }
   0x4   :  { %v644_v3 = vld [vmem:[%s851_s1 + $0xb8] sm:$0xff]   ;;  %588 = vmatprep.subr.bf16.mxu1 %v643_v2  ;;  %568 = vmatprep.subr.bf16.mxu0 %v645_v4  ;;  %v648_v7 = vld [vmem:[%s851_s1 + $0xb0] sm:$0xff]   ;;  %v652_v11 = vld [vmem:[%s851_s1 + $0xa8] sm:$0xff]  }
   0x5   :  { %589 = vmatpush3.bf16.msra.mxu1 %v644_v3  ;;  %v653_v12 = vld [vmem:[%s851_s1 + $0x60] sm:$0xff]   ;;  %v657_v16 = vld [vmem:[%s851_s1 + $0x58] sm:$0xff]   ;;  %v661_v20 = vld [vmem:[%s851_s1 + $0x50] sm:$0xff]  }
   0x6   :  { %590 = vmatprep.subr.bf16.mxu1 %v647_v6  ;;  %v654_v13 = vld [vmem:[%s851_s1 + $0x20] sm:$0xff]   ;;  %v658_v17 = vld [vmem:[%s851_s1 + $0x18] sm:$0xff]   ;;  %v662_v21 = vld [vmem:[%s851_s1 + $0x10] sm:$0xff]  }
   0x7   :  { %569 = vmatpush3.bf16.msra.mxu0 %v646_v5  ;;  %v655_v14 = vld [vmem:[%s851_s1 + $0xe0] sm:$0xff]   ;;  %v659_v18 = vld [vmem:[%s851_s1 + $0xd8] sm:$0xff]   ;;  %v663_v22 = vld [vmem:[%s851_s1 + $0xd0] sm:$0xff]  }
   0x8   :  { %570 = vmatprep.subr.bf16.mxu0 %v649_v8  ;;  %v656_v15 = vld [vmem:[%s851_s1 + $0xa0] sm:$0xff]   ;;  %v660_v19 = vld [vmem:[%s851_s1 + $0x98] sm:$0xff]   ;;  %v664_v23 = vld [vmem:[%s851_s1 + $0x90] sm:$0xff]  }
   0x9   :  { %591 = vmatpush3.bf16.msra.mxu1 %v648_v7  ;;  %v665_v24 = vld [vmem:[%s851_s1 + $0x48] sm:$0xff]   ;;  %v669_v28 = vld [vmem:[%s851_s1 + $0x40] sm:$0xff]   ;;  %v679_v37 = vld [vmem:[%s851_s1 + $0x138] sm:$0xff]  }
   0xa   :  { %592 = vmatprep.subr.bf16.mxu1 %v651_v10  ;;  %v666_v25 = vld [vmem:[%s851_s1 + $0x8] sm:$0xff]   ;;  %v670_v29 = vld [vmem:[%s851_s1] sm:$0xff]   ;;  %v680_v38 = vld [vmem:[%s851_s1 + $0x130] sm:$0xff]  }
   0xb   :  { %571 = vmatpush3.bf16.msra.mxu0 %v650_v9  ;;  %v667_v26 = vld [vmem:[%s851_s1 + $0xc8] sm:$0xff]   ;;  %v671_v30 = vld [vmem:[%s851_s1 + $0xc0] sm:$0xff]   ;;  %v683_v41 = vld [vmem:[%s851_s1 + $0x118] sm:$0xff]  }
   0xc   :  { %572 = vmatprep.subr.bf16.mxu0 %v653_v12  ;;  %v668_v27 = vld [vmem:[%s851_s1 + $0x88] sm:$0xff]   ;;  %v672_v31 = vld [vmem:[%s852_s0] ss:$20 sps:$4 sm:$0xff]   ;;  %v674_v32 = vld [vmem:[%s852_s0 + $0x4] ss:$20 sps:$4 sm:$0xff]  }
   0xd   :  { %593 = vmatpush3.bf16.msra.mxu1 %v652_v11  ;;  %v675_v34 = vld [vmem:[%s851_s1 + $0x80] sm:$0xff]   ;;  %406 = vmatprep.mubr.bf16.mxu0 %v674_v32  ;;  %v676_v35 = vld [vmem:[%s852_s0 + $0x8] ss:$20 sps:$4 sm:$0xff]   ;;  %v684_v42 = vld [vmem:[%s851_s1 + $0x110] sm:$0xff]  }
   0xe   :  { %594 = vmatprep.subr.bf16.mxu1 %v655_v14  ;;  %v678_v36 = vld [vmem:[%s852_s0 + $0xc] ss:$20 sps:$4 sm:$0xff]   ;;  %v687_v45 = vld [vmem:[%s852_s0 + $0x10] ss:$20 sps:$4 sm:$0xff]  }
   0xf   :  { %573 = vmatpush3.bf16.msra.mxu0 %v654_v13  ;;  %447 = vmatprep.mubr.bf16.mxu1 %v678_v36  ;;  %v681_v39 = vld [vmem:[%s851_s1 + $0x128] sm:$0xff]   ;;  %v682_v40 = vld [vmem:[%s851_s1 + $0x120] sm:$0xff]  }
  0x10   :  { %574 = vmatprep.subr.bf16.mxu0 %v657_v16  ;;  %v685_v43 = vld [vmem:[%s851_s1 + $0x108] sm:$0xff]   ;;  %v686_v44 = vld [vmem:[%s851_s1 + $0x100] sm:$0xff]  }
  0x11   :  { %595 = vmatpush3.bf16.msra.mxu1 %v656_v15  ;;  %v511_v55 = vld [vmem:[%s853_s2] ss:$0 sm:$0xff] }
  0x12   :  { %596 = vmatprep.subr.bf16.mxu1 %v659_v18 }
  0x13   :  { %575 = vmatpush3.bf16.msra.mxu0 %v658_v17 }
  0x14   :  { %576 = vmatprep.subr.bf16.mxu0 %v661_v20 }
  0x15   :  { %597 = vmatpush3.bf16.msra.mxu1 %v660_v19 }
  0x16   :  { %598 = vmatprep.subr.bf16.mxu1 %v663_v22 }
  0x17   :  { %577 = vmatpush3.bf16.msra.mxu0 %v662_v21 }
  0x18   :  { %578 = vmatprep.subr.bf16.mxu0 %v665_v24 }
  0x19   :  { %599 = vmatpush3.bf16.msra.mxu1 %v664_v23 }
  0x1a   :  { %600 = vmatprep.subr.bf16.mxu1 %v667_v26 }
  0x1b   :  { %579 = vmatpush3.bf16.msra.mxu0 %v666_v25 }
  0x1c   :  { %580 = vmatprep.subr.bf16.mxu0 %v669_v28 }
  0x1d   :  { %601 = vmatpush3.bf16.msra.mxu1 %v668_v27 }
  0x1e   :  { %602 = vmatprep.subr.bf16.mxu1 %v671_v30 }
  0x1f   :  { %581 = vmatpush3.bf16.msra.mxu0 %v670_v29 }
  0x20   :  { %619 = vmatprep.subr.bf16.mxu0 %v688_v33 }
  0x21   :  { %603 = vmatpush3.bf16.msra.mxu1 %v675_v34 }
  0x22   :  { %407 = vmatmul.mubr.bf16.vlgmr.msra.gmra.mxu0 %v672_v31 }
  0x23   :  { %635 = vmatprep.mubr.msk.bf16.mxu0 %vm689_vm0, %v688_v33  ;;  %620 = vmatpush3.bf16.msra.mxu0 %v679_v37 }
  0x24   :  { %448 = vmatmul.mubr.bf16.vlgmr.msra.gmra.mxu1 %v676_v35  ;;  %621 = vmatprep.subr.bf16.mxu0 %v688_v33 }
  0x27   :  { %622 = vmatpush3.bf16.msra.mxu0 %v680_v38 }
  0x28   :  { %623 = vmatprep.subr.bf16.mxu0 %v688_v33 }
  0x2b   :  { %624 = vmatpush3.bf16.msra.mxu0 %v681_v39 }
  0x2c   :  { %625 = vmatprep.subr.bf16.mxu0 %v688_v33 }
  0x2f   :  { %626 = vmatpush3.bf16.msra.mxu0 %v682_v40 }
  0x30   :  { %627 = vmatprep.subr.bf16.mxu0 %v688_v33 }
  0x33   :  { %628 = vmatpush3.bf16.msra.mxu0 %v683_v41 }
  0x34   :  { %629 = vmatprep.subr.bf16.mxu0 %v688_v33 }
  0x37   :  { %630 = vmatpush3.bf16.msra.mxu0 %v684_v42 }
  0x38   :  { %631 = vmatprep.subr.bf16.mxu0 %v688_v33 }
  0x3b   :  { %632 = vmatpush3.bf16.msra.mxu0 %v685_v43 }
  0x3c   :  { %633 = vmatprep.subr.bf16.mxu0 %v688_v33 }
  0x3f   :  { %634 = vmatpush3.bf16.msra.mxu0 %v686_v44 }
  0x42   :  { %636 = vmatmul.mubr.bf16.vlgmr.msra.gmra.mxu0 %v687_v45 }
  0xe2   :  { %v582_v46 = vpop.f32.mrf.mxu0 }
  0xe4   :  { %v583_v47 = vpop.f32.mrf.mxu0  ;;  %v604_v48 = vpop.f32.mrf.mxu1 }
  0xe5   :  { %v584_v53 = vadd.f32 %v583_v47, %v582_v46 }
  0xe6   :  { %v585_v49 = vpop.f32.mrf.mxu0  ;;  %v605_v50 = vpop.f32.mrf.mxu1 }
  0xe7   :  { %v409_v57 = vadd.f32 %v584_v53, %v511_v55  ;;  %v606_v58 = vadd.f32 %v605_v50, %v604_v48 }
  0xe8   :  { %v586_v51 = vpop.f32.mrf.mxu0  ;;  %v607_v52 = vpop.f32.mrf.mxu1 }
  0xe9   :  { %v587_v54 = vadd.f32 %v586_v51, %v585_v49  ;;  %v450_v63 = vadd.f32 %v606_v58, %v409_v57 }
  0xea   :  { %v608_v56 = vpop.f32.mrf.mxu1 }
  0xeb   :  { %v412_v59 = vadd.f32 %v587_v54, %v511_v55  ;;  %v609_v60 = vadd.f32 %v608_v56, %v607_v52 }
  0xed   :  { %v453_v0 = vadd.f32 %v609_v60, %v412_v59 }
 0x102   :  { %v490_v61 = vpop.f32.mrf.mxu0 }
 0x103   :  { %v491_v2 = vadd.f32 %v490_v61, %v450_v63 }
 0x104   :  { %v637_v62 = vpop.f32.mrf.mxu0 }
 0x106   :  { %v493_v1 = vpop.f32.mrf.mxu0 }
 0x107   :  { %v494_v3 = vadd.f32 %v493_v1, %v453_v0 }
 0x108   :  { %v638_v4 = vpop.f32.mrf.mxu0 }
 0x109   :  { %v564_v5 = vpack.c.bf16 %v494_v3, %v491_v2 }
 0x10b   :  { %565 = vst [vmem:[%s854_s3] sm:$0xff] %v564_v5  }

// kernel: _lambda_.29
= control target key start
LH: loop header
LB: loop body
LE: loop exit
PB: predicated region body
PF: predicated region fallthrough
CT: control target
= control target key end

     0   :  { %v690_v33 = vmov 0.0   ;;  %vm691_vm0 = vmmov 0   ;;  %s853_s1 = inlined_call_operand.vmem [shape: bf16[640,128], index: 1, kind: input, shape index: {}]   ;;  %s854_s0 = inlined_call_operand.vmem [shape: bf16[16,640], index: 0, kind: input, shape index: {}]   ;;  %s855_s2 = inlined_call_operand.vmem [shape: f32[1,128], index: 2, kind: input, shape index: {}]   ;;  %s856_s3 = inlined_call_operand.vmem [shape: bf16[16,128], index: 3, kind: output, shape index: {}]  }
   0x1   :  { %v643_v0 = vld [vmem:[%s853_s1 + $0x78] sm:$0xff]   ;;  %v647_v4 = vld [vmem:[%s853_s1 + $0x70] sm:$0xff]   ;;  %v651_v8 = vld [vmem:[%s853_s1 + $0x68] sm:$0xff]  }
   0x2   :  { %v644_v1 = vld [vmem:[%s853_s1 + $0x38] sm:$0xff]   ;;  %568 = vmatprep.subr.bf16.mxu0 %v643_v0  ;;  %v648_v5 = vld [vmem:[%s853_s1 + $0x30] sm:$0xff]   ;;  %v652_v9 = vld [vmem:[%s853_s1 + $0x28] sm:$0xff]  }
   0x3   :  { %v645_v2 = vld [vmem:[%s853_s1 + $0xf8] sm:$0xff]   ;;  %569 = vmatpush3.bf16.msra.mxu0 %v644_v1  ;;  %v649_v6 = vld [vmem:[%s853_s1 + $0xf0] sm:$0xff]   ;;  %v653_v10 = vld [vmem:[%s853_s1 + $0xe8] sm:$0xff]  }
   0x4   :  { %v646_v3 = vld [vmem:[%s853_s1 + $0xb8] sm:$0xff]   ;;  %590 = vmatprep.subr.bf16.mxu1 %v645_v2  ;;  %570 = vmatprep.subr.bf16.mxu0 %v647_v4  ;;  %v650_v7 = vld [vmem:[%s853_s1 + $0xb0] sm:$0xff]   ;;  %v654_v11 = vld [vmem:[%s853_s1 + $0xa8] sm:$0xff]  }
   0x5   :  { %591 = vmatpush3.bf16.msra.mxu1 %v646_v3  ;;  %v655_v12 = vld [vmem:[%s853_s1 + $0x60] sm:$0xff]   ;;  %v659_v16 = vld [vmem:[%s853_s1 + $0x58] sm:$0xff]   ;;  %v663_v20 = vld [vmem:[%s853_s1 + $0x50] sm:$0xff]  }
   0x6   :  { %592 = vmatprep.subr.bf16.mxu1 %v649_v6  ;;  %v656_v13 = vld [vmem:[%s853_s1 + $0x20] sm:$0xff]   ;;  %v660_v17 = vld [vmem:[%s853_s1 + $0x18] sm:$0xff]   ;;  %v664_v21 = vld [vmem:[%s853_s1 + $0x10] sm:$0xff]  }
   0x7   :  { %571 = vmatpush3.bf16.msra.mxu0 %v648_v5  ;;  %v657_v14 = vld [vmem:[%s853_s1 + $0xe0] sm:$0xff]   ;;  %v661_v18 = vld [vmem:[%s853_s1 + $0xd8] sm:$0xff]   ;;  %v665_v22 = vld [vmem:[%s853_s1 + $0xd0] sm:$0xff]  }
   0x8   :  { %572 = vmatprep.subr.bf16.mxu0 %v651_v8  ;;  %v658_v15 = vld [vmem:[%s853_s1 + $0xa0] sm:$0xff]   ;;  %v662_v19 = vld [vmem:[%s853_s1 + $0x98] sm:$0xff]   ;;  %v666_v23 = vld [vmem:[%s853_s1 + $0x90] sm:$0xff]  }
   0x9   :  { %593 = vmatpush3.bf16.msra.mxu1 %v650_v7  ;;  %v667_v24 = vld [vmem:[%s853_s1 + $0x48] sm:$0xff]   ;;  %v671_v28 = vld [vmem:[%s853_s1 + $0x40] sm:$0xff]   ;;  %v681_v37 = vld [vmem:[%s853_s1 + $0x138] sm:$0xff]  }
   0xa   :  { %594 = vmatprep.subr.bf16.mxu1 %v653_v10  ;;  %v668_v25 = vld [vmem:[%s853_s1 + $0x8] sm:$0xff]   ;;  %v672_v29 = vld [vmem:[%s853_s1] sm:$0xff]   ;;  %v682_v38 = vld [vmem:[%s853_s1 + $0x130] sm:$0xff]  }
   0xb   :  { %573 = vmatpush3.bf16.msra.mxu0 %v652_v9  ;;  %v669_v26 = vld [vmem:[%s853_s1 + $0xc8] sm:$0xff]   ;;  %v673_v30 = vld [vmem:[%s853_s1 + $0xc0] sm:$0xff]   ;;  %v685_v41 = vld [vmem:[%s853_s1 + $0x118] sm:$0xff]  }
   0xc   :  { %574 = vmatprep.subr.bf16.mxu0 %v655_v12  ;;  %v670_v27 = vld [vmem:[%s853_s1 + $0x88] sm:$0xff]   ;;  %v674_v31 = vld [vmem:[%s854_s0] ss:$20 sps:$4 sm:$0xff]   ;;  %v676_v32 = vld [vmem:[%s854_s0 + $0x4] ss:$20 sps:$4 sm:$0xff]  }
   0xd   :  { %595 = vmatpush3.bf16.msra.mxu1 %v654_v11  ;;  %v677_v34 = vld [vmem:[%s853_s1 + $0x80] sm:$0xff]   ;;  %406 = vmatprep.mubr.bf16.mxu0 %v676_v32  ;;  %v678_v35 = vld [vmem:[%s854_s0 + $0x8] ss:$20 sps:$4 sm:$0xff]   ;;  %v686_v42 = vld [vmem:[%s853_s1 + $0x110] sm:$0xff]  }
   0xe   :  { %596 = vmatprep.subr.bf16.mxu1 %v657_v14  ;;  %v680_v36 = vld [vmem:[%s854_s0 + $0xc] ss:$20 sps:$4 sm:$0xff]   ;;  %v689_v45 = vld [vmem:[%s854_s0 + $0x10] ss:$20 sps:$4 sm:$0xff]  }
   0xf   :  { %575 = vmatpush3.bf16.msra.mxu0 %v656_v13  ;;  %447 = vmatprep.mubr.bf16.mxu1 %v680_v36  ;;  %v683_v39 = vld [vmem:[%s853_s1 + $0x128] sm:$0xff]   ;;  %v684_v40 = vld [vmem:[%s853_s1 + $0x120] sm:$0xff]  }
  0x10   :  { %576 = vmatprep.subr.bf16.mxu0 %v659_v16  ;;  %v687_v43 = vld [vmem:[%s853_s1 + $0x108] sm:$0xff]   ;;  %v688_v44 = vld [vmem:[%s853_s1 + $0x100] sm:$0xff]  }
  0x11   :  { %597 = vmatpush3.bf16.msra.mxu1 %v658_v15  ;;  %v513_v54 = vld [vmem:[%s855_s2] ss:$0 sm:$0xff] }
  0x12   :  { %598 = vmatprep.subr.bf16.mxu1 %v661_v18 }
  0x13   :  { %577 = vmatpush3.bf16.msra.mxu0 %v660_v17 }
  0x14   :  { %578 = vmatprep.subr.bf16.mxu0 %v663_v20 }
  0x15   :  { %599 = vmatpush3.bf16.msra.mxu1 %v662_v19 }
  0x16   :  { %600 = vmatprep.subr.bf16.mxu1 %v665_v22 }
  0x17   :  { %579 = vmatpush3.bf16.msra.mxu0 %v664_v21 }
  0x18   :  { %580 = vmatprep.subr.bf16.mxu0 %v667_v24 }
  0x19   :  { %601 = vmatpush3.bf16.msra.mxu1 %v666_v23 }
  0x1a   :  { %602 = vmatprep.subr.bf16.mxu1 %v669_v26 }
  0x1b   :  { %581 = vmatpush3.bf16.msra.mxu0 %v668_v25 }
  0x1c   :  { %582 = vmatprep.subr.bf16.mxu0 %v671_v28 }
  0x1d   :  { %603 = vmatpush3.bf16.msra.mxu1 %v670_v27 }
  0x1e   :  { %604 = vmatprep.subr.bf16.mxu1 %v673_v30 }
  0x1f   :  { %583 = vmatpush3.bf16.msra.mxu0 %v672_v29 }
  0x20   :  { %621 = vmatprep.subr.bf16.mxu0 %v690_v33 }
  0x21   :  { %605 = vmatpush3.bf16.msra.mxu1 %v677_v34 }
  0x22   :  { %407 = vmatmul.mubr.bf16.vlgmr.msra.gmra.mxu0 %v674_v31 }
  0x23   :  { %637 = vmatprep.mubr.msk.bf16.mxu0 %vm691_vm0, %v690_v33  ;;  %622 = vmatpush3.bf16.msra.mxu0 %v681_v37 }
  0x24   :  { %448 = vmatmul.mubr.bf16.vlgmr.msra.gmra.mxu1 %v678_v35  ;;  %623 = vmatprep.subr.bf16.mxu0 %v690_v33 }
  0x27   :  { %624 = vmatpush3.bf16.msra.mxu0 %v682_v38 }
  0x28   :  { %625 = vmatprep.subr.bf16.mxu0 %v690_v33 }
  0x2b   :  { %626 = vmatpush3.bf16.msra.mxu0 %v683_v39 }
  0x2c   :  { %627 = vmatprep.subr.bf16.mxu0 %v690_v33 }
  0x2f   :  { %628 = vmatpush3.bf16.msra.mxu0 %v684_v40 }
  0x30   :  { %629 = vmatprep.subr.bf16.mxu0 %v690_v33 }
  0x33   :  { %630 = vmatpush3.bf16.msra.mxu0 %v685_v41 }
  0x34   :  { %631 = vmatprep.subr.bf16.mxu0 %v690_v33 }
  0x37   :  { %632 = vmatpush3.bf16.msra.mxu0 %v686_v42 }
  0x38   :  { %633 = vmatprep.subr.bf16.mxu0 %v690_v33 }
  0x3b   :  { %634 = vmatpush3.bf16.msra.mxu0 %v687_v43 }
  0x3c   :  { %635 = vmatprep.subr.bf16.mxu0 %v690_v33 }
  0x3f   :  { %636 = vmatpush3.bf16.msra.mxu0 %v688_v44 }
  0x42   :  { %638 = vmatmul.mubr.bf16.vlgmr.msra.gmra.mxu0 %v689_v45 }
  0xe2   :  { %v584_v46 = vpop.f32.mrf.mxu0 }
  0xe4   :  { %v585_v47 = vpop.f32.mrf.mxu0  ;;  %v606_v48 = vpop.f32.mrf.mxu1 }
  0xe5   :  { %v586_v53 = vadd.f32 %v585_v47, %v584_v46 }
  0xe6   :  { %v587_v49 = vpop.f32.mrf.mxu0  ;;  %v607_v50 = vpop.f32.mrf.mxu1 }
  0xe7   :  { %v409_v57 = vadd.f32 %v586_v53, %v513_v54  ;;  %v608_v58 = vadd.f32 %v607_v50, %v606_v48 }
  0xe8   :  { %v588_v51 = vpop.f32.mrf.mxu0  ;;  %v609_v52 = vpop.f32.mrf.mxu1 }
  0xe9   :  { %v589_v55 = vadd.f32 %v588_v51, %v587_v49  ;;  %v450_v62 = vadd.f32 %v608_v58, %v409_v57 }
  0xea   :  { %v610_v56 = vpop.f32.mrf.mxu1 }
  0xeb   :  { %v412_v59 = vadd.f32 %v589_v55, %v513_v54  ;;  %v611_v60 = vadd.f32 %v610_v56, %v609_v52 }
  0xed   :  { %v453_v1 = vadd.f32 %v611_v60, %v412_v59 }
 0x102   :  { %v490_v61 = vpop.f32.mrf.mxu0 }
 0x103   :  { %v491_v0 = vadd.f32 %v490_v61, %v450_v62 }
 0x104   :  { %v639_v63 = vpop.f32.mrf.mxu0 }
 0x105   :  { %v497_v5 = vmax.f32 %v491_v0, 0.0 }
 0x106   :  { %v493_v2 = vpop.f32.mrf.mxu0 }
 0x107   :  { %v494_v3 = vadd.f32 %v493_v2, %v453_v1 }
 0x108   :  { %v640_v4 = vpop.f32.mrf.mxu0 }
 0x109   :  { %v498_v6 = vmax.f32 %v494_v3, 0.0 }
 0x10b   :  { %v566_v7 = vpack.c.bf16 %v498_v6, %v497_v5 }
 0x10d   :  { %567 = vst [vmem:[%s856_s3] sm:$0xff] %v566_v7  }

// kernel: _lambda_.34
= control target key start
LH: loop header
LB: loop body
LE: loop exit
PB: predicated region body
PF: predicated region fallthrough
CT: control target
= control target key end

     0   :  { %v208_v0 = vmov 0.0   ;;  %vm209_vm0 = vmmov 0   ;;  %s263_s1 = inlined_call_operand.vmem [shape: bf16[128,128], index: 1, kind: input, shape index: {}]   ;;  %s264_s0 = inlined_call_operand.vmem [shape: bf16[16,128], index: 0, kind: input, shape index: {}]   ;;  %s265_s2 = inlined_call_operand.vmem [shape: f32[1,128], index: 2, kind: input, shape index: {}]   ;;  %s266_s3 = inlined_call_operand.vmem [shape: bf16[16,128], index: 3, kind: output, shape index: {}]  }
   0x1   :  { %177 = vmatprep.subr.bf16.mxu0 %v208_v0  ;;  %v199_v1 = vld [vmem:[%s263_s1 + $0x38] sm:$0xff]   ;;  %193 = vmatprep.mubr.msk.bf16.mxu0 %vm209_vm0, %v208_v0  ;;  %v200_v2 = vld [vmem:[%s263_s1 + $0x30] sm:$0xff]   ;;  %v201_v3 = vld [vmem:[%s263_s1 + $0x28] sm:$0xff]  }
   0x2   :  { %178 = vmatpush3.bf16.msra.mxu0 %v199_v1  ;;  %v202_v4 = vld [vmem:[%s263_s1 + $0x20] sm:$0xff]   ;;  %v203_v5 = vld [vmem:[%s263_s1 + $0x18] sm:$0xff]   ;;  %v204_v6 = vld [vmem:[%s263_s1 + $0x10] sm:$0xff]  }
   0x3   :  { %179 = vmatprep.subr.bf16.mxu0 %v208_v0  ;;  %v205_v7 = vld [vmem:[%s263_s1 + $0x8] sm:$0xff]   ;;  %v206_v8 = vld [vmem:[%s263_s1] sm:$0xff]  }
   0x4   :  { %v207_v9 = vld [vmem:[%s264_s0] sm:$0xff]  }
   0x5   :  { %v149_v11 = vld [vmem:[%s265_s2] ss:$0 sm:$0xff] }
   0x6   :  { %180 = vmatpush3.bf16.msra.mxu0 %v200_v2 }
   0x7   :  { %181 = vmatprep.subr.bf16.mxu0 %v208_v0 }
   0xa   :  { %182 = vmatpush3.bf16.msra.mxu0 %v201_v3 }
   0xb   :  { %183 = vmatprep.subr.bf16.mxu0 %v208_v0 }
   0xe   :  { %184 = vmatpush3.bf16.msra.mxu0 %v202_v4 }
   0xf   :  { %185 = vmatprep.subr.bf16.mxu0 %v208_v0 }
  0x12   :  { %186 = vmatpush3.bf16.msra.mxu0 %v203_v5 }
  0x13   :  { %187 = vmatprep.subr.bf16.mxu0 %v208_v0 }
  0x16   :  { %188 = vmatpush3.bf16.msra.mxu0 %v204_v6 }
  0x17   :  { %189 = vmatprep.subr.bf16.mxu0 %v208_v0 }
  0x1a   :  { %190 = vmatpush3.bf16.msra.mxu0 %v205_v7 }
  0x1b   :  { %191 = vmatprep.subr.bf16.mxu0 %v208_v0 }
  0x1e   :  { %192 = vmatpush3.bf16.msra.mxu0 %v206_v8 }
  0x21   :  { %194 = vmatmul.mubr.bf16.vlgmr.msra.gmra.mxu0 %v207_v9 }
  0xe1   :  { %v128_v10 = vpop.f32.mrf.mxu0 }
  0xe2   :  { %v129_v14 = vadd.f32 %v149_v11, %v128_v10 }
  0xe3   :  { %v195_v12 = vpop.f32.mrf.mxu0 }
  0xe5   :  { %v131_v13 = vpop.f32.mrf.mxu0 }
  0xe6   :  { %v132_v15 = vadd.f32 %v149_v11, %v131_v13 }
  0xe7   :  { %v196_v16 = vpop.f32.mrf.mxu0 }
  0xe8   :  { %v166_v17 = vpack.c.bf16 %v132_v15, %v129_v14 }
  0xea   :  { %167 = vst [vmem:[%s266_s3] sm:$0xff] %v166_v17  }

// kernel: _lambda_.35
= control target key start
LH: loop header
LB: loop body
LE: loop exit
PB: predicated region body
PF: predicated region fallthrough
CT: control target
= control target key end

     0   :  { %v703_v33 = vmov 0.0   ;;  %vm704_vm0 = vmmov 0   ;;  %s874_s1 = inlined_call_operand.vmem [shape: bf16[640,128], index: 1, kind: input, shape index: {}]   ;;  %s875_s0 = inlined_call_operand.vmem [shape: bf16[16,640], index: 0, kind: input, shape index: {}]   ;;  %s876_s2 = inlined_call_operand.vmem [shape: f32[1,128], index: 2, kind: input, shape index: {}]   ;;  %s877_s3 = inlined_call_operand.vmem [shape: bf16[16,128], index: 3, kind: input, shape index: {}]   ;;  %s878_s4 = inlined_call_operand.vmem [shape: bf16[16,128], index: 4, kind: output, shape index: {}]  }
   0x1   :  { %v656_v0 = vld [vmem:[%s874_s1 + $0x78] sm:$0xff]   ;;  %v660_v4 = vld [vmem:[%s874_s1 + $0x70] sm:$0xff]   ;;  %v664_v8 = vld [vmem:[%s874_s1 + $0x68] sm:$0xff]  }
   0x2   :  { %v657_v1 = vld [vmem:[%s874_s1 + $0x38] sm:$0xff]   ;;  %581 = vmatprep.subr.bf16.mxu0 %v656_v0  ;;  %v661_v5 = vld [vmem:[%s874_s1 + $0x30] sm:$0xff]   ;;  %v665_v9 = vld [vmem:[%s874_s1 + $0x28] sm:$0xff]  }
   0x3   :  { %v658_v2 = vld [vmem:[%s874_s1 + $0xf8] sm:$0xff]   ;;  %582 = vmatpush3.bf16.msra.mxu0 %v657_v1  ;;  %v662_v6 = vld [vmem:[%s874_s1 + $0xf0] sm:$0xff]   ;;  %v666_v10 = vld [vmem:[%s874_s1 + $0xe8] sm:$0xff]  }
   0x4   :  { %v659_v3 = vld [vmem:[%s874_s1 + $0xb8] sm:$0xff]   ;;  %603 = vmatprep.subr.bf16.mxu1 %v658_v2  ;;  %583 = vmatprep.subr.bf16.mxu0 %v660_v4  ;;  %v663_v7 = vld [vmem:[%s874_s1 + $0xb0] sm:$0xff]   ;;  %v667_v11 = vld [vmem:[%s874_s1 + $0xa8] sm:$0xff]  }
   0x5   :  { %604 = vmatpush3.bf16.msra.mxu1 %v659_v3  ;;  %v668_v12 = vld [vmem:[%s874_s1 + $0x60] sm:$0xff]   ;;  %v672_v16 = vld [vmem:[%s874_s1 + $0x58] sm:$0xff]   ;;  %v676_v20 = vld [vmem:[%s874_s1 + $0x50] sm:$0xff]  }
   0x6   :  { %605 = vmatprep.subr.bf16.mxu1 %v662_v6  ;;  %v669_v13 = vld [vmem:[%s874_s1 + $0x20] sm:$0xff]   ;;  %v673_v17 = vld [vmem:[%s874_s1 + $0x18] sm:$0xff]   ;;  %v677_v21 = vld [vmem:[%s874_s1 + $0x10] sm:$0xff]  }
   0x7   :  { %584 = vmatpush3.bf16.msra.mxu0 %v661_v5  ;;  %v670_v14 = vld [vmem:[%s874_s1 + $0xe0] sm:$0xff]   ;;  %v674_v18 = vld [vmem:[%s874_s1 + $0xd8] sm:$0xff]   ;;  %v678_v22 = vld [vmem:[%s874_s1 + $0xd0] sm:$0xff]  }
   0x8   :  { %585 = vmatprep.subr.bf16.mxu0 %v664_v8  ;;  %v671_v15 = vld [vmem:[%s874_s1 + $0xa0] sm:$0xff]   ;;  %v675_v19 = vld [vmem:[%s874_s1 + $0x98] sm:$0xff]   ;;  %v679_v23 = vld [vmem:[%s874_s1 + $0x90] sm:$0xff]  }
   0x9   :  { %606 = vmatpush3.bf16.msra.mxu1 %v663_v7  ;;  %v680_v24 = vld [vmem:[%s874_s1 + $0x48] sm:$0xff]   ;;  %v684_v28 = vld [vmem:[%s874_s1 + $0x40] sm:$0xff]   ;;  %v694_v37 = vld [vmem:[%s874_s1 + $0x138] sm:$0xff]  }
   0xa   :  { %607 = vmatprep.subr.bf16.mxu1 %v666_v10  ;;  %v681_v25 = vld [vmem:[%s874_s1 + $0x8] sm:$0xff]   ;;  %v685_v29 = vld [vmem:[%s874_s1] sm:$0xff]   ;;  %v695_v38 = vld [vmem:[%s874_s1 + $0x130] sm:$0xff]  }
   0xb   :  { %586 = vmatpush3.bf16.msra.mxu0 %v665_v9  ;;  %v682_v26 = vld [vmem:[%s874_s1 + $0xc8] sm:$0xff]   ;;  %v686_v30 = vld [vmem:[%s874_s1 + $0xc0] sm:$0xff]   ;;  %v698_v41 = vld [vmem:[%s874_s1 + $0x118] sm:$0xff]  }
   0xc   :  { %587 = vmatprep.subr.bf16.mxu0 %v668_v12  ;;  %v683_v27 = vld [vmem:[%s874_s1 + $0x88] sm:$0xff]   ;;  %v687_v31 = vld [vmem:[%s875_s0] ss:$20 sps:$4 sm:$0xff]   ;;  %v689_v32 = vld [vmem:[%s875_s0 + $0x4] ss:$20 sps:$4 sm:$0xff]  }
   0xd   :  { %608 = vmatpush3.bf16.msra.mxu1 %v667_v11  ;;  %v690_v34 = vld [vmem:[%s874_s1 + $0x80] sm:$0xff]   ;;  %409 = vmatprep.mubr.bf16.mxu0 %v689_v32  ;;  %v691_v35 = vld [vmem:[%s875_s0 + $0x8] ss:$20 sps:$4 sm:$0xff]   ;;  %v699_v42 = vld [vmem:[%s874_s1 + $0x110] sm:$0xff]  }
   0xe   :  { %609 = vmatprep.subr.bf16.mxu1 %v670_v14  ;;  %v693_v36 = vld [vmem:[%s875_s0 + $0xc] ss:$20 sps:$4 sm:$0xff]   ;;  %v702_v45 = vld [vmem:[%s875_s0 + $0x10] ss:$20 sps:$4 sm:$0xff]  }
   0xf   :  { %588 = vmatpush3.bf16.msra.mxu0 %v669_v13  ;;  %450 = vmatprep.mubr.bf16.mxu1 %v693_v36  ;;  %v696_v39 = vld [vmem:[%s874_s1 + $0x128] sm:$0xff]   ;;  %v697_v40 = vld [vmem:[%s874_s1 + $0x120] sm:$0xff]  }
  0x10   :  { %589 = vmatprep.subr.bf16.mxu0 %v672_v16  ;;  %v700_v43 = vld [vmem:[%s874_s1 + $0x108] sm:$0xff]   ;;  %v701_v44 = vld [vmem:[%s874_s1 + $0x100] sm:$0xff]  }
  0x11   :  { %610 = vmatpush3.bf16.msra.mxu1 %v671_v15  ;;  %v522_v52 = vld [vmem:[%s876_s2] ss:$0 sm:$0xff] }
  0x12   :  { %611 = vmatprep.subr.bf16.mxu1 %v674_v18  ;;  %v573_v59 = vld [vmem:[%s877_s3] sm:$0xff]  }
  0x13   :  { %590 = vmatpush3.bf16.msra.mxu0 %v673_v17  ;;  %v574_v1 = vunpack.c.l.bf16 %v573_v59  ;;  %v575_v4 = vunpack.c.h.bf16 %v573_v59 }
  0x14   :  { %591 = vmatprep.subr.bf16.mxu0 %v676_v20 }
  0x15   :  { %612 = vmatpush3.bf16.msra.mxu1 %v675_v19 }
  0x16   :  { %613 = vmatprep.subr.bf16.mxu1 %v678_v22 }
  0x17   :  { %592 = vmatpush3.bf16.msra.mxu0 %v677_v21 }
  0x18   :  { %593 = vmatprep.subr.bf16.mxu0 %v680_v24 }
  0x19   :  { %614 = vmatpush3.bf16.msra.mxu1 %v679_v23 }
  0x1a   :  { %615 = vmatprep.subr.bf16.mxu1 %v682_v26 }
  0x1b   :  { %594 = vmatpush3.bf16.msra.mxu0 %v681_v25 }
  0x1c   :  { %595 = vmatprep.subr.bf16.mxu0 %v684_v28 }
  0x1d   :  { %616 = vmatpush3.bf16.msra.mxu1 %v683_v27 }
  0x1e   :  { %617 = vmatprep.subr.bf16.mxu1 %v686_v30 }
  0x1f   :  { %596 = vmatpush3.bf16.msra.mxu0 %v685_v29 }
  0x20   :  { %634 = vmatprep.subr.bf16.mxu0 %v703_v33 }
  0x21   :  { %618 = vmatpush3.bf16.msra.mxu1 %v690_v34 }
  0x22   :  { %410 = vmatmul.mubr.bf16.vlgmr.msra.gmra.mxu0 %v687_v31 }
  0x23   :  { %650 = vmatprep.mubr.msk.bf16.mxu0 %vm704_vm0, %v703_v33  ;;  %635 = vmatpush3.bf16.msra.mxu0 %v694_v37 }
  0x24   :  { %451 = vmatmul.mubr.bf16.vlgmr.msra.gmra.mxu1 %v691_v35  ;;  %636 = vmatprep.subr.bf16.mxu0 %v703_v33 }
  0x27   :  { %637 = vmatpush3.bf16.msra.mxu0 %v695_v38 }
  0x28   :  { %638 = vmatprep.subr.bf16.mxu0 %v703_v33 }
  0x2b   :  { %639 = vmatpush3.bf16.msra.mxu0 %v696_v39 }
  0x2c   :  { %640 = vmatprep.subr.bf16.mxu0 %v703_v33 }
  0x2f   :  { %641 = vmatpush3.bf16.msra.mxu0 %v697_v40 }
  0x30   :  { %642 = vmatprep.subr.bf16.mxu0 %v703_v33 }
  0x33   :  { %643 = vmatpush3.bf16.msra.mxu0 %v698_v41 }
  0x34   :  { %644 = vmatprep.subr.bf16.mxu0 %v703_v33 }
  0x37   :  { %645 = vmatpush3.bf16.msra.mxu0 %v699_v42 }
  0x38   :  { %646 = vmatprep.subr.bf16.mxu0 %v703_v33 }
  0x3b   :  { %647 = vmatpush3.bf16.msra.mxu0 %v700_v43 }
  0x3c   :  { %648 = vmatprep.subr.bf16.mxu0 %v703_v33 }
  0x3f   :  { %649 = vmatpush3.bf16.msra.mxu0 %v701_v44 }
  0x42   :  { %651 = vmatmul.mubr.bf16.vlgmr.msra.gmra.mxu0 %v702_v45 }
  0xe2   :  { %v597_v46 = vpop.f32.mrf.mxu0 }
  0xe4   :  { %v598_v47 = vpop.f32.mrf.mxu0  ;;  %v619_v48 = vpop.f32.mrf.mxu1 }
  0xe5   :  { %v599_v51 = vadd.f32 %v598_v47, %v597_v46 }
  0xe6   :  { %v600_v49 = vpop.f32.mrf.mxu0  ;;  %v620_v50 = vpop.f32.mrf.mxu1 }
  0xe7   :  { %v412_v55 = vadd.f32 %v599_v51, %v522_v52  ;;  %v621_v56 = vadd.f32 %v620_v50, %v619_v48 }
  0xe8   :  { %v601_v53 = vpop.f32.mrf.mxu0  ;;  %v622_v54 = vpop.f32.mrf.mxu1 }
  0xe9   :  { %v602_v57 = vadd.f32 %v601_v53, %v600_v49  ;;  %v453_v62 = vadd.f32 %v621_v56, %v412_v55 }
  0xea   :  { %v623_v58 = vpop.f32.mrf.mxu1 }
  0xeb   :  { %v415_v60 = vadd.f32 %v602_v57, %v522_v52  ;;  %v624_v61 = vadd.f32 %v623_v58, %v622_v54 }
  0xed   :  { %v456_v3 = vadd.f32 %v624_v61, %v415_v60 }
 0x102   :  { %v493_v63 = vpop.f32.mrf.mxu0 }
 0x103   :  { %v494_v0 = vadd.f32 %v493_v63, %v453_v62 }
 0x104   :  { %v652_v2 = vpop.f32.mrf.mxu0 }
 0x105   :  { %v504_v6 = vadd.f32 %v574_v1, %v494_v0 }
 0x106   :  { %v496_v5 = vpop.f32.mrf.mxu0 }
 0x107   :  { %v497_v7 = vadd.f32 %v496_v5, %v456_v3  ;;  %v506_v10 = vmax.f32 %v504_v6, 0.0 }
 0x108   :  { %v653_v8 = vpop.f32.mrf.mxu0 }
 0x109   :  { %v505_v9 = vadd.f32 %v575_v4, %v497_v7 }
 0x10b   :  { %v507_v11 = vmax.f32 %v505_v9, 0.0 }
 0x10d   :  { %v579_v12 = vpack.c.bf16 %v507_v11, %v506_v10 }
 0x10f   :  { %580 = vst [vmem:[%s878_s4] sm:$0xff] %v579_v12  }

// kernel: _lambda_.32
= control target key start
LH: loop header
LB: loop body
LE: loop exit
PB: predicated region body
PF: predicated region fallthrough
CT: control target
= control target key end

     0   :  { %vm1184_vm0 = vmmov 0   ;;  %s1462_s1 = inlined_call_operand.vmem [shape: bf16[1152,128], index: 1, kind: input, shape index: {}]   ;;  %s1463_s0 = inlined_call_operand.vmem [shape: bf16[16,1152], index: 0, kind: input, shape index: {}]   ;;  %s1464_s2 = inlined_call_operand.vmem [shape: f32[1,128], index: 2, kind: input, shape index: {}]   ;;  %s1465_s3 = inlined_call_operand.vmem [shape: bf16[16,128], index: 3, kind: input, shape index: {}]   ;;  %s1466_s4 = inlined_call_operand.vmem [shape: bf16[16,128], index: 4, kind: output, shape index: {}]  }
   0x1   :  { %v1098_v0 = vld [vmem:[%s1462_s1 + $0x78] sm:$0xff]   ;;  %v1102_v4 = vld [vmem:[%s1462_s1 + $0x70] sm:$0xff]   ;;  %v1106_v8 = vld [vmem:[%s1462_s1 + $0x68] sm:$0xff]  }
   0x2   :  { %v1099_v1 = vld [vmem:[%s1462_s1 + $0x38] sm:$0xff]   ;;  %979 = vmatprep.subr.bf16.mxu0 %v1098_v0  ;;  %v1103_v5 = vld [vmem:[%s1462_s1 + $0x30] sm:$0xff]   ;;  %v1107_v9 = vld [vmem:[%s1462_s1 + $0x28] sm:$0xff]  }
   0x3   :  { %v1100_v2 = vld [vmem:[%s1462_s1 + $0xf8] sm:$0xff]   ;;  %980 = vmatpush3.bf16.msra.mxu0 %v1099_v1  ;;  %v1104_v6 = vld [vmem:[%s1462_s1 + $0xf0] sm:$0xff]   ;;  %v1108_v10 = vld [vmem:[%s1462_s1 + $0xe8] sm:$0xff]  }
   0x4   :  { %v1101_v3 = vld [vmem:[%s1462_s1 + $0xb8] sm:$0xff]   ;;  %1001 = vmatprep.subr.bf16.mxu1 %v1100_v2  ;;  %981 = vmatprep.subr.bf16.mxu0 %v1102_v4  ;;  %v1105_v7 = vld [vmem:[%s1462_s1 + $0xb0] sm:$0xff]   ;;  %v1109_v11 = vld [vmem:[%s1462_s1 + $0xa8] sm:$0xff]  }
   0x5   :  { %1002 = vmatpush3.bf16.msra.mxu1 %v1101_v3  ;;  %v1110_v12 = vld [vmem:[%s1462_s1 + $0x60] sm:$0xff]   ;;  %v1114_v16 = vld [vmem:[%s1462_s1 + $0x58] sm:$0xff]   ;;  %v1118_v20 = vld [vmem:[%s1462_s1 + $0x50] sm:$0xff]  }
   0x6   :  { %1003 = vmatprep.subr.bf16.mxu1 %v1104_v6  ;;  %v1111_v13 = vld [vmem:[%s1462_s1 + $0x20] sm:$0xff]   ;;  %v1115_v17 = vld [vmem:[%s1462_s1 + $0x18] sm:$0xff]   ;;  %v1119_v21 = vld [vmem:[%s1462_s1 + $0x10] sm:$0xff]   ;;  %v1183_v6 = vmov 0.0  }
   0x7   :  { %982 = vmatpush3.bf16.msra.mxu0 %v1103_v5  ;;  %v1112_v14 = vld [vmem:[%s1462_s1 + $0xe0] sm:$0xff]   ;;  %v1116_v18 = vld [vmem:[%s1462_s1 + $0xd8] sm:$0xff]   ;;  %v1120_v22 = vld [vmem:[%s1462_s1 + $0xd0] sm:$0xff]  }
   0x8   :  { %983 = vmatprep.subr.bf16.mxu0 %v1106_v8  ;;  %v1113_v15 = vld [vmem:[%s1462_s1 + $0xa0] sm:$0xff]   ;;  %v1117_v19 = vld [vmem:[%s1462_s1 + $0x98] sm:$0xff]   ;;  %v1121_v23 = vld [vmem:[%s1462_s1 + $0x90] sm:$0xff]  }
   0x9   :  { %1004 = vmatpush3.bf16.msra.mxu1 %v1105_v7  ;;  %v1122_v24 = vld [vmem:[%s1462_s1 + $0x48] sm:$0xff]   ;;  %v1126_v28 = vld [vmem:[%s1462_s1 + $0x40] sm:$0xff]   ;;  %v1133_v34 = vld [vmem:[%s1462_s1 + $0x178] sm:$0xff]  }
   0xa   :  { %1005 = vmatprep.subr.bf16.mxu1 %v1108_v10  ;;  %v1123_v25 = vld [vmem:[%s1462_s1 + $0x8] sm:$0xff]   ;;  %v1127_v29 = vld [vmem:[%s1462_s1] sm:$0xff]   ;;  %v1137_v37 = vld [vmem:[%s1462_s1 + $0x138] sm:$0xff]  }
   0xb   :  { %984 = vmatpush3.bf16.msra.mxu0 %v1107_v9  ;;  %v1124_v26 = vld [vmem:[%s1462_s1 + $0xc8] sm:$0xff]   ;;  %v1128_v30 = vld [vmem:[%s1462_s1 + $0xc0] sm:$0xff]   ;;  %v1138_v38 = vld [vmem:[%s1462_s1 + $0x1f8] sm:$0xff]  }
   0xc   :  { %985 = vmatprep.subr.bf16.mxu0 %v1110_v12  ;;  %v1125_v27 = vld [vmem:[%s1462_s1 + $0x88] sm:$0xff]   ;;  %v1129_v31 = vld [vmem:[%s1463_s0] ss:$36 sps:$4 sm:$0xff]   ;;  %v1139_v39 = vld [vmem:[%s1462_s1 + $0x1b8] sm:$0xff]  }
   0xd   :  { %1006 = vmatpush3.bf16.msra.mxu1 %v1109_v11  ;;  %v1131_v32 = vld [vmem:[%s1463_s0 + $0x4] ss:$36 sps:$4 sm:$0xff]   ;;  %v1136_v36 = vld [vmem:[%s1463_s0 + $0xc] ss:$36 sps:$4 sm:$0xff]   ;;  %v1152_v52 = vld [vmem:[%s1462_s1 + $0x158] sm:$0xff]  }
   0xe   :  { %1007 = vmatprep.subr.bf16.mxu1 %v1112_v14  ;;  %v1132_v33 = vld [vmem:[%s1462_s1 + $0x80] sm:$0xff]   ;;  %689 = vmatprep.mubr.bf16.mxu0 %v1131_v32  ;;  %v1134_v35 = vld [vmem:[%s1463_s0 + $0x8] ss:$36 sps:$4 sm:$0xff]   ;;  %v1140_v40 = vld [vmem:[%s1462_s1 + $0x170] sm:$0xff]  }
   0xf   :  { %986 = vmatpush3.bf16.msra.mxu0 %v1111_v13  ;;  %730 = vmatprep.mubr.bf16.mxu1 %v1136_v36  ;;  %v1141_v41 = vld [vmem:[%s1462_s1 + $0x130] sm:$0xff]   ;;  %v1144_v44 = vld [vmem:[%s1462_s1 + $0x168] sm:$0xff]   ;;  %v1148_v48 = vld [vmem:[%s1462_s1 + $0x160] sm:$0xff]  }
  0x10   :  { %987 = vmatprep.subr.bf16.mxu0 %v1114_v16  ;;  %v1142_v42 = vld [vmem:[%s1462_s1 + $0x1f0] sm:$0xff]   ;;  %v1145_v45 = vld [vmem:[%s1462_s1 + $0x128] sm:$0xff]   ;;  %v1149_v49 = vld [vmem:[%s1462_s1 + $0x120] sm:$0xff]  }
  0x11   :  { %1008 = vmatpush3.bf16.msra.mxu1 %v1113_v15  ;;  %v1143_v43 = vld [vmem:[%s1462_s1 + $0x1b0] sm:$0xff]   ;;  %v1146_v46 = vld [vmem:[%s1462_s1 + $0x1e8] sm:$0xff]   ;;  %v1150_v50 = vld [vmem:[%s1462_s1 + $0x1e0] sm:$0xff]  }
  0x12   :  { %1009 = vmatprep.subr.bf16.mxu1 %v1116_v18  ;;  %v1147_v47 = vld [vmem:[%s1462_s1 + $0x1a8] sm:$0xff]   ;;  %v1151_v51 = vld [vmem:[%s1462_s1 + $0x1a0] sm:$0xff]   ;;  %v1153_v53 = vld [vmem:[%s1462_s1 + $0x118] sm:$0xff]  }
  0x13   :  { %988 = vmatpush3.bf16.msra.mxu0 %v1115_v17  ;;  %v1154_v54 = vld [vmem:[%s1462_s1 + $0x1d8] sm:$0xff]   ;;  %v1156_v56 = vld [vmem:[%s1462_s1 + $0x150] sm:$0xff]   ;;  %v1160_v60 = vld [vmem:[%s1462_s1 + $0x148] sm:$0xff]  }
  0x14   :  { %989 = vmatprep.subr.bf16.mxu0 %v1118_v20  ;;  %v1155_v55 = vld [vmem:[%s1462_s1 + $0x198] sm:$0xff]   ;;  %v1157_v57 = vld [vmem:[%s1462_s1 + $0x110] sm:$0xff]   ;;  %v1161_v61 = vld [vmem:[%s1462_s1 + $0x108] sm:$0xff]  }
  0x15   :  { %1010 = vmatpush3.bf16.msra.mxu1 %v1117_v19  ;;  %v1158_v58 = vld [vmem:[%s1462_s1 + $0x1d0] sm:$0xff]   ;;  %v1162_v62 = vld [vmem:[%s1462_s1 + $0x1c8] sm:$0xff]   ;;  %v1164_v0 = vld [vmem:[%s1462_s1 + $0x140] sm:$0xff]  }
  0x16   :  { %1011 = vmatprep.subr.bf16.mxu1 %v1120_v22  ;;  %v1159_v59 = vld [vmem:[%s1462_s1 + $0x190] sm:$0xff]   ;;  %v1163_v63 = vld [vmem:[%s1462_s1 + $0x188] sm:$0xff]   ;;  %v1165_v1 = vld [vmem:[%s1462_s1 + $0x100] sm:$0xff]  }
  0x17   :  { %990 = vmatpush3.bf16.msra.mxu0 %v1119_v21  ;;  %v1166_v2 = vld [vmem:[%s1462_s1 + $0x1c0] sm:$0xff]   ;;  %v1167_v3 = vld [vmem:[%s1463_s0 + $0x10] ss:$36 sps:$4 sm:$0xff]   ;;  %v1171_v7 = vld [vmem:[%s1463_s0 + $0x18] ss:$36 sps:$4 sm:$0xff]  }
  0x18   :  { %991 = vmatprep.subr.bf16.mxu0 %v1122_v24  ;;  %v1169_v4 = vld [vmem:[%s1463_s0 + $0x14] ss:$36 sps:$4 sm:$0xff]   ;;  %v1170_v5 = vld [vmem:[%s1462_s1 + $0x180] sm:$0xff]   ;;  %v1176_v11 = vld [vmem:[%s1462_s1 + $0x228] sm:$0xff]  }
  0x19   :  { %1012 = vmatpush3.bf16.msra.mxu1 %v1121_v23  ;;  %v1173_v8 = vld [vmem:[%s1463_s0 + $0x1c] ss:$36 sps:$4 sm:$0xff]   ;;  %v1175_v10 = vld [vmem:[%s1462_s1 + $0x230] sm:$0xff]   ;;  %v1180_v15 = vld [vmem:[%s1462_s1 + $0x208] sm:$0xff]  }
  0x1a   :  { %1013 = vmatprep.subr.bf16.mxu1 %v1124_v26  ;;  %v1174_v9 = vld [vmem:[%s1462_s1 + $0x238] sm:$0xff]   ;;  %v1177_v12 = vld [vmem:[%s1462_s1 + $0x220] sm:$0xff]   ;;  %v1179_v14 = vld [vmem:[%s1462_s1 + $0x210] sm:$0xff]  }
  0x1b   :  { %992 = vmatpush3.bf16.msra.mxu0 %v1123_v25  ;;  %v1178_v13 = vld [vmem:[%s1462_s1 + $0x218] sm:$0xff]   ;;  %v1181_v16 = vld [vmem:[%s1462_s1 + $0x200] sm:$0xff]  }
  0x1c   :  { %993 = vmatprep.subr.bf16.mxu0 %v1126_v28  ;;  %v1182_v17 = vld [vmem:[%s1463_s0 + $0x20] ss:$36 sps:$4 sm:$0xff]  }
  0x1d   :  { %1014 = vmatpush3.bf16.msra.mxu1 %v1125_v27 }
  0x1e   :  { %1015 = vmatprep.subr.bf16.mxu1 %v1128_v30  ;;  %v884_v30 = vld [vmem:[%s1464_s2] ss:$0 sm:$0xff] }
  0x1f   :  { %994 = vmatpush3.bf16.msra.mxu0 %v1127_v29 }
  0x20   :  { %1023 = vmatprep.subr.bf16.mxu0 %v1133_v34 }
  0x21   :  { %1016 = vmatpush3.bf16.msra.mxu1 %v1132_v33 }
  0x22   :  { %690 = vmatmul.mubr.bf16.vlgmr.msra.gmra.mxu0 %v1129_v31  ;;  %1045 = vmatprep.subr.bf16.mxu1 %v1138_v38 }
  0x23   :  { %1024 = vmatpush3.bf16.msra.mxu0 %v1137_v37  ;;  %771 = vmatprep.mubr.bf16.mxu0 %v1169_v4 }
  0x24   :  { %731 = vmatmul.mubr.bf16.vlgmr.msra.gmra.mxu1 %v1134_v35  ;;  %1025 = vmatprep.subr.bf16.mxu0 %v1140_v40 }
  0x25   :  { %1046 = vmatpush3.bf16.msra.mxu1 %v1139_v39  ;;  %812 = vmatprep.mubr.bf16.mxu1 %v1173_v8 }
  0x26   :  { %1047 = vmatprep.subr.bf16.mxu1 %v1142_v42 }
  0x27   :  { %1026 = vmatpush3.bf16.msra.mxu0 %v1141_v41 }
  0x28   :  { %1027 = vmatprep.subr.bf16.mxu0 %v1144_v44 }
  0x29   :  { %1048 = vmatpush3.bf16.msra.mxu1 %v1143_v43 }
  0x2a   :  { %1049 = vmatprep.subr.bf16.mxu1 %v1146_v46 }
  0x2b   :  { %1028 = vmatpush3.bf16.msra.mxu0 %v1145_v45 }
  0x2c   :  { %1029 = vmatprep.subr.bf16.mxu0 %v1148_v48 }
  0x2d   :  { %1050 = vmatpush3.bf16.msra.mxu1 %v1147_v47  ;;  %v971_v47 = vld [vmem:[%s1465_s3] sm:$0xff]  }
  0x2e   :  { %1051 = vmatprep.subr.bf16.mxu1 %v1150_v50 }
  0x2f   :  { %1030 = vmatpush3.bf16.msra.mxu0 %v1149_v49 }
  0x30   :  { %1031 = vmatprep.subr.bf16.mxu0 %v1152_v52 }
  0x31   :  { %1052 = vmatpush3.bf16.msra.mxu1 %v1151_v51 }
  0x32   :  { %1053 = vmatprep.subr.bf16.mxu1 %v1154_v54 }
  0x33   :  { %1032 = vmatpush3.bf16.msra.mxu0 %v1153_v53  ;;  %v972_v53 = vunpack.c.l.bf16 %v971_v47 }
  0x34   :  { %1033 = vmatprep.subr.bf16.mxu0 %v1156_v56  ;;  %v973_v56 = vunpack.c.h.bf16 %v971_v47 }
  0x35   :  { %1054 = vmatpush3.bf16.msra.mxu1 %v1155_v55 }
  0x36   :  { %1055 = vmatprep.subr.bf16.mxu1 %v1158_v58 }
  0x37   :  { %1034 = vmatpush3.bf16.msra.mxu0 %v1157_v57 }
  0x38   :  { %1035 = vmatprep.subr.bf16.mxu0 %v1160_v60 }
  0x39   :  { %1056 = vmatpush3.bf16.msra.mxu1 %v1159_v59 }
  0x3a   :  { %1057 = vmatprep.subr.bf16.mxu1 %v1162_v62 }
  0x3b   :  { %1036 = vmatpush3.bf16.msra.mxu0 %v1161_v61 }
  0x3c   :  { %1037 = vmatprep.subr.bf16.mxu0 %v1164_v0 }
  0x3d   :  { %1058 = vmatpush3.bf16.msra.mxu1 %v1163_v63 }
  0x3e   :  { %1059 = vmatprep.subr.bf16.mxu1 %v1166_v2 }
  0x3f   :  { %1038 = vmatpush3.bf16.msra.mxu0 %v1165_v1 }
  0x40   :  { %1076 = vmatprep.subr.bf16.mxu0 %v1183_v6 }
  0x41   :  { %1060 = vmatpush3.bf16.msra.mxu1 %v1170_v5 }
  0x42   :  { %772 = vmatmul.mubr.bf16.vlgmr.msra.gmra.mxu0 %v1167_v3 }
  0x43   :  { %1092 = vmatprep.mubr.msk.bf16.mxu0 %vm1184_vm0, %v1183_v6  ;;  %1077 = vmatpush3.bf16.msra.mxu0 %v1174_v9 }
  0x44   :  { %813 = vmatmul.mubr.bf16.vlgmr.msra.gmra.mxu1 %v1171_v7  ;;  %1078 = vmatprep.subr.bf16.mxu0 %v1183_v6 }
  0x47   :  { %1079 = vmatpush3.bf16.msra.mxu0 %v1175_v10 }
  0x48   :  { %1080 = vmatprep.subr.bf16.mxu0 %v1183_v6 }
  0x4b   :  { %1081 = vmatpush3.bf16.msra.mxu0 %v1176_v11 }
  0x4c   :  { %1082 = vmatprep.subr.bf16.mxu0 %v1183_v6 }
  0x4f   :  { %1083 = vmatpush3.bf16.msra.mxu0 %v1177_v12 }
  0x50   :  { %1084 = vmatprep.subr.bf16.mxu0 %v1183_v6 }
  0x53   :  { %1085 = vmatpush3.bf16.msra.mxu0 %v1178_v13 }
  0x54   :  { %1086 = vmatprep.subr.bf16.mxu0 %v1183_v6 }
  0x57   :  { %1087 = vmatpush3.bf16.msra.mxu0 %v1179_v14 }
  0x58   :  { %1088 = vmatprep.subr.bf16.mxu0 %v1183_v6 }
  0x5b   :  { %1089 = vmatpush3.bf16.msra.mxu0 %v1180_v15 }
  0x5c   :  { %1090 = vmatprep.subr.bf16.mxu0 %v1183_v6 }
  0x5f   :  { %1091 = vmatpush3.bf16.msra.mxu0 %v1181_v16 }
  0x62   :  { %1093 = vmatmul.mubr.bf16.vlgmr.msra.gmra.mxu0 %v1182_v17 }
  0xe2   :  { %v995_v18 = vpop.f32.mrf.mxu0 }
  0xe4   :  { %v996_v19 = vpop.f32.mrf.mxu0  ;;  %v1017_v20 = vpop.f32.mrf.mxu1 }
  0xe5   :  { %v997_v29 = vadd.f32 %v996_v19, %v995_v18 }
  0xe6   :  { %v998_v21 = vpop.f32.mrf.mxu0  ;;  %v1018_v22 = vpop.f32.mrf.mxu1 }
  0xe7   :  { %v692_v33 = vadd.f32 %v997_v29, %v884_v30  ;;  %v1019_v34 = vadd.f32 %v1018_v22, %v1017_v20 }
  0xe8   :  { %v999_v23 = vpop.f32.mrf.mxu0  ;;  %v1020_v24 = vpop.f32.mrf.mxu1 }
  0xe9   :  { %v1000_v35 = vadd.f32 %v999_v23, %v998_v21  ;;  %v733_v39 = vadd.f32 %v1019_v34, %v692_v33 }
  0xea   :  { %v1021_v26 = vpop.f32.mrf.mxu1 }
  0xeb   :  { %v695_v40 = vadd.f32 %v1000_v35, %v884_v30  ;;  %v1022_v41 = vadd.f32 %v1021_v26, %v1020_v24 }
  0xed   :  { %v736_v46 = vadd.f32 %v1022_v41, %v695_v40 }
 0x102   :  { %v1039_v25 = vpop.f32.mrf.mxu0 }
 0x104   :  { %v1040_v27 = vpop.f32.mrf.mxu0  ;;  %v1061_v28 = vpop.f32.mrf.mxu1 }
 0x105   :  { %v1041_v36 = vadd.f32 %v1040_v27, %v1039_v25 }
 0x106   :  { %v1042_v31 = vpop.f32.mrf.mxu0  ;;  %v1062_v32 = vpop.f32.mrf.mxu1 }
 0x107   :  { %v774_v42 = vadd.f32 %v1041_v36, %v733_v39  ;;  %v1063_v43 = vadd.f32 %v1062_v32, %v1061_v28 }
 0x108   :  { %v1043_v37 = vpop.f32.mrf.mxu0  ;;  %v1064_v38 = vpop.f32.mrf.mxu1 }
 0x109   :  { %v1044_v44 = vadd.f32 %v1043_v37, %v1042_v31  ;;  %v815_v50 = vadd.f32 %v1063_v43, %v774_v42 }
 0x10a   :  { %v1065_v45 = vpop.f32.mrf.mxu1 }
 0x10b   :  { %v777_v48 = vadd.f32 %v1044_v44, %v736_v46  ;;  %v1066_v49 = vadd.f32 %v1065_v45, %v1064_v38 }
 0x10d   :  { %v818_v55 = vadd.f32 %v1066_v49, %v777_v48 }
 0x122   :  { %v855_v51 = vpop.f32.mrf.mxu0 }
 0x123   :  { %v856_v52 = vadd.f32 %v855_v51, %v815_v50 }
 0x124   :  { %v1094_v54 = vpop.f32.mrf.mxu0 }
 0x125   :  { %v866_v58 = vadd.f32 %v972_v53, %v856_v52 }
 0x126   :  { %v858_v57 = vpop.f32.mrf.mxu0 }
 0x127   :  { %v859_v59 = vadd.f32 %v858_v57, %v818_v55  ;;  %v868_v62 = vmax.f32 %v866_v58, 0.0 }
 0x128   :  { %v1095_v60 = vpop.f32.mrf.mxu0 }
 0x129   :  { %v867_v61 = vadd.f32 %v973_v56, %v859_v59 }
 0x12b   :  { %v869_v63 = vmax.f32 %v867_v61, 0.0 }
 0x12d   :  { %v977_v0 = vpack.c.bf16 %v869_v63, %v868_v62 }
 0x12f   :  { %978 = vst [vmem:[%s1466_s4] sm:$0xff] %v977_v0  }

// kernel: _lambda_.31
= control target key start
LH: loop header
LB: loop body
LE: loop exit
PB: predicated region body
PF: predicated region fallthrough
CT: control target
= control target key end

     0   :  { %vm1171_vm0 = vmmov 0   ;;  %s1441_s1 = inlined_call_operand.vmem [shape: bf16[1152,128], index: 1, kind: input, shape index: {}]   ;;  %s1442_s0 = inlined_call_operand.vmem [shape: bf16[16,1152], index: 0, kind: input, shape index: {}]   ;;  %s1443_s2 = inlined_call_operand.vmem [shape: f32[1,128], index: 2, kind: input, shape index: {}]   ;;  %s1444_s3 = inlined_call_operand.vmem [shape: bf16[16,128], index: 3, kind: output, shape index: {}]  }
   0x1   :  { %v1085_v0 = vld [vmem:[%s1441_s1 + $0x78] sm:$0xff]   ;;  %v1089_v4 = vld [vmem:[%s1441_s1 + $0x70] sm:$0xff]   ;;  %v1093_v8 = vld [vmem:[%s1441_s1 + $0x68] sm:$0xff]  }
   0x2   :  { %v1086_v1 = vld [vmem:[%s1441_s1 + $0x38] sm:$0xff]   ;;  %966 = vmatprep.subr.bf16.mxu0 %v1085_v0  ;;  %v1090_v5 = vld [vmem:[%s1441_s1 + $0x30] sm:$0xff]   ;;  %v1094_v9 = vld [vmem:[%s1441_s1 + $0x28] sm:$0xff]  }
   0x3   :  { %v1087_v2 = vld [vmem:[%s1441_s1 + $0xf8] sm:$0xff]   ;;  %967 = vmatpush3.bf16.msra.mxu0 %v1086_v1  ;;  %v1091_v6 = vld [vmem:[%s1441_s1 + $0xf0] sm:$0xff]   ;;  %v1095_v10 = vld [vmem:[%s1441_s1 + $0xe8] sm:$0xff]  }
   0x4   :  { %v1088_v3 = vld [vmem:[%s1441_s1 + $0xb8] sm:$0xff]   ;;  %988 = vmatprep.subr.bf16.mxu1 %v1087_v2  ;;  %968 = vmatprep.subr.bf16.mxu0 %v1089_v4  ;;  %v1092_v7 = vld [vmem:[%s1441_s1 + $0xb0] sm:$0xff]   ;;  %v1096_v11 = vld [vmem:[%s1441_s1 + $0xa8] sm:$0xff]  }
   0x5   :  { %989 = vmatpush3.bf16.msra.mxu1 %v1088_v3  ;;  %v1097_v12 = vld [vmem:[%s1441_s1 + $0x60] sm:$0xff]   ;;  %v1101_v16 = vld [vmem:[%s1441_s1 + $0x58] sm:$0xff]   ;;  %v1105_v20 = vld [vmem:[%s1441_s1 + $0x50] sm:$0xff]  }
   0x6   :  { %990 = vmatprep.subr.bf16.mxu1 %v1091_v6  ;;  %v1098_v13 = vld [vmem:[%s1441_s1 + $0x20] sm:$0xff]   ;;  %v1102_v17 = vld [vmem:[%s1441_s1 + $0x18] sm:$0xff]   ;;  %v1106_v21 = vld [vmem:[%s1441_s1 + $0x10] sm:$0xff]   ;;  %v1170_v6 = vmov 0.0  }
   0x7   :  { %969 = vmatpush3.bf16.msra.mxu0 %v1090_v5  ;;  %v1099_v14 = vld [vmem:[%s1441_s1 + $0xe0] sm:$0xff]   ;;  %v1103_v18 = vld [vmem:[%s1441_s1 + $0xd8] sm:$0xff]   ;;  %v1107_v22 = vld [vmem:[%s1441_s1 + $0xd0] sm:$0xff]  }
   0x8   :  { %970 = vmatprep.subr.bf16.mxu0 %v1093_v8  ;;  %v1100_v15 = vld [vmem:[%s1441_s1 + $0xa0] sm:$0xff]   ;;  %v1104_v19 = vld [vmem:[%s1441_s1 + $0x98] sm:$0xff]   ;;  %v1108_v23 = vld [vmem:[%s1441_s1 + $0x90] sm:$0xff]  }
   0x9   :  { %991 = vmatpush3.bf16.msra.mxu1 %v1092_v7  ;;  %v1109_v24 = vld [vmem:[%s1441_s1 + $0x48] sm:$0xff]   ;;  %v1113_v28 = vld [vmem:[%s1441_s1 + $0x40] sm:$0xff]   ;;  %v1120_v34 = vld [vmem:[%s1441_s1 + $0x178] sm:$0xff]  }
   0xa   :  { %992 = vmatprep.subr.bf16.mxu1 %v1095_v10  ;;  %v1110_v25 = vld [vmem:[%s1441_s1 + $0x8] sm:$0xff]   ;;  %v1114_v29 = vld [vmem:[%s1441_s1] sm:$0xff]   ;;  %v1124_v37 = vld [vmem:[%s1441_s1 + $0x138] sm:$0xff]  }
   0xb   :  { %971 = vmatpush3.bf16.msra.mxu0 %v1094_v9  ;;  %v1111_v26 = vld [vmem:[%s1441_s1 + $0xc8] sm:$0xff]   ;;  %v1115_v30 = vld [vmem:[%s1441_s1 + $0xc0] sm:$0xff]   ;;  %v1125_v38 = vld [vmem:[%s1441_s1 + $0x1f8] sm:$0xff]  }
   0xc   :  { %972 = vmatprep.subr.bf16.mxu0 %v1097_v12  ;;  %v1112_v27 = vld [vmem:[%s1441_s1 + $0x88] sm:$0xff]   ;;  %v1116_v31 = vld [vmem:[%s1442_s0] ss:$36 sps:$4 sm:$0xff]   ;;  %v1126_v39 = vld [vmem:[%s1441_s1 + $0x1b8] sm:$0xff]  }
   0xd   :  { %993 = vmatpush3.bf16.msra.mxu1 %v1096_v11  ;;  %v1118_v32 = vld [vmem:[%s1442_s0 + $0x4] ss:$36 sps:$4 sm:$0xff]   ;;  %v1123_v36 = vld [vmem:[%s1442_s0 + $0xc] ss:$36 sps:$4 sm:$0xff]   ;;  %v1139_v52 = vld [vmem:[%s1441_s1 + $0x158] sm:$0xff]  }
   0xe   :  { %994 = vmatprep.subr.bf16.mxu1 %v1099_v14  ;;  %v1119_v33 = vld [vmem:[%s1441_s1 + $0x80] sm:$0xff]   ;;  %686 = vmatprep.mubr.bf16.mxu0 %v1118_v32  ;;  %v1121_v35 = vld [vmem:[%s1442_s0 + $0x8] ss:$36 sps:$4 sm:$0xff]   ;;  %v1127_v40 = vld [vmem:[%s1441_s1 + $0x170] sm:$0xff]  }
   0xf   :  { %973 = vmatpush3.bf16.msra.mxu0 %v1098_v13  ;;  %727 = vmatprep.mubr.bf16.mxu1 %v1123_v36  ;;  %v1128_v41 = vld [vmem:[%s1441_s1 + $0x130] sm:$0xff]   ;;  %v1131_v44 = vld [vmem:[%s1441_s1 + $0x168] sm:$0xff]   ;;  %v1135_v48 = vld [vmem:[%s1441_s1 + $0x160] sm:$0xff]  }
  0x10   :  { %974 = vmatprep.subr.bf16.mxu0 %v1101_v16  ;;  %v1129_v42 = vld [vmem:[%s1441_s1 + $0x1f0] sm:$0xff]   ;;  %v1132_v45 = vld [vmem:[%s1441_s1 + $0x128] sm:$0xff]   ;;  %v1136_v49 = vld [vmem:[%s1441_s1 + $0x120] sm:$0xff]  }
  0x11   :  { %995 = vmatpush3.bf16.msra.mxu1 %v1100_v15  ;;  %v1130_v43 = vld [vmem:[%s1441_s1 + $0x1b0] sm:$0xff]   ;;  %v1133_v46 = vld [vmem:[%s1441_s1 + $0x1e8] sm:$0xff]   ;;  %v1137_v50 = vld [vmem:[%s1441_s1 + $0x1e0] sm:$0xff]  }
  0x12   :  { %996 = vmatprep.subr.bf16.mxu1 %v1103_v18  ;;  %v1134_v47 = vld [vmem:[%s1441_s1 + $0x1a8] sm:$0xff]   ;;  %v1138_v51 = vld [vmem:[%s1441_s1 + $0x1a0] sm:$0xff]   ;;  %v1140_v53 = vld [vmem:[%s1441_s1 + $0x118] sm:$0xff]  }
  0x13   :  { %975 = vmatpush3.bf16.msra.mxu0 %v1102_v17  ;;  %v1141_v54 = vld [vmem:[%s1441_s1 + $0x1d8] sm:$0xff]   ;;  %v1143_v56 = vld [vmem:[%s1441_s1 + $0x150] sm:$0xff]   ;;  %v1147_v60 = vld [vmem:[%s1441_s1 + $0x148] sm:$0xff]  }
  0x14   :  { %976 = vmatprep.subr.bf16.mxu0 %v1105_v20  ;;  %v1142_v55 = vld [vmem:[%s1441_s1 + $0x198] sm:$0xff]   ;;  %v1144_v57 = vld [vmem:[%s1441_s1 + $0x110] sm:$0xff]   ;;  %v1148_v61 = vld [vmem:[%s1441_s1 + $0x108] sm:$0xff]  }
  0x15   :  { %997 = vmatpush3.bf16.msra.mxu1 %v1104_v19  ;;  %v1145_v58 = vld [vmem:[%s1441_s1 + $0x1d0] sm:$0xff]   ;;  %v1149_v62 = vld [vmem:[%s1441_s1 + $0x1c8] sm:$0xff]   ;;  %v1151_v0 = vld [vmem:[%s1441_s1 + $0x140] sm:$0xff]  }
  0x16   :  { %998 = vmatprep.subr.bf16.mxu1 %v1107_v22  ;;  %v1146_v59 = vld [vmem:[%s1441_s1 + $0x190] sm:$0xff]   ;;  %v1150_v63 = vld [vmem:[%s1441_s1 + $0x188] sm:$0xff]   ;;  %v1152_v1 = vld [vmem:[%s1441_s1 + $0x100] sm:$0xff]  }
  0x17   :  { %977 = vmatpush3.bf16.msra.mxu0 %v1106_v21  ;;  %v1153_v2 = vld [vmem:[%s1441_s1 + $0x1c0] sm:$0xff]   ;;  %v1154_v3 = vld [vmem:[%s1442_s0 + $0x10] ss:$36 sps:$4 sm:$0xff]   ;;  %v1158_v7 = vld [vmem:[%s1442_s0 + $0x18] ss:$36 sps:$4 sm:$0xff]  }
  0x18   :  { %978 = vmatprep.subr.bf16.mxu0 %v1109_v24  ;;  %v1156_v4 = vld [vmem:[%s1442_s0 + $0x14] ss:$36 sps:$4 sm:$0xff]   ;;  %v1157_v5 = vld [vmem:[%s1441_s1 + $0x180] sm:$0xff]   ;;  %v1163_v11 = vld [vmem:[%s1441_s1 + $0x228] sm:$0xff]  }
  0x19   :  { %999 = vmatpush3.bf16.msra.mxu1 %v1108_v23  ;;  %v1160_v8 = vld [vmem:[%s1442_s0 + $0x1c] ss:$36 sps:$4 sm:$0xff]   ;;  %v1162_v10 = vld [vmem:[%s1441_s1 + $0x230] sm:$0xff]   ;;  %v1167_v15 = vld [vmem:[%s1441_s1 + $0x208] sm:$0xff]  }
  0x1a   :  { %1000 = vmatprep.subr.bf16.mxu1 %v1111_v26  ;;  %v1161_v9 = vld [vmem:[%s1441_s1 + $0x238] sm:$0xff]   ;;  %v1164_v12 = vld [vmem:[%s1441_s1 + $0x220] sm:$0xff]   ;;  %v1166_v14 = vld [vmem:[%s1441_s1 + $0x210] sm:$0xff]  }
  0x1b   :  { %979 = vmatpush3.bf16.msra.mxu0 %v1110_v25  ;;  %v1165_v13 = vld [vmem:[%s1441_s1 + $0x218] sm:$0xff]   ;;  %v1168_v16 = vld [vmem:[%s1441_s1 + $0x200] sm:$0xff]  }
  0x1c   :  { %980 = vmatprep.subr.bf16.mxu0 %v1113_v28  ;;  %v1169_v17 = vld [vmem:[%s1442_s0 + $0x20] ss:$36 sps:$4 sm:$0xff]  }
  0x1d   :  { %1001 = vmatpush3.bf16.msra.mxu1 %v1112_v27 }
  0x1e   :  { %1002 = vmatprep.subr.bf16.mxu1 %v1115_v30  ;;  %v875_v30 = vld [vmem:[%s1443_s2] ss:$0 sm:$0xff] }
  0x1f   :  { %981 = vmatpush3.bf16.msra.mxu0 %v1114_v29 }
  0x20   :  { %1010 = vmatprep.subr.bf16.mxu0 %v1120_v34 }
  0x21   :  { %1003 = vmatpush3.bf16.msra.mxu1 %v1119_v33 }
  0x22   :  { %687 = vmatmul.mubr.bf16.vlgmr.msra.gmra.mxu0 %v1116_v31  ;;  %1032 = vmatprep.subr.bf16.mxu1 %v1125_v38 }
  0x23   :  { %1011 = vmatpush3.bf16.msra.mxu0 %v1124_v37  ;;  %768 = vmatprep.mubr.bf16.mxu0 %v1156_v4 }
  0x24   :  { %728 = vmatmul.mubr.bf16.vlgmr.msra.gmra.mxu1 %v1121_v35  ;;  %1012 = vmatprep.subr.bf16.mxu0 %v1127_v40 }
  0x25   :  { %1033 = vmatpush3.bf16.msra.mxu1 %v1126_v39  ;;  %809 = vmatprep.mubr.bf16.mxu1 %v1160_v8 }
  0x26   :  { %1034 = vmatprep.subr.bf16.mxu1 %v1129_v42 }
  0x27   :  { %1013 = vmatpush3.bf16.msra.mxu0 %v1128_v41 }
  0x28   :  { %1014 = vmatprep.subr.bf16.mxu0 %v1131_v44 }
  0x29   :  { %1035 = vmatpush3.bf16.msra.mxu1 %v1130_v43 }
  0x2a   :  { %1036 = vmatprep.subr.bf16.mxu1 %v1133_v46 }
  0x2b   :  { %1015 = vmatpush3.bf16.msra.mxu0 %v1132_v45 }
  0x2c   :  { %1016 = vmatprep.subr.bf16.mxu0 %v1135_v48 }
  0x2d   :  { %1037 = vmatpush3.bf16.msra.mxu1 %v1134_v47 }
  0x2e   :  { %1038 = vmatprep.subr.bf16.mxu1 %v1137_v50 }
  0x2f   :  { %1017 = vmatpush3.bf16.msra.mxu0 %v1136_v49 }
  0x30   :  { %1018 = vmatprep.subr.bf16.mxu0 %v1139_v52 }
  0x31   :  { %1039 = vmatpush3.bf16.msra.mxu1 %v1138_v51 }
  0x32   :  { %1040 = vmatprep.subr.bf16.mxu1 %v1141_v54 }
  0x33   :  { %1019 = vmatpush3.bf16.msra.mxu0 %v1140_v53 }
  0x34   :  { %1020 = vmatprep.subr.bf16.mxu0 %v1143_v56 }
  0x35   :  { %1041 = vmatpush3.bf16.msra.mxu1 %v1142_v55 }
  0x36   :  { %1042 = vmatprep.subr.bf16.mxu1 %v1145_v58 }
  0x37   :  { %1021 = vmatpush3.bf16.msra.mxu0 %v1144_v57 }
  0x38   :  { %1022 = vmatprep.subr.bf16.mxu0 %v1147_v60 }
  0x39   :  { %1043 = vmatpush3.bf16.msra.mxu1 %v1146_v59 }
  0x3a   :  { %1044 = vmatprep.subr.bf16.mxu1 %v1149_v62 }
  0x3b   :  { %1023 = vmatpush3.bf16.msra.mxu0 %v1148_v61 }
  0x3c   :  { %1024 = vmatprep.subr.bf16.mxu0 %v1151_v0 }
  0x3d   :  { %1045 = vmatpush3.bf16.msra.mxu1 %v1150_v63 }
  0x3e   :  { %1046 = vmatprep.subr.bf16.mxu1 %v1153_v2 }
  0x3f   :  { %1025 = vmatpush3.bf16.msra.mxu0 %v1152_v1 }
  0x40   :  { %1063 = vmatprep.subr.bf16.mxu0 %v1170_v6 }
  0x41   :  { %1047 = vmatpush3.bf16.msra.mxu1 %v1157_v5 }
  0x42   :  { %769 = vmatmul.mubr.bf16.vlgmr.msra.gmra.mxu0 %v1154_v3 }
  0x43   :  { %1079 = vmatprep.mubr.msk.bf16.mxu0 %vm1171_vm0, %v1170_v6  ;;  %1064 = vmatpush3.bf16.msra.mxu0 %v1161_v9 }
  0x44   :  { %810 = vmatmul.mubr.bf16.vlgmr.msra.gmra.mxu1 %v1158_v7  ;;  %1065 = vmatprep.subr.bf16.mxu0 %v1170_v6 }
  0x47   :  { %1066 = vmatpush3.bf16.msra.mxu0 %v1162_v10 }
  0x48   :  { %1067 = vmatprep.subr.bf16.mxu0 %v1170_v6 }
  0x4b   :  { %1068 = vmatpush3.bf16.msra.mxu0 %v1163_v11 }
  0x4c   :  { %1069 = vmatprep.subr.bf16.mxu0 %v1170_v6 }
  0x4f   :  { %1070 = vmatpush3.bf16.msra.mxu0 %v1164_v12 }
  0x50   :  { %1071 = vmatprep.subr.bf16.mxu0 %v1170_v6 }
  0x53   :  { %1072 = vmatpush3.bf16.msra.mxu0 %v1165_v13 }
  0x54   :  { %1073 = vmatprep.subr.bf16.mxu0 %v1170_v6 }
  0x57   :  { %1074 = vmatpush3.bf16.msra.mxu0 %v1166_v14 }
  0x58   :  { %1075 = vmatprep.subr.bf16.mxu0 %v1170_v6 }
  0x5b   :  { %1076 = vmatpush3.bf16.msra.mxu0 %v1167_v15 }
  0x5c   :  { %1077 = vmatprep.subr.bf16.mxu0 %v1170_v6 }
  0x5f   :  { %1078 = vmatpush3.bf16.msra.mxu0 %v1168_v16 }
  0x62   :  { %1080 = vmatmul.mubr.bf16.vlgmr.msra.gmra.mxu0 %v1169_v17 }
  0xe2   :  { %v982_v18 = vpop.f32.mrf.mxu0 }
  0xe4   :  { %v983_v19 = vpop.f32.mrf.mxu0  ;;  %v1004_v20 = vpop.f32.mrf.mxu1 }
  0xe5   :  { %v984_v29 = vadd.f32 %v983_v19, %v982_v18 }
  0xe6   :  { %v985_v21 = vpop.f32.mrf.mxu0  ;;  %v1005_v22 = vpop.f32.mrf.mxu1 }
  0xe7   :  { %v689_v34 = vadd.f32 %v984_v29, %v875_v30  ;;  %v1006_v35 = vadd.f32 %v1005_v22, %v1004_v20 }
  0xe8   :  { %v986_v23 = vpop.f32.mrf.mxu0  ;;  %v1007_v24 = vpop.f32.mrf.mxu1 }
  0xe9   :  { %v987_v33 = vadd.f32 %v986_v23, %v985_v21  ;;  %v730_v41 = vadd.f32 %v1006_v35, %v689_v34 }
  0xea   :  { %v1008_v26 = vpop.f32.mrf.mxu1 }
  0xeb   :  { %v692_v38 = vadd.f32 %v987_v33, %v875_v30  ;;  %v1009_v39 = vadd.f32 %v1008_v26, %v1007_v24 }
  0xed   :  { %v733_v44 = vadd.f32 %v1009_v39, %v692_v38 }
 0x102   :  { %v1026_v25 = vpop.f32.mrf.mxu0 }
 0x104   :  { %v1027_v27 = vpop.f32.mrf.mxu0  ;;  %v1048_v28 = vpop.f32.mrf.mxu1 }
 0x105   :  { %v1028_v40 = vadd.f32 %v1027_v27, %v1026_v25 }
 0x106   :  { %v1029_v31 = vpop.f32.mrf.mxu0  ;;  %v1049_v32 = vpop.f32.mrf.mxu1 }
 0x107   :  { %v771_v45 = vadd.f32 %v1028_v40, %v730_v41  ;;  %v1050_v46 = vadd.f32 %v1049_v32, %v1048_v28 }
 0x108   :  { %v1030_v36 = vpop.f32.mrf.mxu0  ;;  %v1051_v37 = vpop.f32.mrf.mxu1 }
 0x109   :  { %v1031_v42 = vadd.f32 %v1030_v36, %v1029_v31  ;;  %v812_v50 = vadd.f32 %v1050_v46, %v771_v45 }
 0x10a   :  { %v1052_v43 = vpop.f32.mrf.mxu1 }
 0x10b   :  { %v774_v47 = vadd.f32 %v1031_v42, %v733_v44  ;;  %v1053_v48 = vadd.f32 %v1052_v43, %v1051_v37 }
 0x10d   :  { %v815_v53 = vadd.f32 %v1053_v48, %v774_v47 }
 0x122   :  { %v852_v49 = vpop.f32.mrf.mxu0 }
 0x123   :  { %v853_v52 = vadd.f32 %v852_v49, %v812_v50 }
 0x124   :  { %v1081_v51 = vpop.f32.mrf.mxu0 }
 0x125   :  { %v859_v57 = vmax.f32 %v853_v52, 0.0 }
 0x126   :  { %v855_v54 = vpop.f32.mrf.mxu0 }
 0x127   :  { %v856_v55 = vadd.f32 %v855_v54, %v815_v53 }
 0x128   :  { %v1082_v56 = vpop.f32.mrf.mxu0 }
 0x129   :  { %v860_v58 = vmax.f32 %v856_v55, 0.0 }
 0x12b   :  { %v964_v59 = vpack.c.bf16 %v860_v58, %v859_v57 }
 0x12d   :  { %965 = vst [vmem:[%s1444_s3] sm:$0xff] %v964_v59  }

// kernel: _lambda_.41
= control target key start
LH: loop header
LB: loop body
LE: loop exit
PB: predicated region body
PF: predicated region fallthrough
CT: control target
= control target key end

     0   :  { %s2042_s12 = smov 0   ;;  %s2044_s13 = smov 0   ;;  %s2432_s0 = inlined_call_operand.vmem [shape: bf16[2048,128], index: 0, kind: input, shape index: {}]   ;;  %s2433_s1 = inlined_call_operand.vmem [shape: bf16[128,128], index: 1, kind: input, shape index: {}]   ;;  %s2434_s2 = inlined_call_operand.vmem [shape: f32[1,128], index: 2, kind: input, shape index: {}]   ;;  %s2435_s3 = inlined_call_operand.vmem [shape: f32[2048,128], index: 3, kind: output, shape index: {}]  }
   0x1   :  { %s2046_s14 = smov 0  }
   0x2 LB: > { %s22_s15 = sadd.s32 1, %s2016_s13  ;;  %p1590_p0 = scmp.ge.s32.totalorder %s2020_s14, 1  ;;  %s2020_s14 = sphi %s2046_s14, %s13_s14   ;;  %s2016_s13 = sphi %s2044_s13, %s2437_s13   ;;  %s2012_s12 = sphi %s2042_s12, %s2436_s12  }
   0x3   : > { %p23_p1 = scmp.ge.s32.totalorder %s22_s15, 2  ;;  %p169_p2 = scmp.lt.s32.totalorder %s2020_s14, 3 }
   0x5   : > { %s2439_s15 = smov (%p23_p1, %s22_s15), 0  ;;  %p170_p3 = pnand %p1590_p0, %p169_p2 }
   0x6   : > { %s1591_s18 = sshll.u32 (!%p170_p3), %s2012_s12, 7 }
   0x7   : > { %173 = sbr.rel (%p170_p3) target bundleno = 367 (0x16f), region = 32  ;;  %p204_p4 = scmp.lt.s32.totalorder (!%p170_p3), %s1591_s18, 255 }
   0xc   : > { %v1926_v0 = vld [vmem:[%s2433_s1 + $0x38] sm:$0xff]   ;;  %v1927_v1 = vld [vmem:[%s2433_s1 + $0x30] sm:$0xff]   ;;  %s2441_s18 = smov (!%p204_p4, %s1591_s18), 255  ;;  %v1928_v2 = vld [vmem:[%s2433_s1 + $0x28] sm:$0xff]  }
   0xd   : > { %1742 = vmatprep.subr.bf16.mxu0 %v1926_v0  ;;  %1886 = vmatprep.subr.bf16.mxu1 %v1926_v0  ;;  %s1592_s23 = sshll.u32 %s2441_s18, 2  ;;  %v1929_v3 = vld [vmem:[%s2433_s1 + $0x20] sm:$0xff]   ;;  %v1930_v6 = vld [vmem:[%s2433_s1 + $0x18] sm:$0xff]   ;;  %v1931_v7 = vld [vmem:[%s2433_s1 + $0x10] sm:$0xff]   ;;  %s1594_s10 = sshll.u32 %s2441_s18, 3 }
   0xe   : > { %1743 = vmatpush3.bf16.msra.mxu0 %v1926_v0  ;;  %1894 = vmatpush3.bf16.msra.mxu1 %v1926_v0  ;;  %s2075_s26 = scalar_lea.vmem %s2432_s0, %s1592_s23  ;;  %v1932_v8 = vld [vmem:[%s2433_s1 + $0x8] sm:$0xff]   ;;  %v1933_v9 = vld [vmem:[%s2433_s1] sm:$0xff]   ;;  %s2165_s19 = scalar_lea.vmem %s2435_s3, %s1594_s10 }
   0xf   : > { %1744 = vmatprep.subr.bf16.mxu0 %v1927_v1  ;;  %1887 = vmatprep.subr.bf16.mxu1 %v1927_v1  ;;  %v1934_v4 = vld [vmem:[%s2075_s26] sm:$0xff]   ;;  %v1936_v10 = vld [vmem:[%s2075_s26 + $0x8] sm:$0xff]   ;;  %v1938_v12 = vld [vmem:[%s2075_s26 + $0x10] sm:$0xff]  }
  0x10   : > { %v1935_v5 = vld [vmem:[%s2075_s26 + $0x100] sm:$0xff]   ;;  %1758 = vmatprep.mubr.bf16.mxu0 %v1934_v4  ;;  %v1937_v11 = vld [vmem:[%s2075_s26 + $0x108] sm:$0xff]   ;;  %v1939_v13 = vld [vmem:[%s2075_s26 + $0x110] sm:$0xff]  }
  0x11   : > { %1822 = vmatprep.mubr.bf16.mxu1 %v1935_v5  ;;  %v1940_v14 = vld [vmem:[%s2075_s26 + $0x18] sm:$0xff]   ;;  %v1942_v16 = vld [vmem:[%s2075_s26 + $0x20] sm:$0xff]   ;;  %v1944_v18 = vld [vmem:[%s2075_s26 + $0x28] sm:$0xff]  }
  0x12   : > { %1745 = vmatpush3.bf16.msra.mxu0 %v1927_v1  ;;  %1895 = vmatpush3.bf16.msra.mxu1 %v1927_v1  ;;  %v1941_v15 = vld [vmem:[%s2075_s26 + $0x118] sm:$0xff]   ;;  %v1943_v17 = vld [vmem:[%s2075_s26 + $0x120] sm:$0xff]   ;;  %v1945_v19 = vld [vmem:[%s2075_s26 + $0x128] sm:$0xff]  }
  0x13   : > { %1746 = vmatprep.subr.bf16.mxu0 %v1928_v2  ;;  %1888 = vmatprep.subr.bf16.mxu1 %v1928_v2  ;;  %v1946_v20 = vld [vmem:[%s2075_s26 + $0x30] sm:$0xff]   ;;  %v1948_v22 = vld [vmem:[%s2075_s26 + $0x38] sm:$0xff]   ;;  %v1950_v24 = vld [vmem:[%s2075_s26 + $0x40] sm:$0xff]  }
  0x14   : > { %v1947_v21 = vld [vmem:[%s2075_s26 + $0x130] sm:$0xff]   ;;  %v1949_v23 = vld [vmem:[%s2075_s26 + $0x138] sm:$0xff]   ;;  %v1951_v25 = vld [vmem:[%s2075_s26 + $0x140] sm:$0xff]  }
  0x15   : > { %v1952_v26 = vld [vmem:[%s2075_s26 + $0x48] sm:$0xff]   ;;  %v1954_v28 = vld [vmem:[%s2075_s26 + $0x50] sm:$0xff]   ;;  %v1956_v30 = vld [vmem:[%s2075_s26 + $0x58] sm:$0xff]  }
  0x16   : > { %1747 = vmatpush3.bf16.msra.mxu0 %v1928_v2  ;;  %1896 = vmatpush3.bf16.msra.mxu1 %v1928_v2  ;;  %v1953_v27 = vld [vmem:[%s2075_s26 + $0x148] sm:$0xff]   ;;  %v1955_v29 = vld [vmem:[%s2075_s26 + $0x150] sm:$0xff]   ;;  %v1957_v31 = vld [vmem:[%s2075_s26 + $0x158] sm:$0xff]  }
  0x17   : > { %1748 = vmatprep.subr.bf16.mxu0 %v1929_v3  ;;  %1889 = vmatprep.subr.bf16.mxu1 %v1929_v3  ;;  %v1958_v32 = vld [vmem:[%s2075_s26 + $0x60] sm:$0xff]   ;;  %v1960_v34 = vld [vmem:[%s2075_s26 + $0x68] sm:$0xff]   ;;  %v1962_v36 = vld [vmem:[%s2075_s26 + $0x70] sm:$0xff]  }
  0x18   : > { %v1959_v33 = vld [vmem:[%s2075_s26 + $0x160] sm:$0xff]   ;;  %v1961_v35 = vld [vmem:[%s2075_s26 + $0x168] sm:$0xff]   ;;  %v1963_v37 = vld [vmem:[%s2075_s26 + $0x170] sm:$0xff]  }
  0x19   : > { %v1964_v38 = vld [vmem:[%s2075_s26 + $0x78] sm:$0xff]   ;;  %v1966_v40 = vld [vmem:[%s2075_s26 + $0x80] sm:$0xff]   ;;  %v1968_v42 = vld [vmem:[%s2075_s26 + $0x88] sm:$0xff]  }
  0x1a   : > { %1749 = vmatpush3.bf16.msra.mxu0 %v1929_v3  ;;  %1897 = vmatpush3.bf16.msra.mxu1 %v1929_v3  ;;  %v1965_v39 = vld [vmem:[%s2075_s26 + $0x178] sm:$0xff]   ;;  %v1967_v41 = vld [vmem:[%s2075_s26 + $0x180] sm:$0xff]   ;;  %v1969_v43 = vld [vmem:[%s2075_s26 + $0x188] sm:$0xff]  }
  0x1b   : > { %1750 = vmatprep.subr.bf16.mxu0 %v1930_v6  ;;  %1890 = vmatprep.subr.bf16.mxu1 %v1930_v6  ;;  %v1970_v44 = vld [vmem:[%s2075_s26 + $0x90] sm:$0xff]   ;;  %v1972_v46 = vld [vmem:[%s2075_s26 + $0x98] sm:$0xff]   ;;  %v1974_v48 = vld [vmem:[%s2075_s26 + $0xa0] sm:$0xff]  }
  0x1c   : > { %v1971_v45 = vld [vmem:[%s2075_s26 + $0x190] sm:$0xff]   ;;  %v1973_v47 = vld [vmem:[%s2075_s26 + $0x198] sm:$0xff]   ;;  %v1975_v49 = vld [vmem:[%s2075_s26 + $0x1a0] sm:$0xff]  }
  0x1d   : > { %v1976_v50 = vld [vmem:[%s2075_s26 + $0xa8] sm:$0xff]   ;;  %v1978_v52 = vld [vmem:[%s2075_s26 + $0xb0] sm:$0xff]   ;;  %v1980_v54 = vld [vmem:[%s2075_s26 + $0xb8] sm:$0xff]  }
  0x1e   : > { %1751 = vmatpush3.bf16.msra.mxu0 %v1930_v6  ;;  %1898 = vmatpush3.bf16.msra.mxu1 %v1930_v6  ;;  %v1977_v51 = vld [vmem:[%s2075_s26 + $0x1a8] sm:$0xff]   ;;  %v1979_v53 = vld [vmem:[%s2075_s26 + $0x1b0] sm:$0xff]   ;;  %v1981_v55 = vld [vmem:[%s2075_s26 + $0x1b8] sm:$0xff]  }
  0x1f   : > { %1752 = vmatprep.subr.bf16.mxu0 %v1931_v7  ;;  %1891 = vmatprep.subr.bf16.mxu1 %v1931_v7  ;;  %v1982_v56 = vld [vmem:[%s2075_s26 + $0xc0] sm:$0xff]   ;;  %v1984_v58 = vld [vmem:[%s2075_s26 + $0xc8] sm:$0xff]   ;;  %v1986_v60 = vld [vmem:[%s2075_s26 + $0xd0] sm:$0xff]  }
  0x20   : > { %v1983_v57 = vld [vmem:[%s2075_s26 + $0x1c0] sm:$0xff]   ;;  %v1985_v59 = vld [vmem:[%s2075_s26 + $0x1c8] sm:$0xff]   ;;  %v1987_v61 = vld [vmem:[%s2075_s26 + $0x1d0] sm:$0xff]  }
  0x21   : > { %v1988_v62 = vld [vmem:[%s2075_s26 + $0xd8] sm:$0xff]   ;;  %v1990_v0 = vld [vmem:[%s2075_s26 + $0xe0] sm:$0xff]   ;;  %v1992_v2 = vld [vmem:[%s2075_s26 + $0xe8] sm:$0xff]  }
  0x22   : > { %1753 = vmatpush3.bf16.msra.mxu0 %v1931_v7  ;;  %1899 = vmatpush3.bf16.msra.mxu1 %v1931_v7  ;;  %v1989_v63 = vld [vmem:[%s2075_s26 + $0x1d8] sm:$0xff]   ;;  %v1991_v1 = vld [vmem:[%s2075_s26 + $0x1e0] sm:$0xff]   ;;  %v1993_v3 = vld [vmem:[%s2075_s26 + $0x1e8] sm:$0xff]  }
  0x23   : > { %1754 = vmatprep.subr.bf16.mxu0 %v1932_v8  ;;  %1892 = vmatprep.subr.bf16.mxu1 %v1932_v8  ;;  %v1994_v4 = vld [vmem:[%s2075_s26 + $0xf0] sm:$0xff]   ;;  %v1996_v6 = vld [vmem:[%s2075_s26 + $0xf8] sm:$0xff]  }
  0x24   : > { %v1995_v5 = vld [vmem:[%s2075_s26 + $0x1f0] sm:$0xff]   ;;  %v1997_v7 = vld [vmem:[%s2075_s26 + $0x1f8] sm:$0xff]  }
  0x26   : > { %1755 = vmatpush3.bf16.msra.mxu0 %v1932_v8  ;;  %1900 = vmatpush3.bf16.msra.mxu1 %v1932_v8  ;;  %v2160_v8 = vld [vmem:[%s2434_s2] ss:$0 sm:$0xff] }
  0x27   : > { %1756 = vmatprep.subr.bf16.mxu0 %v1933_v9  ;;  %1893 = vmatprep.subr.bf16.mxu1 %v1933_v9 }
  0x2a   : > { %1757 = vmatpush3.bf16.msra.mxu0 %v1933_v9  ;;  %1901 = vmatpush3.bf16.msra.mxu1 %v1933_v9 }
  0x2d   : > { %1759 = vmatmul.mubr.bf16.vlgmr.msra.gmra.mxu0 %v1936_v10  ;;  %1823 = vmatmul.mubr.bf16.vlgmr.msra.gmra.mxu1 %v1937_v11 }
  0x2e   : > { %1762 = vmatprep.mubr.bf16.mxu0 %v1938_v12  ;;  %1826 = vmatprep.mubr.bf16.mxu1 %v1939_v13 }
  0x35   : > { %1763 = vmatmul.mubr.bf16.gmra.mxu0 %v1940_v14  ;;  %1827 = vmatmul.mubr.bf16.gmra.mxu1 %v1941_v15 }
  0x36   : > { %1766 = vmatprep.mubr.bf16.mxu0 %v1942_v16  ;;  %1830 = vmatprep.mubr.bf16.mxu1 %v1943_v17 }
  0x3d   : > { %1767 = vmatmul.mubr.bf16.gmra.mxu0 %v1944_v18  ;;  %1831 = vmatmul.mubr.bf16.gmra.mxu1 %v1945_v19 }
  0x3e   : > { %1770 = vmatprep.mubr.bf16.mxu0 %v1946_v20  ;;  %1834 = vmatprep.mubr.bf16.mxu1 %v1947_v21 }
  0x45   : > { %1771 = vmatmul.mubr.bf16.gmra.mxu0 %v1948_v22  ;;  %1835 = vmatmul.mubr.bf16.gmra.mxu1 %v1949_v23 }
  0x46   : > { %1774 = vmatprep.mubr.bf16.mxu0 %v1950_v24  ;;  %1838 = vmatprep.mubr.bf16.mxu1 %v1951_v25 }
  0x4d   : > { %1775 = vmatmul.mubr.bf16.gmra.mxu0 %v1952_v26  ;;  %1839 = vmatmul.mubr.bf16.gmra.mxu1 %v1953_v27 }
  0x4e   : > { %1778 = vmatprep.mubr.bf16.mxu0 %v1954_v28  ;;  %1842 = vmatprep.mubr.bf16.mxu1 %v1955_v29 }
  0x55   : > { %1779 = vmatmul.mubr.bf16.gmra.mxu0 %v1956_v30  ;;  %1843 = vmatmul.mubr.bf16.gmra.mxu1 %v1957_v31 }
  0x56   : > { %1782 = vmatprep.mubr.bf16.mxu0 %v1958_v32  ;;  %1846 = vmatprep.mubr.bf16.mxu1 %v1959_v33 }
  0x5d   : > { %1783 = vmatmul.mubr.bf16.gmra.mxu0 %v1960_v34  ;;  %1847 = vmatmul.mubr.bf16.gmra.mxu1 %v1961_v35 }
  0x5e   : > { %1786 = vmatprep.mubr.bf16.mxu0 %v1962_v36  ;;  %1850 = vmatprep.mubr.bf16.mxu1 %v1963_v37 }
  0x65   : > { %1787 = vmatmul.mubr.bf16.gmra.mxu0 %v1964_v38  ;;  %1851 = vmatmul.mubr.bf16.gmra.mxu1 %v1965_v39 }
  0x66   : > { %1790 = vmatprep.mubr.bf16.mxu0 %v1966_v40  ;;  %1854 = vmatprep.mubr.bf16.mxu1 %v1967_v41 }
  0x6d   : > { %1791 = vmatmul.mubr.bf16.gmra.mxu0 %v1968_v42  ;;  %1855 = vmatmul.mubr.bf16.gmra.mxu1 %v1969_v43 }
  0x6e   : > { %1794 = vmatprep.mubr.bf16.mxu0 %v1970_v44  ;;  %1858 = vmatprep.mubr.bf16.mxu1 %v1971_v45 }
  0x75   : > { %1795 = vmatmul.mubr.bf16.gmra.mxu0 %v1972_v46  ;;  %1859 = vmatmul.mubr.bf16.gmra.mxu1 %v1973_v47 }
  0x76   : > { %1798 = vmatprep.mubr.bf16.mxu0 %v1974_v48  ;;  %1862 = vmatprep.mubr.bf16.mxu1 %v1975_v49 }
  0x7d   : > { %1799 = vmatmul.mubr.bf16.gmra.mxu0 %v1976_v50  ;;  %1863 = vmatmul.mubr.bf16.gmra.mxu1 %v1977_v51 }
  0x7e   : > { %1802 = vmatprep.mubr.bf16.mxu0 %v1978_v52  ;;  %1866 = vmatprep.mubr.bf16.mxu1 %v1979_v53 }
  0x85   : > { %1803 = vmatmul.mubr.bf16.gmra.mxu0 %v1980_v54  ;;  %1867 = vmatmul.mubr.bf16.gmra.mxu1 %v1981_v55 }
  0x86   : > { %1806 = vmatprep.mubr.bf16.mxu0 %v1982_v56  ;;  %1870 = vmatprep.mubr.bf16.mxu1 %v1983_v57 }
  0x8d   : > { %1807 = vmatmul.mubr.bf16.gmra.mxu0 %v1984_v58  ;;  %1871 = vmatmul.mubr.bf16.gmra.mxu1 %v1985_v59 }
  0x8e   : > { %1810 = vmatprep.mubr.bf16.mxu0 %v1986_v60  ;;  %1874 = vmatprep.mubr.bf16.mxu1 %v1987_v61 }
  0x95   : > { %1811 = vmatmul.mubr.bf16.gmra.mxu0 %v1988_v62  ;;  %1875 = vmatmul.mubr.bf16.gmra.mxu1 %v1989_v63 }
  0x96   : > { %1814 = vmatprep.mubr.bf16.mxu0 %v1990_v0  ;;  %1878 = vmatprep.mubr.bf16.mxu1 %v1991_v1 }
  0x9d   : > { %1815 = vmatmul.mubr.bf16.gmra.mxu0 %v1992_v2  ;;  %1879 = vmatmul.mubr.bf16.gmra.mxu1 %v1993_v3 }
  0x9e   : > { %1818 = vmatprep.mubr.bf16.mxu0 %v1994_v4  ;;  %1882 = vmatprep.mubr.bf16.mxu1 %v1995_v5 }
  0xa5   : > { %1819 = vmatmul.mubr.bf16.gmra.mxu0 %v1996_v6  ;;  %1883 = vmatmul.mubr.bf16.gmra.mxu1 %v1997_v7 }
  0xed   : > { %v1760_v9 = vpop.f32.mrf.mxu0  ;;  %v1824_v10 = vpop.f32.mrf.mxu1 }
  0xee   : > { %v852_v11 = vadd.f32 %v1760_v9, %v2160_v8  ;;  %v1108_v12 = vadd.f32 %v1824_v10, %v2160_v8 }
  0xef   : > { %v843_v13 = vpop.f32.mrf.mxu0  ;;  %v1099_v14 = vpop.f32.mrf.mxu1 }
  0xf0   : > { %1356 = vst [vmem:[%s2165_s19 + $0x10] sm:$0xff] %v852_v11  ;;  %1420 = vst [vmem:[%s2165_s19 + $0x210] sm:$0xff] %v1108_v12  ;;  %v844_v15 = vadd.f32 %v2160_v8, %v843_v13  ;;  %v1100_v16 = vadd.f32 %v2160_v8, %v1099_v14 }
  0xf1   : > { %v1761_v17 = vpop.f32.mrf.mxu0  ;;  %v1825_v18 = vpop.f32.mrf.mxu1 }
  0xf2   : > { %1354 = vst [vmem:[%s2165_s19] sm:$0xff] %v844_v15  ;;  %1418 = vst [vmem:[%s2165_s19 + $0x200] sm:$0xff] %v1100_v16  ;;  %v855_v19 = vadd.f32 %v1761_v17, %v2160_v8  ;;  %v1111_v20 = vadd.f32 %v1825_v18, %v2160_v8 }
  0xf3   : > { %v846_v21 = vpop.f32.mrf.mxu0  ;;  %v1102_v22 = vpop.f32.mrf.mxu1 }
  0xf4   : > { %1357 = vst [vmem:[%s2165_s19 + $0x18] sm:$0xff] %v855_v19  ;;  %1421 = vst [vmem:[%s2165_s19 + $0x218] sm:$0xff] %v1111_v20  ;;  %v847_v23 = vadd.f32 %v2160_v8, %v846_v21  ;;  %v1103_v24 = vadd.f32 %v2160_v8, %v1102_v22 }
  0xf5   : > { %v1764_v25 = vpop.f32.mrf.mxu0  ;;  %v1828_v26 = vpop.f32.mrf.mxu1 }
  0xf6   : > { %1355 = vst [vmem:[%s2165_s19 + $0x8] sm:$0xff] %v847_v23  ;;  %1419 = vst [vmem:[%s2165_s19 + $0x208] sm:$0xff] %v1103_v24  ;;  %v868_v27 = vadd.f32 %v1764_v25, %v2160_v8  ;;  %v1124_v28 = vadd.f32 %v1828_v26, %v2160_v8 }
  0xf7   : > { %v859_v29 = vpop.f32.mrf.mxu0  ;;  %v1115_v30 = vpop.f32.mrf.mxu1 }
  0xf8   : > { %1360 = vst [vmem:[%s2165_s19 + $0x30] sm:$0xff] %v868_v27  ;;  %1424 = vst [vmem:[%s2165_s19 + $0x230] sm:$0xff] %v1124_v28  ;;  %v860_v31 = vadd.f32 %v2160_v8, %v859_v29  ;;  %v1116_v32 = vadd.f32 %v2160_v8, %v1115_v30 }
  0xf9   : > { %v1765_v33 = vpop.f32.mrf.mxu0  ;;  %v1829_v34 = vpop.f32.mrf.mxu1 }
  0xfa   : > { %1358 = vst [vmem:[%s2165_s19 + $0x20] sm:$0xff] %v860_v31  ;;  %1422 = vst [vmem:[%s2165_s19 + $0x220] sm:$0xff] %v1116_v32  ;;  %v871_v35 = vadd.f32 %v1765_v33, %v2160_v8  ;;  %v1127_v36 = vadd.f32 %v1829_v34, %v2160_v8 }
  0xfb   : > { %v862_v37 = vpop.f32.mrf.mxu0  ;;  %v1118_v38 = vpop.f32.mrf.mxu1 }
  0xfc   : > { %1361 = vst [vmem:[%s2165_s19 + $0x38] sm:$0xff] %v871_v35  ;;  %1425 = vst [vmem:[%s2165_s19 + $0x238] sm:$0xff] %v1127_v36  ;;  %v863_v39 = vadd.f32 %v2160_v8, %v862_v37  ;;  %v1119_v40 = vadd.f32 %v2160_v8, %v1118_v38 }
  0xfd   : > { %v1768_v41 = vpop.f32.mrf.mxu0  ;;  %v1832_v42 = vpop.f32.mrf.mxu1 }
  0xfe   : > { %1359 = vst [vmem:[%s2165_s19 + $0x28] sm:$0xff] %v863_v39  ;;  %1423 = vst [vmem:[%s2165_s19 + $0x228] sm:$0xff] %v1119_v40  ;;  %v884_v43 = vadd.f32 %v1768_v41, %v2160_v8  ;;  %v1140_v44 = vadd.f32 %v1832_v42, %v2160_v8 }
  0xff   : > { %v875_v45 = vpop.f32.mrf.mxu0  ;;  %v1131_v46 = vpop.f32.mrf.mxu1 }
 0x100   : > { %1364 = vst [vmem:[%s2165_s19 + $0x50] sm:$0xff] %v884_v43  ;;  %1428 = vst [vmem:[%s2165_s19 + $0x250] sm:$0xff] %v1140_v44  ;;  %v876_v47 = vadd.f32 %v2160_v8, %v875_v45  ;;  %v1132_v48 = vadd.f32 %v2160_v8, %v1131_v46 }
 0x101   : > { %v1769_v49 = vpop.f32.mrf.mxu0  ;;  %v1833_v50 = vpop.f32.mrf.mxu1 }
 0x102   : > { %1362 = vst [vmem:[%s2165_s19 + $0x40] sm:$0xff] %v876_v47  ;;  %1426 = vst [vmem:[%s2165_s19 + $0x240] sm:$0xff] %v1132_v48  ;;  %v887_v51 = vadd.f32 %v1769_v49, %v2160_v8  ;;  %v1143_v52 = vadd.f32 %v1833_v50, %v2160_v8 }
 0x103   : > { %v878_v53 = vpop.f32.mrf.mxu0  ;;  %v1134_v54 = vpop.f32.mrf.mxu1 }
 0x104   : > { %1365 = vst [vmem:[%s2165_s19 + $0x58] sm:$0xff] %v887_v51  ;;  %1429 = vst [vmem:[%s2165_s19 + $0x258] sm:$0xff] %v1143_v52  ;;  %v879_v55 = vadd.f32 %v2160_v8, %v878_v53  ;;  %v1135_v56 = vadd.f32 %v2160_v8, %v1134_v54 }
 0x105   : > { %v1772_v57 = vpop.f32.mrf.mxu0  ;;  %v1836_v58 = vpop.f32.mrf.mxu1 }
 0x106   : > { %1363 = vst [vmem:[%s2165_s19 + $0x48] sm:$0xff] %v879_v55  ;;  %1427 = vst [vmem:[%s2165_s19 + $0x248] sm:$0xff] %v1135_v56  ;;  %v900_v59 = vadd.f32 %v1772_v57, %v2160_v8  ;;  %v1156_v60 = vadd.f32 %v1836_v58, %v2160_v8 }
 0x107   : > { %v891_v61 = vpop.f32.mrf.mxu0  ;;  %v1147_v62 = vpop.f32.mrf.mxu1 }
 0x108   : > { %1368 = vst [vmem:[%s2165_s19 + $0x70] sm:$0xff] %v900_v59  ;;  %1432 = vst [vmem:[%s2165_s19 + $0x270] sm:$0xff] %v1156_v60  ;;  %v892_v63 = vadd.f32 %v2160_v8, %v891_v61  ;;  %v1148_v0 = vadd.f32 %v2160_v8, %v1147_v62 }
 0x109   : > { %v1773_v1 = vpop.f32.mrf.mxu0  ;;  %v1837_v2 = vpop.f32.mrf.mxu1 }
 0x10a   : > { %1366 = vst [vmem:[%s2165_s19 + $0x60] sm:$0xff] %v892_v63  ;;  %1430 = vst [vmem:[%s2165_s19 + $0x260] sm:$0xff] %v1148_v0  ;;  %v903_v3 = vadd.f32 %v1773_v1, %v2160_v8  ;;  %v1159_v4 = vadd.f32 %v1837_v2, %v2160_v8 }
 0x10b   : > { %v894_v5 = vpop.f32.mrf.mxu0  ;;  %v1150_v6 = vpop.f32.mrf.mxu1 }
 0x10c   : > { %1369 = vst [vmem:[%s2165_s19 + $0x78] sm:$0xff] %v903_v3  ;;  %1433 = vst [vmem:[%s2165_s19 + $0x278] sm:$0xff] %v1159_v4  ;;  %v895_v7 = vadd.f32 %v2160_v8, %v894_v5  ;;  %v1151_v9 = vadd.f32 %v2160_v8, %v1150_v6 }
 0x10d   : > { %v1776_v10 = vpop.f32.mrf.mxu0  ;;  %v1840_v11 = vpop.f32.mrf.mxu1 }
 0x10e   : > { %1367 = vst [vmem:[%s2165_s19 + $0x68] sm:$0xff] %v895_v7  ;;  %1431 = vst [vmem:[%s2165_s19 + $0x268] sm:$0xff] %v1151_v9  ;;  %v916_v12 = vadd.f32 %v1776_v10, %v2160_v8  ;;  %v1172_v13 = vadd.f32 %v1840_v11, %v2160_v8 }
 0x10f   : > { %v907_v14 = vpop.f32.mrf.mxu0  ;;  %v1163_v15 = vpop.f32.mrf.mxu1 }
 0x110   : > { %1372 = vst [vmem:[%s2165_s19 + $0x90] sm:$0xff] %v916_v12  ;;  %1436 = vst [vmem:[%s2165_s19 + $0x290] sm:$0xff] %v1172_v13  ;;  %v908_v16 = vadd.f32 %v2160_v8, %v907_v14  ;;  %v1164_v17 = vadd.f32 %v2160_v8, %v1163_v15 }
 0x111   : > { %v1777_v18 = vpop.f32.mrf.mxu0  ;;  %v1841_v19 = vpop.f32.mrf.mxu1 }
 0x112   : > { %1370 = vst [vmem:[%s2165_s19 + $0x80] sm:$0xff] %v908_v16  ;;  %1434 = vst [vmem:[%s2165_s19 + $0x280] sm:$0xff] %v1164_v17  ;;  %v919_v20 = vadd.f32 %v1777_v18, %v2160_v8  ;;  %v1175_v21 = vadd.f32 %v1841_v19, %v2160_v8 }
 0x113   : > { %v910_v22 = vpop.f32.mrf.mxu0  ;;  %v1166_v23 = vpop.f32.mrf.mxu1 }
 0x114   : > { %1373 = vst [vmem:[%s2165_s19 + $0x98] sm:$0xff] %v919_v20  ;;  %1437 = vst [vmem:[%s2165_s19 + $0x298] sm:$0xff] %v1175_v21  ;;  %v911_v24 = vadd.f32 %v2160_v8, %v910_v22  ;;  %v1167_v25 = vadd.f32 %v2160_v8, %v1166_v23 }
 0x115   : > { %v1780_v26 = vpop.f32.mrf.mxu0  ;;  %v1844_v27 = vpop.f32.mrf.mxu1 }
 0x116   : > { %1371 = vst [vmem:[%s2165_s19 + $0x88] sm:$0xff] %v911_v24  ;;  %1435 = vst [vmem:[%s2165_s19 + $0x288] sm:$0xff] %v1167_v25  ;;  %v932_v28 = vadd.f32 %v1780_v26, %v2160_v8  ;;  %v1188_v29 = vadd.f32 %v1844_v27, %v2160_v8 }
 0x117   : > { %v923_v30 = vpop.f32.mrf.mxu0  ;;  %v1179_v31 = vpop.f32.mrf.mxu1 }
 0x118   : > { %1376 = vst [vmem:[%s2165_s19 + $0xb0] sm:$0xff] %v932_v28  ;;  %1440 = vst [vmem:[%s2165_s19 + $0x2b0] sm:$0xff] %v1188_v29  ;;  %v924_v32 = vadd.f32 %v2160_v8, %v923_v30  ;;  %v1180_v33 = vadd.f32 %v2160_v8, %v1179_v31 }
 0x119   : > { %v1781_v34 = vpop.f32.mrf.mxu0  ;;  %v1845_v35 = vpop.f32.mrf.mxu1 }
 0x11a   : > { %1374 = vst [vmem:[%s2165_s19 + $0xa0] sm:$0xff] %v924_v32  ;;  %1438 = vst [vmem:[%s2165_s19 + $0x2a0] sm:$0xff] %v1180_v33  ;;  %v935_v36 = vadd.f32 %v1781_v34, %v2160_v8  ;;  %v1191_v37 = vadd.f32 %v1845_v35, %v2160_v8 }
 0x11b   : > { %v926_v38 = vpop.f32.mrf.mxu0  ;;  %v1182_v39 = vpop.f32.mrf.mxu1 }
 0x11c   : > { %1377 = vst [vmem:[%s2165_s19 + $0xb8] sm:$0xff] %v935_v36  ;;  %1441 = vst [vmem:[%s2165_s19 + $0x2b8] sm:$0xff] %v1191_v37  ;;  %v927_v40 = vadd.f32 %v2160_v8, %v926_v38  ;;  %v1183_v41 = vadd.f32 %v2160_v8, %v1182_v39 }
 0x11d   : > { %v1784_v42 = vpop.f32.mrf.mxu0  ;;  %v1848_v43 = vpop.f32.mrf.mxu1 }
 0x11e   : > { %1375 = vst [vmem:[%s2165_s19 + $0xa8] sm:$0xff] %v927_v40  ;;  %1439 = vst [vmem:[%s2165_s19 + $0x2a8] sm:$0xff] %v1183_v41  ;;  %v948_v44 = vadd.f32 %v1784_v42, %v2160_v8  ;;  %v1204_v45 = vadd.f32 %v1848_v43, %v2160_v8 }
 0x11f   : > { %v939_v46 = vpop.f32.mrf.mxu0  ;;  %v1195_v47 = vpop.f32.mrf.mxu1 }
 0x120   : > { %1380 = vst [vmem:[%s2165_s19 + $0xd0] sm:$0xff] %v948_v44  ;;  %1444 = vst [vmem:[%s2165_s19 + $0x2d0] sm:$0xff] %v1204_v45  ;;  %v940_v48 = vadd.f32 %v2160_v8, %v939_v46  ;;  %v1196_v49 = vadd.f32 %v2160_v8, %v1195_v47 }
 0x121   : > { %v1785_v50 = vpop.f32.mrf.mxu0  ;;  %v1849_v51 = vpop.f32.mrf.mxu1 }
 0x122   : > { %1378 = vst [vmem:[%s2165_s19 + $0xc0] sm:$0xff] %v940_v48  ;;  %1442 = vst [vmem:[%s2165_s19 + $0x2c0] sm:$0xff] %v1196_v49  ;;  %v951_v52 = vadd.f32 %v1785_v50, %v2160_v8  ;;  %v1207_v53 = vadd.f32 %v1849_v51, %v2160_v8 }
 0x123   : > { %v942_v54 = vpop.f32.mrf.mxu0  ;;  %v1198_v55 = vpop.f32.mrf.mxu1 }
 0x124   : > { %1381 = vst [vmem:[%s2165_s19 + $0xd8] sm:$0xff] %v951_v52  ;;  %1445 = vst [vmem:[%s2165_s19 + $0x2d8] sm:$0xff] %v1207_v53  ;;  %v943_v56 = vadd.f32 %v2160_v8, %v942_v54  ;;  %v1199_v57 = vadd.f32 %v2160_v8, %v1198_v55 }
 0x125   : > { %v1788_v58 = vpop.f32.mrf.mxu0  ;;  %v1852_v59 = vpop.f32.mrf.mxu1 }
 0x126   : > { %1379 = vst [vmem:[%s2165_s19 + $0xc8] sm:$0xff] %v943_v56  ;;  %1443 = vst [vmem:[%s2165_s19 + $0x2c8] sm:$0xff] %v1199_v57  ;;  %v964_v60 = vadd.f32 %v1788_v58, %v2160_v8  ;;  %v1220_v61 = vadd.f32 %v1852_v59, %v2160_v8 }
 0x127   : > { %v955_v62 = vpop.f32.mrf.mxu0  ;;  %v1211_v63 = vpop.f32.mrf.mxu1 }
 0x128   : > { %1384 = vst [vmem:[%s2165_s19 + $0xf0] sm:$0xff] %v964_v60  ;;  %1448 = vst [vmem:[%s2165_s19 + $0x2f0] sm:$0xff] %v1220_v61  ;;  %v956_v0 = vadd.f32 %v2160_v8, %v955_v62  ;;  %v1212_v1 = vadd.f32 %v2160_v8, %v1211_v63 }
 0x129   : > { %v1789_v2 = vpop.f32.mrf.mxu0  ;;  %v1853_v3 = vpop.f32.mrf.mxu1 }
 0x12a   : > { %1382 = vst [vmem:[%s2165_s19 + $0xe0] sm:$0xff] %v956_v0  ;;  %1446 = vst [vmem:[%s2165_s19 + $0x2e0] sm:$0xff] %v1212_v1  ;;  %v967_v4 = vadd.f32 %v1789_v2, %v2160_v8  ;;  %v1223_v5 = vadd.f32 %v1853_v3, %v2160_v8 }
 0x12b   : > { %v958_v6 = vpop.f32.mrf.mxu0  ;;  %v1214_v7 = vpop.f32.mrf.mxu1 }
 0x12c   : > { %1385 = vst [vmem:[%s2165_s19 + $0xf8] sm:$0xff] %v967_v4  ;;  %1449 = vst [vmem:[%s2165_s19 + $0x2f8] sm:$0xff] %v1223_v5  ;;  %v959_v9 = vadd.f32 %v2160_v8, %v958_v6  ;;  %v1215_v10 = vadd.f32 %v2160_v8, %v1214_v7 }
 0x12d   : > { %v1792_v11 = vpop.f32.mrf.mxu0  ;;  %v1856_v12 = vpop.f32.mrf.mxu1 }
 0x12e   : > { %1383 = vst [vmem:[%s2165_s19 + $0xe8] sm:$0xff] %v959_v9  ;;  %1447 = vst [vmem:[%s2165_s19 + $0x2e8] sm:$0xff] %v1215_v10  ;;  %v980_v13 = vadd.f32 %v1792_v11, %v2160_v8  ;;  %v1236_v14 = vadd.f32 %v1856_v12, %v2160_v8 }
 0x12f   : > { %v971_v15 = vpop.f32.mrf.mxu0  ;;  %v1227_v16 = vpop.f32.mrf.mxu1 }
 0x130   : > { %1388 = vst [vmem:[%s2165_s19 + $0x110] sm:$0xff] %v980_v13  ;;  %1452 = vst [vmem:[%s2165_s19 + $0x310] sm:$0xff] %v1236_v14  ;;  %v972_v17 = vadd.f32 %v2160_v8, %v971_v15  ;;  %v1228_v18 = vadd.f32 %v2160_v8, %v1227_v16 }
 0x131   : > { %v1793_v19 = vpop.f32.mrf.mxu0  ;;  %v1857_v20 = vpop.f32.mrf.mxu1 }
 0x132   : > { %1386 = vst [vmem:[%s2165_s19 + $0x100] sm:$0xff] %v972_v17  ;;  %1450 = vst [vmem:[%s2165_s19 + $0x300] sm:$0xff] %v1228_v18  ;;  %v983_v21 = vadd.f32 %v1793_v19, %v2160_v8  ;;  %v1239_v22 = vadd.f32 %v1857_v20, %v2160_v8 }
 0x133   : > { %v974_v23 = vpop.f32.mrf.mxu0  ;;  %v1230_v24 = vpop.f32.mrf.mxu1 }
 0x134   : > { %1389 = vst [vmem:[%s2165_s19 + $0x118] sm:$0xff] %v983_v21  ;;  %1453 = vst [vmem:[%s2165_s19 + $0x318] sm:$0xff] %v1239_v22  ;;  %v975_v25 = vadd.f32 %v2160_v8, %v974_v23  ;;  %v1231_v26 = vadd.f32 %v2160_v8, %v1230_v24 }
 0x135   : > { %v1796_v27 = vpop.f32.mrf.mxu0  ;;  %v1860_v28 = vpop.f32.mrf.mxu1 }
 0x136   : > { %1387 = vst [vmem:[%s2165_s19 + $0x108] sm:$0xff] %v975_v25  ;;  %1451 = vst [vmem:[%s2165_s19 + $0x308] sm:$0xff] %v1231_v26  ;;  %v996_v29 = vadd.f32 %v1796_v27, %v2160_v8  ;;  %v1252_v30 = vadd.f32 %v1860_v28, %v2160_v8 }
 0x137   : > { %v987_v31 = vpop.f32.mrf.mxu0  ;;  %v1243_v32 = vpop.f32.mrf.mxu1 }
 0x138   : > { %1392 = vst [vmem:[%s2165_s19 + $0x130] sm:$0xff] %v996_v29  ;;  %1456 = vst [vmem:[%s2165_s19 + $0x330] sm:$0xff] %v1252_v30  ;;  %v988_v33 = vadd.f32 %v2160_v8, %v987_v31  ;;  %v1244_v34 = vadd.f32 %v2160_v8, %v1243_v32 }
 0x139   : > { %v1797_v35 = vpop.f32.mrf.mxu0  ;;  %v1861_v36 = vpop.f32.mrf.mxu1 }
 0x13a   : > { %1390 = vst [vmem:[%s2165_s19 + $0x120] sm:$0xff] %v988_v33  ;;  %1454 = vst [vmem:[%s2165_s19 + $0x320] sm:$0xff] %v1244_v34  ;;  %v999_v37 = vadd.f32 %v1797_v35, %v2160_v8  ;;  %v1255_v38 = vadd.f32 %v1861_v36, %v2160_v8 }
 0x13b   : > { %v990_v39 = vpop.f32.mrf.mxu0  ;;  %v1246_v40 = vpop.f32.mrf.mxu1 }
 0x13c   : > { %1393 = vst [vmem:[%s2165_s19 + $0x138] sm:$0xff] %v999_v37  ;;  %1457 = vst [vmem:[%s2165_s19 + $0x338] sm:$0xff] %v1255_v38  ;;  %v991_v41 = vadd.f32 %v2160_v8, %v990_v39  ;;  %v1247_v42 = vadd.f32 %v2160_v8, %v1246_v40 }
 0x13d   : > { %v1800_v43 = vpop.f32.mrf.mxu0  ;;  %v1864_v44 = vpop.f32.mrf.mxu1 }
 0x13e   : > { %1391 = vst [vmem:[%s2165_s19 + $0x128] sm:$0xff] %v991_v41  ;;  %1455 = vst [vmem:[%s2165_s19 + $0x328] sm:$0xff] %v1247_v42  ;;  %v1012_v45 = vadd.f32 %v1800_v43, %v2160_v8  ;;  %v1268_v46 = vadd.f32 %v1864_v44, %v2160_v8 }
 0x13f   : > { %v1003_v47 = vpop.f32.mrf.mxu0  ;;  %v1259_v48 = vpop.f32.mrf.mxu1 }
 0x140   : > { %1396 = vst [vmem:[%s2165_s19 + $0x150] sm:$0xff] %v1012_v45  ;;  %1460 = vst [vmem:[%s2165_s19 + $0x350] sm:$0xff] %v1268_v46  ;;  %v1004_v49 = vadd.f32 %v2160_v8, %v1003_v47  ;;  %v1260_v50 = vadd.f32 %v2160_v8, %v1259_v48 }
 0x141   : > { %v1801_v51 = vpop.f32.mrf.mxu0  ;;  %v1865_v52 = vpop.f32.mrf.mxu1 }
 0x142   : > { %1394 = vst [vmem:[%s2165_s19 + $0x140] sm:$0xff] %v1004_v49  ;;  %1458 = vst [vmem:[%s2165_s19 + $0x340] sm:$0xff] %v1260_v50  ;;  %v1015_v53 = vadd.f32 %v1801_v51, %v2160_v8  ;;  %v1271_v54 = vadd.f32 %v1865_v52, %v2160_v8 }
 0x143   : > { %v1006_v55 = vpop.f32.mrf.mxu0  ;;  %v1262_v56 = vpop.f32.mrf.mxu1 }
 0x144   : > { %1397 = vst [vmem:[%s2165_s19 + $0x158] sm:$0xff] %v1015_v53  ;;  %1461 = vst [vmem:[%s2165_s19 + $0x358] sm:$0xff] %v1271_v54  ;;  %v1007_v57 = vadd.f32 %v2160_v8, %v1006_v55  ;;  %v1263_v58 = vadd.f32 %v2160_v8, %v1262_v56 }
 0x145   : > { %v1804_v59 = vpop.f32.mrf.mxu0  ;;  %v1868_v60 = vpop.f32.mrf.mxu1 }
 0x146   : > { %1395 = vst [vmem:[%s2165_s19 + $0x148] sm:$0xff] %v1007_v57  ;;  %1459 = vst [vmem:[%s2165_s19 + $0x348] sm:$0xff] %v1263_v58  ;;  %v1028_v61 = vadd.f32 %v1804_v59, %v2160_v8  ;;  %v1284_v62 = vadd.f32 %v1868_v60, %v2160_v8 }
 0x147   : > { %v1019_v63 = vpop.f32.mrf.mxu0  ;;  %v1275_v0 = vpop.f32.mrf.mxu1 }
 0x148   : > { %1400 = vst [vmem:[%s2165_s19 + $0x170] sm:$0xff] %v1028_v61  ;;  %1464 = vst [vmem:[%s2165_s19 + $0x370] sm:$0xff] %v1284_v62  ;;  %v1020_v1 = vadd.f32 %v2160_v8, %v1019_v63  ;;  %v1276_v2 = vadd.f32 %v2160_v8, %v1275_v0 }
 0x149   : > { %v1805_v3 = vpop.f32.mrf.mxu0  ;;  %v1869_v4 = vpop.f32.mrf.mxu1 }
 0x14a   : > { %1398 = vst [vmem:[%s2165_s19 + $0x160] sm:$0xff] %v1020_v1  ;;  %1462 = vst [vmem:[%s2165_s19 + $0x360] sm:$0xff] %v1276_v2  ;;  %v1031_v5 = vadd.f32 %v1805_v3, %v2160_v8  ;;  %v1287_v6 = vadd.f32 %v1869_v4, %v2160_v8 }
 0x14b   : > { %v1022_v7 = vpop.f32.mrf.mxu0  ;;  %v1278_v9 = vpop.f32.mrf.mxu1 }
 0x14c   : > { %1401 = vst [vmem:[%s2165_s19 + $0x178] sm:$0xff] %v1031_v5  ;;  %1465 = vst [vmem:[%s2165_s19 + $0x378] sm:$0xff] %v1287_v6  ;;  %v1023_v10 = vadd.f32 %v2160_v8, %v1022_v7  ;;  %v1279_v11 = vadd.f32 %v2160_v8, %v1278_v9 }
 0x14d   : > { %v1808_v12 = vpop.f32.mrf.mxu0  ;;  %v1872_v13 = vpop.f32.mrf.mxu1 }
 0x14e   : > { %1399 = vst [vmem:[%s2165_s19 + $0x168] sm:$0xff] %v1023_v10  ;;  %1463 = vst [vmem:[%s2165_s19 + $0x368] sm:$0xff] %v1279_v11  ;;  %v1044_v14 = vadd.f32 %v1808_v12, %v2160_v8  ;;  %v1300_v15 = vadd.f32 %v1872_v13, %v2160_v8 }
 0x14f   : > { %v1035_v16 = vpop.f32.mrf.mxu0  ;;  %v1291_v17 = vpop.f32.mrf.mxu1 }
 0x150   : > { %1404 = vst [vmem:[%s2165_s19 + $0x190] sm:$0xff] %v1044_v14  ;;  %1468 = vst [vmem:[%s2165_s19 + $0x390] sm:$0xff] %v1300_v15  ;;  %v1036_v18 = vadd.f32 %v2160_v8, %v1035_v16  ;;  %v1292_v19 = vadd.f32 %v2160_v8, %v1291_v17 }
 0x151   : > { %v1809_v20 = vpop.f32.mrf.mxu0  ;;  %v1873_v21 = vpop.f32.mrf.mxu1 }
 0x152   : > { %1402 = vst [vmem:[%s2165_s19 + $0x180] sm:$0xff] %v1036_v18  ;;  %1466 = vst [vmem:[%s2165_s19 + $0x380] sm:$0xff] %v1292_v19  ;;  %v1047_v22 = vadd.f32 %v1809_v20, %v2160_v8  ;;  %v1303_v23 = vadd.f32 %v1873_v21, %v2160_v8 }
 0x153   : > { %v1038_v24 = vpop.f32.mrf.mxu0  ;;  %v1294_v25 = vpop.f32.mrf.mxu1 }
 0x154   : > { %1405 = vst [vmem:[%s2165_s19 + $0x198] sm:$0xff] %v1047_v22  ;;  %1469 = vst [vmem:[%s2165_s19 + $0x398] sm:$0xff] %v1303_v23  ;;  %v1039_v26 = vadd.f32 %v2160_v8, %v1038_v24  ;;  %v1295_v27 = vadd.f32 %v2160_v8, %v1294_v25 }
 0x155   : > { %v1812_v28 = vpop.f32.mrf.mxu0  ;;  %v1876_v29 = vpop.f32.mrf.mxu1 }
 0x156   : > { %1403 = vst [vmem:[%s2165_s19 + $0x188] sm:$0xff] %v1039_v26  ;;  %1467 = vst [vmem:[%s2165_s19 + $0x388] sm:$0xff] %v1295_v27  ;;  %v1060_v30 = vadd.f32 %v1812_v28, %v2160_v8  ;;  %v1316_v31 = vadd.f32 %v1876_v29, %v2160_v8 }
 0x157   : > { %v1051_v32 = vpop.f32.mrf.mxu0  ;;  %v1307_v33 = vpop.f32.mrf.mxu1 }
 0x158   : > { %1408 = vst [vmem:[%s2165_s19 + $0x1b0] sm:$0xff] %v1060_v30  ;;  %1472 = vst [vmem:[%s2165_s19 + $0x3b0] sm:$0xff] %v1316_v31  ;;  %v1052_v34 = vadd.f32 %v2160_v8, %v1051_v32  ;;  %v1308_v35 = vadd.f32 %v2160_v8, %v1307_v33 }
 0x159   : > { %v1813_v36 = vpop.f32.mrf.mxu0  ;;  %v1877_v37 = vpop.f32.mrf.mxu1 }
 0x15a   : > { %1406 = vst [vmem:[%s2165_s19 + $0x1a0] sm:$0xff] %v1052_v34  ;;  %1470 = vst [vmem:[%s2165_s19 + $0x3a0] sm:$0xff] %v1308_v35  ;;  %v1063_v38 = vadd.f32 %v1813_v36, %v2160_v8  ;;  %v1319_v39 = vadd.f32 %v1877_v37, %v2160_v8 }
 0x15b   : > { %v1054_v40 = vpop.f32.mrf.mxu0  ;;  %v1310_v41 = vpop.f32.mrf.mxu1 }
 0x15c   : > { %1409 = vst [vmem:[%s2165_s19 + $0x1b8] sm:$0xff] %v1063_v38  ;;  %1473 = vst [vmem:[%s2165_s19 + $0x3b8] sm:$0xff] %v1319_v39  ;;  %v1055_v42 = vadd.f32 %v2160_v8, %v1054_v40  ;;  %v1311_v43 = vadd.f32 %v2160_v8, %v1310_v41 }
 0x15d   : > { %v1816_v44 = vpop.f32.mrf.mxu0  ;;  %v1880_v45 = vpop.f32.mrf.mxu1 }
 0x15e   : > { %1407 = vst [vmem:[%s2165_s19 + $0x1a8] sm:$0xff] %v1055_v42  ;;  %1471 = vst [vmem:[%s2165_s19 + $0x3a8] sm:$0xff] %v1311_v43  ;;  %v1076_v46 = vadd.f32 %v1816_v44, %v2160_v8  ;;  %v1332_v47 = vadd.f32 %v1880_v45, %v2160_v8 }
 0x15f   : > { %v1067_v48 = vpop.f32.mrf.mxu0  ;;  %v1323_v49 = vpop.f32.mrf.mxu1 }
 0x160   : > { %1412 = vst [vmem:[%s2165_s19 + $0x1d0] sm:$0xff] %v1076_v46  ;;  %1476 = vst [vmem:[%s2165_s19 + $0x3d0] sm:$0xff] %v1332_v47  ;;  %v1068_v50 = vadd.f32 %v2160_v8, %v1067_v48  ;;  %v1324_v51 = vadd.f32 %v2160_v8, %v1323_v49 }
 0x161   : > { %v1817_v52 = vpop.f32.mrf.mxu0  ;;  %v1881_v53 = vpop.f32.mrf.mxu1 }
 0x162   : > { %1410 = vst [vmem:[%s2165_s19 + $0x1c0] sm:$0xff] %v1068_v50  ;;  %1474 = vst [vmem:[%s2165_s19 + $0x3c0] sm:$0xff] %v1324_v51  ;;  %v1079_v54 = vadd.f32 %v1817_v52, %v2160_v8  ;;  %v1335_v55 = vadd.f32 %v1881_v53, %v2160_v8 }
 0x163   : > { %v1070_v56 = vpop.f32.mrf.mxu0  ;;  %v1326_v57 = vpop.f32.mrf.mxu1 }
 0x164   : > { %1413 = vst [vmem:[%s2165_s19 + $0x1d8] sm:$0xff] %v1079_v54  ;;  %1477 = vst [vmem:[%s2165_s19 + $0x3d8] sm:$0xff] %v1335_v55  ;;  %v1071_v58 = vadd.f32 %v2160_v8, %v1070_v56  ;;  %v1327_v59 = vadd.f32 %v2160_v8, %v1326_v57 }
 0x165   : > { %v1820_v60 = vpop.f32.mrf.mxu0  ;;  %v1884_v61 = vpop.f32.mrf.mxu1 }
 0x166   : > { %1411 = vst [vmem:[%s2165_s19 + $0x1c8] sm:$0xff] %v1071_v58  ;;  %1475 = vst [vmem:[%s2165_s19 + $0x3c8] sm:$0xff] %v1327_v59  ;;  %v1092_v62 = vadd.f32 %v1820_v60, %v2160_v8  ;;  %v1348_v63 = vadd.f32 %v1884_v61, %v2160_v8 }
 0x167   : > { %v1083_v0 = vpop.f32.mrf.mxu0  ;;  %v1339_v1 = vpop.f32.mrf.mxu1 }
 0x168   : > { %1416 = vst [vmem:[%s2165_s19 + $0x1f0] sm:$0xff] %v1092_v62  ;;  %1480 = vst [vmem:[%s2165_s19 + $0x3f0] sm:$0xff] %v1348_v63  ;;  %v1084_v2 = vadd.f32 %v2160_v8, %v1083_v0  ;;  %v1340_v3 = vadd.f32 %v2160_v8, %v1339_v1 }
 0x169   : > { %v1821_v4 = vpop.f32.mrf.mxu0  ;;  %v1885_v5 = vpop.f32.mrf.mxu1 }
 0x16a   : > { %1414 = vst [vmem:[%s2165_s19 + $0x1e0] sm:$0xff] %v1084_v2  ;;  %1478 = vst [vmem:[%s2165_s19 + $0x3e0] sm:$0xff] %v1340_v3  ;;  %v1095_v6 = vadd.f32 %v1821_v4, %v2160_v8  ;;  %v1351_v7 = vadd.f32 %v1885_v5, %v2160_v8 }
 0x16b   : > { %v1086_v9 = vpop.f32.mrf.mxu0  ;;  %v1342_v10 = vpop.f32.mrf.mxu1 }
 0x16c   : > { %1417 = vst [vmem:[%s2165_s19 + $0x1f8] sm:$0xff] %v1095_v6  ;;  %1481 = vst [vmem:[%s2165_s19 + $0x3f8] sm:$0xff] %v1351_v7  ;;  %v1087_v11 = vadd.f32 %v2160_v8, %v1086_v9  ;;  %v1343_v12 = vadd.f32 %v2160_v8, %v1342_v10 }
 0x16e   : > { %1415 = vst [vmem:[%s2165_s19 + $0x1e8] sm:$0xff] %v1087_v11  ;;  %1479 = vst [vmem:[%s2165_s19 + $0x3e8] sm:$0xff] %v1343_v12 }
 0x16f PF: > { %s13_s14 = sadd.s32 1, %s2020_s14   ;;  %s2436_s12 = smov %s2016_s13 }
 0x170   : > { %p10_p5 = scmp.ge.s32.totalorder %s13_s14, 4   ;;  %s2437_s13 = smov %s2439_s15 }
 0x172   :  { %12 = sbr.rel (!%p10_p5) target bundleno = 2 (0x2), region = 68 }

</bundles_post_ra>
